<compile_context>
chip_gen: v5e
topology: v5e:2x2
jax: 0.10.0
libtpu: 0.0.40
codegen_flags: <defaults>
</compile_context>

<pallas_src>
import functools
from typing import NamedTuple

import numpy as np

import jax
import jax.numpy as jnp
from jax.experimental import pallas as pl
from jax.experimental.pallas import tpu as pltpu


# MXU-operand dtype (weights, pool matrices, tap slabs).  Accumulation, ReLU
# and the returned activations stay float32.
COMPUTE_DTYPE = jnp.bfloat16

# Lane guard on each side of the conv-input scratch so every (ky, kx) tap is a
# plain static lane-offset slice (no wraparound masks).  Guard reads only feed
# ring outputs that are dropped later; guards are zeroed so they stay finite.
_GUARD = 128


class _LayerCfg(NamedTuple):
    c_in: int
    c_out: int
    hp: int      # conv spatial height (after this layer's AvgPool2d(2))
    wp: int      # conv spatial width
    hpad: int    # hp + 2*(K//2): zero-ringed grid carried inside the kernel
    wpad: int    # wp + 2*(K//2)


def _pool_matrix(h_in, w_in, in_pad, out_pad):
    """AvgPool2d(2) as a matmul acting on row-major-flattened grids.

    Input grid is (h_in + 2*in_pad, w_in + 2*in_pad); only its interior
    (h_in, w_in) block holds valid data (the ring rows get zero coefficients,
    so finite garbage there is harmless).  Output grid is
    (h_in//2 + 2*out_pad, w_in//2 + 2*out_pad); the pooled values land in the
    interior and the out_pad ring is exactly zero, so the result can feed a
    'same'-padded conv with no masking.
    """
    h_out, w_out = h_in // 2, w_in // 2
    hpi, wpi = h_in + 2 * in_pad, w_in + 2 * in_pad
    hpo, wpo = h_out + 2 * out_pad, w_out + 2 * out_pad
    mat = np.zeros((hpi * wpi, hpo * wpo), np.float32)
    for yq in range(h_out):
        for xq in range(w_out):
            col = (yq + out_pad) * wpo + (xq + out_pad)
            for dy in (0, 1):
                for dx in (0, 1):
                    row = (2 * yq + dy + in_pad) * wpi + (2 * xq + dx + in_pad)
                    mat[row, col] = 0.25
    return mat


def _fused_channel_kernel(*refs, layers, kernel_size, batch_block, guard,
                          compute_dtype):
    """Fused SpatioTemporalChannel forward for one block of `batch_block` samples.

    refs = (x,
            W2_0, pool_1, W2_1, ..., pool_{L-1}, W2_{L-1}, pool_out_blockdiag,
            act_out, pooled_out,
            ext_0..ext_{L-1}, col_0..col_{L-1}, (pin_1, pout_1), ...)
    """
    num_layers = len(layers)
    k = kernel_size
    pad = k // 2
    bb = batch_block

    # ---- unpack refs -------------------------------------------------------
    idx = 0
    x_ref = refs[idx]; idx += 1
    w_refs = [refs[idx]]; idx += 1
    pool_refs = [None]
    for _ in range(1, num_layers):
        pool_refs.append(refs[idx]); idx += 1
        w_refs.append(refs[idx]); idx += 1
    pool_out_ref = refs[idx]; idx += 1
    act_ref = refs[idx]; idx += 1
    out_ref = refs[idx]; idx += 1
    ext_refs = refs[idx: idx + num_layers]; idx += num_layers
    col_refs = refs[idx: idx + num_layers]; idx += num_layers
    pin_refs, pout_refs = [None], [None]
    for _ in range(1, num_layers):
        pin_refs.append(refs[idx]); idx += 1
        pout_refs.append(refs[idx]); idx += 1

    h = None  # f32 conv+ReLU output of previous layer, (c_out_prev, bb*npad_prev)
    for li, lay in enumerate(layers):
        npad = lay.hpad * lay.wpad
        width = bb * npad
        ext = ext_refs[li]            # (c_in, guard + bb*npad + guard)
        col = col_refs[li]            # (k*k*c_in, bb*npad)

        # Zero ONLY the two guard bands, every step (cheap: 2*guard lanes).
        # Not under pl.when(program_id==0): with ("parallel",) semantics the
        # second TensorCore never executes program_id 0 and its scratch would
        # stay uninitialized (possible NaNs -> NaN*0 in the pool matmul).
        zg = jnp.zeros((lay.c_in, guard), compute_dtype)
        ext[:, pl.ds(0, guard)] = zg
        ext[:, pl.ds(guard + width, guard)] = zg

        if li == 0:
            # Layer-0 pool was done in the XLA wrapper; just lane-stack the
            # batch onto the guarded conv-input scratch.
            for b in range(bb):
                ext[:, pl.ds(guard + b * npad, npad)] = x_ref[b]
        else:
            prev = layers[li - 1]
            npad_prev = prev.hpad * prev.wpad
            pin, pout = pin_refs[li], pout_refs[li]
            # lanes(batch) -> sublanes(batch) for the batched pool matmul.
            for b in range(bb):
                pin[pl.ds(b * prev.c_out, prev.c_out), :] = (
                    h[:, b * npad_prev:(b + 1) * npad_prev]
                    .astype(compute_dtype))
            # AvgPool2d(2) + zero-ring as ONE (bb*C, npad_prev)@(npad_prev, npad)
            # MXU dot with f32 accumulation.
            pout[...] = jnp.dot(pin[...], pool_refs[li][...],
                                preferred_element_type=jnp.float32
                                ).astype(compute_dtype)
            # sublanes(batch) -> lanes(batch) onto the guarded conv-input slab.
            for b in range(bb):
                ext[:, pl.ds(guard + b * npad, npad)] = (
                    pout[pl.ds(b * lay.c_in, lay.c_in), :])

        # In-VMEM im2col: K*K shifted lane-slices stacked on sublanes.
        # Row order is (tap, c_in) to match the build-time weight reshape.
        for ky in range(k):
            for kx in range(k):
                t = ky * k + kx
                shift = (ky - pad) * lay.wpad + (kx - pad)
                col[pl.ds(t * lay.c_in, lay.c_in), :] = (
                    ext[:, pl.ds(guard + shift, width)])

        # Whole 'same' conv (cross-correlation, bias-free) as ONE
        # (C_out, K*K*C_in) @ (K*K*C_in, bb*npad) MXU dot, f32 acc, fused ReLU.
        acc = jnp.dot(w_refs[li][...], col[...],
                      preferred_element_type=jnp.float32)
        h = jnp.maximum(acc, 0.0)                    # TemporalRF('relu')

    # Channel activations on the zero-ringed grid; ring positions carry finite
    # garbage and MUST be cropped on the host (they are).
    act_ref[...] = h.astype(act_ref.dtype)

    # output_layer = AvgPool2d(2): block-diagonal pool matrix keeps the batch
    # on lanes -> lane-dense (C_out, bb*n_out) store.
    out_ref[...] = jnp.dot(h.astype(compute_dtype), pool_out_ref[...],
                           preferred_element_type=jnp.float32
                           ).astype(out_ref.dtype)


def build_spatio_temporal_channel(conv_weights, height, width, kernel_size,
                                  batch_block=8, compute_dtype=COMPUTE_DTYPE):
    """Returns a jitted forward(x, state=None) -> (output, state, activations).

    conv_weights: list of torch-layout Conv2d weights (C_out, C_in, K, K),
    one per SpatioTemporalRF (spatial layer).  batch_block samples are
    processed per grid step; batch size must be a multiple of batch_block.
    """
    k = kernel_size
    pad = k // 2
    bb = int(batch_block)
    assert k % 2 == 1, "padding='same' path assumes odd kernel size"
    assert bb >= 1

    layers = []
    operands = []                    # [W2_0, pool_1, W2_1, ..., pool_out_blk]
    c_first = int(conv_weights[0].shape[1])
    h_cur, w_cur = height, width     # interior grid entering this layer's pool
    for li, wgt in enumerate(conv_weights):
        wgt = np.asarray(wgt, np.float32)
        c_out, c_in, kk, kk2 = (int(d) for d in wgt.shape)
        assert kk == k and kk2 == k
        assert h_cur % 2 == 0 and w_cur % 2 == 0, "AvgPool2d(2) needs even sizes"
        hp, wp = h_cur // 2, w_cur // 2
        hpad, wpad = hp + 2 * pad, wp + 2 * pad
        assert pad * (wpad + 1) < _GUARD, "guard too small for this grid width"
        if li > 0:
            assert c_in == layers[-1].c_out
            # Pool from the previous layer's ringed conv-output grid to this
            # layer's zero-ringed conv-input grid, as one matmul.
            operands.append(jnp.asarray(
                _pool_matrix(h_cur, w_cur, pad, pad), compute_dtype))
        else:
            assert c_in == c_first
        # torch (C_out, C_in, K, K) -> (C_out, K*K*C_in), tap-major row order
        # (t*C_in + c) to match the im2col slab.  Pre-cast to compute dtype.
        w2 = np.transpose(wgt, (0, 2, 3, 1)).reshape(c_out, k * k * c_in)
        operands.append(jnp.asarray(w2, compute_dtype))
        layers.append(_LayerCfg(c_in, c_out, hp, wp, hpad, wpad))
        h_cur, w_cur = hp, wp

    assert h_cur % 2 == 0 and w_cur % 2 == 0
    layers = tuple(layers)
    last = layers[-1]
    npad0 = layers[0].hpad * layers[0].wpad
    npad_last = last.hpad * last.wpad
    n_out = (last.hp // 2) * (last.wp // 2)

    # Final AvgPool2d(2) as a block-diagonal (bb*npad_last, bb*n_out) matrix so
    # the batch stays on lanes and the output store is lane-dense.
    pool_out = _pool_matrix(h_cur, w_cur, pad, 0)
    pool_out_blk = np.kron(np.eye(bb, dtype=np.float32), pool_out)
    operands.append(jnp.asarray(pool_out_blk, compute_dtype))

    kernel = functools.partial(_fused_channel_kernel, layers=layers,
                               kernel_size=k, batch_block=bb, guard=_GUARD,
                               compute_dtype=compute_dtype)

    # ---- specs -------------------------------------------------------------
    in_specs = [pl.BlockSpec((bb, c_first, npad0), lambda g: (g, 0, 0))]
    for op in operands:
        # Constant index_map -> DMA'd once, then VMEM-resident across the grid.
        in_specs.append(pl.BlockSpec(op.shape, lambda g: (0, 0)))
    act_w = bb * npad_last
    out_w = bb * n_out
    out_specs = (
        pl.BlockSpec((None, last.c_out, act_w), lambda g: (g, 0, 0)),
        pl.BlockSpec((None, last.c_out, out_w), lambda g: (g, 0, 0)),
    )

    itemsize = jnp.dtype(compute_dtype).itemsize
    scratch_shapes = []
    scratch_bytes = 0
    for lay in layers:                                   # ext_0 .. ext_{L-1}
        shp = (lay.c_in, bb * lay.hpad * lay.wpad + 2 * _GUARD)
        scratch_shapes.append(pltpu.VMEM(shp, compute_dtype))
        scratch_bytes += int(np.prod(shp)) * itemsize
    for lay in layers:                                   # col_0 .. col_{L-1}
        shp = (k * k * lay.c_in, bb * lay.hpad * lay.wpad)
        scratch_shapes.append(pltpu.VMEM(shp, compute_dtype))
        scratch_bytes += int(np.prod(shp)) * itemsize
    for li in range(1, len(layers)):                     # (pin, pout) pairs
        prev, lay = layers[li - 1], layers[li]
        shp_in = (bb * prev.c_out, prev.hpad * prev.wpad)
        shp_out = (bb * lay.c_in, lay.hpad * lay.wpad)
        scratch_shapes.append(pltpu.VMEM(shp_in, compute_dtype))
        scratch_shapes.append(pltpu.VMEM(shp_out, compute_dtype))
        scratch_bytes += (int(np.prod(shp_in)) + int(np.prod(shp_out))) * itemsize

    const_bytes = sum(int(np.prod(op.shape)) * op.dtype.itemsize
                      for op in operands)
    io_bytes = (bb * c_first * npad0 * itemsize
                + last.c_out * (act_w + out_w) * 4)
    # Footprint-derived limit (double-buffered I/O + constants), with margin.
    vmem_limit = int(min(32 * 2**20,
                         max(8 * 2**20,
                             2 * (const_bytes + io_bytes) + scratch_bytes
                             + (2 << 20))))

    def forward(x, state=None):
        del state                                    # 'relu' RFs are stateless
        batch = x.shape[0]
        assert x.shape[1] == c_first and x.shape[2] == height and x.shape[3] == width
        assert batch % bb == 0, "batch must be a multiple of batch_block"
        nb = batch // bb

        # Layer-0 AvgPool2d(2) + zero ring in XLA (cheap reshape-mean + pad):
        # removes the worst-shaped pool matmul and shrinks the input DMA.
        hp0, wp0 = layers[0].hp, layers[0].wp
        xp = x.astype(jnp.float32).reshape(
            batch, c_first, hp0, 2, wp0, 2).mean(axis=(3, 5))
        xp = jnp.pad(xp, ((0, 0), (0, 0), (pad, pad), (pad, pad)))
        xp = xp.reshape(batch, c_first, npad0).astype(compute_dtype)

        act_pad, out_flat = pl.pallas_call(
            kernel,
            out_shape=(
                jax.ShapeDtypeStruct((nb, last.c_out, act_w), jnp.float32),
                jax.ShapeDtypeStruct((nb, last.c_out, out_w), jnp.float32),
            ),
            grid=(nb,),
            in_specs=in_specs,
            out_specs=out_specs,
            scratch_shapes=scratch_shapes,
            compiler_params=pltpu.CompilerParams(
                dimension_semantics=("parallel",),   # v7x: keep nb >= 2
                vmem_limit_bytes=vmem_limit,
            ),
        )(xp, *operands)

        # Un-block the batch and crop the zero/garbage ring (never consume
        # act_pad uncropped).
        acts = act_pad.reshape(nb, last.c_out, bb, last.hpad, last.wpad)
        acts = acts.transpose(0, 2, 1, 3, 4).reshape(
            batch, last.c_out, last.hpad, last.wpad)
        acts = acts[:, :, pad:pad + last.hp, pad:pad + last.wp]
        out = out_flat.reshape(nb, last.c_out, bb, last.hp // 2, last.wp // 2)
        out = out.transpose(0, 2, 1, 3, 4).reshape(
            batch, last.c_out, last.hp // 2, last.wp // 2)
        # norse SequentialState returns one (None) state per stateless RF.
        new_state = [None for _ in layers]
        return out, new_state, acts

    return jax.jit(forward)


def _reference_forward(x, conv_weights):
    """Pure-JAX reference for SpatioTemporalChannel (relu config)."""
    h = x
    for wgt in conv_weights:
        b, c, hh, ww = h.shape
        h = h.reshape(b, c, hh // 2, 2, ww // 2, 2).mean(axis=(3, 5))
        h = jax.lax.conv_general_dilated(
            h, wgt, window_strides=(1, 1), padding="SAME",
            dimension_numbers=("NCHW", "OIHW", "NCHW"),
            precision=jax.lax.Precision.HIGHEST)
        h = jnp.maximum(h, 0.0)
    acts = h
    b, c, hh, ww = h.shape
    out = h.reshape(b, c, hh // 2, 2, ww // 2, 2).mean(axis=(3, 5))
    return out, acts


if __name__ == "__main__":
    B, C_IN, H, W = 16, 2, 32, 32
    C_MID, C_OUT, K = 4, 3, 5
    BATCH_BLOCK = 8                     # 2 grid steps -> both v7x TCs busy

    key = jax.random.PRNGKey(0)
    k0, k1, kx = jax.random.split(key, 3)
    w0 = 0.1 * jax.random.normal(k0, (C_MID, C_IN, K, K), jnp.float32)
    w1 = 0.1 * jax.random.normal(k1, (C_OUT, C_MID, K, K), jnp.float32)
    x = jax.random.normal(kx, (B, C_IN, H, W), jnp.float32)

    forward = build_spatio_temporal_channel([w0, w1], H, W, K,
                                            batch_block=BATCH_BLOCK)
    out, state, acts = forward(x)
    out = jax.block_until_ready(out)
    acts = jax.block_until_ready(acts)

    assert out.shape == (B, C_OUT, H // 8, W // 8), out.shape
    assert acts.shape == (B, C_OUT, H // 4, W // 4), acts.shape
    assert len(state) == 2

    ref_out, ref_acts = _reference_forward(x, [w0, w1])
    assert jnp.allclose(acts, ref_acts, atol=2e-2, rtol=2e-2), (
        float(jnp.max(jnp.abs(acts - ref_acts))))
    assert jnp.allclose(out, ref_out, atol=2e-2, rtol=2e-2), (
        float(jnp.max(jnp.abs(out - ref_out))))

    print("KERNEL_OK")
</pallas_src>

<mosaic_0001>
module attributes {stable_mosaic.version = 11 : i64} {
  func.func @_fused_channel_kernel(%arg0: i32, %arg1: memref<8x2x400xbf16, #tpu.memory_space<vmem>>, %arg2: memref<4x50xbf16, #tpu.memory_space<vmem>>, %arg3: memref<400x144xbf16, #tpu.memory_space<vmem>>, %arg4: memref<3x100xbf16, #tpu.memory_space<vmem>>, %arg5: memref<1152x128xbf16, #tpu.memory_space<vmem>>, %arg6: memref<1x3x1152xf32, #tpu.memory_space<vmem>>, %arg7: memref<1x3x128xf32, #tpu.memory_space<vmem>>, %arg8: memref<2x3456xbf16, #tpu.memory_space<vmem>>, %arg9: memref<4x1408xbf16, #tpu.memory_space<vmem>>, %arg10: memref<50x3200xbf16, #tpu.memory_space<vmem>>, %arg11: memref<100x1152xbf16, #tpu.memory_space<vmem>>, %arg12: memref<32x400xbf16, #tpu.memory_space<vmem>>, %arg13: memref<32x144xbf16, #tpu.memory_space<vmem>>) attributes {dimension_semantics = [#tpu.dimension_semantics<parallel>], iteration_bounds = array<i64: 2>, scalar_prefetch = 0 : i64, scratch_operands = 6 : i64, tpu.core_type = #tpu.core_type<tc>, window_params = [{transform_indices = @transform_0, window_bounds = array<i64: 8, 2, 400>}, {pipeline_mode = #tpu.pipeline_mode<synchronous>, transform_indices = @transform_1, window_bounds = array<i64: 4, 50>}, {pipeline_mode = #tpu.pipeline_mode<synchronous>, transform_indices = @transform_2, window_bounds = array<i64: 400, 144>}, {pipeline_mode = #tpu.pipeline_mode<synchronous>, transform_indices = @transform_3, window_bounds = array<i64: 3, 100>}, {pipeline_mode = #tpu.pipeline_mode<synchronous>, transform_indices = @transform_4, window_bounds = array<i64: 1152, 128>}, {transform_indices = @transform_5, window_bounds = array<i64: 1, 3, 1152>}, {transform_indices = @transform_6, window_bounds = array<i64: 1, 3, 128>}]} {
    %cst = arith.constant 0.000000e+00 : bf16
    %0 = vector.broadcast %cst : bf16 to vector<2x128xbf16>
    %c0 = arith.constant 0 : index
    %c0_0 = arith.constant 0 : index
    %1 = vector.load %arg8[%c0, %c0_0] : memref<2x3456xbf16, #tpu.memory_space<vmem>>, vector<2x128xbf16>
    tpu.vector_store %arg8[%c0, %c0_0], %0 {strides = array<i32>} : memref<2x3456xbf16, #tpu.memory_space<vmem>>, vector<2x128xbf16>,
    %c0_1 = arith.constant 0 : index
    %c3328 = arith.constant 3328 : index
    %2 = vector.load %arg8[%c0_1, %c3328] : memref<2x3456xbf16, #tpu.memory_space<vmem>>, vector<2x128xbf16>
    tpu.vector_store %arg8[%c0_1, %c3328], %0 {strides = array<i32>} : memref<2x3456xbf16, #tpu.memory_space<vmem>>, vector<2x128xbf16>,
    %c0_2 = arith.constant 0 : index
    %c0_3 = arith.constant 0 : index
    %c0_4 = arith.constant 0 : index
    %3 = vector.load %arg1[%c0_2, %c0_3, %c0_4] : memref<8x2x400xbf16, #tpu.memory_space<vmem>>, vector<1x2x400xbf16>
    %4 = vector.shape_cast %3 : vector<1x2x400xbf16> to vector<2x400xbf16>
    %c0_5 = arith.constant 0 : index
    %c128 = arith.constant 128 : index
    %5 = vector.load %arg8[%c0_5, %c128] : memref<2x3456xbf16, #tpu.memory_space<vmem>>, vector<2x400xbf16>
    tpu.vector_store %arg8[%c0_5, %c128], %4 {strides = array<i32>} : memref<2x3456xbf16, #tpu.memory_space<vmem>>, vector<2x400xbf16>,
    %c1 = arith.constant 1 : index
    %c0_6 = arith.constant 0 : index
    %c0_7 = arith.constant 0 : index
    %6 = vector.load %arg1[%c1, %c0_6, %c0_7] : memref<8x2x400xbf16, #tpu.memory_space<vmem>>, vector<1x2x400xbf16>
    %7 = vector.shape_cast %6 : vector<1x2x400xbf16> to vector<2x400xbf16>
    %c0_8 = arith.constant 0 : index
    %c528 = arith.constant 528 : index
    %8 = vector.load %arg8[%c0_8, %c528] : memref<2x3456xbf16, #tpu.memory_space<vmem>>, vector<2x400xbf16>
    tpu.vector_store %arg8[%c0_8, %c528], %7 {strides = array<i32>} : memref<2x3456xbf16, #tpu.memory_space<vmem>>, vector<2x400xbf16>,
    %c2 = arith.constant 2 : index
    %c0_9 = arith.constant 0 : index
    %c0_10 = arith.constant 0 : index
    %9 = vector.load %arg1[%c2, %c0_9, %c0_10] : memref<8x2x400xbf16, #tpu.memory_space<vmem>>, vector<1x2x400xbf16>
    %10 = vector.shape_cast %9 : vector<1x2x400xbf16> to vector<2x400xbf16>
    %c0_11 = arith.constant 0 : index
    %c928 = arith.constant 928 : index
    %11 = vector.load %arg8[%c0_11, %c928] : memref<2x3456xbf16, #tpu.memory_space<vmem>>, vector<2x400xbf16>
    tpu.vector_store %arg8[%c0_11, %c928], %10 {strides = array<i32>} : memref<2x3456xbf16, #tpu.memory_space<vmem>>, vector<2x400xbf16>,
    %c3 = arith.constant 3 : index
    %c0_12 = arith.constant 0 : index
    %c0_13 = arith.constant 0 : index
    %12 = vector.load %arg1[%c3, %c0_12, %c0_13] : memref<8x2x400xbf16, #tpu.memory_space<vmem>>, vector<1x2x400xbf16>
    %13 = vector.shape_cast %12 : vector<1x2x400xbf16> to vector<2x400xbf16>
    %c0_14 = arith.constant 0 : index
    %c1328 = arith.constant 1328 : index
    %14 = vector.load %arg8[%c0_14, %c1328] : memref<2x3456xbf16, #tpu.memory_space<vmem>>, vector<2x400xbf16>
    tpu.vector_store %arg8[%c0_14, %c1328], %13 {strides = array<i32>} : memref<2x3456xbf16, #tpu.memory_space<vmem>>, vector<2x400xbf16>,
    %c4 = arith.constant 4 : index
    %c0_15 = arith.constant 0 : index
    %c0_16 = arith.constant 0 : index
    %15 = vector.load %arg1[%c4, %c0_15, %c0_16] : memref<8x2x400xbf16, #tpu.memory_space<vmem>>, vector<1x2x400xbf16>
    %16 = vector.shape_cast %15 : vector<1x2x400xbf16> to vector<2x400xbf16>
    %c0_17 = arith.constant 0 : index
    %c1728 = arith.constant 1728 : index
    %17 = vector.load %arg8[%c0_17, %c1728] : memref<2x3456xbf16, #tpu.memory_space<vmem>>, vector<2x400xbf16>
    tpu.vector_store %arg8[%c0_17, %c1728], %16 {strides = array<i32>} : memref<2x3456xbf16, #tpu.memory_space<vmem>>, vector<2x400xbf16>,
    %c5 = arith.constant 5 : index
    %c0_18 = arith.constant 0 : index
    %c0_19 = arith.constant 0 : index
    %18 = vector.load %arg1[%c5, %c0_18, %c0_19] : memref<8x2x400xbf16, #tpu.memory_space<vmem>>, vector<1x2x400xbf16>
    %19 = vector.shape_cast %18 : vector<1x2x400xbf16> to vector<2x400xbf16>
    %c0_20 = arith.constant 0 : index
    %c2128 = arith.constant 2128 : index
    %20 = vector.load %arg8[%c0_20, %c2128] : memref<2x3456xbf16, #tpu.memory_space<vmem>>, vector<2x400xbf16>
    tpu.vector_store %arg8[%c0_20, %c2128], %19 {strides = array<i32>} : memref<2x3456xbf16, #tpu.memory_space<vmem>>, vector<2x400xbf16>,
    %c6 = arith.constant 6 : index
    %c0_21 = arith.constant 0 : index
    %c0_22 = arith.constant 0 : index
    %21 = vector.load %arg1[%c6, %c0_21, %c0_22] : memref<8x2x400xbf16, #tpu.memory_space<vmem>>, vector<1x2x400xbf16>
    %22 = vector.shape_cast %21 : vector<1x2x400xbf16> to vector<2x400xbf16>
    %c0_23 = arith.constant 0 : index
    %c2528 = arith.constant 2528 : index
    %23 = vector.load %arg8[%c0_23, %c2528] : memref<2x3456xbf16, #tpu.memory_space<vmem>>, vector<2x400xbf16>
    tpu.vector_store %arg8[%c0_23, %c2528], %22 {strides = array<i32>} : memref<2x3456xbf16, #tpu.memory_space<vmem>>, vector<2x400xbf16>,
    %c7 = arith.constant 7 : index
    %c0_24 = arith.constant 0 : index
    %c0_25 = arith.constant 0 : index
    %24 = vector.load %arg1[%c7, %c0_24, %c0_25] : memref<8x2x400xbf16, #tpu.memory_space<vmem>>, vector<1x2x400xbf16>
    %25 = vector.shape_cast %24 : vector<1x2x400xbf16> to vector<2x400xbf16>
    %c0_26 = arith.constant 0 : index
    %c2928 = arith.constant 2928 : index
    %26 = vector.load %arg8[%c0_26, %c2928] : memref<2x3456xbf16, #tpu.memory_space<vmem>>, vector<2x400xbf16>
    tpu.vector_store %arg8[%c0_26, %c2928], %25 {strides = array<i32>} : memref<2x3456xbf16, #tpu.memory_space<vmem>>, vector<2x400xbf16>,
    %c0_27 = arith.constant 0 : index
    %c86 = arith.constant 86 : index
    %27 = vector.load %arg8[%c0_27, %c86] : memref<2x3456xbf16, #tpu.memory_space<vmem>>, vector<2x3200xbf16>
    %c0_28 = arith.constant 0 : index
    %c0_29 = arith.constant 0 : index
    %28 = vector.load %arg10[%c0_28, %c0_29] : memref<50x3200xbf16, #tpu.memory_space<vmem>>, vector<2x3200xbf16>
    tpu.vector_store %arg10[%c0_28, %c0_29], %27 {strides = array<i32>} : memref<50x3200xbf16, #tpu.memory_space<vmem>>, vector<2x3200xbf16>,
    %c0_30 = arith.constant 0 : index
    %c87 = arith.constant 87 : index
    %29 = vector.load %arg8[%c0_30, %c87] : memref<2x3456xbf16, #tpu.memory_space<vmem>>, vector<2x3200xbf16>
    %c2_31 = arith.constant 2 : index
    %c0_32 = arith.constant 0 : index
    %30 = vector.load %arg10[%c2_31, %c0_32] : memref<50x3200xbf16, #tpu.memory_space<vmem>>, vector<2x3200xbf16>
    tpu.vector_store %arg10[%c2_31, %c0_32], %29 {strides = array<i32>} : memref<50x3200xbf16, #tpu.memory_space<vmem>>, vector<2x3200xbf16>,
    %c0_33 = arith.constant 0 : index
    %c88 = arith.constant 88 : index
    %31 = vector.load %arg8[%c0_33, %c88] : memref<2x3456xbf16, #tpu.memory_space<vmem>>, vector<2x3200xbf16>
    %c4_34 = arith.constant 4 : index
    %c0_35 = arith.constant 0 : index
    %32 = vector.load %arg10[%c4_34, %c0_35] : memref<50x3200xbf16, #tpu.memory_space<vmem>>, vector<2x3200xbf16>
    tpu.vector_store %arg10[%c4_34, %c0_35], %31 {strides = array<i32>} : memref<50x3200xbf16, #tpu.memory_space<vmem>>, vector<2x3200xbf16>,
    %c0_36 = arith.constant 0 : index
    %c89 = arith.constant 89 : index
    %33 = vector.load %arg8[%c0_36, %c89] : memref<2x3456xbf16, #tpu.memory_space<vmem>>, vector<2x3200xbf16>
    %c6_37 = arith.constant 6 : index
    %c0_38 = arith.constant 0 : index
    %34 = vector.load %arg10[%c6_37, %c0_38] : memref<50x3200xbf16, #tpu.memory_space<vmem>>, vector<2x3200xbf16>
    tpu.vector_store %arg10[%c6_37, %c0_38], %33 {strides = array<i32>} : memref<50x3200xbf16, #tpu.memory_space<vmem>>, vector<2x3200xbf16>,
    %c0_39 = arith.constant 0 : index
    %c90 = arith.constant 90 : index
    %35 = vector.load %arg8[%c0_39, %c90] : memref<2x3456xbf16, #tpu.memory_space<vmem>>, vector<2x3200xbf16>
    %c8 = arith.constant 8 : index
    %c0_40 = arith.constant 0 : index
    %36 = vector.load %arg10[%c8, %c0_40] : memref<50x3200xbf16, #tpu.memory_space<vmem>>, vector<2x3200xbf16>
    tpu.vector_store %arg10[%c8, %c0_40], %35 {strides = array<i32>} : memref<50x3200xbf16, #tpu.memory_space<vmem>>, vector<2x3200xbf16>,
    %c0_41 = arith.constant 0 : index
    %c106 = arith.constant 106 : index
    %37 = vector.load %arg8[%c0_41, %c106] : memref<2x3456xbf16, #tpu.memory_space<vmem>>, vector<2x3200xbf16>
    %c10 = arith.constant 10 : index
    %c0_42 = arith.constant 0 : index
    %38 = vector.load %arg10[%c10, %c0_42] : memref<50x3200xbf16, #tpu.memory_space<vmem>>, vector<2x3200xbf16>
    tpu.vector_store %arg10[%c10, %c0_42], %37 {strides = array<i32>} : memref<50x3200xbf16, #tpu.memory_space<vmem>>, vector<2x3200xbf16>,
    %c0_43 = arith.constant 0 : index
    %c107 = arith.constant 107 : index
    %39 = vector.load %arg8[%c0_43, %c107] : memref<2x3456xbf16, #tpu.memory_space<vmem>>, vector<2x3200xbf16>
    %c12 = arith.constant 12 : index
    %c0_44 = arith.constant 0 : index
    %40 = vector.load %arg10[%c12, %c0_44] : memref<50x3200xbf16, #tpu.memory_space<vmem>>, vector<2x3200xbf16>
    tpu.vector_store %arg10[%c12, %c0_44], %39 {strides = array<i32>} : memref<50x3200xbf16, #tpu.memory_space<vmem>>, vector<2x3200xbf16>,
    %c0_45 = arith.constant 0 : index
    %c108 = arith.constant 108 : index
    %41 = vector.load %arg8[%c0_45, %c108] : memref<2x3456xbf16, #tpu.memory_space<vmem>>, vector<2x3200xbf16>
    %c14 = arith.constant 14 : index
    %c0_46 = arith.constant 0 : index
    %42 = vector.load %arg10[%c14, %c0_46] : memref<50x3200xbf16, #tpu.memory_space<vmem>>, vector<2x3200xbf16>
    tpu.vector_store %arg10[%c14, %c0_46], %41 {strides = array<i32>} : memref<50x3200xbf16, #tpu.memory_space<vmem>>, vector<2x3200xbf16>,
    %c0_47 = arith.constant 0 : index
    %c109 = arith.constant 109 : index
    %43 = vector.load %arg8[%c0_47, %c109] : memref<2x3456xbf16, #tpu.memory_space<vmem>>, vector<2x3200xbf16>
    %c16 = arith.constant 16 : index
    %c0_48 = arith.constant 0 : index
    %44 = vector.load %arg10[%c16, %c0_48] : memref<50x3200xbf16, #tpu.memory_space<vmem>>, vector<2x3200xbf16>
    tpu.vector_store %arg10[%c16, %c0_48], %43 {strides = array<i32>} : memref<50x3200xbf16, #tpu.memory_space<vmem>>, vector<2x3200xbf16>,
    %c0_49 = arith.constant 0 : index
    %c110 = arith.constant 110 : index
    %45 = vector.load %arg8[%c0_49, %c110] : memref<2x3456xbf16, #tpu.memory_space<vmem>>, vector<2x3200xbf16>
    %c18 = arith.constant 18 : index
    %c0_50 = arith.constant 0 : index
    %46 = vector.load %arg10[%c18, %c0_50] : memref<50x3200xbf16, #tpu.memory_space<vmem>>, vector<2x3200xbf16>
    tpu.vector_store %arg10[%c18, %c0_50], %45 {strides = array<i32>} : memref<50x3200xbf16, #tpu.memory_space<vmem>>, vector<2x3200xbf16>,
    %c0_51 = arith.constant 0 : index
    %c126 = arith.constant 126 : index
    %47 = vector.load %arg8[%c0_51, %c126] : memref<2x3456xbf16, #tpu.memory_space<vmem>>, vector<2x3200xbf16>
    %c20 = arith.constant 20 : index
    %c0_52 = arith.constant 0 : index
    %48 = vector.load %arg10[%c20, %c0_52] : memref<50x3200xbf16, #tpu.memory_space<vmem>>, vector<2x3200xbf16>
    tpu.vector_store %arg10[%c20, %c0_52], %47 {strides = array<i32>} : memref<50x3200xbf16, #tpu.memory_space<vmem>>, vector<2x3200xbf16>,
    %c0_53 = arith.constant 0 : index
    %c127 = arith.constant 127 : index
    %49 = vector.load %arg8[%c0_53, %c127] : memref<2x3456xbf16, #tpu.memory_space<vmem>>, vector<2x3200xbf16>
    %c22 = arith.constant 22 : index
    %c0_54 = arith.constant 0 : index
    %50 = vector.load %arg10[%c22, %c0_54] : memref<50x3200xbf16, #tpu.memory_space<vmem>>, vector<2x3200xbf16>
    tpu.vector_store %arg10[%c22, %c0_54], %49 {strides = array<i32>} : memref<50x3200xbf16, #tpu.memory_space<vmem>>, vector<2x3200xbf16>,
    %c0_55 = arith.constant 0 : index
    %c128_56 = arith.constant 128 : index
    %51 = vector.load %arg8[%c0_55, %c128_56] : memref<2x3456xbf16, #tpu.memory_space<vmem>>, vector<2x3200xbf16>
    %c24 = arith.constant 24 : index
    %c0_57 = arith.constant 0 : index
    %52 = vector.load %arg10[%c24, %c0_57] : memref<50x3200xbf16, #tpu.memory_space<vmem>>, vector<2x3200xbf16>
    tpu.vector_store %arg10[%c24, %c0_57], %51 {strides = array<i32>} : memref<50x3200xbf16, #tpu.memory_space<vmem>>, vector<2x3200xbf16>,
    %c0_58 = arith.constant 0 : index
    %c129 = arith.constant 129 : index
    %53 = vector.load %arg8[%c0_58, %c129] : memref<2x3456xbf16, #tpu.memory_space<vmem>>, vector<2x3200xbf16>
    %c26 = arith.constant 26 : index
    %c0_59 = arith.constant 0 : index
    %54 = vector.load %arg10[%c26, %c0_59] : memref<50x3200xbf16, #tpu.memory_space<vmem>>, vector<2x3200xbf16>
    tpu.vector_store %arg10[%c26, %c0_59], %53 {strides = array<i32>} : memref<50x3200xbf16, #tpu.memory_space<vmem>>, vector<2x3200xbf16>,
    %c0_60 = arith.constant 0 : index
    %c130 = arith.constant 130 : index
    %55 = vector.load %arg8[%c0_60, %c130] : memref<2x3456xbf16, #tpu.memory_space<vmem>>, vector<2x3200xbf16>
    %c28 = arith.constant 28 : index
    %c0_61 = arith.constant 0 : index
    %56 = vector.load %arg10[%c28, %c0_61] : memref<50x3200xbf16, #tpu.memory_space<vmem>>, vector<2x3200xbf16>
    tpu.vector_store %arg10[%c28, %c0_61], %55 {strides = array<i32>} : memref<50x3200xbf16, #tpu.memory_space<vmem>>, vector<2x3200xbf16>,
    %c0_62 = arith.constant 0 : index
    %c146 = arith.constant 146 : index
    %57 = vector.load %arg8[%c0_62, %c146] : memref<2x3456xbf16, #tpu.memory_space<vmem>>, vector<2x3200xbf16>
    %c30 = arith.constant 30 : index
    %c0_63 = arith.constant 0 : index
    %58 = vector.load %arg10[%c30, %c0_63] : memref<50x3200xbf16, #tpu.memory_space<vmem>>, vector<2x3200xbf16>
    tpu.vector_store %arg10[%c30, %c0_63], %57 {strides = array<i32>} : memref<50x3200xbf16, #tpu.memory_space<vmem>>, vector<2x3200xbf16>,
    %c0_64 = arith.constant 0 : index
    %c147 = arith.constant 147 : index
    %59 = vector.load %arg8[%c0_64, %c147] : memref<2x3456xbf16, #tpu.memory_space<vmem>>, vector<2x3200xbf16>
    %c32 = arith.constant 32 : index
    %c0_65 = arith.constant 0 : index
    %60 = vector.load %arg10[%c32, %c0_65] : memref<50x3200xbf16, #tpu.memory_space<vmem>>, vector<2x3200xbf16>
    tpu.vector_store %arg10[%c32, %c0_65], %59 {strides = array<i32>} : memref<50x3200xbf16, #tpu.memory_space<vmem>>, vector<2x3200xbf16>,
    %c0_66 = arith.constant 0 : index
    %c148 = arith.constant 148 : index
    %61 = vector.load %arg8[%c0_66, %c148] : memref<2x3456xbf16, #tpu.memory_space<vmem>>, vector<2x3200xbf16>
    %c34 = arith.constant 34 : index
    %c0_67 = arith.constant 0 : index
    %62 = vector.load %arg10[%c34, %c0_67] : memref<50x3200xbf16, #tpu.memory_space<vmem>>, vector<2x3200xbf16>
    tpu.vector_store %arg10[%c34, %c0_67], %61 {strides = array<i32>} : memref<50x3200xbf16, #tpu.memory_space<vmem>>, vector<2x3200xbf16>,
    %c0_68 = arith.constant 0 : index
    %c149 = arith.constant 149 : index
    %63 = vector.load %arg8[%c0_68, %c149] : memref<2x3456xbf16, #tpu.memory_space<vmem>>, vector<2x3200xbf16>
    %c36 = arith.constant 36 : index
    %c0_69 = arith.constant 0 : index
    %64 = vector.load %arg10[%c36, %c0_69] : memref<50x3200xbf16, #tpu.memory_space<vmem>>, vector<2x3200xbf16>
    tpu.vector_store %arg10[%c36, %c0_69], %63 {strides = array<i32>} : memref<50x3200xbf16, #tpu.memory_space<vmem>>, vector<2x3200xbf16>,
    %c0_70 = arith.constant 0 : index
    %c150 = arith.constant 150 : index
    %65 = vector.load %arg8[%c0_70, %c150] : memref<2x3456xbf16, #tpu.memory_space<vmem>>, vector<2x3200xbf16>
    %c38 = arith.constant 38 : index
    %c0_71 = arith.constant 0 : index
    %66 = vector.load %arg10[%c38, %c0_71] : memref<50x3200xbf16, #tpu.memory_space<vmem>>, vector<2x3200xbf16>
    tpu.vector_store %arg10[%c38, %c0_71], %65 {strides = array<i32>} : memref<50x3200xbf16, #tpu.memory_space<vmem>>, vector<2x3200xbf16>,
    %c0_72 = arith.constant 0 : index
    %c166 = arith.constant 166 : index
    %67 = vector.load %arg8[%c0_72, %c166] : memref<2x3456xbf16, #tpu.memory_space<vmem>>, vector<2x3200xbf16>
    %c40 = arith.constant 40 : index
    %c0_73 = arith.constant 0 : index
    %68 = vector.load %arg10[%c40, %c0_73] : memref<50x3200xbf16, #tpu.memory_space<vmem>>, vector<2x3200xbf16>
    tpu.vector_store %arg10[%c40, %c0_73], %67 {strides = array<i32>} : memref<50x3200xbf16, #tpu.memory_space<vmem>>, vector<2x3200xbf16>,
    %c0_74 = arith.constant 0 : index
    %c167 = arith.constant 167 : index
    %69 = vector.load %arg8[%c0_74, %c167] : memref<2x3456xbf16, #tpu.memory_space<vmem>>, vector<2x3200xbf16>
    %c42 = arith.constant 42 : index
    %c0_75 = arith.constant 0 : index
    %70 = vector.load %arg10[%c42, %c0_75] : memref<50x3200xbf16, #tpu.memory_space<vmem>>, vector<2x3200xbf16>
    tpu.vector_store %arg10[%c42, %c0_75], %69 {strides = array<i32>} : memref<50x3200xbf16, #tpu.memory_space<vmem>>, vector<2x3200xbf16>,
    %c0_76 = arith.constant 0 : index
    %c168 = arith.constant 168 : index
    %71 = vector.load %arg8[%c0_76, %c168] : memref<2x3456xbf16, #tpu.memory_space<vmem>>, vector<2x3200xbf16>
    %c44 = arith.constant 44 : index
    %c0_77 = arith.constant 0 : index
    %72 = vector.load %arg10[%c44, %c0_77] : memref<50x3200xbf16, #tpu.memory_space<vmem>>, vector<2x3200xbf16>
    tpu.vector_store %arg10[%c44, %c0_77], %71 {strides = array<i32>} : memref<50x3200xbf16, #tpu.memory_space<vmem>>, vector<2x3200xbf16>,
    %c0_78 = arith.constant 0 : index
    %c169 = arith.constant 169 : index
    %73 = vector.load %arg8[%c0_78, %c169] : memref<2x3456xbf16, #tpu.memory_space<vmem>>, vector<2x3200xbf16>
    %c46 = arith.constant 46 : index
    %c0_79 = arith.constant 0 : index
    %74 = vector.load %arg10[%c46, %c0_79] : memref<50x3200xbf16, #tpu.memory_space<vmem>>, vector<2x3200xbf16>
    tpu.vector_store %arg10[%c46, %c0_79], %73 {strides = array<i32>} : memref<50x3200xbf16, #tpu.memory_space<vmem>>, vector<2x3200xbf16>,
    %c0_80 = arith.constant 0 : index
    %c170 = arith.constant 170 : index
    %75 = vector.load %arg8[%c0_80, %c170] : memref<2x3456xbf16, #tpu.memory_space<vmem>>, vector<2x3200xbf16>
    %c48 = arith.constant 48 : index
    %c0_81 = arith.constant 0 : index
    %76 = vector.load %arg10[%c48, %c0_81] : memref<50x3200xbf16, #tpu.memory_space<vmem>>, vector<2x3200xbf16>
    tpu.vector_store %arg10[%c48, %c0_81], %75 {strides = array<i32>} : memref<50x3200xbf16, #tpu.memory_space<vmem>>, vector<2x3200xbf16>,
    %c0_82 = arith.constant 0 : index
    %c0_83 = arith.constant 0 : index
    %77 = vector.load %arg2[%c0_82, %c0_83] : memref<4x50xbf16, #tpu.memory_space<vmem>>, vector<4x50xbf16>
    %c0_84 = arith.constant 0 : index
    %c0_85 = arith.constant 0 : index
    %78 = vector.load %arg10[%c0_84, %c0_85] : memref<50x3200xbf16, #tpu.memory_space<vmem>>, vector<50x3200xbf16>
    %cst_86 = arith.constant dense<0.000000e+00> : vector<4x3200xf32>
    %79 = tpu.matmul %77, %78, %cst_86 {dimension_numbers = #tpu.dot_dimension_numbers<[1], [0], [0], [1], [0, 0, 1, 1], [], []>} : vector<4x50xbf16>, vector<50x3200xbf16>, vector<4x3200xf32> -> vector<4x3200xf32>
    %cst_87 = arith.constant 0.000000e+00 : f32
    %80 = vector.broadcast %cst_87 : f32 to vector<4x3200xf32>
    %81 = arith.maximumf %79, %80 : vector<4x3200xf32>
    %cst_88 = arith.constant 0.000000e+00 : bf16
    %82 = vector.broadcast %cst_88 : bf16 to vector<4x128xbf16>
    %c0_89 = arith.constant 0 : index
    %c0_90 = arith.constant 0 : index
    %83 = vector.load %arg9[%c0_89, %c0_90] : memref<4x1408xbf16, #tpu.memory_space<vmem>>, vector<4x128xbf16>
    tpu.vector_store %arg9[%c0_89, %c0_90], %82 {strides = array<i32>} : memref<4x1408xbf16, #tpu.memory_space<vmem>>, vector<4x128xbf16>,
    %c0_91 = arith.constant 0 : index
    %c1280 = arith.constant 1280 : index
    %84 = vector.load %arg9[%c0_91, %c1280] : memref<4x1408xbf16, #tpu.memory_space<vmem>>, vector<4x128xbf16>
    tpu.vector_store %arg9[%c0_91, %c1280], %82 {strides = array<i32>} : memref<4x1408xbf16, #tpu.memory_space<vmem>>, vector<4x128xbf16>,
    %85 = vector.extract_strided_slice %81 {offsets = [0, 0], sizes = [4, 400], strides = [1, 1]} : vector<4x3200xf32> to vector<4x400xf32>
    %86 = arith.truncf %85 : vector<4x400xf32> to vector<4x400xbf16>
    %c0_92 = arith.constant 0 : index
    %c0_93 = arith.constant 0 : index
    %87 = vector.load %arg12[%c0_92, %c0_93] : memref<32x400xbf16, #tpu.memory_space<vmem>>, vector<4x400xbf16>
    tpu.vector_store %arg12[%c0_92, %c0_93], %86 {strides = array<i32>} : memref<32x400xbf16, #tpu.memory_space<vmem>>, vector<4x400xbf16>,
    %88 = vector.extract_strided_slice %81 {offsets = [0, 400], sizes = [4, 400], strides = [1, 1]} : vector<4x3200xf32> to vector<4x400xf32>
    %89 = arith.truncf %88 : vector<4x400xf32> to vector<4x400xbf16>
    %c4_94 = arith.constant 4 : index
    %c0_95 = arith.constant 0 : index
    %90 = vector.load %arg12[%c4_94, %c0_95] : memref<32x400xbf16, #tpu.memory_space<vmem>>, vector<4x400xbf16>
    tpu.vector_store %arg12[%c4_94, %c0_95], %89 {strides = array<i32>} : memref<32x400xbf16, #tpu.memory_space<vmem>>, vector<4x400xbf16>,
    %91 = vector.extract_strided_slice %81 {offsets = [0, 800], sizes = [4, 400], strides = [1, 1]} : vector<4x3200xf32> to vector<4x400xf32>
    %92 = arith.truncf %91 : vector<4x400xf32> to vector<4x400xbf16>
    %c8_96 = arith.constant 8 : index
    %c0_97 = arith.constant 0 : index
    %93 = vector.load %arg12[%c8_96, %c0_97] : memref<32x400xbf16, #tpu.memory_space<vmem>>, vector<4x400xbf16>
    tpu.vector_store %arg12[%c8_96, %c0_97], %92 {strides = array<i32>} : memref<32x400xbf16, #tpu.memory_space<vmem>>, vector<4x400xbf16>,
    %94 = vector.extract_strided_slice %81 {offsets = [0, 1200], sizes = [4, 400], strides = [1, 1]} : vector<4x3200xf32> to vector<4x400xf32>
    %95 = arith.truncf %94 : vector<4x400xf32> to vector<4x400xbf16>
    %c12_98 = arith.constant 12 : index
    %c0_99 = arith.constant 0 : index
    %96 = vector.load %arg12[%c12_98, %c0_99] : memref<32x400xbf16, #tpu.memory_space<vmem>>, vector<4x400xbf16>
    tpu.vector_store %arg12[%c12_98, %c0_99], %95 {strides = array<i32>} : memref<32x400xbf16, #tpu.memory_space<vmem>>, vector<4x400xbf16>,
    %97 = vector.extract_strided_slice %81 {offsets = [0, 1600], sizes = [4, 400], strides = [1, 1]} : vector<4x3200xf32> to vector<4x400xf32>
    %98 = arith.truncf %97 : vector<4x400xf32> to vector<4x400xbf16>
    %c16_100 = arith.constant 16 : index
    %c0_101 = arith.constant 0 : index
    %99 = vector.load %arg12[%c16_100, %c0_101] : memref<32x400xbf16, #tpu.memory_space<vmem>>, vector<4x400xbf16>
    tpu.vector_store %arg12[%c16_100, %c0_101], %98 {strides = array<i32>} : memref<32x400xbf16, #tpu.memory_space<vmem>>, vector<4x400xbf16>,
    %100 = vector.extract_strided_slice %81 {offsets = [0, 2000], sizes = [4, 400], strides = [1, 1]} : vector<4x3200xf32> to vector<4x400xf32>
    %101 = arith.truncf %100 : vector<4x400xf32> to vector<4x400xbf16>
    %c20_102 = arith.constant 20 : index
    %c0_103 = arith.constant 0 : index
    %102 = vector.load %arg12[%c20_102, %c0_103] : memref<32x400xbf16, #tpu.memory_space<vmem>>, vector<4x400xbf16>
    tpu.vector_store %arg12[%c20_102, %c0_103], %101 {strides = array<i32>} : memref<32x400xbf16, #tpu.memory_space<vmem>>, vector<4x400xbf16>,
    %103 = vector.extract_strided_slice %81 {offsets = [0, 2400], sizes = [4, 400], strides = [1, 1]} : vector<4x3200xf32> to vector<4x400xf32>
    %104 = arith.truncf %103 : vector<4x400xf32> to vector<4x400xbf16>
    %c24_104 = arith.constant 24 : index
    %c0_105 = arith.constant 0 : index
    %105 = vector.load %arg12[%c24_104, %c0_105] : memref<32x400xbf16, #tpu.memory_space<vmem>>, vector<4x400xbf16>
    tpu.vector_store %arg12[%c24_104, %c0_105], %104 {strides = array<i32>} : memref<32x400xbf16, #tpu.memory_space<vmem>>, vector<4x400xbf16>,
    %106 = vector.extract_strided_slice %81 {offsets = [0, 2800], sizes = [4, 400], strides = [1, 1]} : vector<4x3200xf32> to vector<4x400xf32>
    %107 = arith.truncf %106 : vector<4x400xf32> to vector<4x400xbf16>
    %c28_106 = arith.constant 28 : index
    %c0_107 = arith.constant 0 : index
    %108 = vector.load %arg12[%c28_106, %c0_107] : memref<32x400xbf16, #tpu.memory_space<vmem>>, vector<4x400xbf16>
    tpu.vector_store %arg12[%c28_106, %c0_107], %107 {strides = array<i32>} : memref<32x400xbf16, #tpu.memory_space<vmem>>, vector<4x400xbf16>,
    %c0_108 = arith.constant 0 : index
    %c0_109 = arith.constant 0 : index
    %109 = vector.load %arg12[%c0_108, %c0_109] : memref<32x400xbf16, #tpu.memory_space<vmem>>, vector<32x400xbf16>
    %c0_110 = arith.constant 0 : index
    %c0_111 = arith.constant 0 : index
    %110 = vector.load %arg3[%c0_110, %c0_111] : memref<400x144xbf16, #tpu.memory_space<vmem>>, vector<400x144xbf16>
    %cst_112 = arith.constant dense<0.000000e+00> : vector<32x144xf32>
    %111 = tpu.matmul %109, %110, %cst_112 {dimension_numbers = #tpu.dot_dimension_numbers<[1], [0], [0], [1], [0, 0, 1, 1], [], []>} : vector<32x400xbf16>, vector<400x144xbf16>, vector<32x144xf32> -> vector<32x144xf32>
    %112 = arith.truncf %111 : vector<32x144xf32> to vector<32x144xbf16>
    %c0_113 = arith.constant 0 : index
    %c0_114 = arith.constant 0 : index
    %113 = vector.load %arg13[%c0_113, %c0_114] : memref<32x144xbf16, #tpu.memory_space<vmem>>, vector<32x144xbf16>
    tpu.vector_store %arg13[%c0_113, %c0_114], %112 {strides = array<i32>} : memref<32x144xbf16, #tpu.memory_space<vmem>>, vector<32x144xbf16>,
    %c0_115 = arith.constant 0 : index
    %c0_116 = arith.constant 0 : index
    %114 = vector.load %arg13[%c0_115, %c0_116] : memref<32x144xbf16, #tpu.memory_space<vmem>>, vector<4x144xbf16>
    %c0_117 = arith.constant 0 : index
    %c128_118 = arith.constant 128 : index
    %115 = vector.load %arg9[%c0_117, %c128_118] : memref<4x1408xbf16, #tpu.memory_space<vmem>>, vector<4x144xbf16>
    tpu.vector_store %arg9[%c0_117, %c128_118], %114 {strides = array<i32>} : memref<4x1408xbf16, #tpu.memory_space<vmem>>, vector<4x144xbf16>,
    %c4_119 = arith.constant 4 : index
    %c0_120 = arith.constant 0 : index
    %116 = vector.load %arg13[%c4_119, %c0_120] : memref<32x144xbf16, #tpu.memory_space<vmem>>, vector<4x144xbf16>
    %c0_121 = arith.constant 0 : index
    %c272 = arith.constant 272 : index
    %117 = vector.load %arg9[%c0_121, %c272] : memref<4x1408xbf16, #tpu.memory_space<vmem>>, vector<4x144xbf16>
    tpu.vector_store %arg9[%c0_121, %c272], %116 {strides = array<i32>} : memref<4x1408xbf16, #tpu.memory_space<vmem>>, vector<4x144xbf16>,
    %c8_122 = arith.constant 8 : index
    %c0_123 = arith.constant 0 : index
    %118 = vector.load %arg13[%c8_122, %c0_123] : memref<32x144xbf16, #tpu.memory_space<vmem>>, vector<4x144xbf16>
    %c0_124 = arith.constant 0 : index
    %c416 = arith.constant 416 : index
    %119 = vector.load %arg9[%c0_124, %c416] : memref<4x1408xbf16, #tpu.memory_space<vmem>>, vector<4x144xbf16>
    tpu.vector_store %arg9[%c0_124, %c416], %118 {strides = array<i32>} : memref<4x1408xbf16, #tpu.memory_space<vmem>>, vector<4x144xbf16>,
    %c12_125 = arith.constant 12 : index
    %c0_126 = arith.constant 0 : index
    %120 = vector.load %arg13[%c12_125, %c0_126] : memref<32x144xbf16, #tpu.memory_space<vmem>>, vector<4x144xbf16>
    %c0_127 = arith.constant 0 : index
    %c560 = arith.constant 560 : index
    %121 = vector.load %arg9[%c0_127, %c560] : memref<4x1408xbf16, #tpu.memory_space<vmem>>, vector<4x144xbf16>
    tpu.vector_store %arg9[%c0_127, %c560], %120 {strides = array<i32>} : memref<4x1408xbf16, #tpu.memory_space<vmem>>, vector<4x144xbf16>,
    %c16_128 = arith.constant 16 : index
    %c0_129 = arith.constant 0 : index
    %122 = vector.load %arg13[%c16_128, %c0_129] : memref<32x144xbf16, #tpu.memory_space<vmem>>, vector<4x144xbf16>
    %c0_130 = arith.constant 0 : index
    %c704 = arith.constant 704 : index
    %123 = vector.load %arg9[%c0_130, %c704] : memref<4x1408xbf16, #tpu.memory_space<vmem>>, vector<4x144xbf16>
    tpu.vector_store %arg9[%c0_130, %c704], %122 {strides = array<i32>} : memref<4x1408xbf16, #tpu.memory_space<vmem>>, vector<4x144xbf16>,
    %c20_131 = arith.constant 20 : index
    %c0_132 = arith.constant 0 : index
    %124 = vector.load %arg13[%c20_131, %c0_132] : memref<32x144xbf16, #tpu.memory_space<vmem>>, vector<4x144xbf16>
    %c0_133 = arith.constant 0 : index
    %c848 = arith.constant 848 : index
    %125 = vector.load %arg9[%c0_133, %c848] : memref<4x1408xbf16, #tpu.memory_space<vmem>>, vector<4x144xbf16>
    tpu.vector_store %arg9[%c0_133, %c848], %124 {strides = array<i32>} : memref<4x1408xbf16, #tpu.memory_space<vmem>>, vector<4x144xbf16>,
    %c24_134 = arith.constant 24 : index
    %c0_135 = arith.constant 0 : index
    %126 = vector.load %arg13[%c24_134, %c0_135] : memref<32x144xbf16, #tpu.memory_space<vmem>>, vector<4x144xbf16>
    %c0_136 = arith.constant 0 : index
    %c992 = arith.constant 992 : index
    %127 = vector.load %arg9[%c0_136, %c992] : memref<4x1408xbf16, #tpu.memory_space<vmem>>, vector<4x144xbf16>
    tpu.vector_store %arg9[%c0_136, %c992], %126 {strides = array<i32>} : memref<4x1408xbf16, #tpu.memory_space<vmem>>, vector<4x144xbf16>,
    %c28_137 = arith.constant 28 : index
    %c0_138 = arith.constant 0 : index
    %128 = vector.load %arg13[%c28_137, %c0_138] : memref<32x144xbf16, #tpu.memory_space<vmem>>, vector<4x144xbf16>
    %c0_139 = arith.constant 0 : index
    %c1136 = arith.constant 1136 : index
    %129 = vector.load %arg9[%c0_139, %c1136] : memref<4x1408xbf16, #tpu.memory_space<vmem>>, vector<4x144xbf16>
    tpu.vector_store %arg9[%c0_139, %c1136], %128 {strides = array<i32>} : memref<4x1408xbf16, #tpu.memory_space<vmem>>, vector<4x144xbf16>,
    %c0_140 = arith.constant 0 : index
    %c102 = arith.constant 102 : index
    %130 = vector.load %arg9[%c0_140, %c102] : memref<4x1408xbf16, #tpu.memory_space<vmem>>, vector<4x1152xbf16>
    %c0_141 = arith.constant 0 : index
    %c0_142 = arith.constant 0 : index
    %131 = vector.load %arg11[%c0_141, %c0_142] : memref<100x1152xbf16, #tpu.memory_space<vmem>>, vector<4x1152xbf16>
    tpu.vector_store %arg11[%c0_141, %c0_142], %130 {strides = array<i32>} : memref<100x1152xbf16, #tpu.memory_space<vmem>>, vector<4x1152xbf16>,
    %c0_143 = arith.constant 0 : index
    %c103 = arith.constant 103 : index
    %132 = vector.load %arg9[%c0_143, %c103] : memref<4x1408xbf16, #tpu.memory_space<vmem>>, vector<4x1152xbf16>
    %c4_144 = arith.constant 4 : index
    %c0_145 = arith.constant 0 : index
    %133 = vector.load %arg11[%c4_144, %c0_145] : memref<100x1152xbf16, #tpu.memory_space<vmem>>, vector<4x1152xbf16>
    tpu.vector_store %arg11[%c4_144, %c0_145], %132 {strides = array<i32>} : memref<100x1152xbf16, #tpu.memory_space<vmem>>, vector<4x1152xbf16>,
    %c0_146 = arith.constant 0 : index
    %c104 = arith.constant 104 : index
    %134 = vector.load %arg9[%c0_146, %c104] : memref<4x1408xbf16, #tpu.memory_space<vmem>>, vector<4x1152xbf16>
    %c8_147 = arith.constant 8 : index
    %c0_148 = arith.constant 0 : index
    %135 = vector.load %arg11[%c8_147, %c0_148] : memref<100x1152xbf16, #tpu.memory_space<vmem>>, vector<4x1152xbf16>
    tpu.vector_store %arg11[%c8_147, %c0_148], %134 {strides = array<i32>} : memref<100x1152xbf16, #tpu.memory_space<vmem>>, vector<4x1152xbf16>,
    %c0_149 = arith.constant 0 : index
    %c105 = arith.constant 105 : index
    %136 = vector.load %arg9[%c0_149, %c105] : memref<4x1408xbf16, #tpu.memory_space<vmem>>, vector<4x1152xbf16>
    %c12_150 = arith.constant 12 : index
    %c0_151 = arith.constant 0 : index
    %137 = vector.load %arg11[%c12_150, %c0_151] : memref<100x1152xbf16, #tpu.memory_space<vmem>>, vector<4x1152xbf16>
    tpu.vector_store %arg11[%c12_150, %c0_151], %136 {strides = array<i32>} : memref<100x1152xbf16, #tpu.memory_space<vmem>>, vector<4x1152xbf16>,
    %c0_152 = arith.constant 0 : index
    %c106_153 = arith.constant 106 : index
    %138 = vector.load %arg9[%c0_152, %c106_153] : memref<4x1408xbf16, #tpu.memory_space<vmem>>, vector<4x1152xbf16>
    %c16_154 = arith.constant 16 : index
    %c0_155 = arith.constant 0 : index
    %139 = vector.load %arg11[%c16_154, %c0_155] : memref<100x1152xbf16, #tpu.memory_space<vmem>>, vector<4x1152xbf16>
    tpu.vector_store %arg11[%c16_154, %c0_155], %138 {strides = array<i32>} : memref<100x1152xbf16, #tpu.memory_space<vmem>>, vector<4x1152xbf16>,
    %c0_156 = arith.constant 0 : index
    %c114 = arith.constant 114 : index
    %140 = vector.load %arg9[%c0_156, %c114] : memref<4x1408xbf16, #tpu.memory_space<vmem>>, vector<4x1152xbf16>
    %c20_157 = arith.constant 20 : index
    %c0_158 = arith.constant 0 : index
    %141 = vector.load %arg11[%c20_157, %c0_158] : memref<100x1152xbf16, #tpu.memory_space<vmem>>, vector<4x1152xbf16>
    tpu.vector_store %arg11[%c20_157, %c0_158], %140 {strides = array<i32>} : memref<100x1152xbf16, #tpu.memory_space<vmem>>, vector<4x1152xbf16>,
    %c0_159 = arith.constant 0 : index
    %c115 = arith.constant 115 : index
    %142 = vector.load %arg9[%c0_159, %c115] : memref<4x1408xbf16, #tpu.memory_space<vmem>>, vector<4x1152xbf16>
    %c24_160 = arith.constant 24 : index
    %c0_161 = arith.constant 0 : index
    %143 = vector.load %arg11[%c24_160, %c0_161] : memref<100x1152xbf16, #tpu.memory_space<vmem>>, vector<4x1152xbf16>
    tpu.vector_store %arg11[%c24_160, %c0_161], %142 {strides = array<i32>} : memref<100x1152xbf16, #tpu.memory_space<vmem>>, vector<4x1152xbf16>,
    %c0_162 = arith.constant 0 : index
    %c116 = arith.constant 116 : index
    %144 = vector.load %arg9[%c0_162, %c116] : memref<4x1408xbf16, #tpu.memory_space<vmem>>, vector<4x1152xbf16>
    %c28_163 = arith.constant 28 : index
    %c0_164 = arith.constant 0 : index
    %145 = vector.load %arg11[%c28_163, %c0_164] : memref<100x1152xbf16, #tpu.memory_space<vmem>>, vector<4x1152xbf16>
    tpu.vector_store %arg11[%c28_163, %c0_164], %144 {strides = array<i32>} : memref<100x1152xbf16, #tpu.memory_space<vmem>>, vector<4x1152xbf16>,
    %c0_165 = arith.constant 0 : index
    %c117 = arith.constant 117 : index
    %146 = vector.load %arg9[%c0_165, %c117] : memref<4x1408xbf16, #tpu.memory_space<vmem>>, vector<4x1152xbf16>
    %c32_166 = arith.constant 32 : index
    %c0_167 = arith.constant 0 : index
    %147 = vector.load %arg11[%c32_166, %c0_167] : memref<100x1152xbf16, #tpu.memory_space<vmem>>, vector<4x1152xbf16>
    tpu.vector_store %arg11[%c32_166, %c0_167], %146 {strides = array<i32>} : memref<100x1152xbf16, #tpu.memory_space<vmem>>, vector<4x1152xbf16>,
    %c0_168 = arith.constant 0 : index
    %c118 = arith.constant 118 : index
    %148 = vector.load %arg9[%c0_168, %c118] : memref<4x1408xbf16, #tpu.memory_space<vmem>>, vector<4x1152xbf16>
    %c36_169 = arith.constant 36 : index
    %c0_170 = arith.constant 0 : index
    %149 = vector.load %arg11[%c36_169, %c0_170] : memref<100x1152xbf16, #tpu.memory_space<vmem>>, vector<4x1152xbf16>
    tpu.vector_store %arg11[%c36_169, %c0_170], %148 {strides = array<i32>} : memref<100x1152xbf16, #tpu.memory_space<vmem>>, vector<4x1152xbf16>,
    %c0_171 = arith.constant 0 : index
    %c126_172 = arith.constant 126 : index
    %150 = vector.load %arg9[%c0_171, %c126_172] : memref<4x1408xbf16, #tpu.memory_space<vmem>>, vector<4x1152xbf16>
    %c40_173 = arith.constant 40 : index
    %c0_174 = arith.constant 0 : index
    %151 = vector.load %arg11[%c40_173, %c0_174] : memref<100x1152xbf16, #tpu.memory_space<vmem>>, vector<4x1152xbf16>
    tpu.vector_store %arg11[%c40_173, %c0_174], %150 {strides = array<i32>} : memref<100x1152xbf16, #tpu.memory_space<vmem>>, vector<4x1152xbf16>,
    %c0_175 = arith.constant 0 : index
    %c127_176 = arith.constant 127 : index
    %152 = vector.load %arg9[%c0_175, %c127_176] : memref<4x1408xbf16, #tpu.memory_space<vmem>>, vector<4x1152xbf16>
    %c44_177 = arith.constant 44 : index
    %c0_178 = arith.constant 0 : index
    %153 = vector.load %arg11[%c44_177, %c0_178] : memref<100x1152xbf16, #tpu.memory_space<vmem>>, vector<4x1152xbf16>
    tpu.vector_store %arg11[%c44_177, %c0_178], %152 {strides = array<i32>} : memref<100x1152xbf16, #tpu.memory_space<vmem>>, vector<4x1152xbf16>,
    %c0_179 = arith.constant 0 : index
    %c128_180 = arith.constant 128 : index
    %154 = vector.load %arg9[%c0_179, %c128_180] : memref<4x1408xbf16, #tpu.memory_space<vmem>>, vector<4x1152xbf16>
    %c48_181 = arith.constant 48 : index
    %c0_182 = arith.constant 0 : index
    %155 = vector.load %arg11[%c48_181, %c0_182] : memref<100x1152xbf16, #tpu.memory_space<vmem>>, vector<4x1152xbf16>
    tpu.vector_store %arg11[%c48_181, %c0_182], %154 {strides = array<i32>} : memref<100x1152xbf16, #tpu.memory_space<vmem>>, vector<4x1152xbf16>,
    %c0_183 = arith.constant 0 : index
    %c129_184 = arith.constant 129 : index
    %156 = vector.load %arg9[%c0_183, %c129_184] : memref<4x1408xbf16, #tpu.memory_space<vmem>>, vector<4x1152xbf16>
    %c52 = arith.constant 52 : index
    %c0_185 = arith.constant 0 : index
    %157 = vector.load %arg11[%c52, %c0_185] : memref<100x1152xbf16, #tpu.memory_space<vmem>>, vector<4x1152xbf16>
    tpu.vector_store %arg11[%c52, %c0_185], %156 {strides = array<i32>} : memref<100x1152xbf16, #tpu.memory_space<vmem>>, vector<4x1152xbf16>,
    %c0_186 = arith.constant 0 : index
    %c130_187 = arith.constant 130 : index
    %158 = vector.load %arg9[%c0_186, %c130_187] : memref<4x1408xbf16, #tpu.memory_space<vmem>>, vector<4x1152xbf16>
    %c56 = arith.constant 56 : index
    %c0_188 = arith.constant 0 : index
    %159 = vector.load %arg11[%c56, %c0_188] : memref<100x1152xbf16, #tpu.memory_space<vmem>>, vector<4x1152xbf16>
    tpu.vector_store %arg11[%c56, %c0_188], %158 {strides = array<i32>} : memref<100x1152xbf16, #tpu.memory_space<vmem>>, vector<4x1152xbf16>,
    %c0_189 = arith.constant 0 : index
    %c138 = arith.constant 138 : index
    %160 = vector.load %arg9[%c0_189, %c138] : memref<4x1408xbf16, #tpu.memory_space<vmem>>, vector<4x1152xbf16>
    %c60 = arith.constant 60 : index
    %c0_190 = arith.constant 0 : index
    %161 = vector.load %arg11[%c60, %c0_190] : memref<100x1152xbf16, #tpu.memory_space<vmem>>, vector<4x1152xbf16>
    tpu.vector_store %arg11[%c60, %c0_190], %160 {strides = array<i32>} : memref<100x1152xbf16, #tpu.memory_space<vmem>>, vector<4x1152xbf16>,
    %c0_191 = arith.constant 0 : index
    %c139 = arith.constant 139 : index
    %162 = vector.load %arg9[%c0_191, %c139] : memref<4x1408xbf16, #tpu.memory_space<vmem>>, vector<4x1152xbf16>
    %c64 = arith.constant 64 : index
    %c0_192 = arith.constant 0 : index
    %163 = vector.load %arg11[%c64, %c0_192] : memref<100x1152xbf16, #tpu.memory_space<vmem>>, vector<4x1152xbf16>
    tpu.vector_store %arg11[%c64, %c0_192], %162 {strides = array<i32>} : memref<100x1152xbf16, #tpu.memory_space<vmem>>, vector<4x1152xbf16>,
    %c0_193 = arith.constant 0 : index
    %c140 = arith.constant 140 : index
    %164 = vector.load %arg9[%c0_193, %c140] : memref<4x1408xbf16, #tpu.memory_space<vmem>>, vector<4x1152xbf16>
    %c68 = arith.constant 68 : index
    %c0_194 = arith.constant 0 : index
    %165 = vector.load %arg11[%c68, %c0_194] : memref<100x1152xbf16, #tpu.memory_space<vmem>>, vector<4x1152xbf16>
    tpu.vector_store %arg11[%c68, %c0_194], %164 {strides = array<i32>} : memref<100x1152xbf16, #tpu.memory_space<vmem>>, vector<4x1152xbf16>,
    %c0_195 = arith.constant 0 : index
    %c141 = arith.constant 141 : index
    %166 = vector.load %arg9[%c0_195, %c141] : memref<4x1408xbf16, #tpu.memory_space<vmem>>, vector<4x1152xbf16>
    %c72 = arith.constant 72 : index
    %c0_196 = arith.constant 0 : index
    %167 = vector.load %arg11[%c72, %c0_196] : memref<100x1152xbf16, #tpu.memory_space<vmem>>, vector<4x1152xbf16>
    tpu.vector_store %arg11[%c72, %c0_196], %166 {strides = array<i32>} : memref<100x1152xbf16, #tpu.memory_space<vmem>>, vector<4x1152xbf16>,
    %c0_197 = arith.constant 0 : index
    %c142 = arith.constant 142 : index
    %168 = vector.load %arg9[%c0_197, %c142] : memref<4x1408xbf16, #tpu.memory_space<vmem>>, vector<4x1152xbf16>
    %c76 = arith.constant 76 : index
    %c0_198 = arith.constant 0 : index
    %169 = vector.load %arg11[%c76, %c0_198] : memref<100x1152xbf16, #tpu.memory_space<vmem>>, vector<4x1152xbf16>
    tpu.vector_store %arg11[%c76, %c0_198], %168 {strides = array<i32>} : memref<100x1152xbf16, #tpu.memory_space<vmem>>, vector<4x1152xbf16>,
    %c0_199 = arith.constant 0 : index
    %c150_200 = arith.constant 150 : index
    %170 = vector.load %arg9[%c0_199, %c150_200] : memref<4x1408xbf16, #tpu.memory_space<vmem>>, vector<4x1152xbf16>
    %c80 = arith.constant 80 : index
    %c0_201 = arith.constant 0 : index
    %171 = vector.load %arg11[%c80, %c0_201] : memref<100x1152xbf16, #tpu.memory_space<vmem>>, vector<4x1152xbf16>
    tpu.vector_store %arg11[%c80, %c0_201], %170 {strides = array<i32>} : memref<100x1152xbf16, #tpu.memory_space<vmem>>, vector<4x1152xbf16>,
    %c0_202 = arith.constant 0 : index
    %c151 = arith.constant 151 : index
    %172 = vector.load %arg9[%c0_202, %c151] : memref<4x1408xbf16, #tpu.memory_space<vmem>>, vector<4x1152xbf16>
    %c84 = arith.constant 84 : index
    %c0_203 = arith.constant 0 : index
    %173 = vector.load %arg11[%c84, %c0_203] : memref<100x1152xbf16, #tpu.memory_space<vmem>>, vector<4x1152xbf16>
    tpu.vector_store %arg11[%c84, %c0_203], %172 {strides = array<i32>} : memref<100x1152xbf16, #tpu.memory_space<vmem>>, vector<4x1152xbf16>,
    %c0_204 = arith.constant 0 : index
    %c152 = arith.constant 152 : index
    %174 = vector.load %arg9[%c0_204, %c152] : memref<4x1408xbf16, #tpu.memory_space<vmem>>, vector<4x1152xbf16>
    %c88_205 = arith.constant 88 : index
    %c0_206 = arith.constant 0 : index
    %175 = vector.load %arg11[%c88_205, %c0_206] : memref<100x1152xbf16, #tpu.memory_space<vmem>>, vector<4x1152xbf16>
    tpu.vector_store %arg11[%c88_205, %c0_206], %174 {strides = array<i32>} : memref<100x1152xbf16, #tpu.memory_space<vmem>>, vector<4x1152xbf16>,
    %c0_207 = arith.constant 0 : index
    %c153 = arith.constant 153 : index
    %176 = vector.load %arg9[%c0_207, %c153] : memref<4x1408xbf16, #tpu.memory_space<vmem>>, vector<4x1152xbf16>
    %c92 = arith.constant 92 : index
    %c0_208 = arith.constant 0 : index
    %177 = vector.load %arg11[%c92, %c0_208] : memref<100x1152xbf16, #tpu.memory_space<vmem>>, vector<4x1152xbf16>
    tpu.vector_store %arg11[%c92, %c0_208], %176 {strides = array<i32>} : memref<100x1152xbf16, #tpu.memory_space<vmem>>, vector<4x1152xbf16>,
    %c0_209 = arith.constant 0 : index
    %c154 = arith.constant 154 : index
    %178 = vector.load %arg9[%c0_209, %c154] : memref<4x1408xbf16, #tpu.memory_space<vmem>>, vector<4x1152xbf16>
    %c96 = arith.constant 96 : index
    %c0_210 = arith.constant 0 : index
    %179 = vector.load %arg11[%c96, %c0_210] : memref<100x1152xbf16, #tpu.memory_space<vmem>>, vector<4x1152xbf16>
    tpu.vector_store %arg11[%c96, %c0_210], %178 {strides = array<i32>} : memref<100x1152xbf16, #tpu.memory_space<vmem>>, vector<4x1152xbf16>,
    %c0_211 = arith.constant 0 : index
    %c0_212 = arith.constant 0 : index
    %180 = vector.load %arg4[%c0_211, %c0_212] : memref<3x100xbf16, #tpu.memory_space<vmem>>, vector<3x100xbf16>
    %c0_213 = arith.constant 0 : index
    %c0_214 = arith.constant 0 : index
    %181 = vector.load %arg11[%c0_213, %c0_214] : memref<100x1152xbf16, #tpu.memory_space<vmem>>, vector<100x1152xbf16>
    %cst_215 = arith.constant dense<0.000000e+00> : vector<3x1152xf32>
    %182 = tpu.matmul %180, %181, %cst_215 {dimension_numbers = #tpu.dot_dimension_numbers<[1], [0], [0], [1], [0, 0, 1, 1], [], []>} : vector<3x100xbf16>, vector<100x1152xbf16>, vector<3x1152xf32> -> vector<3x1152xf32>
    %cst_216 = arith.constant 0.000000e+00 : f32
    %183 = vector.broadcast %cst_216 : f32 to vector<3x1152xf32>
    %184 = arith.maximumf %182, %183 : vector<3x1152xf32>
    %c0_217 = arith.constant 0 : index
    %c0_218 = arith.constant 0 : index
    %c0_219 = arith.constant 0 : index
    %185 = vector.load %arg6[%c0_217, %c0_218, %c0_219] : memref<1x3x1152xf32, #tpu.memory_space<vmem>>, vector<1x3x1152xf32>
    %186 = vector.shape_cast %185 : vector<1x3x1152xf32> to vector<3x1152xf32>
    %187 = vector.shape_cast %184 : vector<3x1152xf32> to vector<1x3x1152xf32>
    tpu.vector_store %arg6[%c0_217, %c0_218, %c0_219], %187 {strides = array<i32>} : memref<1x3x1152xf32, #tpu.memory_space<vmem>>, vector<1x3x1152xf32>,
    %188 = arith.truncf %184 : vector<3x1152xf32> to vector<3x1152xbf16>
    %c0_220 = arith.constant 0 : index
    %c0_221 = arith.constant 0 : index
    %189 = vector.load %arg5[%c0_220, %c0_221] : memref<1152x128xbf16, #tpu.memory_space<vmem>>, vector<1152x128xbf16>
    %cst_222 = arith.constant dense<0.000000e+00> : vector<3x128xf32>
    %190 = tpu.matmul %188, %189, %cst_222 {dimension_numbers = #tpu.dot_dimension_numbers<[1], [0], [0], [1], [0, 0, 1, 1], [], []>} : vector<3x1152xbf16>, vector<1152x128xbf16>, vector<3x128xf32> -> vector<3x128xf32>
    %c0_223 = arith.constant 0 : index
    %c0_224 = arith.constant 0 : index
    %c0_225 = arith.constant 0 : index
    %191 = vector.load %arg7[%c0_223, %c0_224, %c0_225] : memref<1x3x128xf32, #tpu.memory_space<vmem>>, vector<1x3x128xf32>
    %192 = vector.shape_cast %191 : vector<1x3x128xf32> to vector<3x128xf32>
    %193 = vector.shape_cast %190 : vector<3x128xf32> to vector<1x3x128xf32>
    tpu.vector_store %arg7[%c0_223, %c0_224, %c0_225], %193 {strides = array<i32>} : memref<1x3x128xf32, #tpu.memory_space<vmem>>, vector<1x3x128xf32>,
    return
  }
  func.func @transform_0(%arg0: i32) -> (i32, i32, i32) {
    %c0_i32 = arith.constant 0 : i32
    %c0_i32_0 = arith.constant 0 : i32
    %c0_i32_1 = arith.constant 0 : i32
    return %arg0, %c0_i32, %c0_i32_0 : i32, i32, i32
  }
  func.func @transform_1(%arg0: i32) -> (i32, i32) {
    %c0_i32 = arith.constant 0 : i32
    %c0_i32_0 = arith.constant 0 : i32
    %c0_i32_1 = arith.constant 0 : i32
    return %c0_i32, %c0_i32_0 : i32, i32
  }
  func.func @transform_2(%arg0: i32) -> (i32, i32) {
    %c0_i32 = arith.constant 0 : i32
    %c0_i32_0 = arith.constant 0 : i32
    %c0_i32_1 = arith.constant 0 : i32
    return %c0_i32, %c0_i32_0 : i32, i32
  }
  func.func @transform_3(%arg0: i32) -> (i32, i32) {
    %c0_i32 = arith.constant 0 : i32
    %c0_i32_0 = arith.constant 0 : i32
    %c0_i32_1 = arith.constant 0 : i32
    return %c0_i32, %c0_i32_0 : i32, i32
  }
  func.func @transform_4(%arg0: i32) -> (i32, i32) {
    %c0_i32 = arith.constant 0 : i32
    %c0_i32_0 = arith.constant 0 : i32
    %c0_i32_1 = arith.constant 0 : i32
    return %c0_i32, %c0_i32_0 : i32, i32
  }
  func.func @transform_5(%arg0: i32) -> (i32, i32, i32) {
    %c0_i32 = arith.constant 0 : i32
    %c0_i32_0 = arith.constant 0 : i32
    %c0_i32_1 = arith.constant 0 : i32
    return %arg0, %c0_i32, %c0_i32_0 : i32, i32, i32
  }
  func.func @transform_6(%arg0: i32) -> (i32, i32, i32) {
    %c0_i32 = arith.constant 0 : i32
    %c0_i32_0 = arith.constant 0 : i32
    %c0_i32_1 = arith.constant 0 : i32
    return %arg0, %c0_i32, %c0_i32_0 : i32, i32, i32
  }
}

</mosaic_0001>

<bundles_post_ra>
// kernel: forward.1
= control target key start
LH: loop header
LB: loop body
LE: loop exit
PB: predicated region body
PF: predicated region fallthrough
CT: control target
= control target key end

     0   :  { %s9524_s21 = smov 0   ;;  %s14219_s0 = inlined_call_operand.vmem [shape: bf16[16,2,400], index: 0, kind: input, shape index: {}]   ;;  %s14220_s1 = inlined_call_operand.vmem [shape: bf16[4,50], index: 1, kind: input, shape index: {}]   ;;  %s14221_s2 = inlined_call_operand.vmem [shape: bf16[400,144], index: 2, kind: input, shape index: {}]   ;;  %s14222_s3 = inlined_call_operand.vmem [shape: bf16[3,100], index: 3, kind: input, shape index: {}]   ;;  %s14223_s4 = inlined_call_operand.vmem [shape: bf16[1152,128], index: 4, kind: input, shape index: {}]   ;;  %s14224_s5 = inlined_call_operand.vmem [shape: f32[2,3,1152], index: 5, kind: output, shape index: {0}]   ;;  %s14225_s6 = inlined_call_operand.vmem [shape: f32[2,3,128], index: 6, kind: output, shape index: {1}]  }
   0x1 LB: > { %s9530_s22 = sadd.s32 4294967295, %s9437_s21   ;;  %p8023_p0 = scmp.ge.s32.totalorder %s9437_s21, 1  ;;  %s9437_s21 = sphi %s9524_s21, %s17_s21  }
   0x2   : > { %p216_p1 = scmp.lt.s32.totalorder %s9437_s21, 3 }
   0x4   : > { %p217_p2 = pnand %p8023_p0, %p216_p1 }
   0x6   : > { %220 = sbr.rel (%p217_p2) target bundleno = 2483 (0x9b3), region = 40 }
   0xb   : > { %s8024_s23 = sshll.u32 %s9530_s22, 3  ;;  %vm14226_vm0 = vcmask 1040384   ;;  %vm14228_vm1 = vcmask 1041409   ;;  %vm14229_vm2 = vcmask 1042434   ;;  %v9439_v0 = vmov 0   ;;  %s14256_s28 = smov 16  }
   0xc   : > { %p251_p3 = scmp.lt.s32.totalorder %s8024_s23, 15  ;;  %266 = vst [vmem:[#allocation2] sm:$0x1] %v9439_v0  ;;  %vm271_vm3 = vmor %vm14228_vm1, %vm14226_vm0  ;;  %vm274_vm5 = vcmask 125955   ;;  %s14269_s29 = smov 48   ;;  %vm286_vm7 = vcmask 1040512  }
   0xd   : > { %267 = vst [vmem:[#allocation2 + $0x1a] sm:$0x1] %v9439_v0  ;;  %vm273_vm4 = vmor %vm14229_vm2, %vm271_vm3  ;;  %s14273_s30 = smov 80   ;;  %s14264_s7 = smov 32   ;;  %vm301_vm8 = vcmask 1040640   ;;  %vm346_vm10 = vcmask 1041024  }
   0xe   : > { %s14690_s23 = smov (!%p251_p3, %s8024_s23), 15  ;;  %4536 = vst [vmem:[#allocation3 + $0x14] sm:$0x3] %v9439_v0  ;;  %vm275_vm6 = vmor %vm274_vm5, %vm273_vm4  ;;  %s14271_s8 = smov 64   ;;  %vm289_vm13 = vcmask 257027   ;;  %vm304_vm3 = vcmask 388099  }
   0xf   : > { %s8025_s24 = sshll.u32 %s14690_s23, 2  ;;  %4535 = vst [vmem:[#allocation3] sm:$0x3] %v9439_v0  ;;  %s14286_s9 = smov 96   ;;  %vm287_vm9 = vmor %vm14228_vm1, %vm286_vm7  ;;  %vm14227_vm4 = vcmask 130048   ;;  %vm349_vm7 = vcmask 781315  }
  0x10   : > { %s254_s27 = scalar_lea.vmem %s14219_s0, %s8025_s24  ;;  %s14284_s10 = smov 112   ;;  %vm302_vm11 = vmor %vm14228_vm1, %vm301_vm8  ;;  %v14307_v13 = vmov 0  ;;  %v14309_v15 = vmov 0 }
  0x11   : > { %v8028_v1 = vld [vmem:[%s254_s27 + $0x4] sm:$0xf]  ;;  %v268_v2 = vld [vmem:[%s254_s27] sm:$0xf]  ;;  %v8030_v3 = vld [vmem:[%s254_s27 + $0xc] sm:$0xf] }
  0x12   : > { %280 = vrot.lane.b32.xlu0 %v8028_v1, %s14256_s28  ;;  %310 = vrot.lane.b32.xlu1 %v8030_v3, %s14269_s29  ;;  %276 = vst.msk [vmem:[#allocation2 + $0x1] sm:$0xf] %vm275_vm6, %v268_v2  ;;  %v8032_v4 = vld [vmem:[%s254_s27 + $0x14] sm:$0xf]  ;;  %v8029_v5 = vld [vmem:[%s254_s27 + $0x8] sm:$0xf]  ;;  %vm288_vm12 = vmor %vm14229_vm2, %vm287_vm9 }
  0x13   : > { %340 = vrot.lane.b32.xlu2 %v8032_v4, %s14273_s30  ;;  %v8031_v6 = vld [vmem:[%s254_s27 + $0x10] sm:$0xf]  ;;  %v8033_v7 = vld [vmem:[%s254_s27 + $0x18] sm:$0xf]  ;;  %v8034_v8 = vld [vmem:[%s254_s27 + $0x1c] sm:$0xf] }
  0x14   : > { %vm347_vm14 = vmor %vm14228_vm1, %vm346_vm10  ;;  %vm316_vm6 = vcmask 1040768   ;;  %vm331_vm9 = vcmask 1040896   ;;  %s9447_s11 = smov 42   ;;  %s9448_s12 = smov 41  }
  0x15   : > { %vm303_vm15 = vmor %vm14229_vm2, %vm302_vm11  ;;  %s9449_s13 = smov 40   ;;  %s9450_s14 = smov 39  }
  0x16   : > { %vm290_vm5 = vmor %vm289_vm13, %vm288_vm12  ;;  %vm361_vm12 = vcmask 1041152   ;;  %s9451_s15 = smov 38   ;;  %s9452_s16 = smov 22  }
  0x17   : > { %vm348_vm0 = vmor %vm14229_vm2, %vm347_vm14  ;;  %s9453_s17 = smov 21   ;;  %s9454_s18 = smov 20  }
  0x18   : > { %vm9554_vm8 = vmor %vm304_vm3, %vm303_vm15  ;;  %vm319_vm3 = vcmask 519171   ;;  %s9455_s19 = smov 19   ;;  %s9456_s20 = smov 18  }
  0x19   : > { %v14308_v13 = vsel %vm9554_vm8, 4294967295, %v14307_v13  ;;  %vm317_vm10 = vmor %vm14228_vm1, %vm316_vm6  ;;  %vm364_vm8 = vcmask 912387   ;;  %s9457_s23 = smov 2   ;;  %s9458_s24 = smov 1  }
  0x1a   : > { %295 = vrot.lane.b32.xlu0 %v8029_v5, %s14264_s7  ;;  %325 = vrot.lane.b32.xlu1 %v8031_v6, %s14271_s8  ;;  %vm9560_vm11 = vmor %vm349_vm7, %vm348_vm0  ;;  %vm14231_vm0 = vcmask 523264   ;;  %s9459_s25 = smov 127   ;;  %s14294_s26 = smov 126  }
  0x1b   : > { %355 = vrot.lane.b32.xlu2 %v8033_v7, %s14286_s9  ;;  %v14310_v15 = vsel %vm9560_vm11, 4294967295, %v14309_v15  ;;  %vm332_vm13 = vmor %vm14228_vm1, %vm331_vm9  ;;  %vm334_vm11 = vcmask 650243   ;;  %vm14275_vm9 = vcmask 654336   ;;  %s9461_s27 = smov 110   ;;  %s9466_s28 = smov 90  }
  0x1c   : > { %vm318_vm14 = vmor %vm14229_vm2, %vm317_vm10  ;;  %vm14314_vm10 = vnez %v14308_v13  ;;  %s9467_s7 = smov 89   ;;  %s9468_s29 = smov 88  }
  0x1d   : > { %vm362_vm6 = vmor %vm14228_vm1, %vm361_vm12  ;;  %vm14311_vm1 = vcmask 1041280   ;;  %s9469_s8 = smov 87   ;;  %s9470_s30 = smov 86  }
  0x1e   : > { %vm333_vm7 = vmor %vm14229_vm2, %vm332_vm13  ;;  %vm14312_vm13 = vcmask 1041409   ;;  %s9483_s9 = smov 115   ;;  %p256_p4 = scmp.lt.s32.totalorder %s9530_s22, 1 }
  0x1f   : > { %vm363_vm15 = vmor %vm14229_vm2, %vm362_vm6  ;;  %vm14315_vm6 = vcmask 785408  }
  0x20   : > { %vm335_vm12 = vmor %vm334_vm11, %vm333_vm7  ;;  %vm379_vm11 = vcmask 1043459   ;;  %s14692_s22 = smov (!%p256_p4, %s9530_s22), 1 }
  0x21   : > { %vm365_vm2 = vmor %vm364_vm8, %vm363_vm15  ;;  %vm593_vm8 = vcmask 334848   ;;  %vm724_vm15 = vcmask 326656  }
  0x22   : > { %370 = vrot.lane.b32.xlu0 %v8034_v8, %s14284_s10  ;;  %s14622_s10 = smov 48  }
  0x6d   : > { %v341_v9 = vpop.permute.xlu2 %340 }
  0x6e   : > { %v342_v18 = vrot.slane %v341_v9, 7 }
  0x70   : > { %v344_v27 = vsel %vm14275_vm9, %v342_v18, %v341_v9  ;;  %vm14283_vm9 = vcmask 875520  }
  0x75   : > { %v356_v16 = vpop.permute.xlu2 %355 }
  0x76   : > { %v357_v23 = vrot.slane %v356_v16, 7 }
  0x78   : > { %v359_v28 = vsel %vm14315_vm6, %v357_v23, %v356_v16  ;;  %vm14280_vm6 = vcmask 146432  }
  0x84   : > { %v281_v10 = vpop.permute.xlu0 %280  ;;  %v311_v11 = vpop.permute.xlu1 %310 }
  0x85   : > { %v282_v12 = vrot.slane %v281_v10, 7  ;;  %v312_v17 = vrot.slane %v311_v11, 7 }
  0x87   : > { %v284_v14 = vsel %vm14227_vm4, %v282_v12, %v281_v10  ;;  %vm14230_vm4 = vcmask 261120  }
  0x88   : > { %291 = vst.msk [vmem:[#allocation2 + $0x4] sm:$0xf] %vm290_vm5, %v284_v14  ;;  %vm320_vm5 = vmor %vm319_vm3, %vm318_vm14  ;;  %vm14313_vm14 = vcmask 392192  }
  0x89   : > { %vm377_vm3 = vmor %vm14312_vm13, %vm14311_vm1  ;;  %v314_v26 = vsel %vm14313_vm14, %v312_v17, %v311_v11  ;;  %vm14276_vm1 = vcmask 916480   ;;  %vm1508_vm14 = vcmask 154624  }
  0x8c   : > { %v296_v19 = vpop.permute.xlu0 %295  ;;  %v326_v20 = vpop.permute.xlu1 %325 }
  0x8d   : > { %v297_v21 = vrot.slane %v296_v19, 7  ;;  %v327_v22 = vrot.slane %v326_v20, 7 }
  0x8f   : > { %v299_v24 = vsel %vm14230_vm4, %v297_v21, %v296_v19  ;;  %v329_v25 = vsel %vm14231_vm0, %v327_v22, %v326_v20  ;;  %vm14316_vm4 = vcmask 1042434   ;;  %vm14317_vm0 = vnez %v14310_v15 }
  0x90   : > { %306 = vst.msk [vmem:[#allocation2 + $0x7] sm:$0xf] %vm14314_vm10, %v299_v24  ;;  %vm378_vm7 = vmor %vm14316_vm4, %vm377_vm3  ;;  %vm462_vm4 = vcmask 343040   ;;  %vm1116_vm10 = vcmask 179200   ;;  %vm1378_vm3 = vcmask 162816  }
  0x91   : > { %321 = vst.msk [vmem:[#allocation2 + $0xa] sm:$0xf] %vm320_vm5, %v314_v26  ;;  %vm380_vm13 = vmor %vm379_vm11, %vm378_vm7  ;;  %vm14277_vm5 = vcmask 310272   ;;  %vm1770_vm7 = vcmask 15360   ;;  %vm14281_vm11 = vcmask 7168  }
  0x92   : > { %336 = vst.msk [vmem:[#allocation2 + $0xd] sm:$0xf] %vm335_vm12, %v329_v25  ;;  %vm14289_vm12 = vcmask 171008  }
  0x93   : > { %351 = vst.msk [vmem:[#allocation2 + $0x10] sm:$0xf] %vm14317_vm0, %v344_v27  ;;  %vm855_vm0 = vcmask 318464  }
  0x94   : > { %366 = vst.msk [vmem:[#allocation2 + $0x13] sm:$0xf] %vm365_vm2, %v359_v28  ;;  %v371_v29 = vpop.permute.xlu0 %370  ;;  %vm460_vm2 = vcmask 1043456  }
  0x95   : > { %v372_v30 = vrot.slane %v371_v29, 7 }
  0x97   : > { %v9581_v31 = vld [vmem:[#allocation2] sm:$0xff]  ;;  %v374_v32 = vsel %vm14276_vm1, %v372_v30, %v371_v29  ;;  %vm14296_vm1 = vcmask 867328  }
  0x98   : > { %387 = vst [vmem:[#allocation1] ss:$4 sm:$0xff] %v9581_v31 }
  0x99   : > { %v9585_v33 = vld [vmem:[#allocation2 + $0x8] sm:$0xff]  ;;  %381 = vst.msk [vmem:[#allocation2 + $0x16] sm:$0xf] %vm380_vm13, %v374_v32  ;;  %vm14278_vm13 = vcmask 1039360  }
  0x9a   : > { %390 = vst [vmem:[#allocation1 + $0x20] ss:$4 sm:$0xff] %v9585_v33 }
  0x9f   : > { %v391_v34 = vld [vmem:[#allocation1] sm:$0xff]  ;;  %v393_v35 = vld [vmem:[#allocation1 + $0x8] sm:$0xff]  ;;  %v395_v36 = vld [vmem:[#allocation1 + $0x10] sm:$0xff] }
  0xa0   : > { %v397_v37 = vld [vmem:[#allocation1 + $0x18] sm:$0xff]  ;;  %425 = vrot.lane.b32.xlu0 %v395_v36, %s9447_s11  ;;  %423 = vrot.lane.b32.xlu2 %v393_v35, %s9447_s11  ;;  %v385_v40 = vld [vmem:[#allocation2 + $0x18] sm:$0x3] }
  0xa1   : > { %v9588_v38 = vld [vmem:[#allocation2 + $0x10] sm:$0xff]  ;;  %421 = vrot.lane.b32.xlu1 %v391_v34, %s9447_s11  ;;  %v399_v39 = vld [vmem:[#allocation1 + $0x20] sm:$0xff]  ;;  %v401_v41 = vld [vmem:[#allocation1 + $0x28] sm:$0xff] }
  0xa2   : > { %408 = vst [vmem:[#allocation1] ss:$4 sm:$0xff] %v9588_v38  ;;  %v403_v42 = vld [vmem:[#allocation1 + $0x30] sm:$0xff]  ;;  %v405_v43 = vld [vmem:[#allocation1 + $0x38] sm:$0xff]  ;;  %v516_v56 = vld [vmem:[#allocation2 + $0x18] sm:$0x3] }
  0xa3   : > { %410 = vst [vmem:[#allocation1 + $0x20] ss:$4 sm:$0xff] %v385_v40  ;;  %v647_v6 = vld [vmem:[#allocation2 + $0x18] sm:$0x3] }
  0xa4   : > { %v778_v20 = vld [vmem:[#allocation2 + $0x18] sm:$0x3] }
  0xa5   : > { %v909_v36 = vld [vmem:[#allocation2 + $0x18] sm:$0x3] }
  0xa8   : > { %431 = vrot.lane.b32.xlu0 %v401_v41, %s9447_s11  ;;  %429 = vrot.lane.b32.xlu2 %v399_v39, %s9447_s11 }
  0xa9   : > { %v411_v44 = vld [vmem:[#allocation1] sm:$0xff]  ;;  %v413_v45 = vld [vmem:[#allocation1 + $0x8] sm:$0xff]  ;;  %v415_v46 = vld [vmem:[#allocation1 + $0x10] sm:$0xff]  ;;  %427 = vrot.lane.b32.xlu1 %v397_v37, %s9447_s11 }
  0xaa   : > { %v417_v47 = vld [vmem:[#allocation1 + $0x18] sm:$0xff]  ;;  %v419_v48 = vld [vmem:[#allocation1 + $0x20] sm:$0xff] }
  0xab   : > { %519 = vst [vmem:[#allocation1 + $0x1] ss:$4 sm:$0xff] %v9581_v31 }
  0xac   : > { %522 = vst [vmem:[#allocation1 + $0x21] ss:$4 sm:$0xff] %v9585_v33 }
  0xb0   : > { %435 = vrot.lane.b32.xlu2 %v405_v43, %s9447_s11  ;;  %437 = vrot.lane.b32.xlu0 %v411_v44, %s9447_s11 }
  0xb1   : > { %433 = vrot.lane.b32.xlu1 %v403_v42, %s9447_s11 }
  0xb2   : > { %v523_v49 = vld [vmem:[#allocation1] sm:$0xff]  ;;  %v525_v50 = vld [vmem:[#allocation1 + $0x8] sm:$0xff]  ;;  %v527_v51 = vld [vmem:[#allocation1 + $0x10] sm:$0xff] }
  0xb3   : > { %v529_v52 = vld [vmem:[#allocation1 + $0x18] sm:$0xff]  ;;  %v531_v53 = vld [vmem:[#allocation1 + $0x20] sm:$0xff]  ;;  %v533_v54 = vld [vmem:[#allocation1 + $0x28] sm:$0xff] }
  0xb4   : > { %540 = vst [vmem:[#allocation1 + $0x1] ss:$4 sm:$0xff] %v9588_v38  ;;  %v535_v55 = vld [vmem:[#allocation1 + $0x30] sm:$0xff]  ;;  %v537_v57 = vld [vmem:[#allocation1 + $0x38] sm:$0xff] }
  0xb5   : > { %542 = vst [vmem:[#allocation1 + $0x21] ss:$4 sm:$0xff] %v516_v56 }
  0xb8   : > { %441 = vrot.lane.b32.xlu2 %v415_v46, %s9447_s11  ;;  %443 = vrot.lane.b32.xlu0 %v417_v47, %s9447_s11 }
  0xb9   : > { %439 = vrot.lane.b32.xlu1 %v413_v45, %s9447_s11 }
  0xbb   : > { %v543_v58 = vld [vmem:[#allocation1] sm:$0xff]  ;;  %v545_v59 = vld [vmem:[#allocation1 + $0x8] sm:$0xff]  ;;  %v547_v60 = vld [vmem:[#allocation1 + $0x10] sm:$0xff] }
  0xbc   : > { %v549_v61 = vld [vmem:[#allocation1 + $0x18] sm:$0xff]  ;;  %v551_v62 = vld [vmem:[#allocation1 + $0x20] sm:$0xff] }
  0xbd   : > { %650 = vst [vmem:[#allocation1 + $0x2] ss:$4 sm:$0xff] %v9581_v31 }
  0xbe   : > { %653 = vst [vmem:[#allocation1 + $0x22] ss:$4 sm:$0xff] %v9585_v33 }
  0xc0   : > { %555 = vrot.lane.b32.xlu0 %v525_v50, %s9448_s12  ;;  %553 = vrot.lane.b32.xlu2 %v523_v49, %s9448_s12 }
  0xc1   : > { %445 = vrot.lane.b32.xlu1 %v419_v48, %s9447_s11  ;;  %s9462_s11 = smov 109  }
  0xc4   : > { %v654_v63 = vld [vmem:[#allocation1] sm:$0xff]  ;;  %v656_v0 = vld [vmem:[#allocation1 + $0x8] sm:$0xff]  ;;  %v658_v1 = vld [vmem:[#allocation1 + $0x10] sm:$0xff] }
  0xc5   : > { %v660_v2 = vld [vmem:[#allocation1 + $0x18] sm:$0xff]  ;;  %v662_v3 = vld [vmem:[#allocation1 + $0x20] sm:$0xff]  ;;  %v664_v4 = vld [vmem:[#allocation1 + $0x28] sm:$0xff] }
  0xc6   : > { %671 = vst [vmem:[#allocation1 + $0x2] ss:$4 sm:$0xff] %v9588_v38  ;;  %v666_v5 = vld [vmem:[#allocation1 + $0x30] sm:$0xff]  ;;  %v668_v7 = vld [vmem:[#allocation1 + $0x38] sm:$0xff] }
  0xc7   : > { %673 = vst [vmem:[#allocation1 + $0x22] ss:$4 sm:$0xff] %v647_v6 }
  0xc8   : > { %561 = vrot.lane.b32.xlu0 %v531_v53, %s9448_s12  ;;  %559 = vrot.lane.b32.xlu2 %v529_v52, %s9448_s12  ;;  %v1039_v52 = vld [vmem:[#allocation2 + $0x18] sm:$0x3] }
  0xc9   : > { %557 = vrot.lane.b32.xlu1 %v527_v51, %s9448_s12 }
  0xcd   : > { %v674_v8 = vld [vmem:[#allocation1] sm:$0xff]  ;;  %v676_v9 = vld [vmem:[#allocation1 + $0x8] sm:$0xff]  ;;  %v9615_v10 = vld [vmem:[#allocation1 + $0x10] sm:$0xff] }
  0xce   : > { %v9617_v11 = vld [vmem:[#allocation1 + $0x18] sm:$0xff]  ;;  %v9623_v12 = vld [vmem:[#allocation1 + $0x20] sm:$0xff] }
  0xcf   : > { %781 = vst [vmem:[#allocation1 + $0x3] ss:$4 sm:$0xff] %v9581_v31 }
  0xd0   : > { %567 = vrot.lane.b32.xlu0 %v537_v57, %s9448_s12  ;;  %565 = vrot.lane.b32.xlu2 %v535_v55, %s9448_s12  ;;  %784 = vst [vmem:[#allocation1 + $0x23] ss:$4 sm:$0xff] %v9585_v33 }
  0xd1   : > { %563 = vrot.lane.b32.xlu1 %v533_v54, %s9448_s12 }
  0xd6   : > { %v9626_v13 = vld [vmem:[#allocation1] sm:$0xff]  ;;  %v9628_v14 = vld [vmem:[#allocation1 + $0x8] sm:$0xff]  ;;  %v9630_v15 = vld [vmem:[#allocation1 + $0x10] sm:$0xff] }
  0xd7   : > { %v9632_v16 = vld [vmem:[#allocation1 + $0x18] sm:$0xff]  ;;  %v9638_v17 = vld [vmem:[#allocation1 + $0x20] sm:$0xff]  ;;  %v9640_v18 = vld [vmem:[#allocation1 + $0x28] sm:$0xff] }
  0xd8   : > { %802 = vst [vmem:[#allocation1 + $0x3] ss:$4 sm:$0xff] %v9588_v38  ;;  %573 = vrot.lane.b32.xlu0 %v547_v60, %s9448_s12  ;;  %571 = vrot.lane.b32.xlu2 %v545_v59, %s9448_s12  ;;  %v9642_v19 = vld [vmem:[#allocation1 + $0x30] sm:$0xff]  ;;  %v9644_v21 = vld [vmem:[#allocation1 + $0x38] sm:$0xff] }
  0xd9   : > { %569 = vrot.lane.b32.xlu1 %v543_v58, %s9448_s12  ;;  %804 = vst [vmem:[#allocation1 + $0x23] ss:$4 sm:$0xff] %v778_v20 }
  0xdf   : > { %v9646_v22 = vld [vmem:[#allocation1] sm:$0xff]  ;;  %v9648_v23 = vld [vmem:[#allocation1 + $0x8] sm:$0xff]  ;;  %v9650_v24 = vld [vmem:[#allocation1 + $0x10] sm:$0xff] }
  0xe0   : > { %v9652_v25 = vld [vmem:[#allocation1 + $0x18] sm:$0xff]  ;;  %577 = vrot.lane.b32.xlu2 %v551_v62, %s9448_s12  ;;  %684 = vrot.lane.b32.xlu0 %v654_v63, %s9449_s13  ;;  %v9658_v26 = vld [vmem:[#allocation1 + $0x20] sm:$0xff] }
  0xe1   : > { %911 = vst [vmem:[#allocation1] ss:$4 sm:$0xff] %v9581_v31  ;;  %575 = vrot.lane.b32.xlu1 %v549_v61, %s9448_s12  ;;  %s9463_s12 = smov 108  }
  0xe2   : > { %914 = vst [vmem:[#allocation1 + $0x20] ss:$4 sm:$0xff] %v9585_v33 }
  0xe8   : > { %v9661_v27 = vld [vmem:[#allocation1] sm:$0xff]  ;;  %v9663_v28 = vld [vmem:[#allocation1 + $0x8] sm:$0xff]  ;;  %v9665_v29 = vld [vmem:[#allocation1 + $0x10] sm:$0xff]  ;;  %688 = vrot.lane.b32.xlu2 %v658_v1, %s9449_s13  ;;  %690 = vrot.lane.b32.xlu0 %v660_v2, %s9449_s13 }
  0xe9   : > { %v9669_v30 = vld [vmem:[#allocation1 + $0x18] sm:$0xff]  ;;  %686 = vrot.lane.b32.xlu1 %v656_v0, %s9449_s13  ;;  %v9673_v32 = vld [vmem:[#allocation1 + $0x20] sm:$0xff]  ;;  %v9675_v34 = vld [vmem:[#allocation1 + $0x28] sm:$0xff] }
  0xea   : > { %932 = vst [vmem:[#allocation1] ss:$4 sm:$0xff] %v9588_v38  ;;  %v9677_v35 = vld [vmem:[#allocation1 + $0x30] sm:$0xff]  ;;  %v9679_v37 = vld [vmem:[#allocation1 + $0x38] sm:$0xff] }
  0xeb   : > { %934 = vst [vmem:[#allocation1 + $0x20] ss:$4 sm:$0xff] %v909_v36 }
  0xf0   : > { %694 = vrot.lane.b32.xlu2 %v664_v4, %s9449_s13  ;;  %696 = vrot.lane.b32.xlu0 %v666_v5, %s9449_s13 }
  0xf1   : > { %v9683_v39 = vld [vmem:[#allocation1] sm:$0xff]  ;;  %v9685_v40 = vld [vmem:[#allocation1 + $0x8] sm:$0xff]  ;;  %v9687_v41 = vld [vmem:[#allocation1 + $0x10] sm:$0xff]  ;;  %692 = vrot.lane.b32.xlu1 %v662_v3, %s9449_s13 }
  0xf2   : > { %v9690_v42 = vld [vmem:[#allocation1 + $0x18] sm:$0xff]  ;;  %v9693_v43 = vld [vmem:[#allocation1 + $0x20] sm:$0xff] }
  0xf3   : > { %14318 = vst [vmem:[#allocation8_spill] sm:$0xff] %v9690_v42  ;;  %v1170_v3 = vld [vmem:[#allocation2 + $0x18] sm:$0x3] }
  0xf4   : > { %1042 = vst [vmem:[#allocation1 + $0x1] ss:$4 sm:$0xff] %v9581_v31 }
  0xf5   : > { %14319 = vst [vmem:[#allocation9_spill] sm:$0xff] %v9693_v43 }
  0xf6   : > { %1045 = vst [vmem:[#allocation1 + $0x21] ss:$4 sm:$0xff] %v9585_v33 }
  0xf8   : > { %702 = vrot.lane.b32.xlu0 %v676_v9, %s9449_s13  ;;  %700 = vrot.lane.b32.xlu2 %v674_v8, %s9449_s13 }
  0xf9   : > { %698 = vrot.lane.b32.xlu1 %v668_v7, %s9449_s13 }
  0xfa   : > { %v424_v47 = vpop.permute.xlu2 %423 }
  0xfb   : > { %v9699_v44 = vld [vmem:[#allocation1] sm:$0xff]  ;;  %v9701_v45 = vld [vmem:[#allocation1 + $0x8] sm:$0xff]  ;;  %v9703_v46 = vld [vmem:[#allocation1 + $0x10] sm:$0xff]  ;;  %v448_v8 = vrot.slane %v424_v47, 4 }
  0xfc   : > { %v9705_v48 = vld [vmem:[#allocation1 + $0x18] sm:$0xff] }
  0xfd   : > { %v9707_v49 = vld [vmem:[#allocation1 + $0x20] sm:$0xff]  ;;  %v9709_v50 = vld [vmem:[#allocation1 + $0x28] sm:$0xff]  ;;  %v9711_v51 = vld [vmem:[#allocation1 + $0x30] sm:$0xff]  ;;  %1063 = vst [vmem:[#allocation1 + $0x1] ss:$4 sm:$0xff] %v9588_v38 }
  0xfe   : > { %v9714_v53 = vld [vmem:[#allocation1 + $0x38] sm:$0xff] }
  0xff   : > { %1065 = vst [vmem:[#allocation1 + $0x21] ss:$4 sm:$0xff] %v1039_v52 }
 0x100   : > { %708 = vrot.lane.b32.xlu0 %v9623_v12, %s9449_s13  ;;  %706 = vrot.lane.b32.xlu2 %v9617_v11, %s9449_s13 }
 0x101   : > { %704 = vrot.lane.b32.xlu1 %v9615_v10, %s9449_s13  ;;  %s9464_s13 = smov 107  }
 0x102   : > { %v430_v54 = vpop.permute.xlu2 %429 }
 0x104   : > { %v9722_v55 = vld [vmem:[#allocation1] sm:$0xff]  ;;  %v9724_v56 = vld [vmem:[#allocation1 + $0x8] sm:$0xff]  ;;  %v9726_v57 = vld [vmem:[#allocation1 + $0x10] sm:$0xff] }
 0x105   : > { %14320 = vst [vmem:[#allocation10_spill] sm:$0xff] %v9722_v55  ;;  %v9728_v58 = vld [vmem:[#allocation1 + $0x18] sm:$0xff] }
 0x106   : > { %14321 = vst [vmem:[#allocation11_spill] sm:$0xff] %v9724_v56  ;;  %v9730_v59 = vld [vmem:[#allocation1 + $0x20] sm:$0xff] }
 0x107   : > { %14322 = vst [vmem:[#allocation12_spill] sm:$0xff] %v9726_v57 }
 0x108   : > { %14323 = vst [vmem:[#allocation13_spill] sm:$0xff] %v9728_v58  ;;  %819 = vrot.lane.b32.xlu0 %v9630_v15, %s9450_s14  ;;  %817 = vrot.lane.b32.xlu2 %v9628_v14, %s9450_s14 }
 0x109   : > { %14324 = vst [vmem:[#allocation14_spill] sm:$0xff] %v9730_v59  ;;  %815 = vrot.lane.b32.xlu1 %v9626_v13, %s9450_s14 }
 0x10a   : > { %1173 = vst [vmem:[#allocation1 + $0x2] ss:$4 sm:$0xff] %v9581_v31  ;;  %v9740_v60 = vpop.permute.xlu2 %435 }
 0x10b   : > { %1176 = vst [vmem:[#allocation1 + $0x22] ss:$4 sm:$0xff] %v9585_v33 }
 0x110   : > { %825 = vrot.lane.b32.xlu0 %v9640_v18, %s9450_s14  ;;  %823 = vrot.lane.b32.xlu2 %v9638_v17, %s9450_s14 }
 0x111   : > { %v9742_v61 = vld [vmem:[#allocation1] sm:$0xff]  ;;  %v9744_v62 = vld [vmem:[#allocation1 + $0x8] sm:$0xff]  ;;  %v9746_v63 = vld [vmem:[#allocation1 + $0x10] sm:$0xff]  ;;  %821 = vrot.lane.b32.xlu1 %v9632_v16, %s9450_s14 }
 0x112   : > { %v9748_v0 = vld [vmem:[#allocation1 + $0x18] sm:$0xff]  ;;  %v9750_v1 = vld [vmem:[#allocation1 + $0x20] sm:$0xff]  ;;  %v9752_v2 = vld [vmem:[#allocation1 + $0x28] sm:$0xff]  ;;  %v426_v6 = vpop.permute.xlu0 %425  ;;  %v9765_v7 = vpop.permute.xlu2 %441 }
 0x113   : > { %v9754_v4 = vld [vmem:[#allocation1 + $0x30] sm:$0xff]  ;;  %v9756_v5 = vld [vmem:[#allocation1 + $0x38] sm:$0xff]  ;;  %1194 = vst [vmem:[#allocation1 + $0x2] ss:$4 sm:$0xff] %v9588_v38  ;;  %v449_v9 = vrot.slane %v426_v6, 4  ;;  %v422_v10 = vpop.permute.xlu1 %421 }
 0x114   : > { %1196 = vst [vmem:[#allocation1 + $0x22] ss:$4 sm:$0xff] %v1170_v3  ;;  %v447_v11 = vrot.slane %v422_v10, 4  ;;  %v451_v3 = vrot.slane %v430_v54, 4 }
 0x115   : > { %v464_v15 = vsel %vm460_vm2, %v448_v8, %v449_v9 }
 0x116   : > { %v465_v18 = vsel %vm462_vm4, %v424_v47, %v464_v15  ;;  %v461_v20 = vsel %vm460_vm2, %v447_v11, %v448_v8 }
 0x117   : > { %v463_v36 = vsel %vm462_vm4, %v422_v10, %v461_v20  ;;  %501 = vst [vmem:[#allocation4 + $0x8] sm:$0x11] %v465_v18  ;;  %v1301_v20 = vld [vmem:[#allocation2 + $0x18] sm:$0x3] }
 0x118   : > { %829 = vrot.lane.b32.xlu2 %v9644_v21, %s9450_s14  ;;  %831 = vrot.lane.b32.xlu0 %v9646_v22, %s9450_s14  ;;  %500 = vst [vmem:[#allocation4] sm:$0x11] %v463_v36 }
 0x119   : > { %827 = vrot.lane.b32.xlu1 %v9642_v19, %s9450_s14 }
 0x11a   : > { %v9767_v12 = vld [vmem:[#allocation1] sm:$0xff]  ;;  %v9769_v13 = vld [vmem:[#allocation1 + $0x8] sm:$0xff]  ;;  %v9771_v14 = vld [vmem:[#allocation1 + $0x10] sm:$0xff]  ;;  %v432_v47 = vpop.permute.xlu0 %431  ;;  %v9789_v52 = vpop.permute.xlu2 %553 }
 0x11b   : > { %14325 = vst [vmem:[#allocation15_spill] sm:$0xff] %v9767_v12  ;;  %v9774_v17 = vld [vmem:[#allocation1 + $0x18] sm:$0xff]  ;;  %v9776_v16 = vld [vmem:[#allocation1 + $0x20] sm:$0xff]  ;;  %v428_v8 = vpop.permute.xlu1 %427  ;;  %v452_v11 = vrot.slane %v432_v47, 4 }
 0x11c   : > { %14326 = vst [vmem:[#allocation16_spill] sm:$0xff] %v9769_v13  ;;  %v450_v10 = vrot.slane %v428_v8, 4 }
 0x11d   : > { %14327 = vst [vmem:[#allocation17_spill] sm:$0xff] %v9771_v14  ;;  %v470_v15 = vsel %vm460_vm2, %v451_v3, %v452_v11 }
 0x11e   : > { %14328 = vst [vmem:[#allocation18_spill] sm:$0xff] %v9774_v17  ;;  %v466_v21 = vsel %vm460_vm2, %v449_v9, %v450_v10  ;;  %v471_v22 = vsel %vm462_vm4, %v430_v54, %v470_v15 }
 0x11f   : > { %14329 = vst [vmem:[#allocation19_spill] sm:$0xff] %v9776_v16  ;;  %v468_v16 = vsel %vm460_vm2, %v450_v10, %v451_v3  ;;  %v467_v17 = vsel %vm462_vm4, %v426_v6, %v466_v21 }
 0x120   : > { %1304 = vst [vmem:[#allocation1 + $0x3] ss:$4 sm:$0xff] %v9581_v31  ;;  %v469_v42 = vsel %vm462_vm4, %v428_v8, %v468_v16  ;;  %835 = vrot.lane.b32.xlu2 %v9650_v24, %s9450_s14  ;;  %837 = vrot.lane.b32.xlu0 %v9652_v25, %s9450_s14 }
 0x121   : > { %1307 = vst [vmem:[#allocation1 + $0x23] ss:$4 sm:$0xff] %v9585_v33  ;;  %833 = vrot.lane.b32.xlu1 %v9648_v23, %s9450_s14 }
 0x122   : > { %504 = vst [vmem:[#allocation4 + $0x20] sm:$0x11] %v471_v22  ;;  %v438_v6 = vpop.permute.xlu0 %437  ;;  %v9819_v16 = vpop.permute.xlu2 %559 }
 0x123   : > { %502 = vst [vmem:[#allocation4 + $0x10] sm:$0x11] %v467_v17  ;;  %v454_v17 = vrot.slane %v9740_v60, 4  ;;  %v434_v8 = vpop.permute.xlu1 %433  ;;  %v455_v10 = vrot.slane %v438_v6, 4 }
 0x124   : > { %503 = vst [vmem:[#allocation4 + $0x18] sm:$0x11] %v469_v42  ;;  %v453_v24 = vrot.slane %v434_v8, 4 }
 0x125   : > { %v476_v25 = vsel %vm460_vm2, %v454_v17, %v455_v10 }
 0x126   : > { %v472_v15 = vsel %vm460_vm2, %v452_v11, %v453_v24  ;;  %v477_v23 = vsel %vm462_vm4, %v9740_v60, %v476_v25 }
 0x127   : > { %v9795_v18 = vld [vmem:[#allocation1] sm:$0xff]  ;;  %v9797_v19 = vld [vmem:[#allocation1 + $0x8] sm:$0xff]  ;;  %v9813_v54 = vld [vmem:[#allocation1 + $0x10] sm:$0xff]  ;;  %v473_v42 = vsel %vm462_vm4, %v432_v47, %v472_v15  ;;  %507 = vst [vmem:[#allocation4 + $0x38] sm:$0x11] %v477_v23 }
 0x128   : > { %v9799_v36 = vld [vmem:[#allocation1 + $0x20] sm:$0xff]  ;;  %v9801_v59 = vld [vmem:[#allocation1 + $0x28] sm:$0xff]  ;;  %v9803_v43 = vld [vmem:[#allocation1 + $0x30] sm:$0xff]  ;;  %505 = vst [vmem:[#allocation4 + $0x28] sm:$0x11] %v473_v42  ;;  %947 = vrot.lane.b32.xlu0 %v9663_v28, %s9451_s15  ;;  %945 = vrot.lane.b32.xlu2 %v9661_v27, %s9451_s15  ;;  %v457_v28 = vrot.slane %v9765_v7, 4 }
 0x129   : > { %v9807_v9 = vld [vmem:[#allocation1 + $0x38] sm:$0xff]  ;;  %839 = vrot.lane.b32.xlu1 %v9658_v26, %s9450_s14  ;;  %s14292_s14 = smov 106  }
 0x12a   : > { %v9815_v3 = vld [vmem:[#allocation1 + $0x18] sm:$0xff]  ;;  %1327 = vst [vmem:[#allocation1 + $0x23] ss:$4 sm:$0xff] %v1301_v20  ;;  %v474_v20 = vsel %vm460_vm2, %v453_v24, %v454_v17  ;;  %v444_v60 = vpop.permute.xlu0 %443  ;;  %v9839_v47 = vpop.permute.xlu2 %565 }
 0x12b   : > { %1325 = vst [vmem:[#allocation1 + $0x3] ss:$4 sm:$0xff] %v9588_v38  ;;  %v475_v21 = vsel %vm462_vm4, %v434_v8, %v474_v20  ;;  %v440_v24 = vpop.permute.xlu1 %439  ;;  %v458_v25 = vrot.slane %v444_v60, 4 }
 0x12c   : > { %506 = vst [vmem:[#allocation4 + $0x30] sm:$0x11] %v475_v21  ;;  %v456_v15 = vrot.slane %v440_v24, 4 }
 0x12d   : > { %v482_v26 = vsel %vm460_vm2, %v457_v28, %v458_v25 }
 0x12e   : > { %v478_v20 = vsel %vm460_vm2, %v455_v10, %v456_v15  ;;  %v480_v23 = vsel %vm460_vm2, %v456_v15, %v457_v28  ;;  %v483_v42 = vsel %vm462_vm4, %v9765_v7, %v482_v26 }
 0x12f   : > { %v479_v21 = vsel %vm462_vm4, %v438_v6, %v478_v20  ;;  %510 = vst [vmem:[#allocation4 + $0x50] sm:$0x11] %v483_v42  ;;  %v1432_v6 = vld [vmem:[#allocation2 + $0x18] sm:$0x3] }
 0x130   : > { %508 = vst [vmem:[#allocation4 + $0x40] sm:$0x11] %v479_v21  ;;  %953 = vrot.lane.b32.xlu0 %v9673_v32, %s9451_s15  ;;  %951 = vrot.lane.b32.xlu2 %v9669_v30, %s9451_s15 }
 0x131   : > { %v9830_v22 = vld [vmem:[#allocation1 + $0x20] sm:$0xff]  ;;  %949 = vrot.lane.b32.xlu1 %v9665_v29, %s9451_s15 }
 0x132   : > { %14330 = vst [vmem:[#allocation20_spill] sm:$0xff] %v9830_v22  ;;  %v9841_v11 = vld [vmem:[#allocation1] sm:$0xff]  ;;  %v9843_v17 = vld [vmem:[#allocation1 + $0x8] sm:$0xff]  ;;  %v9845_v8 = vld [vmem:[#allocation1 + $0x10] sm:$0xff]  ;;  %v481_v22 = vsel %vm462_vm4, %v440_v24, %v480_v23  ;;  %v556_v10 = vpop.permute.xlu0 %555  ;;  %v9872_v28 = vpop.permute.xlu2 %571  ;;  %v579_v24 = vrot.slane %v9789_v52, 4 }
 0x133   : > { %1437 = vst [vmem:[#allocation1 + $0x20] ss:$4 sm:$0xff] %v9585_v33  ;;  %v9848_v27 = vld [vmem:[#allocation1 + $0x18] sm:$0xff]  ;;  %v446_v15 = vpop.permute.xlu1 %445  ;;  %v580_v26 = vrot.slane %v556_v10, 4 }
 0x134   : > { %14331 = vst [vmem:[#allocation21_spill] sm:$0xff] %v9841_v11 }
 0x135   : > { %14332 = vst [vmem:[#allocation22_spill] sm:$0xff] %v9843_v17  ;;  %v592_v23 = vsel %vm460_vm2, %v579_v24, %v580_v26 }
 0x136   : > { %14333 = vst [vmem:[#allocation23_spill] sm:$0xff] %v9845_v8 }
 0x137   : > { %14334 = vst [vmem:[#allocation24_spill] sm:$0xff] %v9848_v27 }
 0x138   : > { %1434 = vst [vmem:[#allocation1] ss:$4 sm:$0xff] %v9581_v31  ;;  %959 = vrot.lane.b32.xlu0 %v9679_v37, %s9451_s15  ;;  %957 = vrot.lane.b32.xlu2 %v9677_v35, %s9451_s15 }
 0x139   : > { %509 = vst [vmem:[#allocation4 + $0x48] sm:$0x11] %v481_v22  ;;  %v459_v22 = vrot.slane %v446_v15, 4  ;;  %955 = vrot.lane.b32.xlu1 %v9675_v34, %s9451_s15 }
 0x13a   : > { %v9858_v58 = vld [vmem:[#allocation1 + $0x20] sm:$0xff]  ;;  %v9860_v27 = vld [vmem:[#allocation1 + $0x28] sm:$0xff]  ;;  %v9862_v8 = vld [vmem:[#allocation1 + $0x38] sm:$0xff]  ;;  %v562_v24 = vpop.permute.xlu0 %561 }
 0x13b   : > { %v9870_v7 = vld [vmem:[#allocation1 + $0x30] sm:$0xff]  ;;  %v484_v42 = vsel %vm460_vm2, %v458_v25, %v459_v22  ;;  %v486_v21 = vsel %vm462_vm4, %v446_v15, %v459_v22  ;;  %v9898_v15 = vpop.permute.xlu2 %577 }
 0x13c   : > { %1457 = vst [vmem:[#allocation1 + $0x20] ss:$4 sm:$0xff] %v1432_v6  ;;  %v594_v6 = vsel %vm593_vm8, %v9789_v52, %v592_v23  ;;  %v485_v14 = vsel %vm462_vm4, %v444_v60, %v484_v42  ;;  %v582_v52 = vrot.slane %v9819_v16, 4  ;;  %v583_v60 = vrot.slane %v562_v24, 4 }
 0x13d   : > { %512 = vst [vmem:[#allocation4 + $0x60] sm:$0x1] %v486_v21  ;;  %v14232_v37 = vrot.slane %v9898_v15, 4  ;;  %vm14297_vm4 = vcmask 1031168  }
 0x13e   : > { %511 = vst [vmem:[#allocation4 + $0x58] sm:$0x11] %v485_v14  ;;  %v558_v14 = vpop.permute.xlu1 %557  ;;  %v599_v35 = vsel %vm460_vm2, %v582_v52, %v583_v60 }
 0x13f   : > { %v9875_v32 = vld [vmem:[#allocation1] sm:$0xff]  ;;  %v9877_v20 = vld [vmem:[#allocation1 + $0x8] sm:$0xff]  ;;  %v9879_v30 = vld [vmem:[#allocation1 + $0x10] sm:$0xff]  ;;  %631 = vst [vmem:[#allocation4] sm:$0x22] %v594_v6  ;;  %v581_v22 = vrot.slane %v558_v14, 4  ;;  %v617_v34 = vsel %vm593_vm8, %v9898_v15, %v14232_v37  ;;  %v600_v21 = vsel %vm593_vm8, %v9819_v16, %v599_v35 }
 0x140   : > { %v9881_v29 = vld [vmem:[#allocation1 + $0x18] sm:$0xff]  ;;  %643 = vst [vmem:[#allocation4 + $0x60] sm:$0x2] %v617_v34  ;;  %965 = vrot.lane.b32.xlu0 %v9687_v41, %s9451_s15  ;;  %963 = vrot.lane.b32.xlu2 %v9685_v40, %s9451_s15  ;;  %v585_v40 = vrot.slane %v9839_v47, 4 }
 0x141   : > { %1455 = vst [vmem:[#allocation1] ss:$4 sm:$0xff] %v9588_v38  ;;  %v595_v23 = vsel %vm460_vm2, %v580_v26, %v581_v22  ;;  %v597_v42 = vsel %vm460_vm2, %v581_v22, %v582_v52  ;;  %961 = vrot.lane.b32.xlu1 %v9683_v39, %s9451_s15 }
 0x142   : > { %v598_v57 = vsel %vm593_vm8, %v558_v14, %v597_v42  ;;  %634 = vst [vmem:[#allocation4 + $0x18] sm:$0x22] %v600_v21  ;;  %v568_v52 = vpop.permute.xlu0 %567 }
 0x143   : > { %v9896_v25 = vld [vmem:[#allocation1 + $0x20] sm:$0xff]  ;;  %633 = vst [vmem:[#allocation4 + $0x10] sm:$0x22] %v598_v57  ;;  %v9934_v14 = vpop.permute.xlu2 %688  ;;  %v586_v22 = vrot.slane %v568_v52, 4 }
 0x144   : > { %14335 = vst [vmem:[#allocation25_spill] sm:$0xff] %v9896_v25  ;;  %v596_v25 = vsel %vm593_vm8, %v556_v10, %v595_v23 }
 0x145   : > { %1568 = vst [vmem:[#allocation1 + $0x21] ss:$4 sm:$0xff] %v9585_v33  ;;  %v605_v35 = vsel %vm460_vm2, %v585_v40, %v586_v22 }
 0x146   : > { %632 = vst [vmem:[#allocation4 + $0x8] sm:$0x22] %v596_v25  ;;  %v1562_v25 = vld [vmem:[#allocation2 + $0x18] sm:$0x3]  ;;  %v564_v57 = vpop.permute.xlu1 %563  ;;  %v606_v42 = vsel %vm593_vm8, %v9839_v47, %v605_v35 }
 0x147   : > { %v584_v39 = vrot.slane %v564_v57, 4  ;;  %637 = vst [vmem:[#allocation4 + $0x30] sm:$0x22] %v606_v42 }
 0x148   : > { %v9912_v6 = vld [vmem:[#allocation1] sm:$0xff]  ;;  %v9916_v17 = vld [vmem:[#allocation1 + $0x8] sm:$0xff]  ;;  %v9918_v13 = vld [vmem:[#allocation1 + $0x10] sm:$0xff]  ;;  %1086 = vrot.lane.b32.xlu2 %v9709_v50, %s9452_s16  ;;  %1076 = vrot.lane.b32.xlu0 %v9699_v44, %s9452_s16  ;;  %v588_v50 = vrot.slane %v9872_v28, 4 }
 0x149   : > { %14336 = vst [vmem:[#allocation26_spill] sm:$0xff] %v9912_v6  ;;  %v9920_v37 = vld [vmem:[#allocation1 + $0x18] sm:$0xff]  ;;  %v601_v34 = vsel %vm460_vm2, %v583_v60, %v584_v39  ;;  %v603_v23 = vsel %vm460_vm2, %v584_v39, %v585_v40  ;;  %1078 = vrot.lane.b32.xlu1 %v9701_v45, %s9452_s16 }
 0x14a   : > { %14337 = vst [vmem:[#allocation27_spill] sm:$0xff] %v9916_v17  ;;  %v602_v21 = vsel %vm593_vm8, %v562_v24, %v601_v34 }
 0x14b   : > { %14338 = vst [vmem:[#allocation28_spill] sm:$0xff] %v9918_v13  ;;  %v9959_v40 = vpop.permute.xlu2 %694 }
 0x14c   : > { %14339 = vst [vmem:[#allocation29_spill] sm:$0xff] %v9920_v37  ;;  %v9928_v16 = vld [vmem:[#allocation1 + $0x20] sm:$0xff]  ;;  %v9930_v10 = vld [vmem:[#allocation1 + $0x28] sm:$0xff]  ;;  %v9932_v26 = vld [vmem:[#allocation1 + $0x30] sm:$0xff]  ;;  %v604_v37 = vsel %vm593_vm8, %v564_v57, %v603_v23 }
 0x14d   : > { %1565 = vst [vmem:[#allocation1 + $0x1] ss:$4 sm:$0xff] %v9581_v31  ;;  %v9937_v41 = vld [vmem:[#allocation1 + $0x38] sm:$0xff] }
 0x14e   : > { %1588 = vst [vmem:[#allocation1 + $0x21] ss:$4 sm:$0xff] %v1562_v25  ;;  %v574_v25 = vpop.permute.xlu0 %573 }
 0x14f   : > { %635 = vst [vmem:[#allocation4 + $0x20] sm:$0x22] %v602_v21  ;;  %v589_v44 = vrot.slane %v574_v25, 4 }
 0x150   : > { %636 = vst [vmem:[#allocation4 + $0x28] sm:$0x22] %v604_v37  ;;  %v570_v37 = vpop.permute.xlu1 %569  ;;  %1082 = vrot.lane.b32.xlu0 %v9705_v48, %s9452_s16  ;;  %1207 = vrot.lane.b32.xlu2 %v9742_v61, %s9453_s17 }
 0x151   : > { %v587_v45 = vrot.slane %v570_v37, 4  ;;  %v611_v35 = vsel %vm460_vm2, %v588_v50, %v589_v44  ;;  %1080 = vrot.lane.b32.xlu1 %v9703_v46, %s9452_s16 }
 0x152   : > { %v612_v34 = vsel %vm593_vm8, %v9872_v28, %v611_v35 }
 0x153   : > { %v607_v23 = vsel %vm460_vm2, %v586_v22, %v587_v45  ;;  %v609_v42 = vsel %vm460_vm2, %v587_v45, %v588_v50  ;;  %640 = vst [vmem:[#allocation4 + $0x48] sm:$0x22] %v612_v34  ;;  %v9981_v22 = vpop.permute.xlu2 %700  ;;  %v1693_v45 = vld [vmem:[#allocation2 + $0x18] sm:$0x3] }
 0x154   : > { %v9953_v60 = vld [vmem:[#allocation1] sm:$0xff]  ;;  %v9955_v47 = vld [vmem:[#allocation1 + $0x8] sm:$0xff]  ;;  %v9957_v24 = vld [vmem:[#allocation1 + $0x10] sm:$0xff]  ;;  %v608_v21 = vsel %vm593_vm8, %v568_v52, %v607_v23 }
 0x155   : > { %v9961_v57 = vld [vmem:[#allocation1 + $0x18] sm:$0xff]  ;;  %v9963_v39 = vld [vmem:[#allocation1 + $0x20] sm:$0xff]  ;;  %638 = vst [vmem:[#allocation4 + $0x38] sm:$0x22] %v608_v21  ;;  %v14345_v21 = vrot.slane %v9898_v15, 4  ;;  %v712_v15 = vrot.slane %v9934_v14, 4 }
 0x156   : > { %14340 = vst [vmem:[#allocation30_spill] sm:$0xff] %v9963_v39  ;;  %v610_v39 = vsel %vm593_vm8, %v570_v37, %v609_v42  ;;  %v685_v28 = vpop.permute.xlu0 %684 }
 0x157   : > { %1586 = vst [vmem:[#allocation1 + $0x1] ss:$4 sm:$0xff] %v9588_v38 }
 0x158   : > { %1699 = vst [vmem:[#allocation1 + $0x22] ss:$4 sm:$0xff] %v9585_v33  ;;  %v576_v35 = vpop.permute.xlu1 %575  ;;  %1084 = vrot.lane.b32.xlu0 %v9707_v49, %s9452_s16  ;;  %1211 = vrot.lane.b32.xlu2 %v9746_v63, %s9453_s17 }
 0x159   : > { %639 = vst [vmem:[#allocation4 + $0x40] sm:$0x22] %v610_v39  ;;  %v590_v39 = vrot.slane %v576_v35, 4  ;;  %1213 = vrot.lane.b32.xlu1 %v9748_v0, %s9453_s17 }
 0x15b   : > { %v613_v42 = vsel %vm460_vm2, %v589_v44, %v590_v39 }
 0x15e   : > { %v9983_v50 = vld [vmem:[#allocation1] sm:$0xff]  ;;  %v9985_v52 = vld [vmem:[#allocation1 + $0x8] sm:$0xff]  ;;  %v9987_v37 = vld [vmem:[#allocation1 + $0x10] sm:$0xff]  ;;  %v691_v44 = vpop.permute.xlu0 %690 }
 0x15f   : > { %14341 = vst [vmem:[#allocation31_spill] sm:$0xff] %v9983_v50  ;;  %v9989_v48 = vld [vmem:[#allocation1 + $0x18] sm:$0xff]  ;;  %v9991_v34 = vld [vmem:[#allocation1 + $0x20] sm:$0xff]  ;;  %v9993_v61 = vld [vmem:[#allocation1 + $0x28] sm:$0xff] }
 0x160   : > { %14342 = vst [vmem:[#allocation32_spill] sm:$0xff] %v9985_v52  ;;  %v9996_v46 = vld [vmem:[#allocation1 + $0x30] sm:$0xff]  ;;  %v9998_v23 = vld [vmem:[#allocation1 + $0x38] sm:$0xff]  ;;  %1209 = vrot.lane.b32.xlu0 %v9744_v62, %s9453_s17  ;;  %1340 = vrot.lane.b32.xlu2 %v9797_v19, %s9454_s18 }
 0x161   : > { %14343 = vst [vmem:[#allocation33_spill] sm:$0xff] %v9987_v37  ;;  %v615_v37 = vsel %vm460_vm2, %v590_v39, %v14345_v21  ;;  %v713_v39 = vrot.slane %v691_v44, 4  ;;  %1215 = vrot.lane.b32.xlu1 %v9750_v1, %s9453_s17 }
 0x162   : > { %14344 = vst [vmem:[#allocation34_spill] sm:$0xff] %v9989_v48  ;;  %v614_v48 = vsel %vm593_vm8, %v574_v25, %v613_v42  ;;  %v616_v13 = vsel %vm593_vm8, %v576_v35, %v615_v37  ;;  %v687_v25 = vpop.permute.xlu1 %686  ;;  %vm14279_vm8 = vcmask 900096  }
 0x163   : > { %1696 = vst [vmem:[#allocation1 + $0x2] ss:$4 sm:$0xff] %v9581_v31  ;;  %v711_v63 = vrot.slane %v687_v25, 4  ;;  %v728_v0 = vsel %vm460_vm2, %v712_v15, %v713_v39 }
 0x164   : > { %1719 = vst [vmem:[#allocation1 + $0x22] ss:$4 sm:$0xff] %v1693_v45  ;;  %v10012_v45 = vpop.permute.xlu2 %706  ;;  %v729_v17 = vsel %vm724_vm15, %v9934_v14, %v728_v0 }
 0x165   : > { %641 = vst [vmem:[#allocation4 + $0x50] sm:$0x22] %v614_v48  ;;  %v710_v48 = vrot.slane %v685_v28, 4  ;;  %v726_v56 = vsel %vm460_vm2, %v711_v63, %v712_v15 }
 0x166   : > { %642 = vst [vmem:[#allocation4 + $0x58] sm:$0x22] %v616_v13  ;;  %v727_v12 = vsel %vm724_vm15, %v687_v25, %v726_v56  ;;  %v697_v14 = vpop.permute.xlu0 %696 }
 0x167   : > { %v723_v21 = vsel %vm460_vm2, %v710_v48, %v711_v63  ;;  %764 = vst [vmem:[#allocation4 + $0x10] sm:$0x44] %v729_v17  ;;  %v716_v56 = vrot.slane %v697_v14, 4 }
 0x168   : > { %v725_v52 = vsel %vm724_vm15, %v685_v28, %v723_v21  ;;  %763 = vst [vmem:[#allocation4 + $0x8] sm:$0x44] %v727_v12  ;;  %1217 = vrot.lane.b32.xlu0 %v9752_v2, %s9453_s17  ;;  %1344 = vrot.lane.b32.xlu2 %v9815_v3, %s9454_s18 }
 0x169   : > { %762 = vst [vmem:[#allocation4] sm:$0x44] %v725_v52  ;;  %1338 = vrot.lane.b32.xlu1 %v9795_v18, %s9454_s18 }
 0x16a   : > { %v10015_v37 = vld [vmem:[#allocation1] sm:$0xff]  ;;  %v10017_v35 = vld [vmem:[#allocation1 + $0x8] sm:$0xff]  ;;  %v10019_v49 = vld [vmem:[#allocation1 + $0x10] sm:$0xff]  ;;  %v693_v28 = vpop.permute.xlu1 %692 }
 0x16b   : > { %v10021_v13 = vld [vmem:[#allocation1 + $0x18] sm:$0xff]  ;;  %v10023_v42 = vld [vmem:[#allocation1 + $0x20] sm:$0xff]  ;;  %v714_v17 = vrot.slane %v693_v28, 4 }
 0x16c   : > { %14346 = vst [vmem:[#allocation35_spill] sm:$0xff] %v10023_v42  ;;  %v10040_v15 = vpop.permute.xlu2 %817 }
 0x16d   : > { %1717 = vst [vmem:[#allocation1 + $0x2] ss:$4 sm:$0xff] %v9588_v38  ;;  %v730_v1 = vsel %vm460_vm2, %v713_v39, %v714_v17  ;;  %v718_v39 = vrot.slane %v9981_v22, 4 }
 0x16e   : > { %1830 = vst [vmem:[#allocation1 + $0x23] ss:$4 sm:$0xff] %v9585_v33  ;;  %v715_v33 = vrot.slane %v9959_v40, 4  ;;  %v731_v21 = vsel %vm724_vm15, %v691_v44, %v730_v1 }
 0x16f   : > { %765 = vst [vmem:[#allocation4 + $0x18] sm:$0x44] %v731_v21 }
 0x170   : > { %v734_v19 = vsel %vm460_vm2, %v715_v33, %v716_v56  ;;  %v732_v48 = vsel %vm460_vm2, %v714_v17, %v715_v33  ;;  %1342 = vrot.lane.b32.xlu0 %v9813_v54, %s9454_s18  ;;  %1346 = vrot.lane.b32.xlu2 %v9799_v36, %s9454_s18 }
 0x171   : > { %v735_v63 = vsel %vm724_vm15, %v9959_v40, %v734_v19  ;;  %v733_v42 = vsel %vm724_vm15, %v693_v28, %v732_v48  ;;  %v703_v40 = vpop.permute.xlu0 %702  ;;  %1348 = vrot.lane.b32.xlu1 %v9801_v59, %s9454_s18 }
 0x172   : > { %767 = vst [vmem:[#allocation4 + $0x28] sm:$0x44] %v735_v63  ;;  %v699_v33 = vpop.permute.xlu1 %698  ;;  %v719_v28 = vrot.slane %v703_v40, 4 }
 0x173   : > { %766 = vst [vmem:[#allocation4 + $0x20] sm:$0x44] %v733_v42  ;;  %v717_v17 = vrot.slane %v699_v33, 4 }
 0x174   : > { %v10043_v52 = vld [vmem:[#allocation1] sm:$0xff]  ;;  %v10045_v25 = vld [vmem:[#allocation1 + $0x8] sm:$0xff]  ;;  %v10047_v62 = vld [vmem:[#allocation1 + $0x10] sm:$0xff]  ;;  %v10073_v44 = vpop.permute.xlu2 %823  ;;  %v740_v19 = vsel %vm460_vm2, %v718_v39, %v719_v28 }
 0x175   : > { %14347 = vst [vmem:[#allocation36_spill] sm:$0xff] %v10043_v52  ;;  %v10050_v12 = vld [vmem:[#allocation1 + $0x18] sm:$0xff]  ;;  %v10057_v0 = vld [vmem:[#allocation1 + $0x20] sm:$0xff]  ;;  %v736_v2 = vsel %vm460_vm2, %v716_v56, %v717_v17  ;;  %v738_v3 = vsel %vm460_vm2, %v717_v17, %v718_v39  ;;  %v741_v42 = vsel %vm724_vm15, %v9981_v22, %v740_v19 }
 0x176   : > { %14348 = vst [vmem:[#allocation37_spill] sm:$0xff] %v10045_v25  ;;  %v10063_v25 = vld [vmem:[#allocation1 + $0x30] sm:$0xff]  ;;  %v737_v1 = vsel %vm724_vm15, %v697_v14, %v736_v2  ;;  %v739_v48 = vsel %vm724_vm15, %v699_v33, %v738_v3  ;;  %v721_v33 = vrot.slane %v10012_v45, 4 }
 0x177   : > { %14349 = vst [vmem:[#allocation38_spill] sm:$0xff] %v10047_v62  ;;  %v10061_v62 = vld [vmem:[#allocation1 + $0x28] sm:$0xff]  ;;  %v10099_v14 = vld [vmem:[#allocation2 + $0x9] sm:$0xff] }
 0x178   : > { %14350 = vst [vmem:[#allocation39_spill] sm:$0xff] %v10050_v12  ;;  %v10065_v12 = vld [vmem:[#allocation1 + $0x38] sm:$0xff]  ;;  %1476 = vrot.lane.b32.xlu0 %v9858_v58, %s9455_s19  ;;  %1470 = vrot.lane.b32.xlu2 %v9877_v20, %s9455_s19  ;;  %v842_v20 = vrot.slane %v10040_v15, 4 }
 0x179   : > { %1827 = vst [vmem:[#allocation1 + $0x3] ss:$4 sm:$0xff] %v9581_v31  ;;  %v1824_v31 = vld [vmem:[#allocation2 + $0x18] sm:$0x3]  ;;  %v709_v56 = vpop.permute.xlu0 %708  ;;  %1468 = vrot.lane.b32.xlu1 %v9875_v32, %s9455_s19 }
 0x17a   : > { %1850 = vst [vmem:[#allocation1 + $0x23] ss:$4 sm:$0xff] %v1824_v31  ;;  %v705_v17 = vpop.permute.xlu1 %704  ;;  %v722_v54 = vrot.slane %v709_v56, 4 }
 0x17b   : > { %770 = vst [vmem:[#allocation4 + $0x40] sm:$0x44] %v741_v42  ;;  %v720_v36 = vrot.slane %v705_v17, 4 }
 0x17c   : > { %768 = vst [vmem:[#allocation4 + $0x30] sm:$0x44] %v737_v1  ;;  %v10101_v39 = vpop.permute.xlu2 %829  ;;  %v746_v19 = vsel %vm460_vm2, %v721_v33, %v722_v54  ;;  %v748_v59 = vsel %vm724_vm15, %v709_v56, %v722_v54  ;;  %v1955_v56 = vld [vmem:[#allocation2 + $0x19] sm:$0x1] }
 0x17d   : > { %769 = vst [vmem:[#allocation4 + $0x38] sm:$0x44] %v739_v48  ;;  %v742_v2 = vsel %vm460_vm2, %v719_v28, %v720_v36  ;;  %v744_v3 = vsel %vm460_vm2, %v720_v36, %v721_v33  ;;  %v747_v42 = vsel %vm724_vm15, %v10012_v45, %v746_v19  ;;  %v10114_v48 = vld [vmem:[#allocation2 + $0x1] sm:$0xff] }
 0x17e   : > { %774 = vst [vmem:[#allocation4 + $0x60] sm:$0x4] %v748_v59  ;;  %v745_v1 = vsel %vm724_vm15, %v705_v17, %v744_v3 }
 0x17f   : > { %773 = vst [vmem:[#allocation4 + $0x58] sm:$0x44] %v747_v42 }
 0x180   : > { %v10081_v18 = vld [vmem:[#allocation1] sm:$0xff]  ;;  %v10085_v63 = vld [vmem:[#allocation1 + $0x8] sm:$0xff]  ;;  %v10087_v21 = vld [vmem:[#allocation1 + $0x10] sm:$0xff]  ;;  %772 = vst [vmem:[#allocation4 + $0x50] sm:$0x44] %v745_v1  ;;  %1474 = vrot.lane.b32.xlu2 %v9881_v29, %s9455_s19  ;;  %1599 = vrot.lane.b32.xlu0 %v9953_v60, %s9456_s20 }
 0x181   : > { %v10089_v31 = vld [vmem:[#allocation1 + $0x18] sm:$0xff]  ;;  %v10097_v22 = vld [vmem:[#allocation1 + $0x20] sm:$0xff]  ;;  %v820_v33 = vpop.permute.xlu0 %819  ;;  %1472 = vrot.lane.b32.xlu1 %v9879_v30, %s9455_s19 }
 0x182   : > { %14351 = vst [vmem:[#allocation40_spill] sm:$0xff] %v10097_v22  ;;  %v843_v19 = vrot.slane %v820_v33, 4  ;;  %v816_v59 = vpop.permute.xlu1 %815 }
 0x183   : > { %1848 = vst [vmem:[#allocation1 + $0x3] ss:$4 sm:$0xff] %v9588_v38  ;;  %v743_v38 = vsel %vm724_vm15, %v703_v40, %v742_v2  ;;  %v841_v3 = vrot.slane %v816_v59, 4  ;;  %vm2476_vm15 = vcmask 891904  }
 0x184   : > { %1960 = vst [vmem:[#allocation1 + $0x20] ss:$4 sm:$0xff] %v10099_v14  ;;  %v10128_v17 = vpop.permute.xlu2 %835  ;;  %v857_v42 = vsel %vm460_vm2, %v842_v20, %v843_v19 }
 0x185   : > { %771 = vst [vmem:[#allocation4 + $0x48] sm:$0x44] %v743_v38  ;;  %v858_v38 = vsel %vm855_vm0, %v10040_v15, %v857_v42  ;;  %v854_v1 = vsel %vm460_vm2, %v841_v3, %v842_v20 }
 0x186   : > { %894 = vst [vmem:[#allocation4 + $0x8] sm:$0x88] %v858_v38  ;;  %v856_v22 = vsel %vm855_vm0, %v816_v59, %v854_v1  ;;  %v10147_v59 = vld [vmem:[#allocation2 + $0x11] sm:$0xff] }
 0x187   : > { %893 = vst [vmem:[#allocation4] sm:$0x88] %v856_v22  ;;  %v845_v22 = vrot.slane %v10073_v44, 4 }
 0x188   : > { %1480 = vrot.lane.b32.xlu2 %v9870_v7, %s9455_s19  ;;  %1605 = vrot.lane.b32.xlu0 %v9961_v57, %s9456_s20 }
 0x189   : > { %v826_v20 = vpop.permute.xlu0 %825  ;;  %1478 = vrot.lane.b32.xlu1 %v9860_v27, %s9455_s19 }
 0x18a   : > { %v10122_v45 = vld [vmem:[#allocation1] sm:$0xff]  ;;  %v10124_v40 = vld [vmem:[#allocation1 + $0x8] sm:$0xff]  ;;  %v10126_v28 = vld [vmem:[#allocation1 + $0x10] sm:$0xff]  ;;  %v846_v3 = vrot.slane %v826_v20, 4  ;;  %v822_v42 = vpop.permute.xlu1 %821 }
 0x18b   : > { %14352 = vst [vmem:[#allocation41_spill] sm:$0xff] %v10122_v45  ;;  %v10130_v54 = vld [vmem:[#allocation1 + $0x18] sm:$0xff]  ;;  %v1965_v58 = vld [vmem:[#allocation1 + $0x20] sm:$0xff]  ;;  %v1966_v36 = vld [vmem:[#allocation1 + $0x28] sm:$0xff]  ;;  %v844_v60 = vrot.slane %v822_v42, 4 }
 0x18c   : > { %14353 = vst [vmem:[#allocation42_spill] sm:$0xff] %v10124_v40  ;;  %v1967_v32 = vld [vmem:[#allocation1 + $0x30] sm:$0xff]  ;;  %v1968_v2 = vld [vmem:[#allocation1 + $0x38] sm:$0xff]  ;;  %v863_v30 = vsel %vm460_vm2, %v845_v22, %v846_v3 }
 0x18d   : > { %14354 = vst [vmem:[#allocation43_spill] sm:$0xff] %v10126_v28  ;;  %v861_v38 = vsel %vm460_vm2, %v844_v60, %v845_v22 }
 0x18e   : > { %14355 = vst [vmem:[#allocation44_spill] sm:$0xff] %v10130_v54 }
 0x18f   : > { %1957 = vst [vmem:[#allocation1] ss:$4 sm:$0xff] %v10114_v48 }
 0x190   : > { %1972 = vst [vmem:[#allocation1 + $0x20] ss:$4 sm:$0xff] %v1955_v56  ;;  %1603 = vrot.lane.b32.xlu2 %v9957_v24, %s9456_s20  ;;  %1611 = vrot.lane.b32.xlu0 %v9932_v26, %s9456_s20 }
 0x191   : > { %1995 = vst [vmem:[#allocation4 + $0x14c] sm:$0x11] %v1965_v58  ;;  %1601 = vrot.lane.b32.xlu1 %v9955_v47, %s9456_s20 }
 0x192   : > { %1996 = vst [vmem:[#allocation4 + $0x154] sm:$0x11] %v1966_v36  ;;  %v10145_v36 = vpop.permute.xlu2 %945 }
 0x193   : > { %1997 = vst [vmem:[#allocation4 + $0x15c] sm:$0x11] %v1967_v32  ;;  %v864_v32 = vsel %vm855_vm0, %v10073_v44, %v863_v30  ;;  %v832_v44 = vpop.permute.xlu0 %831 }
 0x194   : > { %1998 = vst [vmem:[#allocation4 + $0x164] sm:$0x11] %v1968_v2  ;;  %v859_v2 = vsel %vm460_vm2, %v843_v19, %v844_v60 }
 0x195   : > { %v860_v1 = vsel %vm855_vm0, %v820_v33, %v859_v2  ;;  %897 = vst [vmem:[#allocation4 + $0x20] sm:$0x88] %v864_v32 }
 0x196   : > { %v1961_v56 = vld [vmem:[#allocation1] sm:$0xff]  ;;  %v1962_v15 = vld [vmem:[#allocation1 + $0x8] sm:$0xff]  ;;  %v1963_v58 = vld [vmem:[#allocation1 + $0x10] sm:$0xff]  ;;  %895 = vst [vmem:[#allocation4 + $0x10] sm:$0x88] %v860_v1 }
 0x197   : > { %v1964_v29 = vld [vmem:[#allocation1 + $0x18] sm:$0xff]  ;;  %1991 = vst [vmem:[#allocation4 + $0x12c] sm:$0x11] %v1961_v56  ;;  %v862_v56 = vsel %vm855_vm0, %v822_v42, %v861_v38  ;;  %v849_v42 = vrot.slane %v832_v44, 4 }
 0x198   : > { %1970 = vst [vmem:[#allocation1] ss:$4 sm:$0xff] %v10147_v59  ;;  %1609 = vrot.lane.b32.xlu2 %v9930_v10, %s9456_s20  ;;  %1732 = vrot.lane.b32.xlu0 %v10017_v35, %s9457_s23 }
 0x199   : > { %1992 = vst [vmem:[#allocation4 + $0x134] sm:$0x11] %v1962_v15  ;;  %v848_v15 = vrot.slane %v10101_v39, 4  ;;  %1607 = vrot.lane.b32.xlu1 %v9928_v16, %s9456_s20 }
 0x19a   : > { %1993 = vst [vmem:[#allocation4 + $0x13c] sm:$0x11] %v1963_v58  ;;  %v10164_v19 = vpop.permute.xlu2 %951 }
 0x19b   : > { %1994 = vst [vmem:[#allocation4 + $0x144] sm:$0x11] %v1964_v29  ;;  %v828_v29 = vpop.permute.xlu1 %827  ;;  %v869_v57 = vsel %vm460_vm2, %v848_v15, %v849_v42 }
 0x19c   : > { %896 = vst [vmem:[#allocation4 + $0x18] sm:$0x88] %v862_v56  ;;  %v847_v7 = vrot.slane %v828_v29, 4  ;;  %v870_v38 = vsel %vm855_vm0, %v10101_v39, %v869_v57  ;;  %v851_v56 = vrot.slane %v10128_v17, 4 }
 0x19d   : > { %900 = vst [vmem:[#allocation4 + $0x38] sm:$0x88] %v870_v38  ;;  %v2007_v38 = vld [vmem:[#allocation2 + $0x19] sm:$0x3] }
 0x19e   : > { %v865_v27 = vsel %vm460_vm2, %v846_v3, %v847_v7  ;;  %v867_v30 = vsel %vm460_vm2, %v847_v7, %v848_v15  ;;  %v1977_v3 = vld [vmem:[#allocation1 + $0x20] sm:$0xff] }
 0x19f   : > { %v1973_v33 = vld [vmem:[#allocation1] sm:$0xff]  ;;  %v1974_v58 = vld [vmem:[#allocation1 + $0x8] sm:$0xff]  ;;  %v1975_v22 = vld [vmem:[#allocation1 + $0x10] sm:$0xff]  ;;  %v866_v32 = vsel %vm855_vm0, %v826_v20, %v865_v27  ;;  %v868_v2 = vsel %vm855_vm0, %v828_v29, %v867_v30  ;;  %v838_v20 = vpop.permute.xlu0 %837  ;;  %2013 = vst [vmem:[#allocation1 + $0x21] ss:$4 sm:$0xff] %v10099_v14  ;;  %v971_v27 = vrot.slane %v10145_v36, 4 }
 0x1a0   : > { %v1976_v60 = vld [vmem:[#allocation1 + $0x18] sm:$0xff]  ;;  %1999 = vst [vmem:[#allocation4 + $0x16c] sm:$0x11] %v1973_v33  ;;  %v852_v39 = vrot.slane %v838_v20, 4  ;;  %1734 = vrot.lane.b32.xlu0 %v10019_v49, %s9457_s23  ;;  %1730 = vrot.lane.b32.xlu2 %v10015_v37, %s9457_s23  ;;  %v974_v49 = vrot.slane %v10164_v19, 4 }
 0x1a1   : > { %2000 = vst [vmem:[#allocation4 + $0x174] sm:$0x11] %v1974_v58  ;;  %1736 = vrot.lane.b32.xlu1 %v10021_v13, %s9457_s23 }
 0x1a2   : > { %2001 = vst [vmem:[#allocation4 + $0x17c] sm:$0x11] %v1975_v22  ;;  %v10181_v1 = vpop.permute.xlu2 %957  ;;  %v875_v24 = vsel %vm460_vm2, %v851_v56, %v852_v39 }
 0x1a3   : > { %2002 = vst [vmem:[#allocation4 + $0x184] sm:$0x11] %v1976_v60  ;;  %v834_v15 = vpop.permute.xlu1 %833  ;;  %v876_v58 = vsel %vm855_vm0, %v10128_v17, %v875_v24 }
 0x1a4   : > { %2010 = vst [vmem:[#allocation1 + $0x1] ss:$4 sm:$0xff] %v10114_v48  ;;  %v850_v33 = vrot.slane %v834_v15, 4 }
 0x1a5   : > { %898 = vst [vmem:[#allocation4 + $0x28] sm:$0x88] %v866_v32 }
 0x1a6   : > { %899 = vst [vmem:[#allocation4 + $0x30] sm:$0x88] %v868_v2  ;;  %v871_v26 = vsel %vm460_vm2, %v849_v42, %v850_v33  ;;  %v873_v47 = vsel %vm460_vm2, %v850_v33, %v851_v56  ;;  %v10210_v32 = vld [vmem:[#allocation1 + $0x20] sm:$0xff]  ;;  %v10212_v2 = vld [vmem:[#allocation1 + $0x28] sm:$0xff]  ;;  %v10214_v35 = vld [vmem:[#allocation1 + $0x30] sm:$0xff] }
 0x1a7   : > { %2003 = vst [vmem:[#allocation4 + $0x18c] sm:$0x1] %v1977_v3  ;;  %v872_v22 = vsel %vm855_vm0, %v832_v44, %v871_v26  ;;  %v874_v29 = vsel %vm855_vm0, %v834_v15, %v873_v47  ;;  %v948_v44 = vpop.permute.xlu0 %947  ;;  %v10216_v56 = vld [vmem:[#allocation1 + $0x38] sm:$0xff] }
 0x1a8   : > { %903 = vst [vmem:[#allocation4 + $0x50] sm:$0x88] %v876_v58  ;;  %v972_v10 = vrot.slane %v948_v44, 4  ;;  %1740 = vrot.lane.b32.xlu0 %v9993_v61, %s9457_s23  ;;  %1738 = vrot.lane.b32.xlu2 %v9991_v34, %s9457_s23 }
 0x1a9   : > { %901 = vst [vmem:[#allocation4 + $0x40] sm:$0x88] %v872_v22  ;;  %1742 = vrot.lane.b32.xlu1 %v9996_v46, %s9457_s23 }
 0x1aa   : > { %902 = vst [vmem:[#allocation4 + $0x48] sm:$0x88] %v874_v29  ;;  %v10206_v42 = vpop.permute.xlu2 %963  ;;  %v984_v16 = vsel %vm460_vm2, %v971_v27, %v972_v10 }
 0x1ab   : > { %v10192_v60 = vld [vmem:[#allocation1] sm:$0xff]  ;;  %v10194_v7 = vld [vmem:[#allocation1 + $0x8] sm:$0xff]  ;;  %v10196_v57 = vld [vmem:[#allocation1 + $0x10] sm:$0xff]  ;;  %v840_v30 = vpop.permute.xlu1 %839  ;;  %2033 = vst [vmem:[#allocation1 + $0x21] ss:$4 sm:$0xff] %v2007_v38  ;;  %v986_v24 = vsel %vm14277_vm5, %v10145_v36, %v984_v16 }
 0x1ac   : > { %v10202_v17 = vld [vmem:[#allocation1 + $0x18] sm:$0xff]  ;;  %v853_v3 = vrot.slane %v840_v30, 4  ;;  %1023 = vst [vmem:[#allocation4 + $0x64] sm:$0x11] %v986_v24 }
 0x1ad   : > { %2031 = vst [vmem:[#allocation1 + $0x1] ss:$4 sm:$0xff] %v10147_v59 }
 0x1ae   : > { %v877_v15 = vsel %vm460_vm2, %v852_v39, %v853_v3  ;;  %v879_v33 = vsel %vm855_vm0, %v840_v30, %v853_v3 }
 0x1af   : > { %v878_v26 = vsel %vm855_vm0, %v838_v20, %v877_v15  ;;  %905 = vst [vmem:[#allocation4 + $0x60] sm:$0x8] %v879_v33  ;;  %v954_v36 = vpop.permute.xlu0 %953  ;;  %vm2607_vm0 = vcmask 883712  }
 0x1b0   : > { %904 = vst [vmem:[#allocation4 + $0x58] sm:$0x88] %v878_v26  ;;  %v975_v27 = vrot.slane %v954_v36, 4  ;;  %1869 = vrot.lane.b32.xlu0 %v10057_v0, %s9458_s24  ;;  %1863 = vrot.lane.b32.xlu2 %v10085_v63, %s9458_s24 }
 0x1b1   : > { %1861 = vrot.lane.b32.xlu1 %v10081_v18, %s9458_s24 }
 0x1b2   : > { %v10236_v20 = vpop.permute.xlu2 %1086  ;;  %v10242_v30 = vld [vmem:[#allocation1 + $0x20] sm:$0xff]  ;;  %v991_v13 = vsel %vm460_vm2, %v974_v49, %v975_v27 }
 0x1b3   : > { %14359 = vst [vmem:[#allocation48_spill] sm:$0xff] %v10236_v20  ;;  %v950_v29 = vpop.permute.xlu1 %949  ;;  %v992_v16 = vsel %vm14277_vm5, %v10164_v19, %v991_v13 }
 0x1b4   : > { %v10230_v39 = vld [vmem:[#allocation1] sm:$0xff]  ;;  %v10232_v47 = vld [vmem:[#allocation1 + $0x8] sm:$0xff]  ;;  %v10234_v58 = vld [vmem:[#allocation1 + $0x10] sm:$0xff]  ;;  %v973_v37 = vrot.slane %v950_v29, 4  ;;  %14361 = vst [vmem:[#allocation50_spill] sm:$0xff] %v10242_v30 }
 0x1b5   : > { %14356 = vst [vmem:[#allocation45_spill] sm:$0xff] %v10230_v39  ;;  %v10238_v22 = vld [vmem:[#allocation1 + $0x18] sm:$0xff] }
 0x1b6   : > { %14357 = vst [vmem:[#allocation46_spill] sm:$0xff] %v10232_v47  ;;  %v987_v38 = vsel %vm460_vm2, %v972_v10, %v973_v37  ;;  %v989_v3 = vsel %vm460_vm2, %v973_v37, %v974_v49  ;;  %v977_v49 = vrot.slane %v10181_v1, 4 }
 0x1b7   : > { %14358 = vst [vmem:[#allocation47_spill] sm:$0xff] %v10234_v58  ;;  %v988_v15 = vsel %vm14277_vm5, %v948_v44, %v987_v38  ;;  %v990_v33 = vsel %vm14277_vm5, %v950_v29, %v989_v3  ;;  %v960_v10 = vpop.permute.xlu0 %959  ;;  %v2138_v3 = vld [vmem:[#allocation2 + $0x19] sm:$0x3] }
 0x1b8   : > { %14360 = vst [vmem:[#allocation49_spill] sm:$0xff] %v10238_v22  ;;  %v978_v61 = vrot.slane %v960_v10, 4  ;;  %1867 = vrot.lane.b32.xlu2 %v10089_v31, %s9458_s24  ;;  %2044 = vrot.lane.b32.xlu0 %v10192_v60, %s9459_s25 }
 0x1b9   : > { %2141 = vst [vmem:[#allocation1 + $0x2] ss:$4 sm:$0xff] %v10114_v48  ;;  %1865 = vrot.lane.b32.xlu1 %v10087_v21, %s9458_s24 }
 0x1ba   : > { %2144 = vst [vmem:[#allocation1 + $0x22] ss:$4 sm:$0xff] %v10099_v14  ;;  %v10258_v24 = vpop.permute.xlu2 %1207 }
 0x1bb   : > { %1026 = vst [vmem:[#allocation4 + $0x7c] sm:$0x11] %v992_v16  ;;  %v956_v29 = vpop.permute.xlu1 %955  ;;  %v997_v16 = vsel %vm460_vm2, %v977_v49, %v978_v61 }
 0x1bc   : > { %1024 = vst [vmem:[#allocation4 + $0x6c] sm:$0x11] %v988_v15  ;;  %v976_v34 = vrot.slane %v956_v29, 4  ;;  %v998_v22 = vsel %vm14277_vm5, %v10181_v1, %v997_v16 }
 0x1bd   : > { %1025 = vst [vmem:[#allocation4 + $0x74] sm:$0x11] %v990_v33 }
 0x1be   : > { %v993_v33 = vsel %vm460_vm2, %v975_v27, %v976_v34  ;;  %v995_v30 = vsel %vm460_vm2, %v976_v34, %v977_v49  ;;  %1029 = vst [vmem:[#allocation4 + $0x94] sm:$0x11] %v998_v22 }
 0x1bf   : > { %v994_v54 = vsel %vm14277_vm5, %v954_v36, %v993_v33  ;;  %v996_v58 = vsel %vm14277_vm5, %v956_v29, %v995_v30  ;;  %v10291_v27 = vpop.permute.xlu0 %965  ;;  %v980_v36 = vrot.slane %v10206_v42, 4 }
 0x1c0   : > { %v10260_v19 = vld [vmem:[#allocation1 + $0x8] sm:$0xff]  ;;  %v10262_v44 = vld [vmem:[#allocation1 + $0x18] sm:$0xff]  ;;  %v10264_v26 = vld [vmem:[#allocation1 + $0x10] sm:$0xff]  ;;  %1027 = vst [vmem:[#allocation4 + $0x84] sm:$0x11] %v994_v54  ;;  %v14235_v22 = vrot.slane %v10291_v27, 4  ;;  %1873 = vrot.lane.b32.xlu2 %v10063_v25, %s9458_s24  ;;  %2050 = vrot.lane.b32.xlu0 %v10202_v17, %s9459_s25 }
 0x1c1   : > { %v10267_v37 = vld [vmem:[#allocation1] sm:$0xff]  ;;  %v10272_v46 = vld [vmem:[#allocation1 + $0x28] sm:$0xff]  ;;  %v10274_v38 = vld [vmem:[#allocation1 + $0x30] sm:$0xff]  ;;  %1028 = vst [vmem:[#allocation4 + $0x8c] sm:$0x11] %v996_v58  ;;  %1871 = vrot.lane.b32.xlu1 %v10061_v62, %s9458_s24 }
 0x1c2   : > { %2162 = vst [vmem:[#allocation1 + $0x2] ss:$4 sm:$0xff] %v10147_v59  ;;  %v10270_v13 = vld [vmem:[#allocation1 + $0x20] sm:$0xff]  ;;  %v10277_v15 = vld [vmem:[#allocation1 + $0x38] sm:$0xff]  ;;  %v10293_v1 = vpop.permute.xlu2 %1211  ;;  %v1003_v18 = vsel %vm460_vm2, %v980_v36, %v14235_v22 }
 0x1c3   : > { %2164 = vst [vmem:[#allocation1 + $0x22] ss:$4 sm:$0xff] %v2138_v3  ;;  %v962_v54 = vpop.permute.xlu1 %961  ;;  %v1004_v34 = vsel %vm14277_vm5, %v10206_v42, %v1003_v18  ;;  %v2269_v22 = vld [vmem:[#allocation2 + $0x19] sm:$0x3] }
 0x1c4   : > { %14362 = vst [vmem:[#allocation51_spill] sm:$0xff] %v10291_v27  ;;  %v979_v63 = vrot.slane %v962_v54, 4 }
 0x1c5   : > { %1032 = vst [vmem:[#allocation4 + $0xac] sm:$0x11] %v1004_v34 }
 0x1c6   : > { %v999_v3 = vsel %vm460_vm2, %v978_v61, %v979_v63  ;;  %v1001_v16 = vsel %vm460_vm2, %v979_v63, %v980_v36 }
 0x1c7   : > { %v1000_v33 = vsel %vm14277_vm5, %v960_v10, %v999_v3  ;;  %v1002_v27 = vsel %vm14277_vm5, %v962_v54, %v1001_v16  ;;  %v1077_v42 = vpop.permute.xlu0 %1076  ;;  %vm2999_vm5 = vcmask 736256  }
 0x1c8   : > { %1030 = vst [vmem:[#allocation4 + $0x9c] sm:$0x11] %v1000_v33  ;;  %v1102_v63 = vrot.slane %v1077_v42, 4  ;;  %2048 = vrot.lane.b32.xlu2 %v10196_v57, %s9459_s25  ;;  %2056 = vrot.lane.b32.xlu0 %v10214_v35, %s9459_s25  ;;  %v1235_v35 = vrot.slane %v10293_v1, 4 }
 0x1c9   : > { %v10297_v30 = vld [vmem:[#allocation1] sm:$0xff]  ;;  %v10299_v49 = vld [vmem:[#allocation1 + $0x8] sm:$0xff]  ;;  %v10301_v0 = vld [vmem:[#allocation1 + $0x10] sm:$0xff]  ;;  %1031 = vst [vmem:[#allocation4 + $0xa4] sm:$0x11] %v1002_v27  ;;  %2046 = vrot.lane.b32.xlu1 %v10194_v7, %s9459_s25 }
 0x1ca   : > { %14363 = vst [vmem:[#allocation52_spill] sm:$0xff] %v10297_v30  ;;  %v10303_v58 = vld [vmem:[#allocation1 + $0x18] sm:$0xff]  ;;  %v10309_v29 = vld [vmem:[#allocation1 + $0x20] sm:$0xff]  ;;  %v10324_v61 = vpop.permute.xlu2 %1340 }
 0x1cb   : > { %14364 = vst [vmem:[#allocation53_spill] sm:$0xff] %v10299_v49  ;;  %v1079_v36 = vpop.permute.xlu1 %1078 }
 0x1cc   : > { %14365 = vst [vmem:[#allocation54_spill] sm:$0xff] %v10301_v0  ;;  %v1103_v10 = vrot.slane %v1079_v36, 4 }
 0x1cd   : > { %14366 = vst [vmem:[#allocation55_spill] sm:$0xff] %v10303_v58 }
 0x1ce   : > { %2272 = vst [vmem:[#allocation1 + $0x3] ss:$4 sm:$0xff] %v10114_v48  ;;  %v1115_v27 = vsel %vm460_vm2, %v1102_v63, %v1103_v10 }
 0x1cf   : > { %14367 = vst [vmem:[#allocation56_spill] sm:$0xff] %v10309_v29  ;;  %v1117_v33 = vsel %vm1116_vm10, %v1077_v42, %v1115_v27  ;;  %v1083_v63 = vpop.permute.xlu0 %1082 }
 0x1d0   : > { %2275 = vst [vmem:[#allocation1 + $0x23] ss:$4 sm:$0xff] %v10099_v14  ;;  %v1105_v0 = vrot.slane %v1083_v63, 4  ;;  %2054 = vrot.lane.b32.xlu2 %v10212_v2, %s9459_s25  ;;  %2177 = vrot.lane.b32.xlu0 %v10260_v19, %s14294_s26 }
 0x1d1   : > { %1154 = vst [vmem:[#allocation4 + $0x64] sm:$0x22] %v1117_v33  ;;  %2052 = vrot.lane.b32.xlu1 %v10210_v32, %s9459_s25 }
 0x1d2   : > { %v10351_v29 = vpop.permute.xlu2 %1344 }
 0x1d3   : > { %v1081_v58 = vpop.permute.xlu1 %1080 }
 0x1d4   : > { %v1104_v42 = vrot.slane %v1081_v58, 4 }
 0x1d5   : > { %v10326_v54 = vld [vmem:[#allocation1 + $0x8] sm:$0xff]  ;;  %v10328_v18 = vld [vmem:[#allocation1] sm:$0xff]  ;;  %v10330_v31 = vld [vmem:[#allocation1 + $0x18] sm:$0xff] }
 0x1d6   : > { %v10339_v3 = vld [vmem:[#allocation1 + $0x10] sm:$0xff]  ;;  %v1118_v27 = vsel %vm460_vm2, %v1103_v10, %v1104_v42  ;;  %v1120_v33 = vsel %vm460_vm2, %v1104_v42, %v1105_v0  ;;  %v14236_v42 = vrot.slane %v10236_v20, 4 }
 0x1d7   : > { %v10332_v34 = vld [vmem:[#allocation1 + $0x20] sm:$0xff]  ;;  %v10334_v60 = vld [vmem:[#allocation1 + $0x28] sm:$0xff]  ;;  %v10337_v21 = vld [vmem:[#allocation1 + $0x38] sm:$0xff]  ;;  %2293 = vst [vmem:[#allocation1 + $0x3] ss:$4 sm:$0xff] %v10147_v59  ;;  %v1119_v25 = vsel %vm1116_vm10, %v1079_v36, %v1118_v27  ;;  %v1121_v17 = vsel %vm1116_vm10, %v1081_v58, %v1120_v33  ;;  %v1085_v58 = vpop.permute.xlu0 %1084  ;;  %v14238_v27 = vrot.slane %v10351_v29, 4 }
 0x1d8   : > { %v10341_v16 = vld [vmem:[#allocation1 + $0x30] sm:$0xff]  ;;  %1155 = vst [vmem:[#allocation4 + $0x6c] sm:$0x22] %v1119_v25  ;;  %v1106_v33 = vrot.slane %v1085_v58, 4  ;;  %2179 = vrot.lane.b32.xlu0 %v10264_v26, %s14294_s26  ;;  %2175 = vrot.lane.b32.xlu2 %v10267_v37, %s14294_s26 }
 0x1d9   : > { %2295 = vst [vmem:[#allocation1 + $0x23] ss:$4 sm:$0xff] %v2269_v22  ;;  %2181 = vrot.lane.b32.xlu1 %v10262_v44, %s14294_s26 }
 0x1da   : > { %1156 = vst [vmem:[#allocation4 + $0x74] sm:$0x22] %v1121_v17  ;;  %v10373_v36 = vpop.permute.xlu2 %1346  ;;  %v1122_v7 = vsel %vm460_vm2, %v1105_v0, %v1106_v33 }
 0x1db   : > { %v1214_v57 = vpop.permute.xlu1 %1213  ;;  %v14237_v25 = vrot.slane %v10373_v36, 4 }
 0x1dc   : > { %v1236_v17 = vrot.slane %v1214_v57, 4 }
 0x1de   : > { %v10355_v28 = vld [vmem:[#allocation1] sm:$0xff]  ;;  %v10359_v49 = vld [vmem:[#allocation1 + $0x8] sm:$0xff]  ;;  %v10361_v62 = vld [vmem:[#allocation1 + $0x10] sm:$0xff]  ;;  %v1251_v40 = vsel %vm460_vm2, %v1235_v35, %v1236_v17 }
 0x1df   : > { %14368 = vst [vmem:[#allocation57_spill] sm:$0xff] %v10355_v28  ;;  %v10363_v22 = vld [vmem:[#allocation1 + $0x18] sm:$0xff]  ;;  %v1252_v0 = vsel %vm14289_vm12, %v10293_v1, %v1251_v40  ;;  %v1210_v1 = vpop.permute.xlu0 %1209 }
 0x1e0   : > { %14369 = vst [vmem:[#allocation58_spill] sm:$0xff] %v10359_v49  ;;  %v10369_v10 = vld [vmem:[#allocation1 + $0x20] sm:$0xff]  ;;  %v1234_v32 = vrot.slane %v1210_v1, 4  ;;  %2185 = vrot.lane.b32.xlu0 %v10272_v46, %s14294_s26  ;;  %2183 = vrot.lane.b32.xlu2 %v10270_v13, %s14294_s26 }
 0x1e1   : > { %14370 = vst [vmem:[#allocation59_spill] sm:$0xff] %v10361_v62  ;;  %v1123_v62 = vsel %vm1116_vm10, %v1083_v63, %v1122_v7  ;;  %v2400_v63 = vld [vmem:[#allocation2 + $0x19] sm:$0x3]  ;;  %2187 = vrot.lane.b32.xlu1 %v10274_v38, %s14294_s26 }
 0x1e2   : > { %14371 = vst [vmem:[#allocation60_spill] sm:$0xff] %v10363_v22  ;;  %v1384_v22 = vsel %vm460_vm2, %v14238_v27, %v14237_v25  ;;  %v1249_v25 = vsel %vm460_vm2, %v1234_v32, %v1235_v35  ;;  %v2530_v46 = vld [vmem:[#allocation2 + $0x19] sm:$0x3] }
 0x1e3   : > { %14372 = vst [vmem:[#allocation61_spill] sm:$0xff] %v10369_v10  ;;  %v1124_v10 = vsel %vm460_vm2, %v1106_v33, %v14236_v42  ;;  %v1385_v47 = vsel %vm1378_vm3, %v10351_v29, %v1384_v22  ;;  %v1216_v33 = vpop.permute.xlu1 %1215  ;;  %v1250_v11 = vsel %vm14289_vm12, %v1210_v1, %v1249_v25 }
 0x1e4   : > { %2402 = vst [vmem:[#allocation1] ss:$4 sm:$0xff] %v10114_v48  ;;  %v1125_v49 = vsel %vm1116_vm10, %v1085_v58, %v1124_v10  ;;  %v1233_v58 = vrot.slane %v10258_v24, 4 }
 0x1e5   : > { %2405 = vst [vmem:[#allocation1 + $0x20] ss:$4 sm:$0xff] %v10099_v14 }
 0x1e6   : > { %1157 = vst [vmem:[#allocation4 + $0x7c] sm:$0x22] %v1123_v62  ;;  %v1246_v42 = vsel %vm460_vm2, %v1233_v58, %v1234_v32 }
 0x1e7   : > { %1158 = vst [vmem:[#allocation4 + $0x84] sm:$0x22] %v1125_v49  ;;  %v10409_v49 = vpop.permute.xlu2 %1470  ;;  %v1248_v55 = vsel %vm14289_vm12, %v10258_v24, %v1246_v42  ;;  %v10436_v35 = vpop.permute.xlu0 %1217 }
 0x1e8   : > { %1287 = vst [vmem:[#allocation4 + $0x74] sm:$0x44] %v1252_v0  ;;  %2314 = vrot.lane.b32.xlu0 %v10332_v34, %s9461_s27  ;;  %2308 = vrot.lane.b32.xlu2 %v10326_v54, %s9461_s27  ;;  %v1495_v34 = vrot.slane %v10409_v49, 4 }
 0x1e9   : > { %1419 = vst [vmem:[#allocation4 + $0x7c] sm:$0x88] %v1385_v47  ;;  %v1237_v47 = vrot.slane %v1216_v33, 4  ;;  %2306 = vrot.lane.b32.xlu1 %v10328_v18, %s9461_s27 }
 0x1ea   : > { %1285 = vst [vmem:[#allocation4 + $0x64] sm:$0x44] %v1248_v55 }
 0x1eb   : > { %v10403_v62 = vld [vmem:[#allocation1] sm:$0xff]  ;;  %v10405_v10 = vld [vmem:[#allocation1 + $0x8] sm:$0xff]  ;;  %v10407_v40 = vld [vmem:[#allocation1 + $0x10] sm:$0xff]  ;;  %v1253_v27 = vsel %vm460_vm2, %v1236_v17, %v1237_v47  ;;  %1286 = vst [vmem:[#allocation4 + $0x6c] sm:$0x44] %v1250_v11  ;;  %v1339_v26 = vpop.permute.xlu1 %1338  ;;  %v1365_v11 = vrot.slane %v10324_v61, 4 }
 0x1ec   : > { %v10411_v2 = vld [vmem:[#allocation1 + $0x18] sm:$0xff]  ;;  %v10413_v22 = vld [vmem:[#allocation1 + $0x20] sm:$0xff]  ;;  %v10415_v19 = vld [vmem:[#allocation1 + $0x28] sm:$0xff]  ;;  %v1254_v20 = vsel %vm14289_vm12, %v1214_v57, %v1253_v27  ;;  %14373 = vst [vmem:[#allocation62_spill] sm:$0xff] %v10436_v35  ;;  %v1364_v44 = vrot.slane %v1339_v26, 4 }
 0x1ed   : > { %2423 = vst [vmem:[#allocation1] ss:$4 sm:$0xff] %v10147_v59  ;;  %v10419_v7 = vld [vmem:[#allocation1 + $0x30] sm:$0xff]  ;;  %v10421_v0 = vld [vmem:[#allocation1 + $0x38] sm:$0xff] }
 0x1ee   : > { %2425 = vst [vmem:[#allocation1 + $0x20] ss:$4 sm:$0xff] %v2400_v63  ;;  %v1377_v63 = vsel %vm460_vm2, %v1364_v44, %v1365_v11 }
 0x1ef   : > { %1288 = vst [vmem:[#allocation4 + $0x7c] sm:$0x44] %v1254_v20  ;;  %v10438_v17 = vpop.permute.xlu2 %1474  ;;  %v14241_v20 = vrot.slane %v10436_v35, 4  ;;  %v1379_v1 = vsel %vm1378_vm3, %v1339_v26, %v1377_v63  ;;  %v1343_v58 = vpop.permute.xlu0 %1342  ;;  %v14380_v63 = vrot.slane %v10351_v29, 4 }
 0x1f0   : > { %1416 = vst [vmem:[#allocation4 + $0x64] sm:$0x88] %v1379_v1  ;;  %2312 = vrot.lane.b32.xlu2 %v10330_v31, %s9461_s27  ;;  %2436 = vrot.lane.b32.xlu0 %v10403_v62, %s9462_s11 }
 0x1f1   : > { %v1255_v57 = vsel %vm460_vm2, %v1237_v47, %v14241_v20  ;;  %v1366_v47 = vrot.slane %v1343_v58, 4  ;;  %2310 = vrot.lane.b32.xlu1 %v10339_v3, %s9461_s27 }
 0x1f2   : > { %v1256_v25 = vsel %vm14289_vm12, %v1216_v33, %v1255_v57 }
 0x1f3   : > { %1289 = vst [vmem:[#allocation4 + $0x84] sm:$0x44] %v1256_v25  ;;  %v10468_v33 = vpop.permute.xlu1 %1348  ;;  %v1380_v13 = vsel %vm460_vm2, %v1365_v11, %v1366_v47  ;;  %v1382_v38 = vsel %vm460_vm2, %v1366_v47, %v14380_v63 }
 0x1f4   : > { %v10440_v24 = vld [vmem:[#allocation1] sm:$0xff]  ;;  %v10442_v42 = vld [vmem:[#allocation1 + $0x8] sm:$0xff]  ;;  %v10444_v55 = vld [vmem:[#allocation1 + $0x10] sm:$0xff]  ;;  %14379 = vst [vmem:[#allocation68_spill] sm:$0xff] %v10468_v33  ;;  %v1381_v20 = vsel %vm1378_vm3, %v10324_v61, %v1380_v13  ;;  %v1383_v44 = vsel %vm1378_vm3, %v1343_v58, %v1382_v38 }
 0x1f5   : > { %14374 = vst [vmem:[#allocation63_spill] sm:$0xff] %v10442_v42  ;;  %v10447_v27 = vld [vmem:[#allocation1 + $0x18] sm:$0xff]  ;;  %v10449_v37 = vld [vmem:[#allocation1 + $0x20] sm:$0xff] }
 0x1f6   : > { %14375 = vst [vmem:[#allocation64_spill] sm:$0xff] %v10444_v55 }
 0x1f7   : > { %14376 = vst [vmem:[#allocation65_spill] sm:$0xff] %v10447_v27  ;;  %v10466_v32 = vpop.permute.xlu2 %1480  ;;  %v14382_v27 = vrot.slane %v10373_v36, 4 }
 0x1f8   : > { %14377 = vst [vmem:[#allocation66_spill] sm:$0xff] %v10449_v37  ;;  %v14381_v37 = vrot.slane %v10468_v33, 4  ;;  %2318 = vrot.lane.b32.xlu2 %v10341_v16, %s9461_s27  ;;  %2448 = vrot.lane.b32.xlu0 %v10419_v7, %s9462_s11 }
 0x1f9   : > { %2533 = vst [vmem:[#allocation1 + $0x1] ss:$4 sm:$0xff] %v10114_v48  ;;  %2316 = vrot.lane.b32.xlu1 %v10334_v60, %s9461_s27 }
 0x1fa   : > { %2536 = vst [vmem:[#allocation1 + $0x21] ss:$4 sm:$0xff] %v10099_v14  ;;  %v1386_v55 = vsel %vm460_vm2, %v14382_v27, %v14381_v37 }
 0x1fb   : > { %14378 = vst [vmem:[#allocation67_spill] sm:$0xff] %v10466_v32  ;;  %v1387_v29 = vsel %vm1378_vm3, %v10373_v36, %v1386_v55  ;;  %v1497_v55 = vrot.slane %v10438_v17, 4  ;;  %v1469_v37 = vpop.permute.xlu1 %1468 }
 0x1fc   : > { %1417 = vst [vmem:[#allocation4 + $0x6c] sm:$0x88] %v1381_v20  ;;  %v10507_v20 = vpop.permute.xlu0 %1476  ;;  %v1494_v58 = vrot.slane %v1469_v37, 4 }
 0x1fd   : > { %1418 = vst [vmem:[#allocation4 + $0x74] sm:$0x88] %v1383_v44  ;;  %v1498_v27 = vrot.slane %v10507_v20, 4 }
 0x1fe   : > { %1420 = vst [vmem:[#allocation4 + $0x84] sm:$0x88] %v1387_v29 }
 0x1ff   : > { %v10509_v36 = vpop.permute.xlu2 %1603  ;;  %v1514_v54 = vsel %vm460_vm2, %v1497_v55, %v1498_v27 }
 0x200   : > { %v10491_v35 = vld [vmem:[#allocation1 + $0x8] sm:$0xff]  ;;  %v10495_v11 = vld [vmem:[#allocation1 + $0x10] sm:$0xff]  ;;  %v10497_v47 = vld [vmem:[#allocation1 + $0x18] sm:$0xff]  ;;  %v1515_v18 = vsel %vm1508_vm14, %v10438_v17, %v1514_v54  ;;  %2440 = vrot.lane.b32.xlu2 %v10407_v40, %s9462_s11 }
 0x201   : > { %v10471_v57 = vld [vmem:[#allocation1 + $0x20] sm:$0xff]  ;;  %v10473_v26 = vld [vmem:[#allocation1 + $0x28] sm:$0xff]  ;;  %v10475_v25 = vld [vmem:[#allocation1 + $0x30] sm:$0xff]  ;;  %1549 = vst [vmem:[#allocation4 + $0xe0] sm:$0x11] %v1515_v18  ;;  %2569 = vrot.lane.b32.xlu0 %v10491_v35, %s9463_s12  ;;  %2438 = vrot.lane.b32.xlu1 %v10405_v10, %s9462_s11 }
 0x202   : > { %v10481_v1 = vld [vmem:[#allocation1 + $0x38] sm:$0xff]  ;;  %v10499_v61 = vld [vmem:[#allocation1] sm:$0xff] }
 0x203   : > { %2556 = vst [vmem:[#allocation1 + $0x21] ss:$4 sm:$0xff] %v2530_v46  ;;  %v1507_v46 = vsel %vm460_vm2, %v1494_v58, %v1495_v34  ;;  %v1473_v31 = vpop.permute.xlu1 %1472 }
 0x204   : > { %2554 = vst [vmem:[#allocation1 + $0x1] ss:$4 sm:$0xff] %v10147_v59  ;;  %v1509_v13 = vsel %vm1508_vm14, %v1469_v37, %v1507_v46  ;;  %v10537_v37 = vpop.permute.xlu0 %1599  ;;  %v1496_v54 = vrot.slane %v1473_v31, 4  ;;  %v2661_v46 = vld [vmem:[#allocation2 + $0x19] sm:$0x3] }
 0x205   : > { %1546 = vst [vmem:[#allocation4 + $0xc8] sm:$0x11] %v1509_v13 }
 0x206   : > { %v1510_v13 = vsel %vm460_vm2, %v1495_v34, %v1496_v54 }
 0x207   : > { %v10535_v29 = vpop.permute.xlu2 %1609 }
 0x208   : > { %2442 = vrot.lane.b32.xlu2 %v10411_v2, %s9462_s11 }
 0x209   : > { %2571 = vrot.lane.b32.xlu0 %v10495_v11, %s9463_s12  ;;  %2444 = vrot.lane.b32.xlu1 %v10413_v22, %s9462_s11 }
 0x20a   : > { %v10516_v44 = vld [vmem:[#allocation1 + $0x20] sm:$0xff] }
 0x20b   : > { %14383 = vst [vmem:[#allocation69_spill] sm:$0xff] %v10516_v44  ;;  %v10529_v63 = vld [vmem:[#allocation1] sm:$0xff]  ;;  %v10531_v17 = vld [vmem:[#allocation1 + $0x8] sm:$0xff]  ;;  %v10533_v38 = vld [vmem:[#allocation1 + $0x10] sm:$0xff]  ;;  %v1512_v44 = vsel %vm460_vm2, %v1496_v54, %v1497_v55  ;;  %v1479_v16 = vpop.permute.xlu1 %1478 }
 0x20c   : > { %2667 = vst [vmem:[#allocation1 + $0x22] ss:$4 sm:$0xff] %v10099_v14  ;;  %v10539_v58 = vld [vmem:[#allocation1 + $0x18] sm:$0xff]  ;;  %v1513_v33 = vsel %vm1508_vm14, %v1473_v31, %v1512_v44  ;;  %v10561_v55 = vpop.permute.xlu0 %1605  ;;  %v1499_v60 = vrot.slane %v1479_v16, 4 }
 0x20d   : > { %14384 = vst [vmem:[#allocation70_spill] sm:$0xff] %v10531_v17  ;;  %v14247_v31 = vrot.slane %v10561_v55, 4  ;;  %v14393_v22 = vrot.slane %v10561_v55, 4 }
 0x20e   : > { %14385 = vst [vmem:[#allocation71_spill] sm:$0xff] %v10533_v38  ;;  %v1516_v28 = vsel %vm460_vm2, %v1498_v27, %v1499_v60 }
 0x20f   : > { %14386 = vst [vmem:[#allocation72_spill] sm:$0xff] %v10539_v58  ;;  %v1511_v58 = vsel %vm1508_vm14, %v10409_v49, %v1510_v13  ;;  %v10563_v34 = vpop.permute.xlu2 %1730  ;;  %v1517_v17 = vsel %vm1508_vm14, %v10507_v20, %v1516_v28 }
 0x210   : > { %2664 = vst [vmem:[#allocation1 + $0x2] ss:$4 sm:$0xff] %v10114_v48  ;;  %2567 = vrot.lane.b32.xlu2 %v10499_v61, %s9463_s12 }
 0x211   : > { %1547 = vst [vmem:[#allocation4 + $0xd0] sm:$0x11] %v1511_v58  ;;  %v1627_v58 = vrot.slane %v10509_v36, 4  ;;  %2573 = vrot.lane.b32.xlu0 %v10497_v47, %s9463_s12  ;;  %2446 = vrot.lane.b32.xlu1 %v10415_v19, %s9462_s11 }
 0x212   : > { %1548 = vst [vmem:[#allocation4 + $0xd8] sm:$0x11] %v1513_v33  ;;  %v14246_v33 = vrot.slane %v10466_v32, 4 }
 0x213   : > { %v10542_v62 = vld [vmem:[#allocation1 + $0x20] sm:$0xff]  ;;  %v10544_v18 = vld [vmem:[#allocation1 + $0x28] sm:$0xff]  ;;  %v10546_v3 = vld [vmem:[#allocation1 + $0x30] sm:$0xff]  ;;  %1550 = vst [vmem:[#allocation4 + $0xe8] sm:$0x11] %v1517_v17  ;;  %v1602_v20 = vpop.permute.xlu1 %1601 }
 0x214   : > { %v10550_v38 = vld [vmem:[#allocation1 + $0x38] sm:$0xff]  ;;  %v1518_v42 = vsel %vm460_vm2, %v1499_v60, %v14246_v33  ;;  %v10598_v27 = vpop.permute.xlu0 %1611  ;;  %v1626_v35 = vrot.slane %v1602_v20, 4 }
 0x215   : > { %2687 = vst [vmem:[#allocation1 + $0x22] ss:$4 sm:$0xff] %v2661_v46  ;;  %v1643_v46 = vsel %vm460_vm2, %v1627_v58, %v14247_v31  ;;  %v1519_v45 = vsel %vm1508_vm14, %v1479_v16, %v1518_v42  ;;  %v1630_v42 = vrot.slane %v10535_v29, 4 }
 0x216   : > { %v1644_v39 = vsel %vm14280_vm6, %v10509_v36, %v1643_v46  ;;  %1551 = vst [vmem:[#allocation4 + $0xf0] sm:$0x11] %v1519_v45  ;;  %v14248_v36 = vrot.slane %v10598_v27, 4  ;;  %v1625_v45 = vrot.slane %v10537_v37, 4  ;;  %v1641_v46 = vsel %vm460_vm2, %v1626_v35, %v1627_v58 }
 0x217   : > { %v10565_v54 = vld [vmem:[#allocation1] sm:$0xff]  ;;  %v10567_v49 = vld [vmem:[#allocation1 + $0x8] sm:$0xff]  ;;  %v10569_v44 = vld [vmem:[#allocation1 + $0x10] sm:$0xff]  ;;  %1679 = vst [vmem:[#allocation4 + $0xd8] sm:$0x22] %v1644_v39  ;;  %v10600_v28 = vpop.permute.xlu2 %1738 }
 0x218   : > { %v10573_v7 = vld [vmem:[#allocation1 + $0x18] sm:$0xff]  ;;  %14388 = vst [vmem:[#allocation74_spill] sm:$0xff] %v10598_v27  ;;  %v1649_v39 = vsel %vm460_vm2, %v1630_v42, %v14248_v36  ;;  %v1638_v60 = vsel %vm460_vm2, %v1625_v45, %v1626_v35  ;;  %2575 = vrot.lane.b32.xlu2 %v10471_v57, %s9463_s12 }
 0x219   : > { %2685 = vst [vmem:[#allocation1 + $0x2] ss:$4 sm:$0xff] %v10147_v59  ;;  %v1650_v33 = vsel %vm14280_vm6, %v10535_v29, %v1649_v39  ;;  %v2792_v29 = vld [vmem:[#allocation2 + $0x19] sm:$0x3]  ;;  %2706 = vrot.lane.b32.xlu0 %v10542_v62, %s9464_s13  ;;  %2579 = vrot.lane.b32.xlu1 %v10475_v25, %s9463_s12 }
 0x21a   : > { %1682 = vst [vmem:[#allocation4 + $0xf0] sm:$0x22] %v1650_v33  ;;  %v1756_v33 = vrot.slane %v10563_v34, 4 }
 0x21c   : > { %v10580_v13 = vld [vmem:[#allocation1 + $0x20] sm:$0xff] }
 0x21d   : > { %14387 = vst [vmem:[#allocation73_spill] sm:$0xff] %v10580_v13  ;;  %v1640_v13 = vsel %vm14280_vm6, %v10537_v37, %v1638_v60  ;;  %v1733_v37 = vpop.permute.xlu0 %1732 }
 0x21e   : > { %2798 = vst [vmem:[#allocation1 + $0x23] ss:$4 sm:$0xff] %v10099_v14 }
 0x21f   : > { %1677 = vst [vmem:[#allocation4 + $0xc8] sm:$0x22] %v1640_v13  ;;  %v10638_v58 = vpop.permute.xlu2 %1863  ;;  %v1757_v13 = vrot.slane %v1733_v37, 4 }
 0x220   : > { %v10604_v17 = vld [vmem:[#allocation1] sm:$0xff]  ;;  %v10606_v40 = vld [vmem:[#allocation1 + $0x8] sm:$0xff]  ;;  %v10608_v16 = vld [vmem:[#allocation1 + $0x10] sm:$0xff]  ;;  %2577 = vrot.lane.b32.xlu2 %v10473_v26, %s9463_s12 }
 0x221   : > { %14389 = vst [vmem:[#allocation75_spill] sm:$0xff] %v10604_v17  ;;  %v10611_v10 = vld [vmem:[#allocation1 + $0x18] sm:$0xff]  ;;  %2708 = vrot.lane.b32.xlu0 %v10544_v18, %s9464_s13  ;;  %2698 = vrot.lane.b32.xlu1 %v10565_v54, %s9464_s13 }
 0x222   : > { %14390 = vst [vmem:[#allocation76_spill] sm:$0xff] %v10606_v40 }
 0x223   : > { %14391 = vst [vmem:[#allocation77_spill] sm:$0xff] %v10608_v16 }
 0x224   : > { %14392 = vst [vmem:[#allocation78_spill] sm:$0xff] %v10611_v10  ;;  %v1642_v10 = vsel %vm14280_vm6, %v1602_v20, %v1641_v46  ;;  %v1608_v20 = vpop.permute.xlu1 %1607 }
 0x225   : > { %2795 = vst [vmem:[#allocation1 + $0x3] ss:$4 sm:$0xff] %v10114_v48  ;;  %v10621_v31 = vld [vmem:[#allocation1 + $0x20] sm:$0xff]  ;;  %v10626_v16 = vld [vmem:[#allocation1 + $0x28] sm:$0xff]  ;;  %v10628_v36 = vld [vmem:[#allocation1 + $0x30] sm:$0xff]  ;;  %v1629_v45 = vrot.slane %v1608_v20, 4 }
 0x226   : > { %v10630_v27 = vld [vmem:[#allocation1 + $0x38] sm:$0xff]  ;;  %1678 = vst [vmem:[#allocation4 + $0xd0] sm:$0x22] %v1642_v10  ;;  %v1769_v10 = vsel %vm460_vm2, %v1756_v33, %v1757_v13 }
 0x227   : > { %2818 = vst [vmem:[#allocation1 + $0x23] ss:$4 sm:$0xff] %v2792_v29  ;;  %v1645_v60 = vsel %vm460_vm2, %v14393_v22, %v1629_v45  ;;  %v1647_v46 = vsel %vm460_vm2, %v1629_v45, %v1630_v42  ;;  %v1771_v29 = vsel %vm1770_vm7, %v10563_v34, %v1769_v10  ;;  %v1735_v42 = vpop.permute.xlu0 %1734  ;;  %v10668_v33 = vpop.permute.xlu2 %1867 }
 0x228   : > { %v1646_v32 = vsel %vm14280_vm6, %v10561_v55, %v1645_v60  ;;  %v1648_v40 = vsel %vm14280_vm6, %v1608_v20, %v1647_v46  ;;  %1808 = vst [vmem:[#allocation4 + $0xc8] sm:$0x44] %v1771_v29  ;;  %v1758_v20 = vrot.slane %v1735_v42, 4  ;;  %v1890_v18 = vrot.slane %v10668_v33, 4  ;;  %2700 = vrot.lane.b32.xlu2 %v10567_v49, %s9464_s13 }
 0x229   : > { %1680 = vst [vmem:[#allocation4 + $0xe0] sm:$0x22] %v1646_v32  ;;  %v1760_v32 = vrot.slane %v10600_v28, 4  ;;  %2702 = vrot.lane.b32.xlu1 %v10569_v44, %s9464_s13  ;;  %vm14291_vm6 = vcmask 711680  }
 0x22a   : > { %1681 = vst [vmem:[#allocation4 + $0xe8] sm:$0x22] %v1648_v40  ;;  %v1772_v47 = vsel %vm460_vm2, %v1757_v13, %v1758_v20 }
 0x22b   : > { %v1773_v40 = vsel %vm1770_vm7, %v1733_v37, %v1772_v47 }
 0x22c   : > { %v10641_v35 = vld [vmem:[#allocation1] sm:$0xff]  ;;  %v10643_v2 = vld [vmem:[#allocation1 + $0x8] sm:$0xff]  ;;  %v10645_v11 = vld [vmem:[#allocation1 + $0x10] sm:$0xff]  ;;  %v1737_v55 = vpop.permute.xlu1 %1736  ;;  %1809 = vst [vmem:[#allocation4 + $0xd0] sm:$0x44] %v1773_v40 }
 0x22d   : > { %v10648_v39 = vld [vmem:[#allocation1 + $0x18] sm:$0xff]  ;;  %v1759_v45 = vrot.slane %v1737_v55, 4  ;;  %2829 = vrot.lane.b32.xlu0 %v10641_v35, %s14292_s14 }
 0x22e   : > { %2816 = vst [vmem:[#allocation1 + $0x3] ss:$4 sm:$0xff] %v10147_v59  ;;  %v10666_v34 = vld [vmem:[#allocation1 + $0x20] sm:$0xff] }
 0x22f   : > { %14394 = vst [vmem:[#allocation79_spill] sm:$0xff] %v10666_v34  ;;  %v1776_v61 = vsel %vm460_vm2, %v1759_v45, %v1760_v32  ;;  %v1774_v19 = vsel %vm460_vm2, %v1758_v20, %v1759_v45  ;;  %v1741_v20 = vpop.permute.xlu0 %1740  ;;  %v10698_v45 = vpop.permute.xlu2 %1873 }
 0x230   : > { %2928 = vst [vmem:[#allocation1 + $0x20] ss:$4 sm:$0xff] %v10099_v14  ;;  %v1777_v22 = vsel %vm1770_vm7, %v1737_v55, %v1776_v61  ;;  %v1775_v60 = vsel %vm1770_vm7, %v1735_v42, %v1774_v19  ;;  %v2923_v55 = vld [vmem:[#allocation2 + $0x19] sm:$0x3]  ;;  %v1761_v57 = vrot.slane %v1741_v20, 4  ;;  %2710 = vrot.lane.b32.xlu2 %v10546_v3, %s9464_s13 }
 0x231   : > { %1811 = vst [vmem:[#allocation4 + $0xe0] sm:$0x44] %v1777_v22  ;;  %2704 = vrot.lane.b32.xlu1 %v10573_v7, %s9464_s13 }
 0x232   : > { %1810 = vst [vmem:[#allocation4 + $0xd8] sm:$0x44] %v1775_v60  ;;  %v1778_v61 = vsel %vm460_vm2, %v1760_v32, %v1761_v57 }
 0x233   : > { %14399 = vst [vmem:[#allocation84_spill] sm:$0xff] %v10698_v45  ;;  %v1779_v40 = vsel %vm1770_vm7, %v10600_v28, %v1778_v61 }
 0x234   : > { %v10703_v47 = vpop.permute.xlu1 %1742  ;;  %1812 = vst [vmem:[#allocation4 + $0xe8] sm:$0x44] %v1779_v40  ;;  %v1888_v40 = vrot.slane %v10638_v58, 4 }
 0x235   : > { %v10676_v10 = vld [vmem:[#allocation1] sm:$0xff]  ;;  %v10680_v46 = vld [vmem:[#allocation1 + $0x8] sm:$0xff]  ;;  %v10682_v29 = vld [vmem:[#allocation1 + $0x10] sm:$0xff]  ;;  %14400 = vst [vmem:[#allocation85_spill] sm:$0xff] %v10703_v47  ;;  %v14253_v25 = vrot.slane %v10703_v47, 4  ;;  %2841 = vrot.lane.b32.xlu0 %v10628_v36, %s14292_s14  ;;  %v14258_v36 = vrot.slane %v10698_v45, 4 }
 0x236   : > { %14395 = vst [vmem:[#allocation80_spill] sm:$0xff] %v10676_v10  ;;  %v10684_v34 = vld [vmem:[#allocation1 + $0x18] sm:$0xff] }
 0x237   : > { %14396 = vst [vmem:[#allocation81_spill] sm:$0xff] %v10680_v46  ;;  %v10692_v37 = vld [vmem:[#allocation1 + $0x20] sm:$0xff]  ;;  %v10694_v13 = vld [vmem:[#allocation1 + $0x28] sm:$0xff]  ;;  %v10696_v42 = vld [vmem:[#allocation1 + $0x30] sm:$0xff]  ;;  %v1780_v19 = vsel %vm460_vm2, %v1761_v57, %v14253_v25 }
 0x238   : > { %14397 = vst [vmem:[#allocation82_spill] sm:$0xff] %v10682_v29  ;;  %v10701_v62 = vld [vmem:[#allocation1 + $0x38] sm:$0xff]  ;;  %v1781_v22 = vsel %vm1770_vm7, %v1741_v20, %v1780_v19  ;;  %v10727_v20 = vpop.permute.xlu2 %2048  ;;  %v3053_v29 = vld [vmem:[#allocation2 + $0x19] sm:$0x3]  ;;  %2833 = vrot.lane.b32.xlu2 %v10645_v11, %s14292_s14 }
 0x239   : > { %14398 = vst [vmem:[#allocation83_spill] sm:$0xff] %v10684_v34  ;;  %2831 = vrot.lane.b32.xlu1 %v10643_v2, %s14292_s14 }
 0x23a   : > { %2925 = vst [vmem:[#allocation1] ss:$4 sm:$0xff] %v10114_v48 }
 0x23b   : > { %2948 = vst [vmem:[#allocation1 + $0x20] ss:$4 sm:$0xff] %v2923_v55  ;;  %v10725_v55 = vpop.permute.xlu0 %1869 }
 0x23c   : > { %1813 = vst [vmem:[#allocation4 + $0xf0] sm:$0x44] %v1781_v22  ;;  %v1891_v26 = vrot.slane %v10725_v55, 4  ;;  %v1862_v54 = vpop.permute.xlu1 %1861 }
 0x23d   : > { %v1887_v19 = vrot.slane %v1862_v54, 4 }
 0x23e   : > { %v1907_v22 = vsel %vm460_vm2, %v1890_v18, %v1891_v26 }
 0x23f   : > { %v1908_v25 = vsel %vm14281_vm11, %v10668_v33, %v1907_v22 }
 0x240   : > { %1942 = vst [vmem:[#allocation4 + $0xe0] sm:$0x88] %v1908_v25  ;;  %v10749_v47 = vpop.permute.xlu2 %2054  ;;  %2835 = vrot.lane.b32.xlu2 %v10648_v39, %s14292_s14 }
 0x241   : > { %v10719_v32 = vld [vmem:[#allocation1 + $0x8] sm:$0xff]  ;;  %v10721_v28 = vld [vmem:[#allocation1 + $0x10] sm:$0xff]  ;;  %v10723_v60 = vld [vmem:[#allocation1 + $0x18] sm:$0xff]  ;;  %2837 = vrot.lane.b32.xlu1 %v10621_v31, %s14292_s14 }
 0x242   : > { %v10729_v57 = vld [vmem:[#allocation1] sm:$0xff]  ;;  %2961 = vrot.lane.b32.xlu0 %v10719_v32, %s9466_s28 }
 0x243   : > { %v10731_v61 = vld [vmem:[#allocation1 + $0x20] sm:$0xff]  ;;  %2946 = vst [vmem:[#allocation1] ss:$4 sm:$0xff] %v10147_v59  ;;  %v10751_v33 = vpop.permute.xlu0 %2044 }
 0x244   : > { %14401 = vst [vmem:[#allocation86_spill] sm:$0xff] %v10731_v61  ;;  %v1900_v61 = vsel %vm460_vm2, %v1887_v19, %v1888_v40 }
 0x245   : > { %3059 = vst [vmem:[#allocation1 + $0x21] ss:$4 sm:$0xff] %v10099_v14  ;;  %v1902_v34 = vsel %vm14281_vm11, %v1862_v54, %v1900_v61  ;;  %v1866_v61 = vpop.permute.xlu1 %1865 }
 0x246   : > { %1939 = vst [vmem:[#allocation4 + $0xc8] sm:$0x88] %v1902_v34  ;;  %v1889_v22 = vrot.slane %v1866_v61, 4 }
 0x248   : > { %v1903_v30 = vsel %vm460_vm2, %v1888_v40, %v1889_v22  ;;  %v10783_v40 = vpop.permute.xlu2 %2175  ;;  %2959 = vrot.lane.b32.xlu2 %v10729_v57, %s9466_s28 }
 0x249   : > { %2839 = vrot.lane.b32.xlu1 %v10626_v16, %s14292_s14 }
 0x24a   : > { %v10753_v19 = vld [vmem:[#allocation1] sm:$0xff]  ;;  %v10755_v25 = vld [vmem:[#allocation1 + $0x8] sm:$0xff]  ;;  %v10757_v34 = vld [vmem:[#allocation1 + $0x10] sm:$0xff]  ;;  %2963 = vrot.lane.b32.xlu0 %v10721_v28, %s9466_s28 }
 0x24b   : > { %14402 = vst [vmem:[#allocation87_spill] sm:$0xff] %v10753_v19  ;;  %v10759_v49 = vld [vmem:[#allocation1 + $0x18] sm:$0xff] }
 0x24c   : > { %14403 = vst [vmem:[#allocation88_spill] sm:$0xff] %v10755_v25  ;;  %v10761_v54 = vld [vmem:[#allocation1 + $0x38] sm:$0xff]  ;;  %v10763_v35 = vld [vmem:[#allocation1 + $0x20] sm:$0xff]  ;;  %v10766_v44 = vld [vmem:[#allocation1 + $0x28] sm:$0xff]  ;;  %v1905_v25 = vsel %vm460_vm2, %v1889_v22, %v1890_v18  ;;  %v2072_v18 = vrot.slane %v10727_v20, 4 }
 0x24d   : > { %14404 = vst [vmem:[#allocation89_spill] sm:$0xff] %v10757_v34  ;;  %v10768_v46 = vld [vmem:[#allocation1 + $0x30] sm:$0xff]  ;;  %v1904_v34 = vsel %vm14281_vm11, %v10638_v58, %v1903_v30  ;;  %v1872_v30 = vpop.permute.xlu1 %1871 }
 0x24e   : > { %14405 = vst [vmem:[#allocation90_spill] sm:$0xff] %v10759_v49  ;;  %v1906_v49 = vsel %vm14281_vm11, %v1866_v61, %v1905_v25  ;;  %v1892_v61 = vrot.slane %v1872_v30, 4 }
 0x24f   : > { %3056 = vst [vmem:[#allocation1 + $0x1] ss:$4 sm:$0xff] %v10114_v48 }
 0x250   : > { %3079 = vst [vmem:[#allocation1 + $0x21] ss:$4 sm:$0xff] %v3053_v29  ;;  %v10781_v29 = vpop.permute.xlu0 %2050  ;;  %v1909_v6 = vsel %vm460_vm2, %v1891_v26, %v1892_v61  ;;  %v1911_v50 = vsel %vm460_vm2, %v1892_v61, %v14258_v36  ;;  %v10818_v26 = vpop.permute.xlu2 %2183  ;;  %2967 = vrot.lane.b32.xlu2 %v10692_v37, %s9466_s28 }
 0x251   : > { %1940 = vst [vmem:[#allocation4 + $0xd0] sm:$0x88] %v1904_v34  ;;  %v2073_v58 = vrot.slane %v10781_v29, 4  ;;  %v1910_v17 = vsel %vm14281_vm11, %v10725_v55, %v1909_v6  ;;  %v2075_v6 = vrot.slane %v10749_v47, 4  ;;  %2971 = vrot.lane.b32.xlu1 %v10696_v42, %s9466_s28 }
 0x252   : > { %1941 = vst [vmem:[#allocation4 + $0xd8] sm:$0x88] %v1906_v49  ;;  %2965 = vrot.lane.b32.xlu0 %v10723_v60, %s9466_s28  ;;  %v2205_v60 = vrot.slane %v10818_v26, 4 }
 0x253   : > { %v2088_v22 = vsel %vm460_vm2, %v2072_v18, %v2073_v58  ;;  %1943 = vst [vmem:[#allocation4 + $0xe8] sm:$0x88] %v1910_v17  ;;  %v2070_v17 = vrot.slane %v10751_v33, 4 }
 0x254   : > { %v2089_v52 = vsel %vm14278_vm13, %v10727_v20, %v2088_v22 }
 0x255   : > { %2124 = vst [vmem:[#allocation4 + $0x13c] sm:$0x22] %v2089_v52 }
 0x256   : > { %v10787_v25 = vld [vmem:[#allocation1 + $0x18] sm:$0xff]  ;;  %v10789_v3 = vld [vmem:[#allocation1] sm:$0xff]  ;;  %v10791_v34 = vld [vmem:[#allocation1 + $0x8] sm:$0xff] }
 0x257   : > { %v10794_v7 = vld [vmem:[#allocation1 + $0x10] sm:$0xff]  ;;  %v10796_v49 = vld [vmem:[#allocation1 + $0x20] sm:$0xff] }
 0x258   : > { %14406 = vst [vmem:[#allocation91_spill] sm:$0xff] %v10796_v49  ;;  %v1912_v49 = vsel %vm14281_vm11, %v1872_v30, %v1911_v50  ;;  %v10816_v20 = vpop.permute.xlu0 %2056  ;;  %v2047_v50 = vpop.permute.xlu1 %2046  ;;  %2969 = vrot.lane.b32.xlu2 %v10694_v13, %s9466_s28  ;;  %vm14288_vm11 = vcmask 703488  }
 0x259   : > { %3077 = vst [vmem:[#allocation1 + $0x1] ss:$4 sm:$0xff] %v10147_v59  ;;  %v14263_v52 = vrot.slane %v10816_v20, 4  ;;  %v2071_v11 = vrot.slane %v2047_v50, 4  ;;  %3090 = vrot.lane.b32.xlu1 %v10789_v3, %s9467_s7 }
 0x25a   : > { %3190 = vst [vmem:[#allocation1 + $0x22] ss:$4 sm:$0xff] %v10099_v14  ;;  %3098 = vrot.lane.b32.xlu0 %v10763_v35, %s9467_s7 }
 0x25b   : > { %1944 = vst [vmem:[#allocation4 + $0xf0] sm:$0x88] %v1912_v49  ;;  %v2094_v2 = vsel %vm460_vm2, %v2075_v6, %v14263_v52  ;;  %v2083_v49 = vsel %vm460_vm2, %v2070_v17, %v2071_v11  ;;  %v2086_v22 = vsel %vm460_vm2, %v2071_v11, %v2072_v18  ;;  %v10856_v18 = vpop.permute.xlu2 %2308 }
 0x25c   : > { %14407 = vst [vmem:[#allocation92_spill] sm:$0xff] %v10816_v20  ;;  %v2095_v36 = vsel %vm14278_vm13, %v10749_v47, %v2094_v2  ;;  %v2087_v20 = vsel %vm14278_vm13, %v2047_v50, %v2086_v22  ;;  %v3184_v47 = vld [vmem:[#allocation2 + $0x19] sm:$0x3]  ;;  %v2333_v3 = vrot.slane %v10856_v18, 4 }
 0x25d   : > { %2127 = vst [vmem:[#allocation4 + $0x154] sm:$0x22] %v2095_v36  ;;  %v2201_v36 = vrot.slane %v10783_v40, 4 }
 0x25e   : > { %2123 = vst [vmem:[#allocation4 + $0x134] sm:$0x22] %v2087_v20 }
 0x260   : > { %v10823_v55 = vld [vmem:[#allocation1] sm:$0xff]  ;;  %v10825_v30 = vld [vmem:[#allocation1 + $0x8] sm:$0xff]  ;;  %v10827_v32 = vld [vmem:[#allocation1 + $0x10] sm:$0xff]  ;;  %v2053_v50 = vpop.permute.xlu1 %2052  ;;  %3092 = vrot.lane.b32.xlu2 %v10791_v34, %s9467_s7 }
 0x261   : > { %14408 = vst [vmem:[#allocation93_spill] sm:$0xff] %v10823_v55  ;;  %v10832_v61 = vld [vmem:[#allocation1 + $0x18] sm:$0xff]  ;;  %v10844_v52 = vld [vmem:[#allocation1 + $0x30] sm:$0xff]  ;;  %v10848_v17 = vld [vmem:[#allocation1 + $0x28] sm:$0xff]  ;;  %3094 = vrot.lane.b32.xlu1 %v10794_v7, %s9467_s7 }
 0x262   : > { %14409 = vst [vmem:[#allocation94_spill] sm:$0xff] %v10825_v30  ;;  %v10839_v45 = vld [vmem:[#allocation1 + $0x38] sm:$0xff]  ;;  %3100 = vrot.lane.b32.xlu0 %v10766_v44, %s9467_s7 }
 0x263   : > { %14410 = vst [vmem:[#allocation95_spill] sm:$0xff] %v10827_v32  ;;  %v2085_v32 = vsel %vm14278_vm13, %v10751_v33, %v2083_v49  ;;  %v2178_v33 = vpop.permute.xlu0 %2177 }
 0x264   : > { %14411 = vst [vmem:[#allocation96_spill] sm:$0xff] %v10832_v61  ;;  %v10846_v61 = vld [vmem:[#allocation1 + $0x20] sm:$0xff]  ;;  %v2202_v11 = vrot.slane %v2178_v33, 4 }
 0x265   : > { %3187 = vst [vmem:[#allocation1 + $0x2] ss:$4 sm:$0xff] %v10114_v48 }
 0x266   : > { %2122 = vst [vmem:[#allocation4 + $0x12c] sm:$0x22] %v2085_v32  ;;  %v2074_v32 = vrot.slane %v2053_v50, 4  ;;  %v2214_v39 = vsel %vm460_vm2, %v2201_v36, %v2202_v11 }
 0x267   : > { %3210 = vst [vmem:[#allocation1 + $0x22] ss:$4 sm:$0xff] %v3184_v47  ;;  %v2216_v20 = vsel %vm14297_vm4, %v10783_v40, %v2214_v39 }
 0x268   : > { %v2090_v2 = vsel %vm460_vm2, %v2073_v58, %v2074_v32  ;;  %v2092_v28 = vsel %vm460_vm2, %v2074_v32, %v2075_v6  ;;  %2253 = vst [vmem:[#allocation4 + $0x12c] sm:$0x44] %v2216_v20  ;;  %v10883_v58 = vpop.permute.xlu2 %2312  ;;  %v2182_v6 = vpop.permute.xlu1 %2181  ;;  %3102 = vrot.lane.b32.xlu2 %v10768_v46, %s9467_s7 }
 0x269   : > { %v2091_v49 = vsel %vm14278_vm13, %v10781_v29, %v2090_v2  ;;  %v2093_v22 = vsel %vm14278_vm13, %v2053_v50, %v2092_v28  ;;  %v2204_v32 = vrot.slane %v2182_v6, 4  ;;  %3096 = vrot.lane.b32.xlu1 %v10787_v25, %s9467_s7  ;;  %vm14282_vm13 = vcmask 728064  }
 0x26a   : > { %2125 = vst [vmem:[#allocation4 + $0x144] sm:$0x22] %v2091_v49 }
 0x26b   : > { %2126 = vst [vmem:[#allocation4 + $0x14c] sm:$0x22] %v2093_v22  ;;  %v2180_v40 = vpop.permute.xlu0 %2179  ;;  %v2221_v39 = vsel %vm460_vm2, %v2204_v32, %v2205_v60 }
 0x26c   : > { %v10864_v31 = vld [vmem:[#allocation1 + $0x18] sm:$0xff]  ;;  %v10869_v47 = vld [vmem:[#allocation1] sm:$0xff]  ;;  %v10871_v30 = vld [vmem:[#allocation1 + $0x10] sm:$0xff]  ;;  %v2203_v50 = vrot.slane %v2180_v40, 4  ;;  %v2222_v28 = vsel %vm14297_vm4, %v2182_v6, %v2221_v39 }
 0x26d   : > { %v10873_v36 = vld [vmem:[#allocation1 + $0x8] sm:$0xff]  ;;  %2256 = vst [vmem:[#allocation4 + $0x144] sm:$0x44] %v2222_v28  ;;  %3221 = vrot.lane.b32.xlu0 %v10869_v47, %s9468_s29 }
 0x26e   : > { %v10881_v29 = vld [vmem:[#allocation1 + $0x20] sm:$0xff]  ;;  %3208 = vst [vmem:[#allocation1 + $0x2] ss:$4 sm:$0xff] %v10147_v59  ;;  %v2217_v57 = vsel %vm460_vm2, %v2202_v11, %v2203_v50  ;;  %v2219_v2 = vsel %vm460_vm2, %v2203_v50, %v2204_v32 }
 0x26f   : > { %14412 = vst [vmem:[#allocation97_spill] sm:$0xff] %v10881_v29  ;;  %v2218_v16 = vsel %vm14297_vm4, %v2178_v33, %v2217_v57  ;;  %v2220_v20 = vsel %vm14297_vm4, %v2180_v40, %v2219_v2  ;;  %v3315_v11 = vld [vmem:[#allocation2 + $0x19] sm:$0x3] }
 0x270   : > { %3321 = vst [vmem:[#allocation1 + $0x23] ss:$4 sm:$0xff] %v10099_v14  ;;  %v10906_v6 = vpop.permute.xlu2 %2318  ;;  %v10914_v37 = vpop.permute.xlu1 %2187  ;;  %3225 = vrot.lane.b32.xlu2 %v10871_v30, %s9468_s29 }
 0x271   : > { %2254 = vst [vmem:[#allocation4 + $0x134] sm:$0x44] %v2218_v16  ;;  %v14266_v16 = vrot.slane %v10914_v37, 4  ;;  %3223 = vrot.lane.b32.xlu1 %v10873_v36, %s9468_s29 }
 0x272   : > { %2255 = vst [vmem:[#allocation4 + $0x13c] sm:$0x44] %v2220_v20 }
 0x273   : > { %v2186_v40 = vpop.permute.xlu0 %2185  ;;  %14417 = vst [vmem:[#allocation102_spill] sm:$0xff] %v10914_v37 }
 0x274   : > { %v2206_v57 = vrot.slane %v2186_v40, 4 }
 0x275   : > { %v10900_v33 = vld [vmem:[#allocation1] sm:$0xff]  ;;  %v10902_v49 = vld [vmem:[#allocation1 + $0x8] sm:$0xff]  ;;  %v10904_v22 = vld [vmem:[#allocation1 + $0x10] sm:$0xff]  ;;  %3233 = vrot.lane.b32.xlu0 %v10844_v52, %s9468_s29 }
 0x276   : > { %14413 = vst [vmem:[#allocation98_spill] sm:$0xff] %v10900_v33  ;;  %v10908_v50 = vld [vmem:[#allocation1 + $0x18] sm:$0xff]  ;;  %v2223_v2 = vsel %vm460_vm2, %v2205_v60, %v2206_v57  ;;  %v2225_v20 = vsel %vm460_vm2, %v2206_v57, %v14266_v16 }
 0x277   : > { %14414 = vst [vmem:[#allocation99_spill] sm:$0xff] %v10902_v49  ;;  %v10910_v35 = vld [vmem:[#allocation1 + $0x38] sm:$0xff]  ;;  %v10912_v32 = vld [vmem:[#allocation1 + $0x30] sm:$0xff]  ;;  %v10917_v42 = vld [vmem:[#allocation1 + $0x20] sm:$0xff]  ;;  %v2224_v28 = vsel %vm14297_vm4, %v10818_v26, %v2223_v2  ;;  %v2226_v29 = vsel %vm14297_vm4, %v2186_v40, %v2225_v20 }
 0x278   : > { %14415 = vst [vmem:[#allocation100_spill] sm:$0xff] %v10904_v22  ;;  %v10919_v39 = vld [vmem:[#allocation1 + $0x28] sm:$0xff]  ;;  %v10937_v26 = vpop.permute.xlu2 %2440  ;;  %v2307_v2 = vpop.permute.xlu1 %2306  ;;  %v3446_v49 = vld [vmem:[#allocation2 + $0x19] sm:$0x3]  ;;  %3227 = vrot.lane.b32.xlu2 %v10864_v31, %s9468_s29 }
 0x279   : > { %14416 = vst [vmem:[#allocation101_spill] sm:$0xff] %v10908_v50  ;;  %v2332_v20 = vrot.slane %v2307_v2, 4  ;;  %3229 = vrot.lane.b32.xlu1 %v10846_v61, %s9468_s29 }
 0x27a   : > { %3318 = vst [vmem:[#allocation1 + $0x3] ss:$4 sm:$0xff] %v10114_v48 }
 0x27b   : > { %3341 = vst [vmem:[#allocation1 + $0x23] ss:$4 sm:$0xff] %v3315_v11  ;;  %v10935_v60 = vpop.permute.xlu0 %2314  ;;  %v2345_v22 = vsel %vm460_vm2, %v2332_v20, %v2333_v3 }
 0x27c   : > { %2257 = vst [vmem:[#allocation4 + $0x14c] sm:$0x44] %v2224_v28  ;;  %v2336_v44 = vrot.slane %v10935_v60, 4  ;;  %v2347_v37 = vsel %vm14279_vm8, %v2307_v2, %v2345_v22 }
 0x27d   : > { %2258 = vst [vmem:[#allocation4 + $0x154] sm:$0x44] %v2226_v29  ;;  %v2335_v29 = vrot.slane %v10883_v58, 4 }
 0x27e   : > { %2384 = vst [vmem:[#allocation4 + $0x12c] sm:$0x88] %v2347_v37 }
 0x27f   : > { %v2352_v16 = vsel %vm460_vm2, %v2335_v29, %v2336_v44 }
 0x280   : > { %v2353_v50 = vsel %vm14279_vm8, %v10883_v58, %v2352_v16  ;;  %v2464_v58 = vrot.slane %v10937_v26, 4  ;;  %v2311_v16 = vpop.permute.xlu1 %2310 }
 0x281   : > { %v10939_v11 = vld [vmem:[#allocation1 + $0x8] sm:$0xff]  ;;  %v10941_v57 = vld [vmem:[#allocation1 + $0x10] sm:$0xff]  ;;  %v10943_v40 = vld [vmem:[#allocation1 + $0x18] sm:$0xff]  ;;  %2387 = vst [vmem:[#allocation4 + $0x144] sm:$0x88] %v2353_v50  ;;  %v2334_v2 = vrot.slane %v2311_v16, 4  ;;  %3231 = vrot.lane.b32.xlu1 %v10848_v17, %s9468_s29 }
 0x282   : > { %v10947_v13 = vld [vmem:[#allocation1] sm:$0xff]  ;;  %3354 = vrot.lane.b32.xlu0 %v10939_v11, %s9469_s8 }
 0x283   : > { %v10949_v28 = vld [vmem:[#allocation1 + $0x20] sm:$0xff]  ;;  %3339 = vst [vmem:[#allocation1 + $0x3] ss:$4 sm:$0xff] %v10147_v59  ;;  %3352 = vrot.lane.b32.xlu2 %v10947_v13, %s9469_s8 }
 0x284   : > { %14418 = vst [vmem:[#allocation103_spill] sm:$0xff] %v10949_v28  ;;  %v2437_v28 = vpop.permute.xlu0 %2436 }
 0x285   : > { %3451 = vst [vmem:[#allocation1 + $0x20] ss:$4 sm:$0xff] %v10099_v14  ;;  %v10965_v14 = vpop.permute.xlu2 %2442 }
 0x286   : > { %v2465_v22 = vrot.slane %v10965_v14, 4 }
 0x288   : > { %v2480_v55 = vsel %vm460_vm2, %v2464_v58, %v2465_v22 }
 0x289   : > { %3364 = vrot.lane.b32.xlu1 %v10912_v32, %s9469_s8 }
 0x28a   : > { %v10969_v50 = vld [vmem:[#allocation1] sm:$0xff]  ;;  %v10971_v37 = vld [vmem:[#allocation1 + $0x8] sm:$0xff]  ;;  %v10973_v34 = vld [vmem:[#allocation1 + $0x10] sm:$0xff]  ;;  %3356 = vrot.lane.b32.xlu0 %v10941_v57, %s9469_s8 }
 0x28b   : > { %14419 = vst [vmem:[#allocation104_spill] sm:$0xff] %v10969_v50  ;;  %v10975_v47 = vld [vmem:[#allocation1 + $0x18] sm:$0xff]  ;;  %3360 = vrot.lane.b32.xlu2 %v10917_v42, %s9469_s8 }
 0x28c   : > { %14420 = vst [vmem:[#allocation105_spill] sm:$0xff] %v10971_v37  ;;  %v10977_v20 = vld [vmem:[#allocation1 + $0x28] sm:$0xff]  ;;  %v10979_v7 = vld [vmem:[#allocation1 + $0x30] sm:$0xff]  ;;  %v10985_v33 = vld [vmem:[#allocation1 + $0x38] sm:$0xff]  ;;  %v2350_v37 = vsel %vm460_vm2, %v2334_v2, %v2335_v29 }
 0x28d   : > { %14421 = vst [vmem:[#allocation106_spill] sm:$0xff] %v10973_v34  ;;  %v10987_v50 = vld [vmem:[#allocation1 + $0x20] sm:$0xff]  ;;  %v2348_v34 = vsel %vm460_vm2, %v2333_v3, %v2334_v2  ;;  %v2351_v19 = vsel %vm14279_vm8, %v2311_v16, %v2350_v37  ;;  %v2462_v2 = vrot.slane %v2437_v28, 4 }
 0x28e   : > { %14422 = vst [vmem:[#allocation107_spill] sm:$0xff] %v10975_v47  ;;  %v2481_v47 = vsel %vm2476_vm15, %v10937_v26, %v2480_v55  ;;  %v2349_v10 = vsel %vm14279_vm8, %v10856_v18, %v2348_v34  ;;  %v2568_v55 = vpop.permute.xlu2 %2567  ;;  %v2338_v18 = vrot.slane %v10906_v6, 4 }
 0x28f   : > { %3448 = vst [vmem:[#allocation1] ss:$4 sm:$0xff] %v10114_v48  ;;  %v11002_v48 = vpop.permute.xlu0 %2448 }
 0x290   : > { %3471 = vst [vmem:[#allocation1 + $0x20] ss:$4 sm:$0xff] %v3446_v49  ;;  %v2317_v49 = vpop.permute.xlu1 %2316 }
 0x291   : > { %2516 = vst [vmem:[#allocation4 + $0x1a0] sm:$0x11] %v2481_v47  ;;  %v2337_v26 = vrot.slane %v2317_v49, 4 }
 0x292   : > { %2385 = vst [vmem:[#allocation4 + $0x134] sm:$0x88] %v2349_v10  ;;  %3358 = vrot.lane.b32.xlu0 %v10943_v40, %s9469_s8 }
 0x293   : > { %2386 = vst [vmem:[#allocation4 + $0x13c] sm:$0x88] %v2351_v19  ;;  %v2354_v19 = vsel %vm460_vm2, %v2336_v44, %v2337_v26  ;;  %v2356_v25 = vsel %vm460_vm2, %v2337_v26, %v2338_v18  ;;  %3362 = vrot.lane.b32.xlu2 %v10919_v39, %s9469_s8 }
 0x294   : > { %v2355_v52 = vsel %vm14279_vm8, %v10935_v60, %v2354_v19  ;;  %v2357_v16 = vsel %vm14279_vm8, %v2317_v49, %v2356_v25  ;;  %vm3261_vm8 = vcmask 719872  }
 0x295   : > { %2388 = vst [vmem:[#allocation4 + $0x14c] sm:$0x88] %v2355_v52 }
 0x296   : > { %v11005_v29 = vld [vmem:[#allocation1 + $0x10] sm:$0xff]  ;;  %v11007_v10 = vld [vmem:[#allocation1] sm:$0xff]  ;;  %v11009_v3 = vld [vmem:[#allocation1 + $0x8] sm:$0xff]  ;;  %2389 = vst [vmem:[#allocation4 + $0x154] sm:$0x88] %v2357_v16  ;;  %v2576_v37 = vpop.permute.xlu2 %2575 }
 0x297   : > { %v11011_v46 = vld [vmem:[#allocation1 + $0x18] sm:$0xff]  ;;  %v2570_v44 = vpop.permute.xlu0 %2569  ;;  %v2597_v52 = vrot.slane %v2576_v37, 4  ;;  %3482 = vrot.lane.b32.xlu1 %v11007_v10, %s9470_s30 }
 0x298   : > { %3469 = vst [vmem:[#allocation1] ss:$4 sm:$0xff] %v10147_v59  ;;  %v2593_v59 = vrot.slane %v2568_v55, 4  ;;  %v2439_v34 = vpop.permute.xlu1 %2438  ;;  %v2594_v60 = vrot.slane %v2570_v44, 4 }
 0x299   : > { %v2463_v47 = vrot.slane %v2439_v34, 4 }
 0x29a   : > { %v2606_v49 = vsel %vm460_vm2, %v2593_v59, %v2594_v60  ;;  %3486 = vrot.lane.b32.xlu0 %v11005_v29, %s9470_s30 }
 0x29b   : > { %v2475_v30 = vsel %vm460_vm2, %v2462_v2, %v2463_v47  ;;  %v2478_v26 = vsel %vm460_vm2, %v2463_v47, %v2464_v58  ;;  %v2608_v11 = vsel %vm2607_vm0, %v2568_v55, %v2606_v49  ;;  %v2468_v49 = vrot.slane %v11002_v48, 4  ;;  %3484 = vrot.lane.b32.xlu2 %v11009_v3, %s9470_s30 }
 0x29c   : > { %v2477_v19 = vsel %vm2476_vm15, %v2437_v28, %v2475_v30  ;;  %v2479_v36 = vsel %vm2476_vm15, %v2439_v34, %v2478_v26  ;;  %2645 = vst [vmem:[#allocation4 + $0x190] sm:$0x22] %v2608_v11 }
 0x29d   : > { %2514 = vst [vmem:[#allocation4 + $0x190] sm:$0x11] %v2477_v19 }
 0x29e   : > { %2515 = vst [vmem:[#allocation4 + $0x198] sm:$0x11] %v2479_v36  ;;  %v2578_v58 = vpop.permute.xlu2 %2577 }
 0x29f   : > { %v2572_v25 = vpop.permute.xlu0 %2571  ;;  %v2598_v28 = vrot.slane %v2578_v58, 4  ;;  %3488 = vrot.lane.b32.xlu1 %v11011_v46, %s9470_s30 }
 0x2a0   : > { %v2445_v55 = vpop.permute.xlu1 %2444  ;;  %v2595_v16 = vrot.slane %v2572_v25, 4 }
 0x2a1   : > { %v2466_v59 = vrot.slane %v2445_v55, 4  ;;  %v2615_v2 = vsel %vm460_vm2, %v2597_v52, %v2598_v28 }
 0x2a2   : > { %v2609_v34 = vsel %vm460_vm2, %v2594_v60, %v2595_v16  ;;  %v2616_v47 = vsel %vm2607_vm0, %v2576_v37, %v2615_v2  ;;  %3492 = vrot.lane.b32.xlu0 %v10977_v20, %s9470_s30 }
 0x2a3   : > { %v2482_v31 = vsel %vm460_vm2, %v2465_v22, %v2466_v59  ;;  %v2610_v57 = vsel %vm2607_vm0, %v2570_v44, %v2609_v34  ;;  %2649 = vst [vmem:[#allocation4 + $0x1b0] sm:$0x22] %v2616_v47  ;;  %3496 = vrot.lane.b32.xlu2 %v10985_v33, %s9470_s30 }
 0x2a4   : > { %v2483_v61 = vsel %vm2476_vm15, %v10965_v14, %v2482_v31  ;;  %2646 = vst [vmem:[#allocation4 + $0x198] sm:$0x22] %v2610_v57 }
 0x2a5   : > { %2517 = vst [vmem:[#allocation4 + $0x1a8] sm:$0x11] %v2483_v61 }
 0x2a6   : > { %v11054_v60 = vpop.permute.xlu2 %2700 }
 0x2a7   : > { %v2574_v22 = vpop.permute.xlu0 %2573  ;;  %3490 = vrot.lane.b32.xlu1 %v10987_v50, %s9470_s30 }
 0x2a8   : > { %v2447_v44 = vpop.permute.xlu1 %2446  ;;  %v2596_v37 = vrot.slane %v2574_v22, 4 }
 0x2a9   : > { %v2467_v14 = vrot.slane %v2447_v44, 4 }
 0x2aa   : > { %v2611_v30 = vsel %vm460_vm2, %v2595_v16, %v2596_v37  ;;  %v2613_v26 = vsel %vm460_vm2, %v2596_v37, %v2597_v52  ;;  %3494 = vrot.lane.b32.xlu0 %v10979_v7, %s9470_s30 }
 0x2ab   : > { %v2484_v40 = vsel %vm460_vm2, %v2466_v59, %v2467_v14  ;;  %v2486_v13 = vsel %vm460_vm2, %v2467_v14, %v2468_v49  ;;  %v2612_v17 = vsel %vm2607_vm0, %v2572_v25, %v2611_v30  ;;  %v2614_v36 = vsel %vm2607_vm0, %v2574_v22, %v2613_v26  ;;  %2712 = vrot.lane.b32.xlu2 %v10550_v38, %s9464_s13 }
 0x2ac   : > { %v2485_v11 = vsel %vm2476_vm15, %v2445_v55, %v2484_v40  ;;  %v2487_v19 = vsel %vm2476_vm15, %v2447_v44, %v2486_v13  ;;  %2647 = vst [vmem:[#allocation4 + $0x1a0] sm:$0x22] %v2612_v17 }
 0x2ad   : > { %2518 = vst [vmem:[#allocation4 + $0x1b0] sm:$0x11] %v2485_v11 }
 0x2ae   : > { %2519 = vst [vmem:[#allocation4 + $0x1b8] sm:$0x11] %v2487_v19  ;;  %v11073_v52 = vpop.permute.xlu2 %2710 }
 0x2af   : > { %2648 = vst [vmem:[#allocation4 + $0x1a8] sm:$0x22] %v2614_v36  ;;  %v2707_v25 = vpop.permute.xlu0 %2706  ;;  %v2730_v2 = vrot.slane %v11073_v52, 4  ;;  %2581 = vrot.lane.b32.xlu1 %v10481_v1, %s9463_s12 }
 0x2b0   : > { %v11075_v55 = vpop.permute.xlu1 %2579  ;;  %v2728_v34 = vrot.slane %v2707_v25, 4 }
 0x2b1   : > { %v2599_v16 = vrot.slane %v11075_v55, 4 }
 0x2b2   : > { %2450 = vrot.lane.b32.xlu0 %v10421_v0, %s9462_s11 }
 0x2b3   : > { %v2617_v42 = vsel %vm460_vm2, %v2598_v28, %v2599_v16  ;;  %3104 = vrot.lane.b32.xlu2 %v10761_v54, %s9467_s7 }
 0x2b4   : > { %v2618_v59 = vsel %vm2607_vm0, %v2578_v58, %v2617_v42  ;;  %v2725_v58 = vrot.slane %v11054_v60, 4 }
 0x2b5   : > { %2650 = vst [vmem:[#allocation4 + $0x1b8] sm:$0x22] %v2618_v59 }
 0x2b6   : > { %v2834_v29 = vpop.permute.xlu2 %2833 }
 0x2b7   : > { %v2709_v32 = vpop.permute.xlu0 %2708  ;;  %v2857_v14 = vrot.slane %v2834_v29, 4  ;;  %2973 = vrot.lane.b32.xlu1 %v10701_v62, %s9466_s28 }
 0x2b8   : > { %v2729_v31 = vrot.slane %v2709_v32, 4  ;;  %v2699_v28 = vpop.permute.xlu1 %2698 }
 0x2b9   : > { %v2724_v57 = vrot.slane %v2699_v28, 4 }
 0x2ba   : > { %v2746_v47 = vsel %vm460_vm2, %v2728_v34, %v2729_v31  ;;  %v2748_v39 = vsel %vm460_vm2, %v2729_v31, %v2730_v2  ;;  %2843 = vrot.lane.b32.xlu0 %v10630_v27, %s14292_s14 }
 0x2bb   : > { %v2747_v20 = vsel %vm14283_vm9, %v2707_v25, %v2746_v47  ;;  %v2749_v10 = vsel %vm14283_vm9, %v2709_v32, %v2748_v39  ;;  %v2737_v61 = vsel %vm460_vm2, %v2724_v57, %v2725_v58  ;;  %1088 = vrot.lane.b32.xlu2 %v9711_v51, %s9452_s16 }
 0x2bc   : > { %2780 = vst [vmem:[#allocation4 + $0x1b0] sm:$0x44] %v2747_v20  ;;  %v2739_v22 = vsel %vm14283_vm9, %v2699_v28, %v2737_v61 }
 0x2bd   : > { %2781 = vst [vmem:[#allocation4 + $0x1b8] sm:$0x44] %v2749_v10 }
 0x2be   : > { %2776 = vst [vmem:[#allocation4 + $0x190] sm:$0x44] %v2739_v22  ;;  %v2836_v44 = vpop.permute.xlu2 %2835 }
 0x2bf   : > { %v2830_v37 = vpop.permute.xlu0 %2829  ;;  %v2858_v26 = vrot.slane %v2836_v44, 4  ;;  %3366 = vrot.lane.b32.xlu1 %v10910_v35, %s9469_s8 }
 0x2c0   : > { %v2703_v30 = vpop.permute.xlu1 %2702 }
 0x2c1   : > { %v2726_v40 = vrot.slane %v2703_v30, 4  ;;  %v2873_v13 = vsel %vm460_vm2, %v2857_v14, %v2858_v26 }
 0x2c2   : > { %v2874_v7 = vsel %vm14296_vm1, %v2834_v29, %v2873_v13  ;;  %3235 = vrot.lane.b32.xlu0 %v10839_v45, %s9468_s29 }
 0x2c3   : > { %v2740_v17 = vsel %vm460_vm2, %v2725_v58, %v2726_v40  ;;  %2909 = vst [vmem:[#allocation4 + $0x1a0] sm:$0x88] %v2874_v7 }
 0x2c4   : > { %v2741_v3 = vsel %vm14283_vm9, %v11054_v60, %v2740_v17 }
 0x2c5   : > { %2777 = vst [vmem:[#allocation4 + $0x198] sm:$0x44] %v2741_v3 }
 0x2c6   : > { %v2960_v11 = vpop.permute.xlu2 %2959 }
 0x2c7   : > { %v11115_v46 = vpop.permute.xlu0 %2841  ;;  %v2985_v50 = vrot.slane %v2960_v11, 4  ;;  %1350 = vrot.lane.b32.xlu1 %v9803_v43, %s9454_s18 }
 0x2c8   : > { %v2705_v19 = vpop.permute.xlu1 %2704  ;;  %v2861_v3 = vrot.slane %v11115_v46, 4 }
 0x2c9   : > { %v2727_v36 = vrot.slane %v2705_v19, 4 }
 0x2ca   : > { %1219 = vrot.lane.b32.xlu0 %v9754_v4, %s9453_s17 }
 0x2cb   : > { %v2742_v25 = vsel %vm460_vm2, %v2726_v40, %v2727_v36  ;;  %v2744_v60 = vsel %vm460_vm2, %v2727_v36, %v2728_v34  ;;  %v2855_v34 = vrot.slane %v2830_v37, 4 }
 0x2cc   : > { %v2743_v42 = vsel %vm14283_vm9, %v2703_v30, %v2742_v25  ;;  %v2745_v59 = vsel %vm14283_vm9, %v2705_v19, %v2744_v60 }
 0x2cd   : > { %2778 = vst [vmem:[#allocation4 + $0x1a0] sm:$0x44] %v2743_v42  ;;  %v3472_v42 = vld [vmem:[#allocation1] sm:$0xff] }
 0x2ce   : > { %2779 = vst [vmem:[#allocation4 + $0x1a8] sm:$0x44] %v2745_v59  ;;  %v2968_v33 = vpop.permute.xlu2 %2967  ;;  %3498 = vrot.lane.b32.xlu2 %v3472_v42, %s9470_s30  ;;  %v14424_v42 = vld [vmem:[#allocation80_spill] sm:$0xff] }
 0x2cf   : > { %v2962_v0 = vpop.permute.xlu0 %2961  ;;  %v2989_v20 = vrot.slane %v2968_v33, 4  ;;  %1613 = vrot.lane.b32.xlu1 %v9937_v41, %s9456_s20 }
 0x2d0   : > { %v2832_v32 = vpop.permute.xlu1 %2831  ;;  %v2986_v29 = vrot.slane %v2962_v0, 4 }
 0x2d1   : > { %v2856_v31 = vrot.slane %v2832_v32, 4 }
 0x2d2   : > { %v2998_v28 = vsel %vm460_vm2, %v2985_v50, %v2986_v29  ;;  %1482 = vrot.lane.b32.xlu0 %v9862_v8, %s9455_s19 }
 0x2d3   : > { %v2868_v58 = vsel %vm460_vm2, %v2855_v34, %v2856_v31  ;;  %v2871_v27 = vsel %vm460_vm2, %v2856_v31, %v2857_v14  ;;  %v3000_v38 = vsel %vm2999_vm5, %v2960_v11, %v2998_v28 }
 0x2d4   : > { %v2870_v57 = vsel %vm14296_vm1, %v2830_v37, %v2868_v58  ;;  %v2872_v1 = vsel %vm14296_vm1, %v2832_v32, %v2871_v27  ;;  %3037 = vst [vmem:[#allocation4 + $0x1f4] sm:$0x11] %v3000_v38 }
 0x2d5   : > { %2907 = vst [vmem:[#allocation4 + $0x190] sm:$0x88] %v2870_v57 }
 0x2d6   : > { %2908 = vst [vmem:[#allocation4 + $0x198] sm:$0x88] %v2872_v1  ;;  %v2970_v39 = vpop.permute.xlu2 %2969  ;;  %1744 = vrot.lane.b32.xlu2 %v9998_v23, %s9457_s23 }
 0x2d7   : > { %v2964_v47 = vpop.permute.xlu0 %2963  ;;  %v2990_v22 = vrot.slane %v2970_v39, 4  ;;  %2058 = vrot.lane.b32.xlu1 %v10216_v56, %s9459_s25 }
 0x2d8   : > { %v2838_v10 = vpop.permute.xlu1 %2837  ;;  %v2987_v61 = vrot.slane %v2964_v47, 4 }
 0x2d9   : > { %v2859_v37 = vrot.slane %v2838_v10, 4  ;;  %v3007_v30 = vsel %vm460_vm2, %v2989_v20, %v2990_v22 }
 0x2da   : > { %v3001_v14 = vsel %vm460_vm2, %v2986_v29, %v2987_v61  ;;  %v3008_v54 = vsel %vm2999_vm5, %v2968_v33, %v3007_v30  ;;  %1875 = vrot.lane.b32.xlu0 %v10065_v12, %s9458_s24 }
 0x2db   : > { %v2875_v45 = vsel %vm460_vm2, %v2858_v26, %v2859_v37  ;;  %v3002_v40 = vsel %vm2999_vm5, %v2962_v0, %v3001_v14  ;;  %3041 = vst [vmem:[#allocation4 + $0x214] sm:$0x11] %v3008_v54 }
 0x2dc   : > { %v2876_v13 = vsel %vm14296_vm1, %v2836_v44, %v2875_v45  ;;  %3038 = vst [vmem:[#allocation4 + $0x1fc] sm:$0x11] %v3002_v40 }
 0x2dd   : > { %2910 = vst [vmem:[#allocation4 + $0x1a8] sm:$0x88] %v2876_v13 }
 0x2de   : > { %v11151_v26 = vpop.permute.xlu2 %3092  ;;  %2189 = vrot.lane.b32.xlu2 %v10277_v15, %s14294_s26 }
 0x2df   : > { %v2966_v62 = vpop.permute.xlu0 %2965  ;;  %v3117_v27 = vrot.slane %v11151_v26, 4  ;;  %1090 = vrot.lane.b32.xlu1 %v9714_v53, %s9452_s16 }
 0x2e0   : > { %v2840_v17 = vpop.permute.xlu1 %2839  ;;  %v2988_v7 = vrot.slane %v2966_v62, 4 }
 0x2e1   : > { %v2860_v44 = vrot.slane %v2840_v17, 4 }
 0x2e2   : > { %v3003_v11 = vsel %vm460_vm2, %v2987_v61, %v2988_v7  ;;  %v3005_v19 = vsel %vm460_vm2, %v2988_v7, %v2989_v20  ;;  %2320 = vrot.lane.b32.xlu0 %v10337_v21, %s9461_s27 }
 0x2e3   : > { %v2877_v4 = vsel %vm460_vm2, %v2859_v37, %v2860_v44  ;;  %v2879_v51 = vsel %vm460_vm2, %v2860_v44, %v2861_v3  ;;  %v3004_v35 = vsel %vm2999_vm5, %v2964_v47, %v3003_v11  ;;  %v3006_v60 = vsel %vm2999_vm5, %v2966_v62, %v3005_v19 }
 0x2e4   : > { %v2878_v36 = vsel %vm14296_vm1, %v2838_v10, %v2877_v4  ;;  %v2880_v25 = vsel %vm14296_vm1, %v2840_v17, %v2879_v51  ;;  %3039 = vst [vmem:[#allocation4 + $0x204] sm:$0x11] %v3004_v35 }
 0x2e5   : > { %2911 = vst [vmem:[#allocation4 + $0x1b0] sm:$0x88] %v2878_v36 }
 0x2e6   : > { %2912 = vst [vmem:[#allocation4 + $0x1b8] sm:$0x88] %v2880_v25  ;;  %v11169_v0 = vpop.permute.xlu2 %3102  ;;  %1221 = vrot.lane.b32.xlu2 %v9756_v5, %s9453_s17  ;;  %v3474_v5 = vld [vmem:[#allocation1 + $0x8] sm:$0xff] }
 0x2e7   : > { %3040 = vst [vmem:[#allocation4 + $0x20c] sm:$0x11] %v3006_v60  ;;  %v3099_v59 = vpop.permute.xlu0 %3098  ;;  %v3122_v31 = vrot.slane %v11169_v0, 4  ;;  %3500 = vrot.lane.b32.xlu1 %v3474_v5, %s9470_s30  ;;  %v14423_v60 = vld [vmem:[#allocation87_spill] sm:$0xff]  ;;  %v14431_v5 = vld [vmem:[#allocation26_spill] sm:$0xff] }
 0x2e8   : > { %v11171_v33 = vpop.permute.xlu1 %2971  ;;  %v3120_v34 = vrot.slane %v3099_v59, 4 }
 0x2e9   : > { %v2991_v50 = vrot.slane %v11171_v33, 4 }
 0x2ea   : > { %1352 = vrot.lane.b32.xlu0 %v9807_v9, %s9454_s18 }
 0x2eb   : > { %v3009_v32 = vsel %vm460_vm2, %v2990_v22, %v2991_v50 }
 0x2ec   : > { %v3010_v8 = vsel %vm2999_vm5, %v2970_v39, %v3009_v32 }
 0x2ed   : > { %3042 = vst [vmem:[#allocation4 + $0x21c] sm:$0x11] %v3010_v8 }
 0x2ee   : > { %v3226_v29 = vpop.permute.xlu2 %3225  ;;  %2452 = vrot.lane.b32.xlu2 %v10440_v24, %s9462_s11 }
 0x2ef   : > { %v3101_v43 = vpop.permute.xlu0 %3100  ;;  %v3249_v10 = vrot.slane %v3226_v29, 4 }
 0x2f0   : > { %v3121_v28 = vrot.slane %v3101_v43, 4  ;;  %v3091_v58 = vpop.permute.xlu1 %3090 }
 0x2f1   : > { %v3116_v38 = vrot.slane %v3091_v58, 4 }
 0x2f2   : > { %v3138_v57 = vsel %vm460_vm2, %v3120_v34, %v3121_v28  ;;  %v3140_v23 = vsel %vm460_vm2, %v3121_v28, %v3122_v31  ;;  %2583 = vrot.lane.b32.xlu0 %v10529_v63, %s9463_s12 }
 0x2f3   : > { %v3139_v12 = vsel %vm14282_vm13, %v3099_v59, %v3138_v57  ;;  %v3141_v41 = vsel %vm14282_vm13, %v3101_v43, %v3140_v23  ;;  %v3129_v1 = vsel %vm460_vm2, %v3116_v38, %v3117_v27  ;;  %v14425_v59 = vld [vmem:[#allocation75_spill] sm:$0xff] }
 0x2f4   : > { %3172 = vst [vmem:[#allocation4 + $0x214] sm:$0x22] %v3139_v12  ;;  %v3131_v47 = vsel %vm14282_vm13, %v3091_v58, %v3129_v1  ;;  %2714 = vrot.lane.b32.xlu1 %v14425_v59, %s9464_s13  ;;  %v14426_v1 = vld [vmem:[#allocation104_spill] sm:$0xff] }
 0x2f5   : > { %3173 = vst [vmem:[#allocation4 + $0x21c] sm:$0x22] %v3141_v41 }
 0x2f6   : > { %3168 = vst [vmem:[#allocation4 + $0x1f4] sm:$0x22] %v3131_v47  ;;  %v11200_v39 = vpop.permute.xlu2 %3227  ;;  %2845 = vrot.lane.b32.xlu2 %v14424_v42, %s14292_s14  ;;  %v14427_v47 = vld [vmem:[#allocation98_spill] sm:$0xff] }
 0x2f7   : > { %v3222_v20 = vpop.permute.xlu0 %3221  ;;  %v3250_v22 = vrot.slane %v11200_v39, 4 }
 0x2f8   : > { %v3095_v61 = vpop.permute.xlu1 %3094  ;;  %v3247_v19 = vrot.slane %v3222_v20, 4 }
 0x2f9   : > { %v3118_v37 = vrot.slane %v3095_v61, 4  ;;  %v3265_v14 = vsel %vm460_vm2, %v3249_v10, %v3250_v22 }
 0x2fa   : > { %v3266_v30 = vsel %vm3261_vm8, %v3226_v29, %v3265_v14  ;;  %2975 = vrot.lane.b32.xlu0 %v14423_v60, %s9466_s28 }
 0x2fb   : > { %v3132_v21 = vsel %vm460_vm2, %v3117_v27, %v3118_v37  ;;  %3301 = vst [vmem:[#allocation4 + $0x204] sm:$0x44] %v3266_v30 }
 0x2fc   : > { %v3133_v15 = vsel %vm14282_vm13, %v11151_v26, %v3132_v21 }
 0x2fd   : > { %3169 = vst [vmem:[#allocation4 + $0x1fc] sm:$0x22] %v3133_v15 }
 0x2fe   : > { %v3353_v45 = vpop.permute.xlu2 %3352  ;;  %3237 = vrot.lane.b32.xlu2 %v14427_v47, %s9468_s29 }
 0x2ff   : > { %v11214_v56 = vpop.permute.xlu0 %3233  ;;  %v3378_v7 = vrot.slane %v3353_v45, 4 }
 0x300   : > { %v3097_v40 = vpop.permute.xlu1 %3096  ;;  %v3253_v14 = vrot.slane %v11214_v56, 4 }
 0x301   : > { %v3119_v54 = vrot.slane %v3097_v40, 4 }
 0x302   : > { %3368 = vrot.lane.b32.xlu0 %v14426_v1, %s9469_s8 }
 0x303   : > { %v3134_v13 = vsel %vm460_vm2, %v3118_v37, %v3119_v54  ;;  %v3136_v62 = vsel %vm460_vm2, %v3119_v54, %v3120_v34 }
 0x304   : > { %v3135_v26 = vsel %vm14282_vm13, %v3095_v61, %v3134_v13  ;;  %v3137_v17 = vsel %vm14282_vm13, %v3097_v40, %v3136_v62 }
 0x305   : > { %3170 = vst [vmem:[#allocation4 + $0x204] sm:$0x22] %v3135_v26  ;;  %v14429_v26 = vld [vmem:[#allocation36_spill] sm:$0xff] }
 0x306   : > { %3171 = vst [vmem:[#allocation4 + $0x20c] sm:$0x22] %v3137_v17  ;;  %v3361_v9 = vpop.permute.xlu2 %3360  ;;  %v14430_v17 = vld [vmem:[#allocation31_spill] sm:$0xff] }
 0x307   : > { %v3355_v53 = vpop.permute.xlu0 %3354  ;;  %v3382_v43 = vrot.slane %v3361_v9, 4  ;;  %1615 = vrot.lane.b32.xlu2 %v14430_v17, %s9456_s20 }
 0x308   : > { %v3224_v44 = vpop.permute.xlu1 %3223  ;;  %v3379_v11 = vrot.slane %v3355_v53, 4 }
 0x309   : > { %v3248_v4 = vrot.slane %v3224_v44, 4 }
 0x30a   : > { %v3391_v51 = vsel %vm460_vm2, %v3378_v7, %v3379_v11  ;;  %1746 = vrot.lane.b32.xlu0 %v14429_v26, %s9457_s23 }
 0x30b   : > { %v3260_v35 = vsel %vm460_vm2, %v3247_v19, %v3248_v4  ;;  %v3263_v63 = vsel %vm460_vm2, %v3248_v4, %v3249_v10  ;;  %v3393_v36 = vsel %vm14291_vm6, %v3353_v45, %v3391_v51 }
 0x30c   : > { %v3262_v24 = vsel %vm3261_vm8, %v3222_v20, %v3260_v35  ;;  %v3264_v25 = vsel %vm3261_vm8, %v3224_v44, %v3263_v63  ;;  %3430 = vst [vmem:[#allocation4 + $0x1f4] sm:$0x88] %v3393_v36  ;;  %v14428_v20 = vld [vmem:[#allocation93_spill] sm:$0xff]  ;;  %v14432_v36 = vld [vmem:[#allocation52_spill] sm:$0xff] }
 0x30d   : > { %3299 = vst [vmem:[#allocation4 + $0x1f4] sm:$0x44] %v3262_v24  ;;  %3106 = vrot.lane.b32.xlu1 %v14428_v20, %s9467_s7  ;;  %v14433_v24 = vld [vmem:[#allocation45_spill] sm:$0xff] }
 0x30e   : > { %3300 = vst [vmem:[#allocation4 + $0x1fc] sm:$0x44] %v3264_v25  ;;  %v3363_v8 = vpop.permute.xlu2 %3362  ;;  %v14434_v25 = vld [vmem:[#allocation41_spill] sm:$0xff] }
 0x30f   : > { %v3357_v32 = vpop.permute.xlu0 %3356  ;;  %v3383_v28 = vrot.slane %v3363_v8, 4  ;;  %2060 = vrot.lane.b32.xlu2 %v14433_v24, %s9459_s25  ;;  %v14443_v24 = vld [vmem:[#allocation48_spill] sm:$0xff] }
 0x310   : > { %v3230_v29 = vpop.permute.xlu1 %3229  ;;  %v3380_v34 = vrot.slane %v3357_v32, 4 }
 0x311   : > { %v3251_v58 = vrot.slane %v3230_v29, 4  ;;  %v3400_v38 = vsel %vm460_vm2, %v3382_v43, %v3383_v28 }
 0x312   : > { %v3394_v27 = vsel %vm460_vm2, %v3379_v11, %v3380_v34  ;;  %v3401_v12 = vsel %vm14291_vm6, %v3361_v9, %v3400_v38  ;;  %2191 = vrot.lane.b32.xlu0 %v14432_v36, %s14294_s26  ;;  %v14437_v38 = vld [vmem:[#allocation57_spill] sm:$0xff] }
 0x313   : > { %v3267_v57 = vsel %vm460_vm2, %v3250_v22, %v3251_v58  ;;  %v3395_v23 = vsel %vm14291_vm6, %v3355_v53, %v3394_v27  ;;  %3434 = vst [vmem:[#allocation4 + $0x214] sm:$0x88] %v3401_v12  ;;  %v14436_v27 = vld [vmem:[#allocation63_spill] sm:$0xff] }
 0x314   : > { %v3268_v41 = vsel %vm3261_vm8, %v11200_v39, %v3267_v57  ;;  %3431 = vst [vmem:[#allocation4 + $0x1fc] sm:$0x88] %v3395_v23 }
 0x315   : > { %3302 = vst [vmem:[#allocation4 + $0x20c] sm:$0x44] %v3268_v41  ;;  %1484 = vrot.lane.b32.xlu1 %v14431_v5, %s9455_s19 }
 0x316   : > { %v3485_v61 = vpop.permute.xlu2 %3484 }
 0x317   : > { %v3359_v10 = vpop.permute.xlu0 %3358  ;;  %v3509_v7 = vrot.slane %v3485_v61, 4  ;;  %2454 = vrot.lane.b32.xlu2 %v14436_v27, %s9462_s11 }
 0x318   : > { %v3232_v22 = vpop.permute.xlu1 %3231  ;;  %v3381_v37 = vrot.slane %v3359_v10, 4 }
 0x319   : > { %v3252_v21 = vrot.slane %v3232_v22, 4 }
 0x31a   : > { %v3396_v39 = vsel %vm460_vm2, %v3380_v34, %v3381_v37  ;;  %v3398_v30 = vsel %vm460_vm2, %v3381_v37, %v3382_v43 }
 0x31b   : > { %v3269_v15 = vsel %vm460_vm2, %v3251_v58, %v3252_v21  ;;  %v3271_v45 = vsel %vm460_vm2, %v3252_v21, %v3253_v14  ;;  %v3397_v40 = vsel %vm14291_vm6, %v3357_v32, %v3396_v39  ;;  %v3399_v62 = vsel %vm14291_vm6, %v3359_v10, %v3398_v30  ;;  %v14435_v58 = vld [vmem:[#allocation70_spill] sm:$0xff] }
 0x31c   : > { %v3270_v54 = vsel %vm3261_vm8, %v3230_v29, %v3269_v15  ;;  %v3272_v13 = vsel %vm3261_vm8, %v3232_v22, %v3271_v45  ;;  %3432 = vst [vmem:[#allocation4 + $0x204] sm:$0x88] %v3397_v40  ;;  %2585 = vrot.lane.b32.xlu0 %v14435_v58, %s9463_s12  ;;  %v14438_v45 = vld [vmem:[#allocation88_spill] sm:$0xff]  ;;  %v14439_v40 = vld [vmem:[#allocation81_spill] sm:$0xff] }
 0x31d   : > { %3303 = vst [vmem:[#allocation4 + $0x214] sm:$0x44] %v3270_v54  ;;  %1877 = vrot.lane.b32.xlu1 %v14434_v25, %s9458_s24  ;;  %v14444_v25 = vrot.slane %v14443_v24, 4 }
 0x31e   : > { %3304 = vst [vmem:[#allocation4 + $0x21c] sm:$0x44] %v3272_v13  ;;  %v11267_v9 = vpop.permute.xlu2 %3496  ;;  %v14440_v13 = vld [vmem:[#allocation76_spill] sm:$0xff] }
 0x31f   : > { %3433 = vst [vmem:[#allocation4 + $0x20c] sm:$0x88] %v3399_v62  ;;  %v3487_v53 = vpop.permute.xlu0 %3486  ;;  %2847 = vrot.lane.b32.xlu2 %v14439_v40, %s14292_s14 }
 0x320   : > { %v11269_v44 = vpop.permute.xlu1 %3364  ;;  %v3510_v11 = vrot.slane %v3487_v53, 4 }
 0x321   : > { %v3384_v19 = vrot.slane %v11269_v44, 4 }
 0x322   : > { %v3524_v4 = vsel %vm460_vm2, %v3509_v7, %v3510_v11 }
 0x323   : > { %v3402_v51 = vsel %vm460_vm2, %v3383_v28, %v3384_v19  ;;  %v3525_v35 = vsel %vm14288_vm11, %v3485_v61, %v3524_v4 }
 0x324   : > { %v3403_v63 = vsel %vm14291_vm6, %v3363_v8, %v3402_v51  ;;  %3561 = vst [vmem:[#allocation4 + $0x260] sm:$0x11] %v3525_v35  ;;  %2977 = vrot.lane.b32.xlu0 %v14438_v45, %s9466_s28 }
 0x325   : > { %3435 = vst [vmem:[#allocation4 + $0x21c] sm:$0x88] %v3403_v63  ;;  %2322 = vrot.lane.b32.xlu1 %v14437_v38, %s9461_s27  ;;  %v8239_v63 = vld [vmem:[#allocation4 + $0x1f4] sm:$0xf0] }
 0x326   : > { %v11284_v42 = vpop.permute.xlu2 %2712 }
 0x327   : > { %v3493_v60 = vpop.permute.xlu0 %3492  ;;  %v2731_v59 = vrot.slane %v11284_v42, 4 }
 0x328   : > { %v3483_v32 = vpop.permute.xlu1 %3482  ;;  %v3513_v23 = vrot.slane %v3493_v60, 4 }
 0x329   : > { %v3508_v43 = vrot.slane %v3483_v32, 4  ;;  %v2750_v8 = vsel %vm460_vm2, %v2730_v2, %v2731_v59 }
 0x32a   : > { %v2751_v29 = vsel %vm14283_vm9, %v11073_v52, %v2750_v8  ;;  %v3515_v52 = vrot.slane %v11267_v9, 4 }
 0x32b   : > { %v3521_v34 = vsel %vm460_vm2, %v3508_v43, %v3509_v7  ;;  %2782 = vst [vmem:[#allocation4 + $0x1c0] sm:$0x44] %v2751_v29 }
 0x32c   : > { %v3523_v28 = vsel %vm14288_vm11, %v3483_v32, %v3521_v34  ;;  %v8237_v34 = vld [vmem:[#allocation4 + $0x190] sm:$0xf] }
 0x32d   : > { %3560 = vst [vmem:[#allocation4 + $0x258] sm:$0x11] %v3523_v28  ;;  %2716 = vrot.lane.b32.xlu1 %v14440_v13, %s9464_s13  ;;  %v3653_v28 = vld [vmem:[#allocation4 + $0x260] sm:$0x11] }
 0x32e   : > { %v11302_v2 = vpop.permute.xlu2 %3104 }
 0x32f   : > { %v3495_v57 = vpop.permute.xlu0 %3494  ;;  %v3123_v41 = vrot.slane %v11302_v2, 4 }
 0x330   : > { %v3514_v12 = vrot.slane %v3495_v57, 4  ;;  %v3489_v1 = vpop.permute.xlu1 %3488 }
 0x331   : > { %v3511_v47 = vrot.slane %v3489_v1, 4  ;;  %v3142_v61 = vsel %vm460_vm2, %v3122_v31, %v3123_v41 }
 0x332   : > { %v3532_v20 = vsel %vm460_vm2, %v3513_v23, %v3514_v12  ;;  %v3534_v10 = vsel %vm460_vm2, %v3514_v12, %v3515_v52  ;;  %v3143_v21 = vsel %vm14282_vm13, %v11169_v0, %v3142_v61  ;;  %vm14441_vm13 = vcmask 1040384   ;;  %v9148_v12 = vld [vmem:[#allocation4 + $0x128] sm:$0xf0] }
 0x333   : > { %v3533_v22 = vsel %vm14288_vm11, %v3493_v60, %v3532_v20  ;;  %v3535_v37 = vsel %vm14288_vm11, %v3495_v57, %v3534_v10  ;;  %v3526_v39 = vsel %vm460_vm2, %v3510_v11, %v3511_v47  ;;  %3174 = vst [vmem:[#allocation4 + $0x224] sm:$0x22] %v3143_v21  ;;  %v9173_v11 = vld [vmem:[#allocation4 + $0x1f0] sm:$0xf0]  ;;  %vm14442_vm9 = vmmov %vm14441_vm13  ;;  %v14446_v20 = vld [vmem:[#allocation99_spill] sm:$0xff] }
 0x334   : > { %3565 = vst [vmem:[#allocation4 + $0x280] sm:$0x11] %v3533_v22  ;;  %v3527_v30 = vsel %vm14288_vm11, %v3487_v53, %v3526_v39  ;;  %v3652_v15 = vld [vmem:[#allocation4 + $0x258] sm:$0x11]  ;;  %v8238_v38 = vor.u32 %v9173_v11, %v8237_v34  ;;  %3239 = vrot.lane.b32.xlu2 %v14446_v20, %s9468_s29  ;;  %v8137_v10 = vld [vmem:[#allocation4 + $0xc8] sm:$0xf] }
 0x335   : > { %3566 = vst [vmem:[#allocation4 + $0x288] sm:$0x11] %v3535_v37  ;;  %v3906_v31 = vunpack.c.l.b16 %v3652_v15  ;;  %v3907_v54 = vunpack.c.h.b16 %v3652_v15  ;;  %v14447_v22 = vld [vmem:[#allocation94_spill] sm:$0xff]  ;;  %v8138_v39 = vor.u32 %v9148_v12, %v8137_v10 }
 0x336   : > { %3562 = vst [vmem:[#allocation4 + $0x268] sm:$0x11] %v3527_v30  ;;  %v11329_v62 = vpop.permute.xlu2 %1088  ;;  %3108 = vrot.lane.b32.xlu1 %v14447_v22, %s9467_s7  ;;  %v9136_v30 = vld [vmem:[#allocation4 + $0xcc] sm:$0xf]  ;;  %v14450_v20 = vld [vmem:[#allocation10_spill] sm:$0xff] }
 0x337   : > { %v11327_v0 = vpop.permute.xlu0 %2450  ;;  %v4006_v26 = vpack.c.b16 %v3906_v31, %v3906_v31  ;;  %v4007_v17 = vpack.c.b16 %v3907_v54, %v3907_v54  ;;  %v1108_v53 = vrot.slane %v11329_v62, 4  ;;  %v11407_v22 = vld [vmem:[%s14220_s1] sm:$0x3] }
 0x338   : > { %v2469_v5 = vrot.slane %v11327_v0, 4  ;;  %v3491_v7 = vpop.permute.xlu1 %3490 }
 0x339   : > { %v3512_v4 = vrot.slane %v3491_v7, 4  ;;  %v4111_v51 = vsel %vm14441_vm13, %v4006_v26, 0  ;;  %v4114_v35 = vsel %vm14442_vm9, %v4007_v17, 0  ;;  %v1126_v60 = vsel %vm460_vm2, %v14444_v25, %v1108_v53  ;;  %v8037_v26 = vld [vmem:[#allocation4] sm:$0xf]  ;;  %vm14448_vm13 = vmmov %vm14442_vm9 }
 0x33a   : > { %v2488_v36 = vsel %vm460_vm2, %v2468_v49, %v2469_v5  ;;  %4189 = vmatpush.bf16.msra.mxu3 %v4111_v51  ;;  %4202 = vmatpush.bf16.msra.mxu2 %v4114_v35  ;;  %v1127_v43 = vsel %vm1116_vm10, %v14443_v24, %v1126_v60  ;;  %v9161_v49 = vld [vmem:[#allocation4 + $0x194] sm:$0xf]  ;;  %v3909_v17 = vunpack.c.h.b16 %v3653_v28  ;;  %v8039_v35 = vld [vmem:[#allocation4 + $0x64] sm:$0xf0]  ;;  %v9111_v24 = vld [vmem:[#allocation4 + $0x4] sm:$0xf] }
 0x33b   : > { %v2489_v32 = vsel %vm2476_vm15, %v11002_v48, %v2488_v36  ;;  %v3528_v8 = vsel %vm460_vm2, %v3511_v47, %v3512_v4  ;;  %v3530_v29 = vsel %vm460_vm2, %v3512_v4, %v3513_v23  ;;  %v8242_v57 = vor.u32 %v9161_v49, %v8239_v63  ;;  %1159 = vst [vmem:[#allocation4 + $0x8c] sm:$0x22] %v1127_v43  ;;  %v14445_v48 = vld [vmem:[#allocation105_spill] sm:$0xff]  ;;  %v8139_v47 = vld [vmem:[#allocation4 + $0x12c] sm:$0xf0] }
 0x33c   : > { %2520 = vst [vmem:[#allocation4 + $0x1c0] sm:$0x11] %v2489_v32  ;;  %v3529_v58 = vsel %vm14288_vm11, %v3489_v1, %v3528_v8  ;;  %v3531_v27 = vsel %vm14288_vm11, %v3491_v7, %v3530_v29  ;;  %3370 = vrot.lane.b32.xlu0 %v14445_v48, %s9469_s8  ;;  %v9123_v23 = vld [vmem:[#allocation4 + $0x60] sm:$0xf0]  ;;  %v3908_v1 = vunpack.c.l.b16 %v3653_v28  ;;  %v8142_v13 = vor.u32 %v9136_v30, %v8139_v47  ;;  %v8255_v49 = vld [vmem:[#allocation4 + $0x204] sm:$0xf0] }
 0x33d   : > { %3563 = vst [vmem:[#allocation4 + $0x270] sm:$0x11] %v3529_v58  ;;  %v3654_v61 = vld [vmem:[#allocation4 + $0x268] sm:$0x11]  ;;  %v8038_v51 = vor.u32 %v9123_v23, %v8037_v26  ;;  %v9175_v8 = vld [vmem:[#allocation4 + $0x200] sm:$0xf0]  ;;  %v8042_v34 = vor.u32 %v9111_v24, %v8039_v35  ;;  %v4009_v28 = vpack.c.b16 %v3909_v17, %v3909_v17 }
 0x33e   : > { %4190 = vmatpush.bf16.msra.mxu3 %v8238_v38  ;;  %4203 = vmatpush.bf16.msra.mxu2 %v8242_v57  ;;  %3564 = vst [vmem:[#allocation4 + $0x278] sm:$0x11] %v3531_v27  ;;  %v11361_v21 = vpop.permute.xlu2 %3498  ;;  %v3910_v15 = vunpack.c.l.b16 %v3654_v61  ;;  %v3911_v45 = vunpack.c.h.b16 %v3654_v61  ;;  %v4008_v25 = vpack.c.b16 %v3908_v1, %v3908_v1  ;;  %v8153_v58 = vld [vmem:[#allocation4 + $0xd8] sm:$0xf]  ;;  %v8155_v27 = vld [vmem:[#allocation4 + $0x13c] sm:$0xf0] }
 0x33f   : > { %v11359_v37 = vpop.permute.xlu0 %2843  ;;  %v3516_v54 = vrot.slane %v11361_v21, 4  ;;  %v9163_v57 = vld [vmem:[#allocation4 + $0x1a4] sm:$0xf]  ;;  %1092 = vrot.lane.b32.xlu1 %v14450_v20, %s9452_s16  ;;  %v14451_v47 = vld [vmem:[#allocation15_spill] sm:$0xff]  ;;  %v9174_v1 = vld [vmem:[#allocation4 + $0x1f8] sm:$0xf0] }
 0x340   : > { %v2862_v40 = vrot.slane %v11359_v37, 4  ;;  %v11364_v31 = vpop.permute.xlu1 %2581  ;;  %v4010_v11 = vpack.c.b16 %v3910_v15, %v3910_v15  ;;  %v4011_v4 = vpack.c.b16 %v3911_v45, %v3911_v45  ;;  %v8258_v48 = vor.u32 %v9163_v57, %v8255_v49  ;;  %1223 = vrot.lane.b32.xlu2 %v14451_v47, %s9453_s17  ;;  %v8247_v26 = vld [vmem:[#allocation4 + $0x1fc] sm:$0xf0]  ;;  %v14453_v24 = vld [vmem:[#allocation85_spill] sm:$0xff]  ;;  %v9149_v49 = vld [vmem:[#allocation4 + $0x130] sm:$0xf0] }
 0x341   : > { %v2600_v7 = vrot.slane %v11364_v31, 4  ;;  %v3536_v36 = vsel %vm460_vm2, %v3515_v52, %v3516_v54  ;;  %v11388_v52 = vld [vmem:[#allocation4 + $0x138] sm:$0xf0]  ;;  %v4117_v23 = vsel %vm14442_vm9, %v4008_v25, 0  ;;  %v14454_v25 = vrot.slane %v14453_v24, 4 }
 0x342   : > { %v2881_v63 = vsel %vm460_vm2, %v2861_v3, %v2862_v40  ;;  %4191 = vmatpush.bf16.msra.mxu3 %v8138_v39  ;;  %4204 = vmatpush.bf16.msra.mxu2 %v8142_v13  ;;  %v3537_v3 = vsel %vm14288_vm11, %v11267_v9, %v3536_v36  ;;  %v4123_v43 = vsel %vm14442_vm9, %v4010_v11, 0  ;;  %v8253_v9 = vld [vmem:[#allocation4 + $0x1a0] sm:$0xf]  ;;  %vm14452_vm11 = vmmov %vm14442_vm9  ;;  %v8154_v13 = vor.u32 %v11388_v52, %v8153_v58  ;;  %v8047_v57 = vld [vmem:[#allocation4 + $0x6c] sm:$0xf0] }
 0x343   : > { %v2882_v60 = vsel %vm14296_vm1, %v11115_v46, %v2881_v63  ;;  %v2619_v32 = vsel %vm460_vm2, %v2599_v16, %v2600_v7  ;;  %4241 = vmatpush.bf16.msra.mxu0 %v4123_v43  ;;  %v4126_v46 = vsel %vm14448_vm13, %v4011_v4, 0  ;;  %v14449_v16 = vld [vmem:[#allocation21_spill] sm:$0xff]  ;;  %3567 = vst [vmem:[#allocation4 + $0x290] sm:$0x11] %v3537_v3  ;;  %v8254_v38 = vor.u32 %v9175_v8, %v8253_v9  ;;  %v9124_v9 = vld [vmem:[#allocation4 + $0x68] sm:$0xf0] }
 0x344   : > { %2913 = vst [vmem:[#allocation4 + $0x1c0] sm:$0x88] %v2882_v60  ;;  %v2620_v29 = vsel %vm2607_vm0, %v11075_v55, %v2619_v32  ;;  %4254 = vmatpush.bf16.msra.mxu1 %v4126_v46  ;;  %1354 = vrot.lane.b32.xlu0 %v14449_v16, %s9454_s18  ;;  %v9138_v55 = vld [vmem:[#allocation4 + $0xdc] sm:$0xf]  ;;  %vm4106_vm13 = vcmask 408576   ;;  %v4120_v39 = vsel %vm14452_vm11, %v4009_v28, 0  ;;  %vm14457_vm11 = vmmov %vm14442_vm9 }
 0x345   : > { %2651 = vst [vmem:[#allocation4 + $0x1c0] sm:$0x22] %v2620_v29  ;;  %v3656_v12 = vld [vmem:[#allocation4 + $0x278] sm:$0x11]  ;;  %v8158_v11 = vor.u32 %v9138_v55, %v8155_v27  ;;  %v11416_v63 = vld [vmem:[#allocation4 + $0x270] sm:$0x11] }
 0x346   : > { %4192 = vmatpush.bf16.msra.mxu3 %v8038_v51  ;;  %4205 = vmatpush.bf16.msra.mxu2 %v8042_v34  ;;  %v11402_v61 = vpop.permute.xlu2 %1744  ;;  %v8245_v4 = vld [vmem:[#allocation4 + $0x198] sm:$0xf]  ;;  %v3914_v51 = vunpack.c.l.b16 %v3656_v12  ;;  %v3915_v35 = vunpack.c.h.b16 %v3656_v12  ;;  %v9162_v3 = vld [vmem:[#allocation4 + $0x19c] sm:$0xf]  ;;  %v8053_v29 = vld [vmem:[#allocation4 + $0x10] sm:$0xf]  ;;  %v3912_v58 = vunpack.c.l.b16 %v11416_v63  ;;  %v3913_v47 = vunpack.c.h.b16 %v11416_v63 }
 0x347   : > { %v11400_v10 = vpop.permute.xlu0 %3235  ;;  %4242 = vmatpush.bf16.msra.mxu0 %v8254_v38  ;;  %v1763_v45 = vrot.slane %v11402_v61, 4  ;;  %v8246_v32 = vor.u32 %v9174_v1, %v8245_v4  ;;  %v8250_v52 = vor.u32 %v9162_v3, %v8247_v26  ;;  %v9125_v46 = vld [vmem:[#allocation4 + $0x70] sm:$0xf0]  ;;  %v8055_v34 = vld [vmem:[#allocation4 + $0x74] sm:$0xf0]  ;;  %v14456_v1 = vld [vmem:[#allocation27_spill] sm:$0xff] }
 0x348   : > { %v3254_v30 = vrot.slane %v11400_v10, 4  ;;  %v11411_v15 = vpop.permute.xlu1 %2973  ;;  %4255 = vmatpush.bf16.msra.mxu1 %v8258_v48  ;;  %v8147_v16 = vld [vmem:[#allocation4 + $0x134] sm:$0xf0]  ;;  %v4014_v27 = vpack.c.b16 %v3914_v51, %v3914_v51  ;;  %v4015_v38 = vpack.c.b16 %v3915_v35, %v3915_v35  ;;  %v14455_v55 = vld [vmem:[#allocation32_spill] sm:$0xff]  ;;  %v8054_v12 = vor.u32 %v9125_v46, %v8053_v29  ;;  %1486 = vrot.lane.b32.xlu2 %v14456_v1, %s9455_s19  ;;  %v14460_v46 = vld [vmem:[#allocation102_spill] sm:$0xff] }
 0x349   : > { %v2992_v17 = vrot.slane %v11411_v15, 4  ;;  %v1782_v60 = vsel %vm460_vm2, %v14454_v25, %v1763_v45  ;;  %8335 = vmatmul.msk.bf16.vlgmr.msra.gmra.mxu3 %vm4106_vm13, %v11407_v22  ;;  %8336 = vmatmul.msk.bf16.vlgmr.msra.gmra.mxu2 %vm4106_vm13, %v11407_v22  ;;  %v9137_v20 = vld [vmem:[#allocation4 + $0xd4] sm:$0xf]  ;;  %v4012_v25 = vpack.c.b16 %v3912_v58, %v3912_v58  ;;  %v8263_v1 = vld [vmem:[#allocation4 + $0x20c] sm:$0xf0] }
 0x34a   : > { %4215 = vmatpush.bf16.msrb.mxu2 %v4117_v23  ;;  %4228 = vmatpush.bf16.msrb.mxu3 %v4120_v39  ;;  %v3273_v36 = vsel %vm460_vm2, %v3253_v14, %v3254_v30  ;;  %v1783_v8 = vsel %vm1770_vm7, %v14453_v24, %v1782_v60  ;;  %v8150_v39 = vor.u32 %v9137_v20, %v8147_v16  ;;  %v9177_v24 = vld [vmem:[#allocation4 + $0x210] sm:$0xf0]  ;;  %v4135_v60 = vsel %vm14457_vm11, %v4014_v27, 0  ;;  %v3658_v16 = vld [vmem:[#allocation4 + $0x288] sm:$0x11]  ;;  %vm14462_vm11 = vmmov %vm14442_vm9 }
 0x34b   : > { %v3274_v43 = vsel %vm3261_vm8, %v11214_v56, %v3273_v36  ;;  %v3011_v14 = vsel %vm460_vm2, %v2991_v50, %v2992_v17  ;;  %4243 = vmatpush.bf16.msra.mxu0 %v8154_v13  ;;  %v9113_v56 = vld [vmem:[#allocation4 + $0x14] sm:$0xf]  ;;  %v8145_v50 = vld [vmem:[#allocation4 + $0xd0] sm:$0xf]  ;;  %1814 = vst [vmem:[#allocation4 + $0xf8] sm:$0x44] %v1783_v8 }
 0x34c   : > { %3305 = vst [vmem:[#allocation4 + $0x224] sm:$0x44] %v3274_v43  ;;  %v3012_v28 = vsel %vm2999_vm5, %v11171_v33, %v3011_v14  ;;  %4256 = vmatpush.bf16.msra.mxu1 %v8158_v11  ;;  %1617 = vrot.lane.b32.xlu0 %v14455_v55, %s9456_s20  ;;  %v3476_v33 = vld [vmem:[#allocation1 + $0x10] sm:$0xff]  ;;  %v8146_v48 = vor.u32 %v9149_v49, %v8145_v50  ;;  %v8045_v11 = vld [vmem:[#allocation4 + $0x8] sm:$0xf]  ;;  %v14458_v8 = vld [vmem:[#allocation62_spill] sm:$0xff] }
 0x34d   : > { %3043 = vst [vmem:[#allocation4 + $0x224] sm:$0x11] %v3012_v28  ;;  %v8058_v23 = vor.u32 %v9113_v56, %v8055_v34  ;;  %3502 = vrot.lane.b32.xlu1 %v3476_v33, %s9470_s30  ;;  %v8046_v63 = vor.u32 %v9124_v9, %v8045_v11  ;;  %v9112_v36 = vld [vmem:[#allocation4 + $0xc] sm:$0xf]  ;;  %v8271_v14 = vld [vmem:[#allocation4 + $0x214] sm:$0xf0]  ;;  %v4013_v56 = vpack.c.b16 %v3913_v47, %v3913_v47 }
 0x34e   : > { %4216 = vmatpush.bf16.msrb.mxu2 %v8246_v32  ;;  %4229 = vmatpush.bf16.msrb.mxu3 %v8250_v52  ;;  %v11452_v26 = vpop.permute.xlu2 %2189  ;;  %v4138_v32 = vsel %vm14442_vm9, %v4015_v38, 0  ;;  %v8050_v43 = vor.u32 %v9112_v36, %v8047_v57  ;;  %v14459_v52 = vrot.slane %v14458_v8, 4  ;;  %v14461_v34 = vrot.slane %v14460_v46, 4  ;;  %v8269_v28 = vld [vmem:[#allocation4 + $0x1b0] sm:$0xf]  ;;  %v14463_v11 = vld [vmem:[#allocation46_spill] sm:$0xff] }
 0x34f   : > { %v11450_v13 = vpop.permute.xlu0 %1219  ;;  %4244 = vmatpush.bf16.msra.mxu0 %v8054_v12  ;;  %v2208_v35 = vrot.slane %v11452_v26, 4  ;;  %v8270_v27 = vor.u32 %v9177_v24, %v8269_v28  ;;  %v9165_v38 = vld [vmem:[#allocation4 + $0x1b4] sm:$0xf]  ;;  %v9152_v57 = vld [vmem:[#allocation4 + $0x148] sm:$0xf0]  ;;  %v4129_v33 = vsel %vm14462_vm11, %v4012_v25, 0  ;;  %vm14470_vm11 = vmmov %vm14442_vm9 }
 0x350   : > { %v1239_v4 = vrot.slane %v11450_v13, 4  ;;  %v11455_v51 = vpop.permute.xlu1 %3366  ;;  %4257 = vmatpush.bf16.msra.mxu1 %v8058_v23  ;;  %v8274_v12 = vor.u32 %v9165_v38, %v8271_v14  ;;  %v8171_v20 = vld [vmem:[#allocation4 + $0x14c] sm:$0xf0]  ;;  %v8261_v47 = vld [vmem:[#allocation4 + $0x1a8] sm:$0xf]  ;;  %v3918_v23 = vunpack.c.l.b16 %v3658_v16  ;;  %v14465_v14 = vld [vmem:[#allocation42_spill] sm:$0xff] }
 0x351   : > { %v3385_v3 = vrot.slane %v11455_v51, 4  ;;  %v2227_v49 = vsel %vm460_vm2, %v14461_v34, %v2208_v35  ;;  %v9140_v36 = vld [vmem:[#allocation4 + $0xec] sm:$0xf]  ;;  %1879 = vrot.lane.b32.xlu2 %v14465_v14, %s9458_s24  ;;  %v3657_v28 = vld [vmem:[#allocation4 + $0x280] sm:$0x11] }
 0x352   : > { %4217 = vmatpush.bf16.msrb.mxu2 %v8146_v48  ;;  %4230 = vmatpush.bf16.msrb.mxu3 %v8150_v39  ;;  %v1257_v29 = vsel %vm460_vm2, %v14459_v52, %v1239_v4  ;;  %v2228_v50 = vsel %vm14297_vm4, %v14460_v46, %v2227_v49  ;;  %v9176_v48 = vld [vmem:[#allocation4 + $0x208] sm:$0xf0]  ;;  %v3919_v39 = vunpack.c.h.b16 %v3658_v16  ;;  %v8174_v52 = vor.u32 %v9140_v36, %v8171_v20  ;;  %v14468_v20 = vld [vmem:[#allocation68_spill] sm:$0xff] }
 0x353   : > { %4293 = vmatpush.bf16.msrb.mxu0 %v4135_v60  ;;  %v1258_v9 = vsel %vm14289_vm12, %v14458_v8, %v1257_v29  ;;  %v3404_v58 = vsel %vm460_vm2, %v3384_v19, %v3385_v3  ;;  %8340 = vmatmul.msk.bf16.vlgmr.msra.gmra.mxu1 %vm4106_vm13, %v11407_v22  ;;  %v9151_v19 = vld [vmem:[#allocation4 + $0x140] sm:$0xf0]  ;;  %2259 = vst [vmem:[#allocation4 + $0x15c] sm:$0x44] %v2228_v50  ;;  %v9164_v46 = vld [vmem:[#allocation4 + $0x1ac] sm:$0xf] }
 0x354   : > { %4306 = vmatpush.bf16.msrb.mxu1 %v4138_v32  ;;  %8339 = vmatmul.msk.bf16.vlgmr.msra.gmra.mxu0 %vm4106_vm13, %v11407_v22  ;;  %1290 = vst [vmem:[#allocation4 + $0x8c] sm:$0x44] %v1258_v9  ;;  %v3405_v55 = vsel %vm14291_vm6, %v11269_v44, %v3404_v58  ;;  %v4132_v44 = vsel %vm14442_vm9, %v4013_v56, 0  ;;  %v8262_v25 = vor.u32 %v9176_v48, %v8261_v47  ;;  %v8161_v32 = vld [vmem:[#allocation4 + $0xe0] sm:$0xf]  ;;  %v14466_v38 = vld [vmem:[#allocation67_spill] sm:$0xff] }
 0x355   : > { %3436 = vst [vmem:[#allocation4 + $0x224] sm:$0x88] %v3405_v55  ;;  %2062 = vrot.lane.b32.xlu0 %v14463_v11, %s9459_s25  ;;  %v8266_v56 = vor.u32 %v9164_v46, %v8263_v1  ;;  %v9127_v9 = vld [vmem:[#allocation4 + $0x80] sm:$0xf0]  ;;  %v8071_v58 = vld [vmem:[#allocation4 + $0x84] sm:$0xf0]  ;;  %v8162_v50 = vor.u32 %v9151_v19, %v8161_v32  ;;  %v4019_v48 = vpack.c.b16 %v3919_v39, %v3919_v39  ;;  %v3916_v39 = vunpack.c.l.b16 %v3657_v28 }
 0x356   : > { %4218 = vmatpush.bf16.msrb.mxu2 %v8046_v63  ;;  %4231 = vmatpush.bf16.msrb.mxu3 %v8050_v43  ;;  %v8169_v63 = vld [vmem:[#allocation4 + $0xe8] sm:$0xf]  ;;  %v11492_v60 = vpop.permute.xlu2 %1221  ;;  %v14464_v43 = vld [vmem:[#allocation37_spill] sm:$0xff]  ;;  %v14469_v47 = vrot.slane %v14468_v20, 4  ;;  %v8069_v1 = vld [vmem:[#allocation4 + $0x20] sm:$0xf] }
 0x357   : > { %4294 = vmatpush.bf16.msrb.mxu0 %v8270_v27  ;;  %v11490_v24 = vpop.permute.xlu0 %1482  ;;  %1748 = vrot.lane.b32.xlu1 %v14464_v43, %s9457_s23  ;;  %v8170_v8 = vor.u32 %v9152_v57, %v8169_v63  ;;  %v1240_v49 = vrot.slane %v11492_v60, 4  ;;  %v4018_v27 = vpack.c.b16 %v3918_v23, %v3918_v23  ;;  %v14467_v57 = vrot.slane %v14466_v38, 4  ;;  %v9115_v11 = vld [vmem:[#allocation4 + $0x24] sm:$0xf]  ;;  %v8061_v43 = vld [vmem:[#allocation4 + $0x18] sm:$0xf] }
 0x358   : > { %4307 = vmatpush.bf16.msrb.mxu1 %v8274_v12  ;;  %v1501_v29 = vrot.slane %v11490_v24, 4  ;;  %v11499_v34 = vpop.permute.xlu1 %1350  ;;  %v8070_v36 = vor.u32 %v9127_v9, %v8069_v1  ;;  %v9139_v32 = vld [vmem:[#allocation4 + $0xe4] sm:$0xf]  ;;  %v4150_v9 = vsel %vm14442_vm9, %v4019_v48, 0 }
 0x359   : > { %v1370_v16 = vrot.slane %v11499_v34, 4  ;;  %v1259_v12 = vsel %vm460_vm2, %v1239_v4, %v1240_v49  ;;  %8337 = vmatmul.msk.bf16.vlgmr.msrb.gmra.mxu2 %vm4106_vm13, %v11407_v22  ;;  %v9126_v4 = vld [vmem:[#allocation4 + $0x78] sm:$0xf0]  ;;  %8338 = vmatmul.msk.bf16.vlgmr.msrb.gmra.mxu3 %vm4106_vm13, %v11407_v22  ;;  %v14473_v1 = vld [vmem:[#allocation58_spill] sm:$0xff] }
 0x35a   : > { %4267 = vmatpush.bf16.msra.mxu2 %v4129_v33  ;;  %4280 = vmatpush.bf16.msra.mxu3 %v4132_v44  ;;  %v1520_v55 = vsel %vm460_vm2, %v14467_v57, %v1501_v29  ;;  %v8163_v33 = vld [vmem:[#allocation4 + $0x144] sm:$0xf0]  ;;  %v1260_v44 = vsel %vm14289_vm12, %v11450_v13, %v1259_v12  ;;  %v3917_v13 = vunpack.c.h.b16 %v3657_v28  ;;  %v8062_v57 = vor.u32 %v9126_v4, %v8061_v43  ;;  %v9167_v28 = vld [vmem:[#allocation4 + $0x1c4] sm:$0xf] }
 0x35b   : > { %4295 = vmatpush.bf16.msrb.mxu0 %v8170_v8  ;;  %v1521_v19 = vsel %vm1508_vm14, %v14466_v38, %v1520_v55  ;;  %v1388_v23 = vsel %vm460_vm2, %v14469_v47, %v1370_v16  ;;  %v8166_v8 = vor.u32 %v9139_v32, %v8163_v33  ;;  %1291 = vst [vmem:[#allocation4 + $0x94] sm:$0x44] %v1260_v44  ;;  %v8285_v38 = vld [vmem:[#allocation4 + $0x1c0] sm:$0xf]  ;;  %v14471_v33 = vld [vmem:[#allocation11_spill] sm:$0xff]  ;;  %v14472_v44 = vld [vmem:[#allocation53_spill] sm:$0xff] }
 0x35c   : > { %4308 = vmatpush.bf16.msrb.mxu1 %v8174_v52  ;;  %1552 = vst [vmem:[#allocation4 + $0xf8] sm:$0x11] %v1521_v19  ;;  %v1389_v63 = vsel %vm1378_vm3, %v14468_v20, %v1388_v23  ;;  %v9179_v14 = vld [vmem:[#allocation4 + $0x220] sm:$0xf0]  ;;  %v8063_v52 = vld [vmem:[#allocation4 + $0x7c] sm:$0xf0]  ;;  %v4017_v23 = vpack.c.b16 %v3917_v13, %v3917_v13  ;;  %2324 = vrot.lane.b32.xlu2 %v14473_v1, %s9461_s27 }
 0x35d   : > { %1421 = vst [vmem:[#allocation4 + $0x8c] sm:$0x88] %v1389_v63  ;;  %v8287_v46 = vld [vmem:[#allocation4 + $0x224] sm:$0xf0]  ;;  %v8286_v55 = vor.u32 %v9179_v14, %v8285_v38  ;;  %1094 = vrot.lane.b32.xlu0 %v14471_v33, %s9452_s16  ;;  %v14477_v43 = vld [vmem:[#allocation74_spill] sm:$0xff]  ;;  %vm14479_vm12 = vcmask 146432  }
 0x35e   : > { %4268 = vmatpush.bf16.msra.mxu2 %v8262_v25  ;;  %4281 = vmatpush.bf16.msra.mxu3 %v8266_v56  ;;  %v8074_v25 = vor.u32 %v9115_v11, %v8071_v58  ;;  %v4147_v56 = vsel %vm14470_vm11, %v4018_v27, 0  ;;  %v11532_v12 = vpop.permute.xlu2 %2452  ;;  %v9114_v27 = vld [vmem:[#allocation4 + $0x1c] sm:$0xf]  ;;  %v8290_v20 = vor.u32 %v9167_v28, %v8287_v46  ;;  %vm14476_vm11 = vcmask 7168   ;;  %v8279_v38 = vld [vmem:[#allocation4 + $0x21c] sm:$0xf0] }
 0x35f   : > { %4296 = vmatpush.bf16.msrb.mxu0 %v8070_v36  ;;  %v11530_v58 = vpop.permute.xlu0 %1875  ;;  %v2470_v48 = vrot.slane %v11532_v12, 4  ;;  %2193 = vrot.lane.b32.xlu1 %v14472_v44, %s14294_s26  ;;  %v8066_v11 = vor.u32 %v9114_v27, %v8063_v52  ;;  %v14478_v14 = vrot.slane %v14477_v43, 4  ;;  %v9178_v46 = vld [vmem:[#allocation4 + $0x218] sm:$0xf0] }
 0x360   : > { %4309 = vmatpush.bf16.msrb.mxu1 %v8074_v25  ;;  %v1894_v19 = vrot.slane %v11530_v58, 4  ;;  %v11537_v47 = vpop.permute.xlu1 %1613 }
 0x361   : > { %v1632_v4 = vrot.slane %v11537_v47, 4  ;;  %v2490_v25 = vsel %vm460_vm2, %v2469_v5, %v2470_v48 }
 0x362   : > { %4269 = vmatpush.bf16.msra.mxu2 %v8162_v50  ;;  %4282 = vmatpush.bf16.msra.mxu3 %v8166_v8  ;;  %v4016_v50 = vpack.c.b16 %v3916_v39, %v3916_v39  ;;  %v14474_v39 = vld [vmem:[#allocation84_spill] sm:$0xff]  ;;  %v2491_v8 = vsel %vm2476_vm15, %v11327_v0, %v2490_v25 }
 0x363   : > { %4345 = vmatpush.bf16.msra.mxu0 %v4147_v56  ;;  %v14475_v63 = vrot.slane %v14474_v39, 4  ;;  %v1651_v13 = vsel %vm460_vm2, %v14478_v14, %v1632_v4  ;;  %2521 = vst [vmem:[#allocation4 + $0x1c8] sm:$0x11] %v2491_v8  ;;  %8344 = vmatmul.msk.bf16.vlgmr.msrb.gmra.mxu1 %vm4106_vm13, %v11407_v22  ;;  %v9141_v8 = vld [vmem:[#allocation4 + $0xf4] sm:$0xf] }
 0x364   : > { %4358 = vmatpush.bf16.msra.mxu1 %v4150_v9  ;;  %v4141_v52 = vsel %vm14442_vm9, %v4016_v50, 0  ;;  %v1652_v5 = vsel %vm14479_vm12, %v14477_v43, %v1651_v13  ;;  %v8277_v9 = vld [vmem:[#allocation4 + $0x1b8] sm:$0xf]  ;;  %8343 = vmatmul.msk.bf16.vlgmr.msrb.gmra.mxu0 %vm4106_vm13, %v11407_v22  ;;  %v3478_v50 = vld [vmem:[#allocation1 + $0x18] sm:$0xff]  ;;  %vm14483_vm12 = vcmask 900096  }
 0x365   : > { %v1913_v36 = vsel %vm460_vm2, %v14475_v63, %v1894_v19  ;;  %1683 = vst [vmem:[#allocation4 + $0xf8] sm:$0x22] %v1652_v5  ;;  %v8278_v0 = vor.u32 %v9178_v46, %v8277_v9  ;;  %3504 = vrot.lane.b32.xlu0 %v3478_v50, %s9470_s30  ;;  %v14484_v5 = vld [vmem:[#allocation92_spill] sm:$0xff] }
 0x366   : > { %4270 = vmatpush.bf16.msra.mxu2 %v8062_v57  ;;  %v1914_v32 = vsel %vm14476_vm11, %v14474_v39, %v1913_v36  ;;  %4283 = vmatpush.bf16.msra.mxu3 %v8066_v11  ;;  %vm14480_vm11 = vmmov %vm14442_vm9  ;;  %v9166_v57 = vld [vmem:[#allocation4 + $0x1bc] sm:$0xf]  ;;  %v11574_v27 = vpop.permute.xlu2 %2845  ;;  %v8179_v11 = vld [vmem:[#allocation4 + $0x154] sm:$0xf0]  ;;  %vm14486_vm9 = vcmask 1039360  }
 0x367   : > { %4346 = vmatpush.bf16.msra.mxu0 %v8286_v55  ;;  %1945 = vst [vmem:[#allocation4 + $0xf8] sm:$0x88] %v1914_v32  ;;  %v4144_v56 = vsel %vm14480_vm11, %v4017_v23, 0  ;;  %v3659_v55 = vld [vmem:[#allocation4 + $0x290] sm:$0x11]  ;;  %v8282_v28 = vor.u32 %v9166_v57, %v8279_v38  ;;  %v11572_v33 = vpop.permute.xlu0 %2320  ;;  %v2863_v1 = vrot.slane %v11574_v27, 4  ;;  %v8182_v9 = vor.u32 %v9141_v8, %v8179_v11 }
 0x368   : > { %4359 = vmatpush.bf16.msra.mxu1 %v8290_v20  ;;  %v9153_v20 = vld [vmem:[#allocation4 + $0x150] sm:$0xf0]  ;;  %v2339_v23 = vrot.slane %v11572_v33, 4  ;;  %v11578_v44 = vpop.permute.xlu1 %2058  ;;  %v8177_v36 = vld [vmem:[#allocation4 + $0xf0] sm:$0xf]  ;;  %v3920_v25 = vunpack.c.l.b16 %v3659_v55  ;;  %v14482_v32 = vld [vmem:[#allocation22_spill] sm:$0xff] }
 0x369   : > { %v14481_v39 = vld [vmem:[#allocation16_spill] sm:$0xff]  ;;  %v2077_v63 = vrot.slane %v11578_v44, 4  ;;  %1356 = vrot.lane.b32.xlu2 %v14482_v32, %s9454_s18  ;;  %v2883_v14 = vsel %vm460_vm2, %v2862_v40, %v2863_v1  ;;  %v8178_v13 = vor.u32 %v9153_v20, %v8177_v36  ;;  %8341 = vmatmul.msk.bf16.vlgmr.msra.gmra.mxu2 %vm4106_vm13, %v11407_v22  ;;  %v8077_v57 = vld [vmem:[#allocation4 + $0x28] sm:$0xf]  ;;  %v14487_v36 = vld [vmem:[#allocation77_spill] sm:$0xff] }
 0x36a   : > { %4319 = vmatpush.bf16.msrb.mxu2 %v4141_v52  ;;  %4332 = vmatpush.bf16.msrb.mxu3 %v4144_v56  ;;  %v2358_v43 = vsel %vm460_vm2, %v2338_v18, %v2339_v23  ;;  %v3921_v52 = vunpack.c.h.b16 %v3659_v55  ;;  %v14485_v56 = vrot.slane %v14484_v5, 4  ;;  %v2884_v18 = vsel %vm14296_vm1, %v11359_v37, %v2883_v14 }
 0x36b   : > { %1225 = vrot.lane.b32.xlu1 %v14481_v39, %s9453_s17  ;;  %v2359_v46 = vsel %vm14483_vm12, %v10906_v6, %v2358_v43  ;;  %v8079_v6 = vld [vmem:[#allocation4 + $0x8c] sm:$0xf0]  ;;  %8342 = vmatmul.msk.bf16.vlgmr.msra.gmra.mxu3 %vm4106_vm13, %v11407_v22  ;;  %v4020_v55 = vpack.c.b16 %v3920_v25, %v3920_v25  ;;  %2914 = vst [vmem:[#allocation4 + $0x1c8] sm:$0x88] %v2884_v18  ;;  %vm14490_vm12 = vmmov %vm14480_vm11 }
 0x36c   : > { %v2096_v38 = vsel %vm460_vm2, %v14485_v56, %v2077_v63  ;;  %2390 = vst [vmem:[#allocation4 + $0x15c] sm:$0x88] %v2359_v46  ;;  %v4021_v50 = vpack.c.b16 %v3921_v52, %v3921_v52  ;;  %v14488_v25 = vld [vmem:[#allocation64_spill] sm:$0xff]  ;;  %v14489_v52 = vld [vmem:[#allocation71_spill] sm:$0xff] }
 0x36d   : > { %v2097_v40 = vsel %vm14486_vm9, %v14484_v5, %v2096_v38  ;;  %2718 = vrot.lane.b32.xlu0 %v14487_v36, %s9464_s13  ;;  %v14493_v36 = vld [vmem:[#allocation89_spill] sm:$0xff]  ;;  %vm14494_vm9 = vcmask 146432  }
 0x36e   : > { %4320 = vmatpush.bf16.msrb.mxu2 %v8278_v0  ;;  %4333 = vmatpush.bf16.msrb.mxu3 %v8282_v28  ;;  %v9128_v0 = vld [vmem:[#allocation4 + $0x88] sm:$0xf0]  ;;  %2128 = vst [vmem:[#allocation4 + $0x15c] sm:$0x22] %v2097_v40  ;;  %v11613_v39 = vpop.permute.xlu2 %3237  ;;  %v4156_v46 = vsel %vm14490_vm12, %v4021_v50, 0  ;;  %v14492_v50 = vld [vmem:[#allocation82_spill] sm:$0xff] }
 0x36f   : > { %v8078_v37 = vor.u32 %v9128_v0, %v8077_v57  ;;  %v9116_v28 = vld [vmem:[#allocation4 + $0x2c] sm:$0xf]  ;;  %v11611_v11 = vpop.permute.xlu0 %1352  ;;  %v3255_v14 = vrot.slane %v11613_v39, 4  ;;  %v9142_v0 = vld [vmem:[#allocation4 + $0xfc] sm:$0xf]  ;;  %vm14499_vm12 = vcmask 1039360  }
 0x370   : > { %v8082_v20 = vor.u32 %v9116_v28, %v8079_v6  ;;  %v1371_v32 = vrot.slane %v11611_v11, 4  ;;  %v11618_v43 = vpop.permute.xlu1 %1090 }
 0x371   : > { %v1109_v8 = vrot.slane %v11618_v43, 4  ;;  %2587 = vrot.lane.b32.xlu2 %v14489_v52, %s9463_s12  ;;  %v3275_v56 = vsel %vm460_vm2, %v3254_v30, %v3255_v14 }
 0x372   : > { %4321 = vmatpush.bf16.msrb.mxu2 %v8178_v13  ;;  %4334 = vmatpush.bf16.msrb.mxu3 %v8182_v9  ;;  %v4153_v13 = vsel %vm14480_vm11, %v4020_v55, 0  ;;  %v1390_v5 = vsel %vm460_vm2, %v1370_v16, %v1371_v32  ;;  %v3276_v9 = vsel %vm3261_vm8, %v11400_v10, %v3275_v56  ;;  %v8185_v16 = vld [vmem:[#allocation4 + $0xf8] sm:$0xf]  ;;  %v14491_v10 = vld [vmem:[#allocation95_spill] sm:$0xff]  ;;  %v8085_v56 = vld [vmem:[#allocation4 + $0x30] sm:$0xf] }
 0x373   : > { %2456 = vrot.lane.b32.xlu1 %v14488_v25, %s9462_s11  ;;  %v1391_v38 = vsel %vm1378_vm3, %v11499_v34, %v1390_v5  ;;  %v1128_v18 = vsel %vm460_vm2, %v1108_v53, %v1109_v8  ;;  %3306 = vst [vmem:[#allocation4 + $0x22c] sm:$0x44] %v3276_v9  ;;  %vm14495_vm11 = vcmask 703488  }
 0x374   : > { %1422 = vst [vmem:[#allocation4 + $0x94] sm:$0x88] %v1391_v38  ;;  %v1129_v40 = vsel %vm1116_vm10, %v11329_v62, %v1128_v18 }
 0x375   : > { %v9154_v30 = vld [vmem:[#allocation4 + $0x158] sm:$0xf0]  ;;  %v8187_v6 = vld [vmem:[#allocation4 + $0x15c] sm:$0xf0]  ;;  %1160 = vst [vmem:[#allocation4 + $0x94] sm:$0x22] %v1129_v40  ;;  %3110 = vrot.lane.b32.xlu0 %v14491_v10, %s9467_s7 }
 0x376   : > { %4322 = vmatpush.bf16.msrb.mxu2 %v8078_v37  ;;  %4335 = vmatpush.bf16.msrb.mxu3 %v8082_v20  ;;  %v8186_v57 = vor.u32 %v9154_v30, %v8185_v16  ;;  %v8190_v34 = vor.u32 %v9142_v0, %v8187_v6  ;;  %v11651_v53 = vpop.permute.xlu2 %1615  ;;  %v14496_v16 = vld [vmem:[#allocation28_spill] sm:$0xff] }
 0x377   : > { %v11649_v55 = vpop.permute.xlu0 %2583  ;;  %v1633_v62 = vrot.slane %v11651_v53, 4  ;;  %v14497_v30 = vld [vmem:[#allocation100_spill] sm:$0xff] }
 0x378   : > { %4347 = vmatpush.bf16.msra.mxu0 %v8186_v57  ;;  %4360 = vmatpush.bf16.msra.mxu1 %v8190_v34  ;;  %v2601_v37 = vrot.slane %v11649_v55, 4  ;;  %v11656_v28 = vpop.permute.xlu1 %3500  ;;  %v14498_v57 = vld [vmem:[#allocation106_spill] sm:$0xff] }
 0x379   : > { %v3517_v20 = vrot.slane %v11656_v28, 4  ;;  %2979 = vrot.lane.b32.xlu2 %v14493_v36, %s9466_s28  ;;  %8345 = vmatmul.msk.bf16.vlgmr.msrb.gmra.mxu2 %vm4106_vm13, %v11407_v22 }
 0x37a   : > { %4371 = vmatpush.bf16.msra.mxu2 %v4153_v13  ;;  %4384 = vmatpush.bf16.msra.mxu3 %v4156_v46  ;;  %v2621_v25 = vsel %vm460_vm2, %v2600_v7, %v2601_v37  ;;  %v1653_v13 = vsel %vm460_vm2, %v1632_v4, %v1633_v62  ;;  %v9117_v7 = vld [vmem:[#allocation4 + $0x34] sm:$0xf] }
 0x37b   : > { %2849 = vrot.lane.b32.xlu1 %v14492_v50, %s14292_s14  ;;  %v2622_v52 = vsel %vm2607_vm0, %v11364_v31, %v2621_v25  ;;  %v3538_v46 = vsel %vm460_vm2, %v3516_v54, %v3517_v20  ;;  %v1654_v5 = vsel %vm14494_vm9, %v11537_v47, %v1653_v13  ;;  %8346 = vmatmul.msk.bf16.vlgmr.msrb.gmra.mxu3 %vm4106_vm13, %v11407_v22  ;;  %vm14500_vm9 = vcmask 875520  }
 0x37c   : > { %2652 = vst [vmem:[#allocation4 + $0x1c8] sm:$0x22] %v2622_v52  ;;  %v3539_v4 = vsel %vm14495_vm11, %v11361_v21, %v3538_v46  ;;  %v9129_v38 = vld [vmem:[#allocation4 + $0x90] sm:$0xf0]  ;;  %v8087_v31 = vld [vmem:[#allocation4 + $0x94] sm:$0xf0] }
 0x37d   : > { %3568 = vst [vmem:[#allocation4 + $0x298] sm:$0x11] %v3539_v4  ;;  %v8086_v18 = vor.u32 %v9129_v38, %v8085_v56  ;;  %v8090_v54 = vor.u32 %v9117_v7, %v8087_v31  ;;  %1488 = vrot.lane.b32.xlu0 %v14496_v16, %s9455_s19  ;;  %v14502_v7 = vld [vmem:[#allocation33_spill] sm:$0xff]  ;;  %vm14503_vm11 = vcmask 1040384  }
 0x37e   : > { %1684 = vst [vmem:[#allocation4 + $0x100] sm:$0x22] %v1654_v5  ;;  %v11691_v9 = vpop.permute.xlu2 %2060 }
 0x37f   : > { %4348 = vmatpush.bf16.msra.mxu0 %v8086_v18  ;;  %4361 = vmatpush.bf16.msra.mxu1 %v8090_v54  ;;  %v11689_v47 = vpop.permute.xlu0 %2975  ;;  %v2078_v40 = vrot.slane %v11691_v9, 4  ;;  %v14505_v18 = vld [vmem:[#allocation38_spill] sm:$0xff] }
 0x380   : > { %v2993_v21 = vrot.slane %v11689_v47, 4  ;;  %v11696_v0 = vpop.permute.xlu1 %2714 }
 0x381   : > { %v2732_v6 = vrot.slane %v11696_v0, 4  ;;  %3372 = vrot.lane.b32.xlu2 %v14498_v57, %s9469_s8  ;;  %v2098_v10 = vsel %vm460_vm2, %v2077_v63, %v2078_v40 }
 0x382   : > { %v3013_v34 = vsel %vm460_vm2, %v2992_v17, %v2993_v21  ;;  %8347 = vmatmul.msk.bf16.vlgmr.msra.gmra.mxu0 %vm4106_vm13, %v11407_v22  ;;  %v2099_v17 = vsel %vm14499_vm12, %v11578_v44, %v2098_v10  ;;  %8348 = vmatmul.msk.bf16.vlgmr.msra.gmra.mxu1 %vm4106_vm13, %v11407_v22  ;;  %v14501_v44 = vld [vmem:[#allocation43_spill] sm:$0xff]  ;;  %vm14504_vm12 = vmmov %vm14503_vm11 }
 0x383   : > { %3241 = vrot.lane.b32.xlu1 %v14497_v30, %s9468_s29  ;;  %v3014_v50 = vsel %vm2999_vm5, %v11411_v15, %v3013_v34  ;;  %v2752_v36 = vsel %vm460_vm2, %v2731_v59, %v2732_v6  ;;  %2129 = vst [vmem:[#allocation4 + $0x164] sm:$0x22] %v2099_v17  ;;  %v14509_v17 = vld [vmem:[#allocation54_spill] sm:$0xff] }
 0x384   : > { %3044 = vst [vmem:[#allocation4 + $0x22c] sm:$0x11] %v3014_v50  ;;  %v2753_v63 = vsel %vm14500_vm9, %v11284_v42, %v2752_v36  ;;  %v3660_v25 = vld [vmem:[#allocation4 + $0x298] sm:$0x11]  ;;  %vm14506_vm9 = vcmask 728064   ;;  %v14508_v36 = vld [vmem:[#allocation47_spill] sm:$0xff] }
 0x385   : > { %2783 = vst [vmem:[#allocation4 + $0x1c8] sm:$0x44] %v2753_v63  ;;  %v3922_v13 = vunpack.c.l.b16 %v3660_v25  ;;  %v3923_v15 = vunpack.c.h.b16 %v3660_v25  ;;  %1881 = vrot.lane.b32.xlu0 %v14501_v44, %s9458_s24 }
 0x386   : > { %v11731_v46 = vpop.permute.xlu2 %2454 }
 0x387   : > { %v11729_v52 = vpop.permute.xlu0 %3368  ;;  %v4022_v59 = vpack.c.b16 %v3922_v13, %v3922_v13  ;;  %v4023_v5 = vpack.c.b16 %v3923_v15, %v3923_v15  ;;  %v2471_v42 = vrot.slane %v11731_v46, 4 }
 0x388   : > { %v3386_v22 = vrot.slane %v11729_v52, 4  ;;  %v11736_v56 = vpop.permute.xlu1 %3106 }
 0x389   : > { %v3124_v4 = vrot.slane %v11736_v56, 4  ;;  %v4159_v38 = vsel %vm14503_vm11, %v4022_v59, 0  ;;  %v4162_v31 = vsel %vm14504_vm12, %v4023_v5, 0  ;;  %1750 = vrot.lane.b32.xlu2 %v14505_v18, %s9457_s23  ;;  %v2492_v16 = vsel %vm460_vm2, %v2470_v48, %v2471_v42 }
 0x38a   : > { %v3406_v54 = vsel %vm460_vm2, %v3385_v3, %v3386_v22  ;;  %4397 = vmatpush.bf16.msrb.mxu0 %v4159_v38  ;;  %v2493_v34 = vsel %vm2476_vm15, %v11532_v12, %v2492_v16  ;;  %4410 = vmatpush.bf16.msrb.mxu1 %v4162_v31  ;;  %v14511_v16 = vld [vmem:[#allocation65_spill] sm:$0xff]  ;;  %vm14513_vm11 = vcmask 7168   ;;  %vm14517_vm12 = vcmask 900096  }
 0x38b   : > { %1619 = vrot.lane.b32.xlu1 %v14502_v7, %s9456_s20  ;;  %v3407_v30 = vsel %vm14291_vm6, %v11455_v51, %v3406_v54  ;;  %v3144_v57 = vsel %vm460_vm2, %v3123_v41, %v3124_v4  ;;  %2522 = vst [vmem:[#allocation4 + $0x1d0] sm:$0x11] %v2493_v34  ;;  %v14507_v51 = vld [vmem:[#allocation59_spill] sm:$0xff] }
 0x38c   : > { %3437 = vst [vmem:[#allocation4 + $0x22c] sm:$0x88] %v3407_v30  ;;  %v3145_v3 = vsel %vm14506_vm9, %v11302_v2, %v3144_v57  ;;  %v8293_v5 = vld [vmem:[#allocation4 + $0x1c8] sm:$0xf]  ;;  %v14512_v57 = vld [vmem:[#allocation72_spill] sm:$0xff]  ;;  %vm14518_vm9 = vcmask 171008  }
 0x38d   : > { %3175 = vst [vmem:[#allocation4 + $0x22c] sm:$0x22] %v3145_v3  ;;  %2326 = vrot.lane.b32.xlu0 %v14507_v51, %s9461_s27 }
 0x38e   : > { %v11769_v10 = vpop.permute.xlu2 %2847 }
 0x38f   : > { %v11767_v48 = vpop.permute.xlu0 %1746  ;;  %v2864_v12 = vrot.slane %v11769_v10, 4 }
 0x390   : > { %v1764_v50 = vrot.slane %v11767_v48, 4  ;;  %v11774_v41 = vpop.permute.xlu1 %1484 }
 0x391   : > { %v1502_v2 = vrot.slane %v11774_v41, 4  ;;  %2195 = vrot.lane.b32.xlu2 %v14509_v17, %s14294_s26  ;;  %v2885_v25 = vsel %vm460_vm2, %v2863_v1, %v2864_v12 }
 0x392   : > { %v1784_v63 = vsel %vm460_vm2, %v1763_v45, %v1764_v50  ;;  %v2886_v59 = vsel %vm14296_vm1, %v11574_v27, %v2885_v25  ;;  %v9168_v45 = vld [vmem:[#allocation4 + $0x1cc] sm:$0xf]  ;;  %v14510_v27 = vld [vmem:[#allocation78_spill] sm:$0xff] }
 0x393   : > { %2064 = vrot.lane.b32.xlu1 %v14508_v36, %s9459_s25  ;;  %v1785_v13 = vsel %vm1770_vm7, %v11402_v61, %v1784_v63  ;;  %v1522_v15 = vsel %vm460_vm2, %v1501_v29, %v1502_v2  ;;  %2915 = vst [vmem:[#allocation4 + $0x1d0] sm:$0x88] %v2886_v59 }
 0x394   : > { %1815 = vst [vmem:[#allocation4 + $0x100] sm:$0x44] %v1785_v13  ;;  %v1523_v44 = vsel %vm1508_vm14, %v11490_v24, %v1522_v15  ;;  %v9180_v7 = vld [vmem:[#allocation4 + $0x228] sm:$0xf0]  ;;  %v8295_v1 = vld [vmem:[#allocation4 + $0x22c] sm:$0xf0] }
 0x395   : > { %1553 = vst [vmem:[#allocation4 + $0x100] sm:$0x11] %v1523_v44  ;;  %v8294_v38 = vor.u32 %v9180_v7, %v8293_v5  ;;  %v8298_v61 = vor.u32 %v9168_v45, %v8295_v1  ;;  %2720 = vrot.lane.b32.xlu0 %v14510_v27, %s9464_s13  ;;  %v14519_v1 = vld [vmem:[#allocation12_spill] sm:$0xff]  ;;  %v14521_v27 = vld [vmem:[#allocation107_spill] sm:$0xff] }
 0x396   : > { %v11805_v29 = vpop.permute.xlu2 %3239 }
 0x397   : > { %4372 = vmatpush.bf16.msra.mxu2 %v8294_v38  ;;  %4385 = vmatpush.bf16.msra.mxu3 %v8298_v61  ;;  %v11803_v31 = vpop.permute.xlu0 %2191  ;;  %v3256_v24 = vrot.slane %v11805_v29, 4 }
 0x398   : > { %v2209_v18 = vrot.slane %v11803_v31, 4  ;;  %v11810_v54 = vpop.permute.xlu1 %1877 }
 0x399   : > { %v1895_v30 = vrot.slane %v11810_v54, 4  ;;  %2589 = vrot.lane.b32.xlu2 %v14512_v57, %s9463_s12  ;;  %v3277_v3 = vsel %vm460_vm2, %v3255_v14, %v3256_v24  ;;  %v14514_v14 = vld [vmem:[#allocation96_spill] sm:$0xff] }
 0x39a   : > { %v2229_v34 = vsel %vm460_vm2, %v2208_v35, %v2209_v18  ;;  %v3278_v17 = vsel %vm3261_vm8, %v11613_v39, %v3277_v3 }
 0x39b   : > { %2458 = vrot.lane.b32.xlu1 %v14511_v16, %s9462_s11  ;;  %v2230_v51 = vsel %vm14297_vm4, %v11452_v26, %v2229_v34  ;;  %v1915_v36 = vsel %vm460_vm2, %v1894_v19, %v1895_v30  ;;  %3307 = vst [vmem:[#allocation4 + $0x234] sm:$0x44] %v3278_v17  ;;  %v14515_v19 = vld [vmem:[#allocation83_spill] sm:$0xff] }
 0x39c   : > { %2260 = vst [vmem:[#allocation4 + $0x164] sm:$0x44] %v2230_v51  ;;  %v1916_v35 = vsel %vm14513_vm11, %v11530_v58, %v1915_v36  ;;  %v14516_v58 = vld [vmem:[#allocation90_spill] sm:$0xff]  ;;  %vm14522_vm11 = vcmask 875520  }
 0x39d   : > { %1946 = vst [vmem:[#allocation4 + $0x100] sm:$0x88] %v1916_v35  ;;  %3112 = vrot.lane.b32.xlu0 %v14514_v14, %s9467_s7 }
 0x39e   : > { %v11849_v13 = vpop.permute.xlu2 %1223 }
 0x39f   : > { %v11839_v63 = vpop.permute.xlu0 %2585  ;;  %v1241_v59 = vrot.slane %v11849_v13, 4 }
 0x3a0   : > { %v2602_v26 = vrot.slane %v11839_v63, 4  ;;  %v11844_v25 = vpop.permute.xlu1 %2322 }
 0x3a1   : > { %v2340_v39 = vrot.slane %v11844_v25, 4  ;;  %2981 = vrot.lane.b32.xlu2 %v14516_v58, %s9466_s28 }
 0x3a2   : > { %v2623_v15 = vsel %vm460_vm2, %v2601_v37, %v2602_v26  ;;  %v1261_v37 = vsel %vm460_vm2, %v1240_v49, %v1241_v59 }
 0x3a3   : > { %2851 = vrot.lane.b32.xlu1 %v14515_v19, %s14292_s14  ;;  %v2624_v5 = vsel %vm2607_vm0, %v11649_v55, %v2623_v15  ;;  %v2360_v45 = vsel %vm460_vm2, %v2339_v23, %v2340_v39  ;;  %v1262_v55 = vsel %vm14518_vm9, %v11492_v60, %v1261_v37  ;;  %v3480_v19 = vld [vmem:[#allocation1 + $0x20] sm:$0xff]  ;;  %vm14526_vm9 = vcmask 7168  }
 0x3a4   : > { %2653 = vst [vmem:[#allocation4 + $0x1d0] sm:$0x22] %v2624_v5  ;;  %v2361_v44 = vsel %vm14517_vm12, %v11572_v33, %v2360_v45  ;;  %v14520_v33 = vld [vmem:[#allocation101_spill] sm:$0xff]  ;;  %v8193_v3 = vld [vmem:[#allocation4 + $0x100] sm:$0xf]  ;;  %v14524_v5 = vld [vmem:[#allocation23_spill] sm:$0xff] }
 0x3a5   : > { %2391 = vst [vmem:[#allocation4 + $0x164] sm:$0x88] %v2361_v44  ;;  %1096 = vrot.lane.b32.xlu0 %v14519_v1, %s9452_s16  ;;  %v9143_v51 = vld [vmem:[#allocation4 + $0x104] sm:$0xf]  ;;  %vm14525_vm12 = vcmask 728064  }
 0x3a6   : > { %1292 = vst [vmem:[#allocation4 + $0x9c] sm:$0x44] %v1262_v55  ;;  %v11885_v49 = vpop.permute.xlu2 %1486 }
 0x3a7   : > { %v11875_v7 = vpop.permute.xlu0 %2977  ;;  %v1503_v16 = vrot.slane %v11885_v49, 4 }
 0x3a8   : > { %v2994_v23 = vrot.slane %v11875_v7, 4  ;;  %v11880_v38 = vpop.permute.xlu1 %2716 }
 0x3a9   : > { %v2733_v61 = vrot.slane %v11880_v38, 4  ;;  %3374 = vrot.lane.b32.xlu2 %v14521_v27, %s9469_s8 }
 0x3aa   : > { %v3015_v60 = vsel %vm460_vm2, %v2993_v21, %v2994_v23  ;;  %v1524_v21 = vsel %vm460_vm2, %v1502_v2, %v1503_v16  ;;  %v14523_v2 = vld [vmem:[#allocation17_spill] sm:$0xff] }
 0x3ab   : > { %3243 = vrot.lane.b32.xlu1 %v14520_v33, %s9468_s29  ;;  %v3016_v57 = vsel %vm2999_vm5, %v11689_v47, %v3015_v60  ;;  %v2754_v34 = vsel %vm460_vm2, %v2732_v6, %v2733_v61  ;;  %v1525_v35 = vsel %vm1508_vm14, %v11774_v41, %v1524_v21  ;;  %v14527_v60 = vld [vmem:[#allocation39_spill] sm:$0xff] }
 0x3ac   : > { %3045 = vst [vmem:[#allocation4 + $0x234] sm:$0x11] %v3016_v57  ;;  %v2755_v36 = vsel %vm14522_vm11, %v11696_v0, %v2754_v34  ;;  %v9155_v17 = vld [vmem:[#allocation4 + $0x160] sm:$0xf0]  ;;  %v8195_v47 = vld [vmem:[#allocation4 + $0x164] sm:$0xf0] }
 0x3ad   : > { %2784 = vst [vmem:[#allocation4 + $0x1d0] sm:$0x44] %v2755_v36  ;;  %v8194_v14 = vor.u32 %v9155_v17, %v8193_v3  ;;  %v8198_v6 = vor.u32 %v9143_v51, %v8195_v47  ;;  %3506 = vrot.lane.b32.xlu0 %v3480_v19, %s9470_s30  ;;  %v14529_v34 = vld [vmem:[#allocation34_spill] sm:$0xff]  ;;  %vm14530_vm11 = vcmask 900096   ;;  %s9480_s30 = smov 118  }
 0x3ae   : > { %1554 = vst [vmem:[#allocation4 + $0x108] sm:$0x11] %v1525_v35  ;;  %v11927_v44 = vpop.permute.xlu2 %1879 }
 0x3af   : > { %4373 = vmatpush.bf16.msra.mxu2 %v8194_v14  ;;  %4386 = vmatpush.bf16.msra.mxu3 %v8198_v6  ;;  %v11911_v58 = vpop.permute.xlu0 %3370  ;;  %v1896_v55 = vrot.slane %v11927_v44, 4 }
 0x3b0   : > { %v3387_v0 = vrot.slane %v11911_v58, 4  ;;  %v11917_v15 = vpop.permute.xlu1 %3108 }
 0x3b1   : > { %1358 = vrot.lane.b32.xlu2 %v14524_v5, %s9454_s18  ;;  %v3125_v45 = vrot.slane %v11917_v15, 4  ;;  %v14532_v5 = vld [vmem:[#allocation44_spill] sm:$0xff] }
 0x3b2   : > { %v3408_v41 = vsel %vm460_vm2, %v3386_v22, %v3387_v0  ;;  %v1917_v22 = vsel %vm460_vm2, %v1895_v30, %v1896_v55 }
 0x3b3   : > { %1227 = vrot.lane.b32.xlu1 %v14523_v2, %s9453_s17  ;;  %v3409_v37 = vsel %vm14291_vm6, %v11729_v52, %v3408_v41  ;;  %v3146_v1 = vsel %vm460_vm2, %v3124_v4, %v3125_v45  ;;  %v1918_v52 = vsel %vm14526_vm9, %v11810_v54, %v1917_v22  ;;  %v14528_v4 = vld [vmem:[#allocation29_spill] sm:$0xff]  ;;  %v14531_v2 = vld [vmem:[#allocation55_spill] sm:$0xff]  ;;  %vm14535_vm9 = vcmask 703488  }
 0x3b4   : > { %3438 = vst [vmem:[#allocation4 + $0x234] sm:$0x88] %v3409_v37  ;;  %v3147_v33 = vsel %vm14525_vm12, %v11736_v56, %v3146_v1  ;;  %v8301_v17 = vld [vmem:[#allocation4 + $0x1d0] sm:$0xf]  ;;  %v9169_v35 = vld [vmem:[#allocation4 + $0x1d4] sm:$0xf] }
 0x3b5   : > { %3176 = vst [vmem:[#allocation4 + $0x234] sm:$0x22] %v3147_v33  ;;  %1752 = vrot.lane.b32.xlu0 %v14527_v60, %s9457_s23  ;;  %vm14534_vm12 = vcmask 146432   ;;  %v8093_v60 = vld [vmem:[#allocation4 + $0x38] sm:$0xf] }
 0x3b6   : > { %1947 = vst [vmem:[#allocation4 + $0x108] sm:$0x88] %v1918_v52  ;;  %v11960_v51 = vpop.permute.xlu2 %2324 }
 0x3b7   : > { %v1355_v27 = vpop.permute.xlu0 %1354  ;;  %v2341_v21 = vrot.slane %v11960_v51, 4 }
 0x3b8   : > { %v1372_v57 = vrot.slane %v1355_v27, 4  ;;  %v11950_v56 = vpop.permute.xlu1 %1092 }
 0x3b9   : > { %1621 = vrot.lane.b32.xlu2 %v14529_v34, %s9456_s20  ;;  %v1110_v54 = vrot.slane %v11950_v56, 4 }
 0x3ba   : > { %v1392_v30 = vsel %vm460_vm2, %v1371_v32, %v1372_v57 }
 0x3bb   : > { %1490 = vrot.lane.b32.xlu1 %v14528_v4, %s9455_s19  ;;  %v1393_v3 = vsel %vm1378_vm3, %v11611_v11, %v1392_v30  ;;  %v1130_v36 = vsel %vm460_vm2, %v1109_v8, %v1110_v54  ;;  %v2362_v11 = vsel %vm460_vm2, %v2340_v39, %v2341_v21  ;;  %v14533_v39 = vld [vmem:[#allocation49_spill] sm:$0xff] }
 0x3bc   : > { %1423 = vst [vmem:[#allocation4 + $0x9c] sm:$0x88] %v1393_v3  ;;  %v1131_v32 = vsel %vm1116_vm10, %v11618_v43, %v1130_v36  ;;  %v9181_v47 = vld [vmem:[#allocation4 + $0x230] sm:$0xf0]  ;;  %v8303_v14 = vld [vmem:[#allocation4 + $0x234] sm:$0xf0]  ;;  %v2363_v8 = vsel %vm14530_vm11, %v11844_v25, %v2362_v11 }
 0x3bd   : > { %1161 = vst [vmem:[#allocation4 + $0x9c] sm:$0x22] %v1131_v32  ;;  %v8302_v6 = vor.u32 %v9181_v47, %v8301_v17  ;;  %v8306_v19 = vor.u32 %v9169_v35, %v8303_v14  ;;  %2197 = vrot.lane.b32.xlu0 %v14531_v2, %s14294_s26  ;;  %v9118_v3 = vld [vmem:[#allocation4 + $0x3c] sm:$0xf]  ;;  %v14538_v35 = vld [vmem:[#allocation8_spill] sm:$0xff]  ;;  %vm14539_vm11 = vcmask 1039360  }
 0x3be   : > { %2392 = vst [vmem:[#allocation4 + $0x16c] sm:$0x88] %v2363_v8  ;;  %v14536_v32 = vld [vmem:[#allocation13_spill] sm:$0xff]  ;;  %v12025_v11 = vld [vmem:[%s14220_s1] sm:$0x3] }
 0x3bf   : > { %4398 = vmatpush.bf16.msrb.mxu0 %v8302_v6  ;;  %v11979_v43 = vpop.permute.xlu0 %1617  ;;  %4411 = vmatpush.bf16.msrb.mxu1 %v8306_v19 }
 0x3c0   : > { %v1634_v41 = vrot.slane %v11979_v43, 4  ;;  %v11984_v37 = vpop.permute.xlu1 %3502 }
 0x3c1   : > { %2066 = vrot.lane.b32.xlu2 %v14533_v39, %s9459_s25  ;;  %v3518_v25 = vrot.slane %v11984_v37, 4 }
 0x3c2   : > { %v1655_v1 = vsel %vm460_vm2, %v1633_v62, %v1634_v41 }
 0x3c3   : > { %1883 = vrot.lane.b32.xlu1 %v14532_v5, %s9458_s24  ;;  %v1656_v33 = vsel %vm14534_vm12, %v11651_v53, %v1655_v1  ;;  %v3540_v22 = vsel %vm460_vm2, %v3517_v20, %v3518_v25  ;;  %v12001_v52 = vpop.permute.xlu2 %1356  ;;  %vm14543_vm12 = vcmask 1040384  }
 0x3c4   : > { %1685 = vst [vmem:[#allocation4 + $0x108] sm:$0x22] %v1656_v33  ;;  %v3541_v4 = vsel %vm14535_vm9, %v11656_v28, %v3540_v22  ;;  %v1373_v34 = vrot.slane %v12001_v52, 4  ;;  %v9130_v30 = vld [vmem:[#allocation4 + $0x98] sm:$0xf0]  ;;  %v14537_v28 = vld [vmem:[#allocation60_spill] sm:$0xff]  ;;  %vm14544_vm9 = vmmov %vm14543_vm12 }
 0x3c5   : > { %3569 = vst [vmem:[#allocation4 + $0x2a0] sm:$0x11] %v3541_v4  ;;  %v8094_v62 = vor.u32 %v9130_v30, %v8093_v60  ;;  %v8095_v53 = vld [vmem:[#allocation4 + $0x9c] sm:$0xf0]  ;;  %1098 = vrot.lane.b32.xlu0 %v14536_v32, %s9452_s16  ;;  %v14542_v30 = vld [vmem:[#allocation24_spill] sm:$0xff] }
 0x3c6   : > { %v1394_v36 = vsel %vm460_vm2, %v1372_v57, %v1373_v34  ;;  %v8098_v17 = vor.u32 %v9118_v3, %v8095_v53 }
 0x3c7   : > { %v1395_v20 = vsel %vm1378_vm3, %v1355_v27, %v1394_v36  ;;  %4374 = vmatpush.bf16.msra.mxu2 %v8094_v62  ;;  %v12014_v47 = vpop.permute.xlu0 %2062 }
 0x3c8   : > { %1424 = vst [vmem:[#allocation4 + $0xa4] sm:$0x88] %v1395_v20  ;;  %4387 = vmatpush.bf16.msra.mxu3 %v8098_v17  ;;  %v2079_v14 = vrot.slane %v12014_v47, 4 }
 0x3c9   : > { %967 = vrot.lane.b32.xlu2 %v14538_v35, %s9451_s15  ;;  %v12019_v57 = vpop.permute.xlu1 %1748 }
 0x3ca   : > { %v1765_v27 = vrot.slane %v12019_v57, 4  ;;  %8349 = vmatmul.msk.bf16.vlgmr.msra.gmra.mxu2 %vm4106_vm13, %v12025_v11  ;;  %v2100_v6 = vsel %vm460_vm2, %v2078_v40, %v2079_v14 }
 0x3cb   : > { %2328 = vrot.lane.b32.xlu1 %v14537_v28, %s9461_s27  ;;  %v12034_v19 = vpop.permute.xlu2 %2587  ;;  %8350 = vmatmul.msk.bf16.vlgmr.msra.gmra.mxu3 %vm4106_vm13, %v12025_v11  ;;  %v2101_v8 = vsel %vm14539_vm11, %v11691_v9, %v2100_v6  ;;  %vm14548_vm11 = vcmask 703488  }
 0x3cc   : > { %v1786_v2 = vsel %vm460_vm2, %v1764_v50, %v1765_v27  ;;  %v2603_v5 = vrot.slane %v12034_v19, 4  ;;  %v3661_v39 = vld [vmem:[#allocation4 + $0x2a0] sm:$0x11]  ;;  %2130 = vst [vmem:[#allocation4 + $0x16c] sm:$0x22] %v2101_v8  ;;  %v4194_v53 = vpop.f32.mrf.mxu3 }
 0x3cd   : > { %v1787_v40 = vsel %vm1770_vm7, %v11767_v48, %v1786_v2  ;;  %v3924_v1 = vunpack.c.l.b16 %v3661_v39  ;;  %v3925_v33 = vunpack.c.h.b16 %v3661_v39  ;;  %v14540_v50 = vld [vmem:[#allocation66_spill] sm:$0xff]  ;;  %v14545_v2 = vld [vmem:[#allocation79_spill] sm:$0xff]  ;;  %v14547_v39 = vld [vmem:[#allocation73_spill] sm:$0xff] }
 0x3ce   : > { %1816 = vst [vmem:[#allocation4 + $0x108] sm:$0x44] %v1787_v40  ;;  %v2625_v9 = vsel %vm460_vm2, %v2602_v26, %v2603_v5  ;;  %2460 = vrot.lane.b32.xlu0 %v14540_v50, %s9462_s11  ;;  %v14541_v48 = vld [vmem:[#allocation18_spill] sm:$0xff]  ;;  %s9478_s11 = smov 11  }
 0x3cf   : > { %v2626_v22 = vsel %vm2607_vm0, %v11839_v63, %v2625_v9  ;;  %v4024_v60 = vpack.c.b16 %v3924_v1, %v3924_v1  ;;  %v4025_v4 = vpack.c.b16 %v3925_v33, %v3925_v33  ;;  %v12061_v62 = vpop.permute.xlu0 %1094 }
 0x3d0   : > { %2654 = vst [vmem:[#allocation4 + $0x1d8] sm:$0x22] %v2626_v22  ;;  %v1111_v63 = vrot.slane %v12061_v62, 4 }
 0x3d1   : > { %1360 = vrot.lane.b32.xlu2 %v14542_v30, %s9454_s18  ;;  %v4165_v3 = vsel %vm14543_vm12, %v4024_v60, 0  ;;  %v4168_v26 = vsel %vm14544_vm9, %v4025_v4, 0  ;;  %v12066_v36 = vpop.permute.xlu1 %2193  ;;  %vm14549_vm12 = vcmask 171008   ;;  %vm14553_vm9 = vcmask 875520  }
 0x3d2   : > { %4423 = vmatpush.bf16.msrb.mxu2 %v4165_v3  ;;  %4436 = vmatpush.bf16.msrb.mxu3 %v4168_v26  ;;  %v2210_v17 = vrot.slane %v12066_v36, 4  ;;  %v1132_v32 = vsel %vm460_vm2, %v1110_v54, %v1111_v63 }
 0x3d3   : > { %1229 = vrot.lane.b32.xlu1 %v14541_v48, %s9453_s17  ;;  %v12069_v20 = vpop.permute.xlu2 %2979  ;;  %v1133_v35 = vsel %vm1116_vm10, %v11950_v56, %v1132_v32 }
 0x3d4   : > { %v2995_v28 = vrot.slane %v12069_v20, 4  ;;  %v2231_v6 = vsel %vm460_vm2, %v2209_v18, %v2210_v17  ;;  %1162 = vst [vmem:[#allocation4 + $0xa4] sm:$0x22] %v1133_v35  ;;  %v14546_v18 = vld [vmem:[#allocation69_spill] sm:$0xff]  ;;  %v4196_v40 = vpop.f32.mrf.mxu3 }
 0x3d5   : > { %v2232_v8 = vsel %vm14297_vm4, %v11803_v31, %v2231_v6  ;;  %v8201_v4 = vld [vmem:[#allocation4 + $0x108] sm:$0xf]  ;;  %v9144_v48 = vld [vmem:[#allocation4 + $0x10c] sm:$0xf]  ;;  %v4510_v6 = vmax.f32 %v4194_v53, 0.0  ;;  %v12142_v53 = vpop.f32.mrf.mxu0 }
 0x3d6   : > { %v3017_v54 = vsel %vm460_vm2, %v2994_v23, %v2995_v28  ;;  %2261 = vst [vmem:[#allocation4 + $0x16c] sm:$0x44] %v2232_v8  ;;  %2853 = vrot.lane.b32.xlu0 %v14545_v2, %s14292_s14  ;;  %v4207_v8 = vpop.f32.mrf.mxu2  ;;  %s9487_s14 = smov 103  }
 0x3d7   : > { %v3018_v56 = vsel %vm2999_vm5, %v11875_v7, %v3017_v54  ;;  %v12099_v31 = vpop.permute.xlu0 %3504  ;;  %v14552_v54 = vld [vmem:[#allocation91_spill] sm:$0xff] }
 0x3d8   : > { %3046 = vst [vmem:[#allocation4 + $0x23c] sm:$0x11] %v3018_v56  ;;  %v3519_v1 = vrot.slane %v12099_v31, 4  ;;  %v4511_v56 = vmax.f32 %v4207_v8, 0.0 }
 0x3d9   : > { %2722 = vrot.lane.b32.xlu2 %v14547_v39, %s9464_s13  ;;  %s14650_s13 = smov 126  }
 0x3da   : > { %v3542_v9 = vsel %vm460_vm2, %v3518_v25, %v3519_v1 }
 0x3db   : > { %2591 = vrot.lane.b32.xlu1 %v14546_v18, %s9463_s12  ;;  %v12105_v7 = vpop.permute.xlu2 %3372  ;;  %v3543_v50 = vsel %vm14548_vm11, %v11984_v37, %v3542_v9  ;;  %v4537_v9 = vpack.c.bf16 %v4511_v56, %v4510_v6  ;;  %v14556_v56 = vld [vmem:[#allocation25_spill] sm:$0xff]  ;;  %vm14557_vm11 = vcmask 1040384   ;;  %s9479_s12 = smov 10  }
 0x3dc   : > { %v3388_v22 = vrot.slane %v12105_v7, 4  ;;  %3570 = vst [vmem:[#allocation4 + $0x2a8] sm:$0x11] %v3543_v50  ;;  %v12137_v2 = vpop.f32.mrf.mxu3 }
 0x3dd   : > { %v12102_v23 = vpop.permute.xlu1 %1225  ;;  %v9156_v3 = vld [vmem:[#allocation4 + $0x168] sm:$0xf0]  ;;  %v8203_v37 = vld [vmem:[#allocation4 + $0x16c] sm:$0xf0]  ;;  %4539 = vst [vmem:[#allocation6] sm:$0x33] %v4537_v9 }
 0x3de   : > { %v1242_v33 = vrot.slane %v12102_v23, 4  ;;  %v3410_v25 = vsel %vm460_vm2, %v3387_v0, %v3388_v22  ;;  %v8202_v32 = vor.u32 %v9156_v3, %v8201_v4  ;;  %v8206_v35 = vor.u32 %v9144_v48, %v8203_v37  ;;  %v8101_v4 = vld [vmem:[#allocation4 + $0x40] sm:$0xf] }
 0x3df   : > { %v3411_v26 = vsel %vm14291_vm6, %v11911_v58, %v3410_v25  ;;  %v12135_v0 = vpop.permute.xlu0 %2718  ;;  %v9119_v25 = vld [vmem:[#allocation4 + $0x44] sm:$0xf] }
 0x3e0   : > { %v1263_v60 = vsel %vm460_vm2, %v1241_v59, %v1242_v33  ;;  %v14550_v59 = vld [vmem:[#allocation97_spill] sm:$0xff]  ;;  %3439 = vst [vmem:[#allocation4 + $0x23c] sm:$0x88] %v3411_v26  ;;  %4399 = vmatpush.bf16.msrb.mxu0 %v8202_v32  ;;  %4412 = vmatpush.bf16.msrb.mxu1 %v8206_v35  ;;  %v2734_v58 = vrot.slane %v12135_v0, 4  ;;  %v14554_v35 = vld [vmem:[#allocation30_spill] sm:$0xff] }
 0x3e1   : > { %v1264_v30 = vsel %vm14549_vm12, %v11849_v13, %v1263_v60  ;;  %3245 = vrot.lane.b32.xlu0 %v14550_v59, %s9468_s29  ;;  %v14551_v13 = vld [vmem:[#allocation86_spill] sm:$0xff]  ;;  %3114 = vrot.lane.b32.xlu2 %v14552_v54, %s9467_s7  ;;  %vm14558_vm12 = vmmov %vm14557_vm11  ;;  %s14576_s29 = smov 112   ;;  %s14578_s7 = smov 80  }
 0x3e2   : > { %1293 = vst [vmem:[#allocation4 + $0xa4] sm:$0x44] %v1264_v30  ;;  %v2756_v50 = vsel %vm460_vm2, %v2733_v61, %v2734_v58 }
 0x3e3   : > { %2983 = vrot.lane.b32.xlu1 %v14551_v13, %s9466_s28  ;;  %v12145_v40 = vpop.permute.xlu2 %1750  ;;  %v2757_v48 = vsel %vm14553_vm9, %v11880_v38, %v2756_v50  ;;  %v3662_v3 = vld [vmem:[#allocation4 + $0x2a8] sm:$0x11]  ;;  %vm14559_vm9 = vcmask 728064   ;;  %s14575_s28 = smov 96  }
 0x3e4   : > { %v1766_v60 = vrot.slane %v12145_v40, 4  ;;  %2785 = vst [vmem:[#allocation4 + $0x1d8] sm:$0x44] %v2757_v48  ;;  %v3926_v59 = vunpack.c.l.b16 %v3662_v3  ;;  %v3927_v32 = vunpack.c.h.b16 %v3662_v3  ;;  %v4235_v50 = vpop.f32.mrf.mxu3 }
 0x3e5   : > { %v12140_v18 = vpop.permute.xlu1 %2456 }
 0x3e6   : > { %v2472_v39 = vrot.slane %v12140_v18, 4  ;;  %v1788_v61 = vsel %vm460_vm2, %v1765_v27, %v1766_v60  ;;  %v4026_v8 = vpack.c.b16 %v3926_v59, %v3926_v59  ;;  %v4027_v54 = vpack.c.b16 %v3927_v32, %v3927_v32  ;;  %v4209_v27 = vpop.f32.mrf.mxu2 }
 0x3e7   : > { %v12175_v9 = vpop.permute.xlu0 %3110 }
 0x3e8   : > { %v2494_v30 = vsel %vm460_vm2, %v2471_v42, %v2472_v39  ;;  %v1789_v42 = vsel %vm1770_vm7, %v12019_v57, %v1788_v61  ;;  %v3126_v57 = vrot.slane %v12175_v9, 4 }
 0x3e9   : > { %v2495_v37 = vsel %vm2476_vm15, %v11731_v46, %v2494_v30  ;;  %v9131_v38 = vld [vmem:[#allocation4 + $0xa0] sm:$0xf0]  ;;  %v8103_v26 = vld [vmem:[#allocation4 + $0xa4] sm:$0xf0]  ;;  %1623 = vrot.lane.b32.xlu0 %v14554_v35, %s9456_s20  ;;  %1817 = vst [vmem:[#allocation4 + $0x110] sm:$0x44] %v1789_v42  ;;  %1492 = vrot.lane.b32.xlu2 %v14556_v56, %s9455_s19 }
 0x3ea   : > { %2523 = vst [vmem:[#allocation4 + $0x1d8] sm:$0x11] %v2495_v37  ;;  %v8102_v6 = vor.u32 %v9131_v38, %v8101_v4  ;;  %v8106_v13 = vor.u32 %v9119_v25, %v8103_v26  ;;  %v14555_v46 = vld [vmem:[#allocation103_spill] sm:$0xff]  ;;  %v4171_v4 = vsel %vm14557_vm11, %v4026_v8, 0  ;;  %v4174_v30 = vsel %vm14558_vm12, %v4027_v54, 0  ;;  %v4248_v25 = vpop.f32.mrf.mxu0  ;;  %v14560_v42 = vld [vmem:[#allocation50_spill] sm:$0xff] }
 0x3eb   : > { %3376 = vrot.lane.b32.xlu1 %v14555_v46, %s9469_s8  ;;  %v12183_v37 = vpop.permute.xlu2 %2195  ;;  %v3148_v61 = vsel %vm460_vm2, %v3125_v45, %v3126_v57  ;;  %vm14290_vm11 = vcmask 1041408   ;;  %vm4541_vm12 = vcmask 128004   ;;  %s14620_s19 = smov 64   ;;  %s14651_s8 = smov 106  }
 0x3ec   : > { %4400 = vmatpush.bf16.msrb.mxu0 %v8102_v6  ;;  %4413 = vmatpush.bf16.msrb.mxu1 %v8106_v13  ;;  %v2211_v38 = vrot.slane %v12183_v37, 4  ;;  %v3149_v26 = vsel %vm14559_vm9, %v11917_v15, %v3148_v61  ;;  %vm12226_vm9 = vmor %vm4541_vm12, %vm14290_vm11  ;;  %vm14568_vm12 = vcmask 7168   ;;  %vm14569_vm11 = vcmask 146432   ;;  %s9485_s20 = smov 105  }
 0x3ed   : > { %v12178_v48 = vpop.permute.xlu1 %2849  ;;  %3177 = vst [vmem:[#allocation4 + $0x23c] sm:$0x22] %v3149_v26 }
 0x3ee   : > { %v2865_v3 = vrot.slane %v12178_v48, 4  ;;  %v2233_v32 = vsel %vm460_vm2, %v2210_v17, %v2211_v38  ;;  %v4220_v35 = vpop.f32.mrf.mxu2  ;;  %v4513_v17 = vmax.f32 %v12137_v2, 0.0  ;;  %v12220_v46 = vpop.f32.mrf.mxu3 }
 0x3ef   : > { %8351 = vmatmul.msk.bf16.vlgmr.msrb.gmra.mxu0 %vm4106_vm13, %v12025_v11  ;;  %8352 = vmatmul.msk.bf16.vlgmr.msrb.gmra.mxu1 %vm4106_vm13, %v12025_v11  ;;  %v2234_v15 = vsel %vm14297_vm4, %v12066_v36, %v2233_v32  ;;  %v12217_v6 = vpop.permute.xlu0 %1488  ;;  %v4512_v13 = vmax.f32 %v4220_v35, 0.0  ;;  %v4259_v32 = vpop.f32.mrf.mxu1 }
 0x3f0   : > { %4449 = vmatpush.bf16.msra.mxu0 %v4171_v4  ;;  %4462 = vmatpush.bf16.msra.mxu1 %v4174_v30  ;;  %v2887_v59 = vsel %vm460_vm2, %v2864_v12, %v2865_v3  ;;  %2262 = vst [vmem:[#allocation4 + $0x174] sm:$0x44] %v2234_v15  ;;  %v14561_v12 = vld [vmem:[#allocation35_spill] sm:$0xff]  ;;  %v1504_v36 = vrot.slane %v12217_v6, 4 }
 0x3f1   : > { %v2888_v45 = vsel %vm14296_vm1, %v11769_v10, %v2887_v59  ;;  %2068 = vrot.lane.b32.xlu0 %v14560_v42, %s9459_s25  ;;  %v14562_v10 = vld [vmem:[#allocation40_spill] sm:$0xff]  ;;  %v4538_v4 = vpack.c.bf16 %v4513_v17, %v4512_v13  ;;  %v14565_v59 = vld [vmem:[#allocation9_spill] sm:$0xff] }
 0x3f2   : > { %2916 = vst [vmem:[#allocation4 + $0x1d8] sm:$0x88] %v2888_v45  ;;  %1885 = vrot.lane.b32.xlu2 %v14562_v10, %s9458_s24  ;;  %v12230_v27 = vpop.f32.mrf.mxu0  ;;  %v1526_v2 = vsel %vm460_vm2, %v1503_v16, %v1504_v36 }
 0x3f3   : > { %1754 = vrot.lane.b32.xlu1 %v14561_v12, %s9457_s23  ;;  %v12233_v50 = vpop.permute.xlu2 %2589  ;;  %v1527_v25 = vsel %vm1508_vm14, %v11885_v49, %v1526_v2  ;;  %4543 = vst.msk [vmem:[#allocation6 + $0x8] sm:$0x33] %vm12226_vm9, %v4538_v4  ;;  %v4514_v2 = vmax.f32 %v12142_v53, 0.0 }
 0x3f4   : > { %v2604_v30 = vrot.slane %v12233_v50, 4  ;;  %1555 = vst [vmem:[#allocation4 + $0x110] sm:$0x11] %v1527_v25 }
 0x3f5   : > { %v12223_v8 = vpop.permute.xlu1 %3241 }
 0x3f6   : > { %v3257_v56 = vrot.slane %v12223_v8, 4  ;;  %v2627_v16 = vsel %vm460_vm2, %v2603_v5, %v2604_v30  ;;  %v4222_v45 = vpop.f32.mrf.mxu2  ;;  %v4287_v42 = vpop.f32.mrf.mxu3 }
 0x3f7   : > { %v2628_v49 = vsel %vm2607_vm0, %v12034_v19, %v2627_v16  ;;  %v12265_v15 = vpop.permute.xlu0 %1881  ;;  %v4544_v42 = vpack.c.bf16 %v4514_v2, %v4513_v17 }
 0x3f8   : > { %v3279_v61 = vsel %vm460_vm2, %v3256_v24, %v3257_v56  ;;  %2655 = vst [vmem:[#allocation4 + $0x1e0] sm:$0x22] %v2628_v49  ;;  %v14566_v24 = vld [vmem:[#allocation56_spill] sm:$0xff]  ;;  %v1897_v5 = vrot.slane %v12265_v15, 4  ;;  %v4517_v49 = vmax.f32 %v12220_v46, 0.0 }
 0x3f9   : > { %v3280_v26 = vsel %vm3261_vm8, %v11805_v29, %v3279_v61  ;;  %969 = vrot.lane.b32.xlu0 %v14565_v59, %s9451_s15  ;;  %v14567_v29 = vld [vmem:[#allocation61_spill] sm:$0xff]  ;;  %s14623_s15 = smov 32  }
 0x3fa   : > { %3308 = vst [vmem:[#allocation4 + $0x23c] sm:$0x44] %v3280_v26  ;;  %2330 = vrot.lane.b32.xlu2 %v14567_v29, %s9461_s27  ;;  %v4300_v19 = vpop.f32.mrf.mxu0  ;;  %v1919_v13 = vsel %vm460_vm2, %v1896_v55, %v1897_v5  ;;  %v8309_v26 = vld [vmem:[#allocation4 + $0x1d8] sm:$0xf]  ;;  %v9170_v16 = vld [vmem:[#allocation4 + $0x1dc] sm:$0xf] }
 0x3fb   : > { %2199 = vrot.lane.b32.xlu1 %v14566_v24, %s14294_s26  ;;  %v12271_v10 = vpop.permute.xlu2 %2981  ;;  %v1920_v25 = vsel %vm14568_vm12, %v11927_v44, %v1919_v13  ;;  %v14570_v24 = vld [vmem:[#allocation20_spill] sm:$0xff]  ;;  %v4515_v29 = vmax.f32 %v4259_v32, 0.0  ;;  %v4261_v19 = vpop.f32.mrf.mxu1  ;;  %vm14574_vm12 = vcmask 1039360   ;;  %s9481_s26 = smov 117   ;;  %s9486_s27 = smov 104  }
 0x3fc   : > { %v2996_v4 = vrot.slane %v12271_v10, 4  ;;  %1948 = vst [vmem:[#allocation4 + $0x110] sm:$0x88] %v1920_v25 }
 0x3fd   : > { %v12268_v12 = vpop.permute.xlu1 %1619 }
 0x3fe   : > { %v1635_v35 = vrot.slane %v12268_v12, 4  ;;  %v3019_v44 = vsel %vm460_vm2, %v2995_v28, %v2996_v4  ;;  %v4272_v13 = vpop.f32.mrf.mxu2  ;;  %v14572_v28 = vld [vmem:[#allocation19_spill] sm:$0xff] }
 0x3ff   : > { %v12303_v25 = vpop.permute.xlu0 %2326 }
 0x400   : > { %v1657_v61 = vsel %vm460_vm2, %v1634_v41, %v1635_v35  ;;  %v3020_v41 = vsel %vm2999_vm5, %v12069_v20, %v3019_v44  ;;  %v4516_v20 = vmax.f32 %v4272_v13, 0.0 }
 0x401   : > { %v1658_v55 = vsel %vm14569_vm11, %v11979_v43, %v1657_v61  ;;  %v9182_v53 = vld [vmem:[#allocation4 + $0x238] sm:$0xf0]  ;;  %v8311_v59 = vld [vmem:[#allocation4 + $0x23c] sm:$0xf0]  ;;  %1362 = vrot.lane.b32.xlu0 %v14570_v24, %s9454_s18  ;;  %3047 = vst [vmem:[#allocation4 + $0x244] sm:$0x11] %v3020_v41  ;;  %v4337_v61 = vpop.f32.mrf.mxu3 }
 0x402   : > { %1686 = vst [vmem:[#allocation4 + $0x110] sm:$0x22] %v1658_v55  ;;  %v8310_v46 = vor.u32 %v9182_v53, %v8309_v26  ;;  %v8314_v45 = vor.u32 %v9170_v16, %v8311_v59  ;;  %v14571_v43 = vld [vmem:[#allocation14_spill] sm:$0xff]  ;;  %1231 = vrot.lane.b32.xlu2 %v14572_v28, %s9453_s17  ;;  %v2342_v26 = vrot.slane %v12303_v25, 4  ;;  %v4521_v32 = vmax.f32 %v4337_v61, 0.0  ;;  %v12308_v55 = vpop.f32.mrf.mxu0  ;;  %s14624_s17 = smov 16  }
 0x403   : > { %1100 = vrot.lane.b32.xlu1 %v14571_v43, %s9452_s16  ;;  %v12311_v2 = vpop.permute.xlu2 %3374  ;;  %v4545_v44 = vpack.c.bf16 %v4516_v20, %v4515_v29  ;;  %v4566_v53 = vpack.c.bf16 %v4517_v49, %v4516_v20  ;;  %v4522_v59 = vmax.f32 %v12308_v55, 0.0  ;;  %v4548_v41 = vrot.slane %v4544_v42, 6  ;;  %v9235_v55 = vld [vmem:[%s14221_s2 + $0x144] sm:$0xf0]  ;;  %s9484_s18 = smov 114  }
 0x404   : > { %4424 = vmatpush.bf16.msrb.mxu2 %v8310_v46  ;;  %4437 = vmatpush.bf16.msrb.mxu3 %v8314_v45  ;;  %v2364_v24 = vsel %vm460_vm2, %v2341_v21, %v2342_v26  ;;  %v3389_v46 = vrot.slane %v12311_v2, 4  ;;  %vm14573_vm11 = vcmask 900096   ;;  %v4518_v42 = vmax.f32 %v12230_v27, 0.0 }
 0x405   : > { %v12306_v16 = vpop.permute.xlu1 %2064  ;;  %v2365_v45 = vsel %vm14573_vm11, %v11960_v51, %v2364_v24  ;;  %v4549_v29 = vrot.slane %v4545_v44, 6  ;;  %vm14577_vm11 = vcmask 875520  }
 0x406   : > { %v2080_v17 = vrot.slane %v12306_v16, 4  ;;  %2393 = vst [vmem:[#allocation4 + $0x174] sm:$0x88] %v2365_v45  ;;  %v3412_v21 = vsel %vm460_vm2, %v3388_v22, %v3389_v46  ;;  %v4274_v19 = vpop.f32.mrf.mxu2 }
 0x407   : > { %v3413_v51 = vsel %vm14291_vm6, %v12105_v7, %v3412_v21  ;;  %v12341_v13 = vpop.permute.xlu0 %2720  ;;  %vm14584_vm6 = vcmask 171008  }
 0x408   : > { %v2102_v49 = vsel %vm460_vm2, %v2079_v14, %v2080_v17  ;;  %v4584_v14 = vpack.c.bf16 %v4522_v59, %v4521_v32  ;;  %3440 = vst [vmem:[#allocation4 + $0x244] sm:$0x88] %v3413_v51  ;;  %v2735_v7 = vrot.slane %v12341_v13, 4 }
 0x409   : > { %v2103_v43 = vsel %vm14574_vm12, %v12014_v47, %v2102_v49  ;;  %4570 = vrot.lane.b32.xlu0 %v4566_v53, %s14575_s28  ;;  %v4311_v47 = vpop.f32.mrf.mxu1  ;;  %v4339_v22 = vpop.f32.mrf.mxu3  ;;  %vm14579_vm12 = vcmask 728064  }
 0x40a   : > { %2131 = vst [vmem:[#allocation4 + $0x174] sm:$0x22] %v2103_v43  ;;  %v4519_v28 = vmax.f32 %v4311_v47, 0.0  ;;  %4552 = vrot.lane.b32.xlu2 %v4549_v29, %s14576_s29  ;;  %v4352_v61 = vpop.f32.mrf.mxu0  ;;  %v4588_v27 = vrot.slane %v4584_v14, 6  ;;  %v2758_v53 = vsel %vm460_vm2, %v2734_v58, %v2735_v7  ;;  %v8209_v29 = vld [vmem:[#allocation4 + $0x110] sm:$0xf] }
 0x40b   : > { %4550 = vrot.lane.b32.xlu1 %v4548_v41, %s14576_s29  ;;  %v12348_v44 = vpop.permute.xlu2 %1358  ;;  %v2759_v45 = vsel %vm14577_vm11, %v12135_v0, %v2758_v53  ;;  %v9145_v43 = vld [vmem:[#allocation4 + $0x114] sm:$0xf]  ;;  %vm14580_vm11 = vcmask 146432  }
 0x40c   : > { %v1374_v41 = vrot.slane %v12348_v44, 4  ;;  %v4567_v24 = vpack.c.bf16 %v4519_v28, %v4518_v42  ;;  %2786 = vst [vmem:[#allocation4 + $0x1e0] sm:$0x44] %v2759_v45 }
 0x40d   : > { %v12345_v20 = vpop.permute.xlu1 %2458 }
 0x40e   : > { %v2473_v32 = vrot.slane %v12345_v20, 4  ;;  %v1396_v58 = vsel %vm460_vm2, %v1373_v34, %v1374_v41 }
 0x40f   : > { %v1397_v14 = vsel %vm1378_vm3, %v12001_v52, %v1396_v58  ;;  %v12374_v47 = vpop.permute.xlu0 %3112 }
 0x410   : > { %v2496_v49 = vsel %vm460_vm2, %v2472_v39, %v2473_v32  ;;  %1425 = vst [vmem:[#allocation4 + $0xac] sm:$0x88] %v1397_v14  ;;  %v3127_v34 = vrot.slane %v12374_v47, 4 }
 0x411   : > { %v2497_v21 = vsel %vm2476_vm15, %v12140_v18, %v2496_v49  ;;  %v9157_v51 = vld [vmem:[#allocation4 + $0x170] sm:$0xf0]  ;;  %v8211_v0 = vld [vmem:[#allocation4 + $0x174] sm:$0xf0]  ;;  %4591 = vrot.lane.b32.xlu0 %v4588_v27, %s14578_s7  ;;  %v4313_v18 = vpop.f32.mrf.mxu1 }
 0x412   : > { %2524 = vst [vmem:[#allocation4 + $0x1e0] sm:$0x11] %v2497_v21  ;;  %v8210_v42 = vor.u32 %v9157_v51, %v8209_v29  ;;  %v8214_v39 = vor.u32 %v9145_v43, %v8211_v0  ;;  %v3150_v52 = vsel %vm460_vm2, %v3126_v57, %v3127_v34  ;;  %v4324_v29 = vpop.f32.mrf.mxu2 }
 0x413   : > { %4572 = vrot.lane.b32.xlu1 %v4567_v24, %s14575_s28  ;;  %v12380_v61 = vpop.permute.xlu2 %1621  ;;  %v3151_v53 = vsel %vm14579_vm12, %v12175_v9, %v3150_v52  ;;  %v4520_v21 = vmax.f32 %v4324_v29, 0.0  ;;  %vm14581_vm12 = vcmask 1039360  }
 0x414   : > { %4425 = vmatpush.bf16.msrb.mxu2 %v8210_v42  ;;  %4438 = vmatpush.bf16.msrb.mxu3 %v8214_v39  ;;  %v1636_v27 = vrot.slane %v12380_v61, 4  ;;  %3178 = vst [vmem:[#allocation4 + $0x244] sm:$0x22] %v3151_v53 }
 0x415   : > { %v12377_v19 = vpop.permute.xlu1 %2851  ;;  %v4583_v51 = vpack.c.bf16 %v4520_v21, %v4519_v28  ;;  %v14585_v21 = vld [vmem:[#allocation51_spill] sm:$0xff] }
 0x416   : > { %v2866_v22 = vrot.slane %v12377_v19, 4  ;;  %v1659_v57 = vsel %vm460_vm2, %v1635_v35, %v1636_v27 }
 0x417   : > { %v1660_v9 = vsel %vm14580_vm11, %v12268_v12, %v1659_v57  ;;  %v12404_v49 = vpop.permute.xlu0 %1096  ;;  %v4587_v28 = vrot.slane %v4583_v51, 6  ;;  %vm14582_vm11 = vcmask 703488  }
 0x418   : > { %v2889_v24 = vsel %vm460_vm2, %v2865_v3, %v2866_v22  ;;  %1687 = vst [vmem:[#allocation4 + $0x118] sm:$0x22] %v1660_v9  ;;  %v1112_v3 = vrot.slane %v12404_v49, 4 }
 0x419   : > { %v2890_v45 = vsel %vm14296_vm1, %v12178_v48, %v2889_v24  ;;  %4589 = vrot.lane.b32.xlu2 %v4587_v28, %s14578_s7 }
 0x41a   : > { %2917 = vst [vmem:[#allocation4 + $0x1e0] sm:$0x88] %v2890_v45  ;;  %v1134_v35 = vsel %vm460_vm2, %v1111_v63, %v1112_v3 }
 0x41b   : > { %v12410_v58 = vpop.permute.xlu2 %2066  ;;  %v1135_v0 = vsel %vm1116_vm10, %v12061_v62, %v1134_v35  ;;  %v14586_v35 = vrot.slane %v14585_v21, 4 }
 0x41c   : > { %v2081_v12 = vrot.slane %v12410_v58, 4  ;;  %1163 = vst [vmem:[#allocation4 + $0xac] sm:$0x22] %v1135_v0 }
 0x41d   : > { %v12407_v43 = vpop.permute.xlu1 %3243 }
 0x41e   : > { %v3258_v48 = vrot.slane %v12407_v43, 4  ;;  %v2104_v63 = vsel %vm460_vm2, %v2080_v17, %v2081_v12 }
 0x41f   : > { %v2105_v62 = vsel %vm14581_vm12, %v12306_v16, %v2104_v63  ;;  %v3507_v39 = vpop.permute.xlu0 %3506  ;;  %vm14583_vm12 = vmmov %vm14582_vm11 }
 0x420   : > { %v3281_v14 = vsel %vm460_vm2, %v3257_v56, %v3258_v48  ;;  %2132 = vst [vmem:[#allocation4 + $0x17c] sm:$0x22] %v2105_v62  ;;  %v4326_v56 = vpop.f32.mrf.mxu2  ;;  %v3520_v18 = vrot.slane %v3507_v39, 4 }
 0x421   : > { %v3282_v42 = vsel %vm3261_vm8, %v12223_v8, %v3281_v14  ;;  %v8317_v9 = vld [vmem:[#allocation4 + $0x1e0] sm:$0xf]  ;;  %v9171_v29 = vld [vmem:[#allocation4 + $0x1e4] sm:$0xf] }
 0x422   : > { %3309 = vst [vmem:[#allocation4 + $0x244] sm:$0x44] %v3282_v42  ;;  %v3544_v17 = vsel %vm460_vm2, %v3519_v1, %v3520_v18  ;;  %v3546_v24 = vsel %vm14582_vm11, %v3507_v39, %v3520_v18  ;;  %vm14587_vm11 = vcmask 310272  }
 0x423   : > { %v12438_v53 = vpop.permute.xlu2 %967  ;;  %v3545_v45 = vsel %vm14583_vm12, %v12099_v31, %v3544_v17  ;;  %3572 = vst [vmem:[#allocation4 + $0x2b8] sm:$0x1] %v3546_v24 }
 0x424   : > { %v982_v16 = vrot.slane %v12438_v53, 4  ;;  %3571 = vst [vmem:[#allocation4 + $0x2b0] sm:$0x11] %v3545_v45  ;;  %v8109_v45 = vld [vmem:[#allocation4 + $0x48] sm:$0xf] }
 0x425   : > { %v12435_v52 = vpop.permute.xlu1 %1227 }
 0x426   : > { %v1243_v8 = vrot.slane %v12435_v52, 4  ;;  %v1005_v51 = vsel %vm460_vm2, %v14586_v35, %v982_v16 }
 0x427   : > { %v1006_v14 = vsel %vm14587_vm11, %v14585_v21, %v1005_v51  ;;  %v12461_v63 = vpop.permute.xlu0 %1752  ;;  %vm14590_vm11 = vcmask 7168  }
 0x428   : > { %v1265_v57 = vsel %vm460_vm2, %v1242_v33, %v1243_v8  ;;  %1033 = vst [vmem:[#allocation4 + $0xb4] sm:$0x11] %v1006_v14 }
 0x429   : > { %v1266_v1 = vsel %vm14584_vm6, %v12102_v23, %v1265_v57  ;;  %v9183_v31 = vld [vmem:[#allocation4 + $0x240] sm:$0xf0]  ;;  %v8319_v0 = vld [vmem:[#allocation4 + $0x244] sm:$0xf0]  ;;  %v1767_v23 = vrot.slane %v12461_v63, 4  ;;  %vm14588_vm6 = vcmask 1040384  }
 0x42a   : > { %1294 = vst [vmem:[#allocation4 + $0xac] sm:$0x44] %v1266_v1  ;;  %v8318_v42 = vor.u32 %v9183_v31, %v8317_v9  ;;  %v8322_v33 = vor.u32 %v9171_v29, %v8319_v0  ;;  %v9120_v57 = vld [vmem:[#allocation4 + $0x4c] sm:$0xf]  ;;  %vm14589_vm12 = vmmov %vm14588_vm6 }
 0x42b   : > { %v12467_v39 = vpop.permute.xlu2 %1360  ;;  %v1790_v56 = vsel %vm460_vm2, %v1766_v60, %v1767_v23  ;;  %v3663_v9 = vld [vmem:[#allocation4 + $0x2b0] sm:$0x11] }
 0x42c   : > { %4450 = vmatpush.bf16.msra.mxu0 %v8318_v42  ;;  %4463 = vmatpush.bf16.msra.mxu1 %v8322_v33  ;;  %v1375_v18 = vrot.slane %v12467_v39, 4  ;;  %v1791_v17 = vsel %vm1770_vm7, %v12145_v40, %v1790_v56  ;;  %v3928_v21 = vunpack.c.l.b16 %v3663_v9  ;;  %v3929_v35 = vunpack.c.h.b16 %v3663_v9 }
 0x42d   : > { %v12464_v62 = vpop.permute.xlu1 %1490  ;;  %1818 = vst [vmem:[#allocation4 + $0x118] sm:$0x44] %v1791_v17 }
 0x42e   : > { %v1505_v28 = vrot.slane %v12464_v62, 4  ;;  %v1398_v60 = vsel %vm460_vm2, %v1374_v41, %v1375_v18  ;;  %v4028_v0 = vpack.c.b16 %v3928_v21, %v3928_v21  ;;  %v4029_v14 = vpack.c.b16 %v3929_v35, %v3929_v35 }
 0x430   : > { %v1528_v24 = vsel %vm460_vm2, %v1504_v36, %v1505_v28  ;;  %v1399_v36 = vsel %vm1378_vm3, %v12348_v44, %v1398_v60  ;;  %v4177_v33 = vsel %vm14588_vm6, %v4028_v0, 0  ;;  %v4180_v56 = vsel %vm14589_vm12, %v4029_v14, 0 }
 0x431   : > { %v1529_v29 = vsel %vm1508_vm14, %v12217_v6, %v1528_v24  ;;  %v9132_v40 = vld [vmem:[#allocation4 + $0xa8] sm:$0xf0]  ;;  %v8111_v1 = vld [vmem:[#allocation4 + $0xac] sm:$0xf0]  ;;  %1426 = vst [vmem:[#allocation4 + $0xb4] sm:$0x88] %v1399_v36  ;;  %v12491_v6 = vpop.permute.xlu0 %2197 }
 0x432   : > { %1556 = vst [vmem:[#allocation4 + $0x118] sm:$0x11] %v1529_v29  ;;  %v8110_v51 = vor.u32 %v9132_v40, %v8109_v45  ;;  %v8114_v31 = vor.u32 %v9120_v57, %v8111_v1  ;;  %v2212_v42 = vrot.slane %v12491_v6, 4  ;;  %vm14591_vm6 = vcmask 875520  }
 0x433   : > { %v2723_v44 = vpop.permute.xlu2 %2722  ;;  %vm14592_vm12 = vmmov %vm14591_vm6 }
 0x434   : > { %4426 = vmatpush.bf16.msrb.mxu2 %v8110_v51  ;;  %4439 = vmatpush.bf16.msrb.mxu3 %v8114_v31  ;;  %v2235_v24 = vsel %vm460_vm2, %v2211_v38, %v2212_v42  ;;  %v2736_v45 = vrot.slane %v2723_v44, 4 }
 0x435   : > { %v12494_v41 = vpop.permute.xlu1 %1883  ;;  %v2236_v57 = vsel %vm14297_vm4, %v12183_v37, %v2235_v24  ;;  %v3664_v24 = vld [vmem:[#allocation4 + $0x2b8] sm:$0x1] }
 0x436   : > { %v1898_v17 = vrot.slane %v12494_v41, 4  ;;  %2263 = vst [vmem:[#allocation4 + $0x17c] sm:$0x44] %v2236_v57  ;;  %v2760_v29 = vsel %vm460_vm2, %v2735_v7, %v2736_v45  ;;  %v2762_v60 = vsel %vm14591_vm6, %v2723_v44, %v2736_v45  ;;  %vm14594_vm6 = vcmask 728064  }
 0x437   : > { %8353 = vmatmul.msk.bf16.vlgmr.msrb.gmra.mxu2 %vm4106_vm13, %v12025_v11  ;;  %8354 = vmatmul.msk.bf16.vlgmr.msrb.gmra.mxu3 %vm4106_vm13, %v12025_v11  ;;  %v2761_v37 = vsel %vm14592_vm12, %v12341_v13, %v2760_v29  ;;  %2788 = vst [vmem:[#allocation4 + $0x1f0] sm:$0x4] %v2762_v60  ;;  %vm14595_vm12 = vmmov %vm14594_vm6 }
 0x438   : > { %4475 = vmatpush.bf16.msra.mxu2 %v4177_v33  ;;  %4488 = vmatpush.bf16.msra.mxu3 %v4180_v56  ;;  %v1921_v9 = vsel %vm460_vm2, %v1897_v5, %v1898_v17  ;;  %2787 = vst [vmem:[#allocation4 + $0x1e8] sm:$0x44] %v2761_v37 }
 0x439   : > { %v1922_v38 = vsel %vm14590_vm11, %v12265_v15, %v1921_v9  ;;  %v12523_v40 = vpop.permute.xlu0 %1098  ;;  %vm14593_vm11 = vcmask 900096  }
 0x43a   : > { %1949 = vst [vmem:[#allocation4 + $0x118] sm:$0x88] %v1922_v38  ;;  %v1113_v5 = vrot.slane %v12523_v40, 4 }
 0x43b   : > { %v3115_v21 = vpop.permute.xlu2 %3114 }
 0x43c   : > { %v1136_v7 = vsel %vm460_vm2, %v1112_v3, %v1113_v5  ;;  %v3128_v35 = vrot.slane %v3115_v21, 4 }
 0x43d   : > { %v12526_v1 = vpop.permute.xlu1 %2328  ;;  %v1137_v13 = vsel %vm1116_vm10, %v12404_v49, %v1136_v7 }
 0x43e   : > { %v2343_v15 = vrot.slane %v12526_v1, 4  ;;  %1164 = vst [vmem:[#allocation4 + $0xb4] sm:$0x22] %v1137_v13  ;;  %v3152_v31 = vsel %vm460_vm2, %v3127_v34, %v3128_v35  ;;  %v3154_v3 = vsel %vm14594_vm6, %v3115_v21, %v3128_v35  ;;  %vm14600_vm6 = vcmask 900096  }
 0x43f   : > { %v3153_v49 = vsel %vm14595_vm12, %v12374_v47, %v3152_v31  ;;  %3180 = vst [vmem:[#allocation4 + $0x254] sm:$0x2] %v3154_v3 }
 0x440   : > { %v2366_v36 = vsel %vm460_vm2, %v2342_v26, %v2343_v15  ;;  %3179 = vst [vmem:[#allocation4 + $0x24c] sm:$0x22] %v3153_v49 }
 0x441   : > { %v2367_v51 = vsel %vm14593_vm11, %v12303_v25, %v2366_v36  ;;  %v2461_v0 = vpop.permute.xlu0 %2460  ;;  %v8217_v57 = vld [vmem:[#allocation4 + $0x118] sm:$0xf]  ;;  %v9146_v9 = vld [vmem:[#allocation4 + $0x11c] sm:$0xf]  ;;  %vm14596_vm11 = vcmask 171008  }
 0x442   : > { %2394 = vst [vmem:[#allocation4 + $0x17c] sm:$0x88] %v2367_v51  ;;  %v2474_v14 = vrot.slane %v2461_v0, 4 }
 0x443   : > { %v1493_v56 = vpop.permute.xlu2 %1492 }
 0x444   : > { %v2498_v25 = vsel %vm460_vm2, %v2473_v32, %v2474_v14  ;;  %v2500_v34 = vsel %vm2476_vm15, %v2461_v0, %v2474_v14  ;;  %v1506_v44 = vrot.slane %v1493_v56, 4  ;;  %v8117_v14 = vld [vmem:[#allocation4 + $0x50] sm:$0xf] }
 0x445   : > { %v12549_v33 = vpop.permute.xlu1 %1229  ;;  %v2499_v47 = vsel %vm2476_vm15, %v12345_v20, %v2498_v25  ;;  %2526 = vst [vmem:[#allocation4 + $0x1f0] sm:$0x1] %v2500_v34 }
 0x446   : > { %v1244_v26 = vrot.slane %v12549_v33, 4  ;;  %2525 = vst [vmem:[#allocation4 + $0x1e8] sm:$0x11] %v2499_v47  ;;  %v1530_v38 = vsel %vm460_vm2, %v1505_v28, %v1506_v44  ;;  %v1532_v29 = vsel %vm1508_vm14, %v1493_v56, %v1506_v44  ;;  %v9121_v56 = vld [vmem:[#allocation4 + $0x54] sm:$0xf] }
 0x447   : > { %v1531_v37 = vsel %vm1508_vm14, %v12464_v62, %v1530_v38  ;;  %1558 = vst [vmem:[#allocation4 + $0x128] sm:$0x1] %v1532_v29  ;;  %vm14597_vm14 = vcmask 7168  }
 0x448   : > { %v1267_v45 = vsel %vm460_vm2, %v1243_v8, %v1244_v26  ;;  %1557 = vst [vmem:[#allocation4 + $0x120] sm:$0x11] %v1531_v37  ;;  %vm14598_vm15 = vmmov %vm14597_vm14 }
 0x449   : > { %v1268_v32 = vsel %vm14596_vm11, %v12435_v52, %v1267_v45  ;;  %v9158_v20 = vld [vmem:[#allocation4 + $0x178] sm:$0xf0]  ;;  %v8219_v60 = vld [vmem:[#allocation4 + $0x17c] sm:$0xf0]  ;;  %v2854_v7 = vpop.permute.xlu0 %2853  ;;  %v3930_v52 = vunpack.c.l.b16 %v3664_v24  ;;  %vm14604_vm11 = vcmask 711680  }
 0x44a   : > { %1295 = vst [vmem:[#allocation4 + $0xb4] sm:$0x44] %v1268_v32  ;;  %v8218_v21 = vor.u32 %v9158_v20, %v8217_v57  ;;  %v8222_v8 = vor.u32 %v9146_v9, %v8219_v60  ;;  %v2867_v35 = vrot.slane %v2854_v7, 4 }
 0x44b   : > { %v4030_v25 = vpack.c.b16 %v3930_v52, %v3930_v52 }
 0x44c   : > { %4451 = vmatpush.bf16.msra.mxu0 %v8218_v21  ;;  %4464 = vmatpush.bf16.msra.mxu1 %v8222_v8  ;;  %v1886_v28 = vpop.permute.xlu2 %1885  ;;  %v2891_v51 = vsel %vm460_vm2, %v2866_v22, %v2867_v35  ;;  %v2893_v31 = vsel %vm14296_vm1, %v2854_v7, %v2867_v35 }
 0x44d   : > { %v2592_v13 = vpop.permute.xlu1 %2591  ;;  %v1899_v3 = vrot.slane %v1886_v28, 4  ;;  %v2892_v62 = vsel %vm14296_vm1, %v12377_v19, %v2891_v51  ;;  %2919 = vst [vmem:[#allocation4 + $0x1f0] sm:$0x8] %v2893_v31  ;;  %vm14644_vm1 = vcmask 261120  }
 0x44e   : > { %v2605_v36 = vrot.slane %v2592_v13, 4  ;;  %2918 = vst [vmem:[#allocation4 + $0x1e8] sm:$0x88] %v2892_v62 }
 0x44f   : > { %v1923_v34 = vsel %vm460_vm2, %v1898_v17, %v1899_v3 }
 0x450   : > { %v2629_v49 = vsel %vm460_vm2, %v2604_v30, %v2605_v36  ;;  %v2631_v0 = vsel %vm2607_vm0, %v2592_v13, %v2605_v36  ;;  %v1924_v24 = vsel %vm14597_vm14, %v12494_v41, %v1923_v34  ;;  %v1925_v30 = vsel %vm14598_vm15, %v1886_v28, %v1899_v3  ;;  %vm14605_vm14 = vmmov %vm14604_vm11 }
 0x451   : > { %v2630_v22 = vsel %vm2607_vm0, %v12233_v50, %v2629_v49  ;;  %v9133_v44 = vld [vmem:[#allocation4 + $0xb0] sm:$0xf0]  ;;  %v8119_v19 = vld [vmem:[#allocation4 + $0xb4] sm:$0xf0]  ;;  %2657 = vst [vmem:[#allocation4 + $0x1f0] sm:$0x2] %v2631_v0 }
 0x452   : > { %2656 = vst [vmem:[#allocation4 + $0x1e8] sm:$0x22] %v2630_v22  ;;  %v8118_v47 = vor.u32 %v9133_v44, %v8117_v14  ;;  %v8122_v45 = vor.u32 %v9121_v56, %v8119_v19  ;;  %vm14599_vm0 = vcmask 1040384   ;;  %vm14606_vm15 = vcmask 171008  }
 0x453   : > { %1950 = vst [vmem:[#allocation4 + $0x120] sm:$0x88] %v1924_v24  ;;  %v3246_v57 = vpop.permute.xlu0 %3245  ;;  %v4183_v50 = vsel %vm14599_vm0, %v4030_v25, 0  ;;  %vm14607_vm0 = vmmov %vm14606_vm15 }
 0x454   : > { %4452 = vmatpush.bf16.msra.mxu0 %v8118_v47  ;;  %4465 = vmatpush.bf16.msra.mxu1 %v8122_v45  ;;  %1951 = vst [vmem:[#allocation4 + $0x128] sm:$0x8] %v1925_v30  ;;  %v3259_v9 = vrot.slane %v3246_v57, 4  ;;  %v2331_v38 = vpop.permute.xlu2 %2330  ;;  %v8450_v45 = vld [vmem:[%s14221_s2 + $0x70] sm:$0xf] }
 0x455   : > { %v2984_v17 = vpop.permute.xlu1 %2983  ;;  %v2344_v20 = vrot.slane %v2331_v38, 4 }
 0x456   : > { %v2997_v32 = vrot.slane %v2984_v17, 4  ;;  %v3283_v41 = vsel %vm460_vm2, %v3258_v48, %v3259_v9  ;;  %v3285_v29 = vsel %vm3261_vm8, %v3246_v57, %v3259_v9 }
 0x457   : > { %8355 = vmatmul.msk.bf16.vlgmr.msra.gmra.mxu0 %vm4106_vm13, %v12025_v11  ;;  %8356 = vmatmul.msk.bf16.vlgmr.msra.gmra.mxu1 %vm4106_vm13, %v12025_v11  ;;  %v3284_v60 = vsel %vm3261_vm8, %v12407_v43, %v3283_v41  ;;  %3311 = vst [vmem:[#allocation4 + $0x254] sm:$0x4] %v3285_v29  ;;  %v2368_v8 = vsel %vm460_vm2, %v2343_v15, %v2344_v20  ;;  %vm14601_vm8 = vmmov %vm14600_vm6  ;;  %v8442_v29 = vld [vmem:[%s14221_s2 + $0x60] sm:$0xf] }
 0x458   : > { %4501 = vmatpush.bf16.msrb.mxu0 %v4183_v50  ;;  %v3021_v37 = vsel %vm460_vm2, %v2996_v4, %v2997_v32  ;;  %v3023_v21 = vsel %vm2999_vm5, %v2984_v17, %v2997_v32  ;;  %3310 = vst [vmem:[#allocation4 + $0x24c] sm:$0x44] %v3284_v60  ;;  %v2369_v11 = vsel %vm14600_vm6, %v12526_v1, %v2368_v8  ;;  %vm14608_vm6 = vcmask 1039360   ;;  %v8333_v19 = vld [vmem:[#allocation4 + $0x1f0] sm:$0xf] }
 0x459   : > { %v3022_v48 = vsel %vm2999_vm5, %v12271_v10, %v3021_v37  ;;  %v2370_v43 = vsel %vm14601_vm8, %v2331_v38, %v2344_v20  ;;  %3049 = vst [vmem:[#allocation4 + $0x254] sm:$0x1] %v3023_v21  ;;  %vm14602_vm5 = vcmask 146432   ;;  %vm14609_vm8 = vmmov %vm14608_vm6  ;;  %v8325_v25 = vld [vmem:[#allocation4 + $0x1e8] sm:$0xf] }
 0x45a   : > { %3048 = vst [vmem:[#allocation4 + $0x24c] sm:$0x11] %v3022_v48  ;;  %vm14603_vm12 = vmmov %vm14602_vm5  ;;  %v9172_v22 = vld [vmem:[#allocation4 + $0x1ec] sm:$0xf]  ;;  %v8548_v8 = vld [vmem:[%s14221_s2 + $0x138] sm:$0xf0] }
 0x45b   : > { %2395 = vst [vmem:[#allocation4 + $0x184] sm:$0x88] %v2369_v11  ;;  %v1624_v7 = vpop.permute.xlu0 %1623  ;;  %v9207_v20 = vld [vmem:[%s14221_s2 + $0x64] sm:$0xf0] }
 0x45c   : > { %2396 = vst [vmem:[#allocation4 + $0x18c] sm:$0x8] %v2370_v43  ;;  %v1637_v4 = vrot.slane %v1624_v7, 4  ;;  %v1232_v13 = vpop.permute.xlu2 %1231  ;;  %v8443_v11 = vor.u32 %v9207_v20, %v8442_v29  ;;  %v9205_v43 = vld [vmem:[%s14221_s2 + $0x54] sm:$0xf0] }
 0x45d   : > { %v3377_v52 = vpop.permute.xlu1 %3376  ;;  %v1245_v36 = vrot.slane %v1232_v13, 4 }
 0x45e   : > { %v3390_v35 = vrot.slane %v3377_v52, 4  ;;  %v1661_v10 = vsel %vm460_vm2, %v1636_v27, %v1637_v4  ;;  %v1663_v15 = vsel %vm14602_vm5, %v1624_v7, %v1637_v4  ;;  %vm4562_vm5 = vcmask 1043458  }
 0x45f   : > { %v1662_v1 = vsel %vm14603_vm12, %v12380_v61, %v1661_v10  ;;  %1689 = vst [vmem:[#allocation4 + $0x128] sm:$0x2] %v1663_v15  ;;  %v1269_v27 = vsel %vm460_vm2, %v1244_v26, %v1245_v36  ;;  %v1271_v61 = vsel %vm14607_vm0, %v1232_v13, %v1245_v36  ;;  %vm4563_vm12 = vcmask 130054   ;;  %v8426_v15 = vld [vmem:[%s14221_s2 + $0x40] sm:$0xf] }
 0x460   : > { %v3414_v28 = vsel %vm460_vm2, %v3389_v46, %v3390_v35  ;;  %v3416_v51 = vsel %vm14604_vm11, %v3377_v52, %v3390_v35  ;;  %1688 = vst [vmem:[#allocation4 + $0x120] sm:$0x22] %v1662_v1  ;;  %v1270_v3 = vsel %vm14606_vm15, %v12549_v33, %v1269_v27  ;;  %vm14610_vm11 = vcmask 310272   ;;  %vm12670_vm15 = vmor %vm4563_vm12, %vm4562_vm5  ;;  %v9203_v36 = vld [vmem:[%s14221_s2 + $0x44] sm:$0xf0] }
 0x461   : > { %v3415_v31 = vsel %vm14605_vm14, %v12311_v2, %v3414_v28  ;;  %3442 = vst [vmem:[#allocation4 + $0x254] sm:$0x8] %v3416_v51  ;;  %vm14611_vm14 = vmmov %vm14610_vm11  ;;  %vm14614_vm0 = vcmask 916480   ;;  %v8427_v27 = vor.u32 %v9203_v36, %v8426_v15  ;;  %v4363_v15 = vpop.f32.mrf.mxu1 }
 0x462   : > { %3441 = vst [vmem:[#allocation4 + $0x24c] sm:$0x88] %v3415_v31 }
 0x463   : > { %1296 = vst [vmem:[#allocation4 + $0xbc] sm:$0x44] %v1270_v3  ;;  %v2069_v62 = vpop.permute.xlu0 %2068 }
 0x464   : > { %1297 = vst [vmem:[#allocation4 + $0xc4] sm:$0x4] %v1271_v61  ;;  %v2082_v46 = vrot.slane %v2069_v62, 4  ;;  %v12652_v41 = vpop.permute.xlu2 %4552 }
 0x465   : > { %v1755_v49 = vpop.permute.xlu1 %1754  ;;  %v4555_v21 = vrot.slane %v12652_v41, 4 }
 0x466   : > { %v1768_v0 = vrot.slane %v1755_v49, 4  ;;  %v2106_v2 = vsel %vm460_vm2, %v2081_v12, %v2082_v46  ;;  %v2108_v14 = vsel %vm14608_vm6, %v2069_v62, %v2082_v46  ;;  %vm14616_vm6 = vcmask 654336  }
 0x467   : > { %v2107_v26 = vsel %vm14609_vm8, %v12410_v58, %v2106_v2  ;;  %2134 = vst [vmem:[#allocation4 + $0x18c] sm:$0x2] %v2108_v14  ;;  %v9201_v14 = vld [vmem:[%s14221_s2 + $0x34] sm:$0xf0]  ;;  %vm14617_vm8 = vcmask 785408   ;;  %vm14618_vm12 = vmmov %vm14616_vm6 }
 0x468   : > { %v1792_v33 = vsel %vm460_vm2, %v1767_v23, %v1768_v0  ;;  %v1794_v56 = vsel %vm1770_vm7, %v1755_v49, %v1768_v0  ;;  %2133 = vst [vmem:[#allocation4 + $0x184] sm:$0x22] %v2107_v26  ;;  %v9185_v24 = vld [vmem:[#allocation4 + $0x250] sm:$0xf0] }
 0x469   : > { %v1793_v34 = vsel %vm1770_vm7, %v12461_v63, %v1792_v33  ;;  %v9184_v44 = vld [vmem:[#allocation4 + $0x248] sm:$0xf0]  ;;  %v8327_v12 = vld [vmem:[#allocation4 + $0x24c] sm:$0xf0]  ;;  %1820 = vst [vmem:[#allocation4 + $0x128] sm:$0x4] %v1794_v56  ;;  %v8334_v47 = vor.u32 %v9185_v24, %v8333_v19 }
 0x46a   : > { %1819 = vst [vmem:[#allocation4 + $0x120] sm:$0x44] %v1793_v34  ;;  %v8326_v30 = vor.u32 %v9184_v44, %v8325_v25  ;;  %v8330_v58 = vor.u32 %v9172_v22, %v8327_v12  ;;  %v9209_v63 = vld [vmem:[%s14221_s2 + $0x74] sm:$0xf0]  ;;  %v8514_v33 = vld [vmem:[%s14221_s2 + $0xf0] sm:$0xf] }
 0x46b   : > { %v970_v23 = vpop.permute.xlu0 %969  ;;  %4502 = vmatpush.bf16.msrb.mxu0 %v8334_v47  ;;  %v8451_v9 = vor.u32 %v9209_v63, %v8450_v45  ;;  %v8410_v25 = vld [vmem:[%s14221_s2 + $0x20] sm:$0xf]  ;;  %v9225_v22 = vld [vmem:[%s14221_s2 + $0xf4] sm:$0xf0]  ;;  %v9199_v44 = vld [vmem:[%s14221_s2 + $0x24] sm:$0xf0] }
 0x46c   : > { %4476 = vmatpush.bf16.msra.mxu2 %v8326_v30  ;;  %4489 = vmatpush.bf16.msra.mxu3 %v8330_v58  ;;  %v983_v57 = vrot.slane %v970_v23, 4  ;;  %v8125_v12 = vld [vmem:[#allocation4 + $0x58] sm:$0xf]  ;;  %v9241_v24 = vld [vmem:[%s14221_s2 + $0x174] sm:$0xf0]  ;;  %v8411_v30 = vor.u32 %v9199_v44, %v8410_v25 }
 0x46d   : > { %v2200_v50 = vpop.permute.xlu1 %2199  ;;  %5027 = vmatpush.bf16.msrb.mxu1 %v8451_v9  ;;  %v8578_v19 = vld [vmem:[%s14221_s2 + $0x170] sm:$0xf]  ;;  %v8133_v58 = vld [vmem:[#allocation4 + $0x60] sm:$0xf]  ;;  %v9122_v47 = vld [vmem:[#allocation4 + $0x5c] sm:$0xf] }
 0x46e   : > { %v2213_v17 = vrot.slane %v2200_v50, 4  ;;  %v1007_v32 = vsel %vm460_vm2, %v982_v16, %v983_v57  ;;  %v1009_v38 = vsel %vm14610_vm11, %v970_v23, %v983_v57  ;;  %v8506_v23 = vld [vmem:[%s14221_s2 + $0xe0] sm:$0xf]  ;;  %v9223_v45 = vld [vmem:[%s14221_s2 + $0xe4] sm:$0xf0]  ;;  %vm14619_vm11 = vmmov %vm14617_vm8 }
 0x46f   : > { %v1008_v60 = vsel %vm14611_vm14, %v12438_v53, %v1007_v32  ;;  %1035 = vst [vmem:[#allocation4 + $0xc4] sm:$0x1] %v1009_v38  ;;  %v4558_v53 = vsel %vm14614_vm0, %v12652_v41, %v4555_v21  ;;  %v8402_v38 = vld [vmem:[%s14221_s2 + $0x10] sm:$0xf]  ;;  %v9197_v41 = vld [vmem:[%s14221_s2 + $0x14] sm:$0xf0] }
 0x470   : > { %v2237_v16 = vsel %vm460_vm2, %v2212_v42, %v2213_v17  ;;  %v2239_v37 = vsel %vm14297_vm4, %v2200_v50, %v2213_v17  ;;  %1034 = vst [vmem:[#allocation4 + $0xbc] sm:$0x11] %v1008_v60  ;;  %v8233_v46 = vld [vmem:[#allocation4 + $0x128] sm:$0xf]  ;;  %v8515_v17 = vor.u32 %v9225_v22, %v8514_v33  ;;  %v9219_v22 = vld [vmem:[%s14221_s2 + $0xc4] sm:$0xf0] }
 0x471   : > { %v2238_v48 = vsel %vm14297_vm4, %v12491_v6, %v2237_v16  ;;  %2265 = vst [vmem:[#allocation4 + $0x18c] sm:$0x4] %v2239_v37  ;;  %5028 = vmatpush.bf16.msrb.mxu1 %v8443_v11  ;;  %v8434_v6 = vld [vmem:[%s14221_s2 + $0x50] sm:$0xf]  ;;  %v8225_v51 = vld [vmem:[#allocation4 + $0x120] sm:$0xf]  ;;  %v8579_v16 = vor.u32 %v9241_v24, %v8578_v19 }
 0x472   : > { %2264 = vst [vmem:[#allocation4 + $0x184] sm:$0x44] %v2238_v48  ;;  %v8435_v52 = vor.u32 %v9205_v43, %v8434_v6  ;;  %v9147_v31 = vld [vmem:[#allocation4 + $0x124] sm:$0xf]  ;;  %v9239_v48 = vld [vmem:[%s14221_s2 + $0x164] sm:$0xf0] }
 0x473   : > { %v1363_v42 = vpop.permute.xlu0 %1362  ;;  %4565 = vst.msk [vmem:[#allocation6 + $0x8] sm:$0xcc] %vm12670_vm15, %v4558_v53  ;;  %v4590_v57 = vpop.permute.xlu2 %4589  ;;  %v9221_v6 = vld [vmem:[%s14221_s2 + $0xd4] sm:$0xf0]  ;;  %v8490_v25 = vld [vmem:[%s14221_s2 + $0xc0] sm:$0xf] }
 0x474   : > { %v1376_v7 = vrot.slane %v1363_v42, 4  ;;  %v4593_v11 = vrot.slane %v4590_v57, 4  ;;  %v9217_v19 = vld [vmem:[%s14221_s2 + $0xb4] sm:$0xf0]  ;;  %vm14625_vm14 = vcmask 523264   ;;  %vm14645_vm4 = vcmask 392192  }
 0x475   : > { %v1101_v4 = vpop.permute.xlu1 %1100  ;;  %5029 = vmatpush.bf16.msrb.mxu1 %v8435_v52 }
 0x476   : > { %v1114_v35 = vrot.slane %v1101_v4, 4  ;;  %v1400_v13 = vsel %vm460_vm2, %v1375_v18, %v1376_v7  ;;  %v1402_v10 = vsel %vm1378_vm3, %v1363_v42, %v1376_v7  ;;  %v8498_v42 = vld [vmem:[%s14221_s2 + $0xd0] sm:$0xf]  ;;  %v8403_v7 = vor.u32 %v9197_v41, %v8402_v38  ;;  %v9231_v38 = vld [vmem:[%s14221_s2 + $0x124] sm:$0xf0] }
 0x477   : > { %v1401_v1 = vsel %vm1378_vm3, %v12467_v39, %v1400_v13  ;;  %1428 = vst [vmem:[#allocation4 + $0xc4] sm:$0x8] %v1402_v10  ;;  %vm14615_vm3 = vmmov %vm14614_vm0  ;;  %v8394_v13 = vld [vmem:[%s14221_s2] sm:$0xf]  ;;  %v9195_v10 = vld [vmem:[%s14221_s2 + $0x4] sm:$0xf0] }
 0x478   : > { %v1138_v28 = vsel %vm460_vm2, %v1113_v5, %v1114_v35  ;;  %v1140_v18 = vsel %vm1116_vm10, %v1101_v4, %v1114_v35  ;;  %1427 = vst [vmem:[#allocation4 + $0xbc] sm:$0x88] %v1401_v1  ;;  %v9160_v49 = vld [vmem:[#allocation4 + $0x188] sm:$0xf0]  ;;  %v8418_v5 = vld [vmem:[%s14221_s2 + $0x30] sm:$0xf]  ;;  %v8507_v4 = vor.u32 %v9223_v45, %v8506_v23  ;;  %vm14626_vm0 = vmmov %vm14625_vm14 }
 0x479   : > { %v1139_v3 = vsel %vm1116_vm10, %v12523_v40, %v1138_v28  ;;  %v9159_v61 = vld [vmem:[#allocation4 + $0x180] sm:$0xf0]  ;;  %v8227_v62 = vld [vmem:[#allocation4 + $0x184] sm:$0xf0]  ;;  %1166 = vst [vmem:[#allocation4 + $0xc4] sm:$0x2] %v1140_v18  ;;  %v8234_v2 = vor.u32 %v9160_v49, %v8233_v46  ;;  %5030 = vmatpush.bf16.msrb.mxu1 %v8427_v27  ;;  %v8419_v26 = vor.u32 %v9201_v14, %v8418_v5  ;;  %v12771_v27 = vpop.f32.mrf.mxu2 }
 0x47a   : > { %1165 = vst [vmem:[#allocation4 + $0xbc] sm:$0x22] %v1139_v3  ;;  %v8226_v39 = vor.u32 %v9159_v61, %v8225_v51  ;;  %v8230_v0 = vor.u32 %v9147_v31, %v8227_v62  ;;  %v8395_v28 = vor.u32 %v9195_v10, %v8394_v13  ;;  %v8586_v18 = vld [vmem:[%s14221_s2 + $0x180] sm:$0xf]  ;;  %v9243_v51 = vld [vmem:[%s14221_s2 + $0x184] sm:$0xf0]  ;;  %v8499_v14 = vor.u32 %v9221_v6, %v8498_v42 }
 0x47b   : > { %v12710_v40 = vpop.permute.xlu0 %4570  ;;  %4503 = vmatpush.bf16.msrb.mxu0 %v8234_v2  ;;  %v4523_v31 = vmax.f32 %v4363_v15, 0.0  ;;  %v9430_v3 = vld [vmem:[%s14220_s1] sm:$0x3]  ;;  %v8562_v61 = vld [vmem:[%s14221_s2 + $0x150] sm:$0xf] }
 0x47c   : > { %4477 = vmatpush.bf16.msra.mxu2 %v8226_v39  ;;  %4490 = vmatpush.bf16.msra.mxu3 %v8230_v0  ;;  %v4574_v53 = vrot.slane %v12710_v40, 4  ;;  %v9237_v62 = vld [vmem:[%s14221_s2 + $0x154] sm:$0xf0]  ;;  %v8587_v39 = vor.u32 %v9243_v51, %v8586_v18  ;;  %v8458_v6 = vld [vmem:[%s14221_s2 + $0x80] sm:$0xf]  ;;  %v4402_v18 = vpop.f32.mrf.mxu0  ;;  %v4389_v51 = vpop.f32.mrf.mxu3 }
 0x47d   : > { %v4551_v56 = vpop.permute.xlu1 %4550  ;;  %5031 = vmatpush.bf16.msrb.mxu1 %v8419_v26  ;;  %v4602_v33 = vpack.c.bf16 %v4523_v31, %v4522_v59  ;;  %v8491_v59 = vor.u32 %v9219_v22, %v8490_v25  ;;  %v9187_v45 = vld [vmem:[#allocation6 + $0xc] sm:$0xf] }
 0x47e   : > { %v4554_v34 = vrot.slane %v4551_v56, 4 }
 0x47f   : > { %4606 = vrot.lane.b32.xlu1 %v4602_v33, %s14620_s19 }
 0x480   : > { %v4556_v63 = vsel %vm460_vm2, %v4554_v34, %v4555_v21  ;;  %v9135_v29 = vld [vmem:[#allocation4 + $0xc0] sm:$0xf0]  ;;  %v4365_v34 = vpop.f32.mrf.mxu1 }
 0x481   : > { %v9134_v50 = vld [vmem:[#allocation4 + $0xb8] sm:$0xf0]  ;;  %v8127_v9 = vld [vmem:[#allocation4 + $0xbc] sm:$0xf0]  ;;  %v4557_v32 = vsel %vm14615_vm3, %v4551_v56, %v4556_v63  ;;  %v8134_v37 = vor.u32 %v9135_v29, %v8133_v58  ;;  %v8570_v21 = vld [vmem:[%s14221_s2 + $0x160] sm:$0xf]  ;;  %5032 = vmatpush.bf16.msrb.mxu1 %v8411_v30  ;;  %v8563_v56 = vor.u32 %v9237_v62, %v8562_v61  ;;  %v4378_v24 = vpop.f32.mrf.mxu2 }
 0x482   : > { %v8126_v20 = vor.u32 %v9134_v50, %v8125_v12  ;;  %v8130_v60 = vor.u32 %v9122_v47, %v8127_v9  ;;  %4561 = vst [vmem:[#allocation6] sm:$0xcc] %v4557_v32  ;;  %v8571_v36 = vor.u32 %v9239_v48, %v8570_v21  ;;  %v8482_v12 = vld [vmem:[%s14221_s2 + $0xb0] sm:$0xf]  ;;  %v9233_v58 = vld [vmem:[%s14221_s2 + $0x134] sm:$0xf0] }
 0x483   : > { %v4592_v43 = vpop.permute.xlu0 %4591  ;;  %4504 = vmatpush.bf16.msrb.mxu0 %v8134_v37  ;;  %v8546_v30 = vld [vmem:[%s14221_s2 + $0x130] sm:$0xf]  ;;  %v8483_v23 = vor.u32 %v9217_v19, %v8482_v12  ;;  %v8474_v50 = vld [vmem:[%s14221_s2 + $0xa0] sm:$0xf]  ;;  %v9215_v9 = vld [vmem:[%s14221_s2 + $0xa4] sm:$0xf0] }
 0x484   : > { %4478 = vmatpush.bf16.msra.mxu2 %v8126_v20  ;;  %4491 = vmatpush.bf16.msra.mxu3 %v8130_v60  ;;  %v4594_v35 = vrot.slane %v4592_v43, 4  ;;  %v8538_v32 = vld [vmem:[%s14221_s2 + $0x120] sm:$0xf]  ;;  %v8475_v60 = vor.u32 %v9215_v9, %v8474_v50  ;;  %v8466_v37 = vld [vmem:[%s14221_s2 + $0x90] sm:$0xf]  ;;  %v4525_v61 = vmax.f32 %v4389_v51, 0.0 }
 0x485   : > { %v4573_v52 = vpop.permute.xlu1 %4572  ;;  %5033 = vmatpush.bf16.msrb.mxu1 %v8403_v7  ;;  %v8539_v41 = vor.u32 %v9231_v38, %v8538_v32  ;;  %v9213_v21 = vld [vmem:[%s14221_s2 + $0x94] sm:$0xf0]  ;;  %v8530_v48 = vld [vmem:[%s14221_s2 + $0x110] sm:$0xf]  ;;  %v8522_v7 = vld [vmem:[%s14221_s2 + $0x100] sm:$0xf] }
 0x486   : > { %v4575_v1 = vrot.slane %v4573_v52, 4  ;;  %v4597_v46 = vsel %vm14616_vm6, %v4592_v43, %v4594_v35  ;;  %v4595_v49 = vsel %vm460_vm2, %v4593_v11, %v4594_v35  ;;  %8359 = vmatmul.msk.bf16.vlgmr.msrb.gmra.mxu0 %vm4106_vm13, %v9430_v3  ;;  %v9229_v11 = vld [vmem:[%s14221_s2 + $0x114] sm:$0xf0]  ;;  %v9211_v43 = vld [vmem:[%s14221_s2 + $0x84] sm:$0xf0]  ;;  %vm14627_vm3 = vcmask 392192  }
 0x487   : > { %8357 = vmatmul.msk.bf16.vlgmr.msra.gmra.mxu2 %vm4106_vm13, %v9430_v3  ;;  %8358 = vmatmul.msk.bf16.vlgmr.msra.gmra.mxu3 %vm4106_vm13, %v9430_v3  ;;  %4601 = vst.msk [vmem:[#allocation6 + $0x18] sm:$0xcc] %vm12670_vm15, %v4597_v46  ;;  %v4596_v5 = vsel %vm14618_vm12, %v4590_v57, %v4595_v49  ;;  %v8547_v57 = vor.u32 %v9233_v58, %v8546_v30  ;;  %vm14621_vm13 = vcmask 130048   ;;  %v4526_v3 = vmax.f32 %v4402_v18, 0.0  ;;  %vm14628_vm6 = vmmov %vm14627_vm3 }
 0x488   : > { %5046 = vmatpush.bf16.msrb.mxu2 %v8515_v17  ;;  %5065 = vmatpush.bf16.msrb.mxu3 %v8579_v16  ;;  %v4576_v0 = vsel %vm460_vm2, %v4574_v53, %v4575_v1  ;;  %v4578_v2 = vsel %vm14617_vm8, %v4573_v52, %v4575_v1  ;;  %4600 = vst [vmem:[#allocation6 + $0x10] sm:$0xcc] %v4596_v5  ;;  %v4415_v16 = vpop.f32.mrf.mxu1  ;;  %vm14629_vm8 = vcmask 261120  }
 0x489   : > { %v4577_v26 = vsel %vm14619_vm11, %v12710_v40, %v4576_v0  ;;  %4582 = vst.msk [vmem:[#allocation6 + $0x18] sm:$0x33] %vm12226_vm9, %v4578_v2  ;;  %5091 = vmatpush.bf16.msra.mxu0 %v8587_v39  ;;  %v8554_v40 = vld [vmem:[%s14221_s2 + $0x140] sm:$0xf]  ;;  %5034 = vmatpush.bf16.msrb.mxu1 %v8395_v28  ;;  %v8362_v47 = vld [vmem:[#allocation6] sm:$0xf]  ;;  %v8467_v53 = vor.u32 %v9213_v21, %v8466_v37  ;;  %v4391_v0 = vpop.f32.mrf.mxu3  ;;  %vm14630_vm12 = vmmov %vm14629_vm8 }
 0x48a   : > { %4581 = vst [vmem:[#allocation6 + $0x10] sm:$0x33] %v4577_v26  ;;  %v8555_v44 = vor.u32 %v9235_v55, %v8554_v40  ;;  %v8531_v42 = vor.u32 %v9229_v11, %v8530_v48  ;;  %v8459_v52 = vor.u32 %v9211_v43, %v8458_v6  ;;  %v9186_v35 = vld [vmem:[#allocation6 + $0x4] sm:$0xf]  ;;  %v4524_v28 = vmax.f32 %v12771_v27, 0.0  ;;  %v4404_v27 = vpop.f32.mrf.mxu0 }
 0x48b   : > { %v4619_v49 = vpack.c.bf16 %v4526_v3, %v4525_v61  ;;  %v4527_v2 = vmax.f32 %v4415_v16, 0.0  ;;  %v9208_v43 = vld [vmem:[%s14221_s2 + $0x74] sm:$0xf] }
 0x48c   : > { %5047 = vmatpush.bf16.msrb.mxu2 %v8507_v4  ;;  %5066 = vmatpush.bf16.msrb.mxu3 %v8571_v36  ;;  %v9227_v4 = vld [vmem:[%s14221_s2 + $0x104] sm:$0xf0]  ;;  %v8370_v36 = vld [vmem:[#allocation6 + $0x8] sm:$0xf]  ;;  %v4603_v46 = vpack.c.bf16 %v4525_v61, %v4524_v28 }
 0x48d   : > { %v8523_v15 = vor.u32 %v9227_v4, %v8522_v7  ;;  %v4623_v39 = vrot.slane %v4619_v49, 6  ;;  %v8452_v7 = vld [vmem:[%s14221_s2 + $0x78] sm:$0xf0]  ;;  %v9206_v49 = vld [vmem:[%s14221_s2 + $0x64] sm:$0xf] }
 0x48e   : > { %4608 = vrot.lane.b32.xlu2 %v4603_v46, %s14620_s19  ;;  %v8455_v4 = vor.u32 %v9208_v43, %v8452_v7  ;;  %v9204_v0 = vld [vmem:[%s14221_s2 + $0x54] sm:$0xf]  ;;  %v9218_v7 = vld [vmem:[%s14221_s2 + $0xc4] sm:$0xf] }
 0x48f   : > { %4625 = vrot.lane.b32.xlu0 %v4623_v39, %s14622_s10  ;;  %v8444_v39 = vld [vmem:[%s14221_s2 + $0x68] sm:$0xf0] }
 0x490   : > { %5048 = vmatpush.bf16.msrb.mxu2 %v8499_v14  ;;  %5067 = vmatpush.bf16.msrb.mxu3 %v8563_v56  ;;  %v8372_v63 = vld [vmem:[#allocation6 + $0x18] sm:$0xf0]  ;;  %v4417_v10 = vpop.f32.mrf.mxu1  ;;  %v9189_v1 = vld [vmem:[#allocation6 + $0x14] sm:$0xf0]  ;;  %v8447_v27 = vor.u32 %v9206_v49, %v8444_v39 }
 0x491   : > { %v9188_v17 = vld [vmem:[#allocation6 + $0xc] sm:$0xf0]  ;;  %v12837_v20 = vor.u32 %v9187_v45, %v8372_v63  ;;  %v8364_v13 = vld [vmem:[#allocation6 + $0x10] sm:$0xf0]  ;;  %v12869_v62 = vor.u32 %v9189_v1, %v8370_v36  ;;  %5103 = vmatpush.bf16.msrb.mxu0 %v8455_v4  ;;  %v8492_v4 = vld [vmem:[%s14221_s2 + $0xc8] sm:$0xf0] }
 0x492   : > { %v12835_v29 = vor.u32 %v9188_v17, %v8362_v47  ;;  %v12867_v31 = vor.u32 %v9186_v35, %v8364_v13 }
 0x494   : > { %5049 = vmatpush.bf16.msrb.mxu2 %v8491_v59  ;;  %5068 = vmatpush.bf16.msrb.mxu3 %v8555_v44 }
 0x495   : > { %5035 = vmatmul.bf16.vlgmr.msrb.gmra.mxu1 %v12835_v29  ;;  %5104 = vmatpush.bf16.msrb.mxu0 %v8447_v27 }
 0x496   : > { %8592 = vmatmul.msk.bf16.vlgmr.msra.gmra.mxu0 %vm14621_vm13, %v12837_v20 }
 0x498   : > { %5050 = vmatpush.bf16.msrb.mxu2 %v8483_v23  ;;  %5069 = vmatpush.bf16.msrb.mxu3 %v8547_v57 }
 0x49c   : > { %5051 = vmatpush.bf16.msrb.mxu2 %v8475_v60  ;;  %5070 = vmatpush.bf16.msrb.mxu3 %v8539_v41 }
 0x4a0   : > { %5052 = vmatpush.bf16.msrb.mxu2 %v8467_v53  ;;  %5071 = vmatpush.bf16.msrb.mxu3 %v8531_v42 }
 0x4a4   : > { %5053 = vmatpush.bf16.msrb.mxu2 %v8459_v52  ;;  %5072 = vmatpush.bf16.msrb.mxu3 %v8523_v15 }
 0x4a7   : > { %5054 = vmatmul.bf16.vlgmr.msrb.gmra.mxu2 %v12867_v31  ;;  %5073 = vmatmul.bf16.vlgmr.msrb.gmra.mxu3 %v12869_v62 }
 0x4ba   : > { %v4428_v5 = vpop.f32.mrf.mxu2  ;;  %v4441_v14 = vpop.f32.mrf.mxu3 }
 0x4bb   : > { %v4528_v26 = vmax.f32 %v4428_v5, 0.0  ;;  %v4529_v33 = vmax.f32 %v4441_v14, 0.0  ;;  %v9202_v5 = vld [vmem:[%s14221_s2 + $0x44] sm:$0xf]  ;;  %v8428_v14 = vld [vmem:[%s14221_s2 + $0x48] sm:$0xf0] }
 0x4bd   : > { %v4620_v56 = vpack.c.bf16 %v4528_v26, %v4527_v2  ;;  %v4638_v25 = vpack.c.bf16 %v4529_v33, %v4528_v26  ;;  %v8436_v2 = vld [vmem:[%s14221_s2 + $0x58] sm:$0xf0]  ;;  %v8431_v26 = vor.u32 %v9202_v5, %v8428_v14  ;;  %v9200_v33 = vld [vmem:[%s14221_s2 + $0x34] sm:$0xf]  ;;  %v8540_v5 = vld [vmem:[%s14221_s2 + $0x128] sm:$0xf0] }
 0x4be   : > { %v8439_v54 = vor.u32 %v9204_v0, %v8436_v2 }
 0x4bf   : > { %v4624_v22 = vrot.slane %v4620_v56, 6  ;;  %4642 = vrot.lane.b32.xlu2 %v4638_v25, %s14623_s15  ;;  %v8420_v56 = vld [vmem:[%s14221_s2 + $0x38] sm:$0xf0] }
 0x4c0   : > { %5105 = vmatpush.bf16.msrb.mxu0 %v8439_v54  ;;  %v8423_v25 = vor.u32 %v9200_v33, %v8420_v56  ;;  %v9230_v54 = vld [vmem:[%s14221_s2 + $0x124] sm:$0xf]  ;;  %v8468_v33 = vld [vmem:[%s14221_s2 + $0x98] sm:$0xf0] }
 0x4c1   : > { %4627 = vrot.lane.b32.xlu1 %v4624_v22, %s14622_s10  ;;  %v9198_v22 = vld [vmem:[%s14221_s2 + $0x24] sm:$0xf]  ;;  %v8543_v56 = vor.u32 %v9230_v54, %v8540_v5 }
 0x4c2   : > { %v4430_v40 = vpop.f32.mrf.mxu2  ;;  %v4443_v55 = vpop.f32.mrf.mxu3 }
 0x4c3   : > { %v8412_v40 = vld [vmem:[%s14221_s2 + $0x28] sm:$0xf0]  ;;  %v9224_v55 = vld [vmem:[%s14221_s2 + $0xf4] sm:$0xf] }
 0x4c4   : > { %5106 = vmatpush.bf16.msrb.mxu0 %v8431_v26  ;;  %v9212_v26 = vld [vmem:[%s14221_s2 + $0x94] sm:$0xf] }
 0x4c8   : > { %5107 = vmatpush.bf16.msrb.mxu0 %v8423_v25  ;;  %v9228_v25 = vld [vmem:[%s14221_s2 + $0x114] sm:$0xf] }
 0x4d4   : > { %v4454_v59 = vpop.f32.mrf.mxu0  ;;  %v4467_v34 = vpop.f32.mrf.mxu1 }
 0x4d5   : > { %v4530_v44 = vmax.f32 %v4454_v59, 0.0  ;;  %v4531_v12 = vmax.f32 %v4467_v34, 0.0  ;;  %v8516_v59 = vld [vmem:[%s14221_s2 + $0xf8] sm:$0xf0] }
 0x4d6   : > { %v8519_v34 = vor.u32 %v9224_v55, %v8516_v59  ;;  %v9210_v55 = vld [vmem:[%s14221_s2 + $0x84] sm:$0xf]  ;;  %v8460_v59 = vld [vmem:[%s14221_s2 + $0x88] sm:$0xf0] }
 0x4d7   : > { %v4639_v19 = vpack.c.bf16 %v4531_v12, %v4530_v44  ;;  %v9240_v44 = vld [vmem:[%s14221_s2 + $0x174] sm:$0xf] }
 0x4d8   : > { %5122 = vmatpush.bf16.msra.mxu1 %v8519_v34 }
 0x4d9   : > { %4644 = vrot.lane.b32.xlu0 %v4639_v19, %s14623_s15 }
 0x4dc   : > { %v4456_v24 = vpop.f32.mrf.mxu0  ;;  %v4469_v30 = vpop.f32.mrf.mxu1 }
 0x4dd   : > { %v8415_v24 = vor.u32 %v9198_v22, %v8412_v40  ;;  %v9196_v30 = vld [vmem:[%s14221_s2 + $0x14] sm:$0xf]  ;;  %v8532_v22 = vld [vmem:[%s14221_s2 + $0x118] sm:$0xf0]  ;;  %v8471_v40 = vor.u32 %v9212_v26, %v8468_v33 }
 0x4de   : > { %v8535_v34 = vor.u32 %v9228_v25, %v8532_v22 }
 0x4df   : > { %5108 = vmatpush.bf16.msrb.mxu0 %v8415_v24 }
 0x4e8   : > { %v4609_v37 = vpop.permute.xlu2 %4608 }
 0x4e9   : > { %v4611_v48 = vrot.slane %v4609_v37, 4 }
 0x4eb   : > { %v4614_v53 = vsel %vm14625_vm14, %v4609_v37, %v4611_v48 }
 0x4ec   : > { %4618 = vst.msk [vmem:[#allocation6 + $0x28] sm:$0x33] %vm12226_vm9, %v4614_v53  ;;  %v8564_v53 = vld [vmem:[%s14221_s2 + $0x158] sm:$0xf0] }
 0x4f1   : > { %v4607_v41 = vpop.permute.xlu1 %4606 }
 0x4f2   : > { %v4610_v21 = vrot.slane %v4607_v41, 4 }
 0x4f4   : > { %v4612_v11 = vsel %vm460_vm2, %v4610_v21, %v4611_v48  ;;  %v8500_v48 = vld [vmem:[%s14221_s2 + $0xd8] sm:$0xf0] }
 0x4f5   : > { %v4613_v42 = vsel %vm14626_vm0, %v4607_v41, %v4612_v11  ;;  %v9220_v41 = vld [vmem:[%s14221_s2 + $0xd4] sm:$0xf]  ;;  %vm5184_vm0 = vcmask 130052  }
 0x4f6   : > { %4617 = vst [vmem:[#allocation6 + $0x20] sm:$0x33] %v4613_v42  ;;  %v9236_v11 = vld [vmem:[%s14221_s2 + $0x154] sm:$0xf] }
 0x4f7   : > { %v8567_v43 = vor.u32 %v9236_v11, %v8564_v53 }
 0x501   : > { %v4626_v6 = vpop.permute.xlu0 %4625 }
 0x502   : > { %v4629_v52 = vrot.slane %v4626_v6, 4 }
 0x503   : > { %v4506_v58 = vpop.f32.mrf.mxu0 }
 0x504   : > { %v4534_v47 = vmax.f32 %v4506_v58, 0.0  ;;  %v8404_v58 = vld [vmem:[%s14221_s2 + $0x18] sm:$0xf0] }
 0x50a   : > { %v4480_v23 = vpop.f32.mrf.mxu2  ;;  %v4493_v45 = vpop.f32.mrf.mxu3 }
 0x50b   : > { %v4532_v63 = vmax.f32 %v4480_v23, 0.0  ;;  %v4533_v57 = vmax.f32 %v4493_v45, 0.0  ;;  %v4508_v17 = vpop.f32.mrf.mxu0  ;;  %v9242_v23 = vld [vmem:[%s14221_s2 + $0x184] sm:$0xf]  ;;  %v8588_v45 = vld [vmem:[%s14221_s2 + $0x188] sm:$0xf0] }
 0x50c   : > { %v8508_v17 = vld [vmem:[%s14221_s2 + $0xe8] sm:$0xf0] }
 0x50d   : > { %v4655_v50 = vpack.c.bf16 %v4532_v63, %v4531_v12  ;;  %v4656_v9 = vpack.c.bf16 %v4534_v47, %v4533_v57  ;;  %v8580_v12 = vld [vmem:[%s14221_s2 + $0x178] sm:$0xf0]  ;;  %v8407_v47 = vor.u32 %v9196_v30, %v8404_v58  ;;  %v9194_v63 = vld [vmem:[%s14221_s2 + $0x4] sm:$0xf]  ;;  %v8591_v57 = vor.u32 %v9242_v23, %v8588_v45 }
 0x50e   : > { %v8583_v19 = vor.u32 %v9240_v44, %v8580_v12  ;;  %v9226_v44 = vld [vmem:[%s14221_s2 + $0x104] sm:$0xf]  ;;  %v8524_v12 = vld [vmem:[%s14221_s2 + $0x108] sm:$0xf0] }
 0x50f   : > { %v4659_v32 = vrot.slane %v4655_v50, 6  ;;  %v4660_v38 = vrot.slane %v4656_v9, 6  ;;  %5109 = vmatpush.bf16.msrb.mxu0 %v8407_v47  ;;  %v8396_v50 = vld [vmem:[%s14221_s2 + $0x8] sm:$0xf0]  ;;  %v9222_v9 = vld [vmem:[%s14221_s2 + $0xe4] sm:$0xf]  ;;  %5167 = vmatpush.bf16.msra.mxu3 %v8591_v57  ;;  %v8527_v24 = vor.u32 %v9226_v44, %v8524_v12 }
 0x510   : > { %5141 = vmatpush.bf16.msra.mxu2 %v8583_v19  ;;  %v8463_v19 = vor.u32 %v9210_v55, %v8460_v59 }
 0x511   : > { %4663 = vrot.lane.b32.xlu2 %v4660_v38, %s14624_s17  ;;  %4661 = vrot.lane.b32.xlu1 %v4659_v32, %s14624_s17  ;;  %v8399_v32 = vor.u32 %v9194_v63, %v8396_v50  ;;  %v8511_v38 = vor.u32 %v9222_v9, %v8508_v17 }
 0x512   : > { %v4482_v60 = vpop.f32.mrf.mxu2  ;;  %v4495_v16 = vpop.f32.mrf.mxu3 }
 0x513   : > { %v9238_v60 = vld [vmem:[%s14221_s2 + $0x164] sm:$0xf]  ;;  %v8572_v16 = vld [vmem:[%s14221_s2 + $0x168] sm:$0xf0]  ;;  %5110 = vmatpush.bf16.msrb.mxu0 %v8399_v32  ;;  %5123 = vmatpush.bf16.msra.mxu1 %v8511_v38 }
 0x514   : > { %v8575_v21 = vor.u32 %v9238_v60, %v8572_v16 }
 0x516   : > { %5142 = vmatpush.bf16.msra.mxu2 %v8575_v21 }
 0x519   : > { %v4643_v1 = vpop.permute.xlu2 %4642 }
 0x51a   : > { %v4646_v28 = vrot.slane %v4643_v1, 4  ;;  %5143 = vmatpush.bf16.msra.mxu2 %v8567_v43 }
 0x52a   : > { %v5074_v32 = vpop.f32.mrf.mxu3  ;;  %v5055_v60 = vpop.f32.mrf.mxu2 }
 0x532   : > { %v5076_v16 = vpop.f32.mrf.mxu3  ;;  %v5057_v21 = vpop.f32.mrf.mxu2 }
 0x533   : > { %v4628_v35 = vpop.permute.xlu1 %4627 }
 0x534   : > { %v4630_v13 = vrot.slane %v4628_v35, 4 }
 0x536   : > { %v4633_v10 = vsel %vm14627_vm3, %v4628_v35, %v4630_v13  ;;  %v4631_v15 = vsel %vm460_vm2, %v4629_v52, %v4630_v13  ;;  %v9234_v35 = vld [vmem:[%s14221_s2 + $0x144] sm:$0xf]  ;;  %v8556_v13 = vld [vmem:[%s14221_s2 + $0x148] sm:$0xf0]  ;;  %vm13064_vm3 = vmor %vm5184_vm0, %vm460_vm2  ;;  %vm5212_vm0 = vcmask 257026  }
 0x537   : > { %4637 = vst.msk [vmem:[#allocation6 + $0x28] sm:$0xcc] %vm12670_vm15, %v4633_v10  ;;  %v4632_v36 = vsel %vm14628_vm6, %v4626_v6, %v4631_v15  ;;  %v8503_v6 = vor.u32 %v9220_v41, %v8500_v48  ;;  %v8495_v10 = vor.u32 %v9218_v7, %v8492_v4  ;;  %v8559_v15 = vor.u32 %v9234_v35, %v8556_v13 }
 0x538   : > { %4636 = vst [vmem:[#allocation6 + $0x20] sm:$0xcc] %v4632_v36  ;;  %v9216_v36 = vld [vmem:[%s14221_s2 + $0xb4] sm:$0xf]  ;;  %vm5197_vm6 = vcmask 125954  }
 0x539   : > { %5124 = vmatpush.bf16.msra.mxu1 %v8503_v6  ;;  %5144 = vmatpush.bf16.msra.mxu2 %v8559_v15 }
 0x53d   : > { %5125 = vmatpush.bf16.msra.mxu1 %v8495_v10 }
 0x53e   : > { %v9191_v49 = vld [vmem:[#allocation6 + $0x2c] sm:$0xf] }
 0x53f   : > { %v8378_v45 = vld [vmem:[#allocation6 + $0x20] sm:$0xf]  ;;  %v9190_v57 = vld [vmem:[#allocation6 + $0x24] sm:$0xf] }
 0x54b   : > { %v4645_v18 = vpop.permute.xlu0 %4644 }
 0x54c   : > { %v4647_v51 = vrot.slane %v4645_v18, 4 }
 0x54e   : > { %v4648_v3 = vsel %vm460_vm2, %v4646_v28, %v4647_v51  ;;  %v4650_v61 = vsel %vm14629_vm8, %v4645_v18, %v4647_v51  ;;  %v9232_v28 = vld [vmem:[%s14221_s2 + $0x134] sm:$0xf]  ;;  %vm14638_vm8 = vcmask 1041408  }
 0x54f   : > { %v4649_v46 = vsel %vm14630_vm12, %v4643_v1, %v4648_v3  ;;  %4654 = vst.msk [vmem:[#allocation6 + $0x38] sm:$0x33] %vm12226_vm9, %v4650_v61  ;;  %vm14631_vm9 = vmmov %vm14621_vm13  ;;  %v8484_v1 = vld [vmem:[%s14221_s2 + $0xb8] sm:$0xf0]  ;;  %v8386_v51 = vld [vmem:[#allocation6 + $0x28] sm:$0xf]  ;;  %v8551_v27 = vor.u32 %v9232_v28, %v8548_v8 }
 0x550   : > { %4653 = vst [vmem:[#allocation6 + $0x30] sm:$0x33] %v4649_v46  ;;  %v8487_v18 = vor.u32 %v9216_v36, %v8484_v1  ;;  %v9214_v3 = vld [vmem:[%s14221_s2 + $0xa4] sm:$0xf]  ;;  %v8476_v61 = vld [vmem:[%s14221_s2 + $0xa8] sm:$0xf0]  ;;  %vm14633_vm11 = vmmov %vm14631_vm9 }
 0x551   : > { %v8479_v14 = vor.u32 %v9214_v3, %v8476_v61  ;;  %5145 = vmatpush.bf16.msra.mxu2 %v8551_v27  ;;  %vm14634_vm13 = vmmov %vm14631_vm9 }
 0x552   : > { %5126 = vmatpush.bf16.msra.mxu1 %v8487_v18  ;;  %vm14635_vm14 = vmmov %vm14631_vm9 }
 0x553   : > { %vm5198_vm12 = vmor %vm5197_vm6, %vm14638_vm8  ;;  %vm5227_vm6 = vcmask 1041664  }
 0x555   : > { %5146 = vmatpush.bf16.msra.mxu2 %v8543_v56 }
 0x556   : > { %5127 = vmatpush.bf16.msra.mxu1 %v8479_v14 }
 0x559   : > { %5147 = vmatpush.bf16.msra.mxu2 %v8535_v34 }
 0x55a   : > { %5128 = vmatpush.bf16.msra.mxu1 %v8471_v40 }
 0x55d   : > { %5148 = vmatpush.bf16.msra.mxu2 %v8527_v24 }
 0x55e   : > { %5129 = vmatpush.bf16.msra.mxu1 %v8463_v19 }
 0x56b   : > { %v12976_v37 = vpop.permute.xlu2 %4663 }
 0x56c   : > { %v4666_v42 = vrot.slane %v12976_v37, 4 }
 0x56e   : > { %v4669_v52 = vsel %vm14631_vm9, %v12976_v37, %v4666_v42 }
 0x56f   : > { %4673 = vst.msk [vmem:[#allocation6 + $0x38] sm:$0xcc] %vm12670_vm15, %v4669_v52  ;;  %vm14632_vm15 = vmmov %vm14631_vm9 }
 0x570   : > { %vm14639_vm9 = vmmov %vm14638_vm8 }
 0x576   : > { %v9193_v46 = vld [vmem:[#allocation6 + $0x34] sm:$0xf0]  ;;  %v8388_v39 = vld [vmem:[#allocation6 + $0x38] sm:$0xf0] }
 0x577   : > { %v8387_v0 = vor.u32 %v9193_v46, %v8386_v51  ;;  %v8391_v2 = vor.u32 %v9191_v49, %v8388_v39 }
 0x579   : > { %5078 = vmatmul.bf16.gmra.mxu3 %v8387_v0  ;;  %8593 = vmatmul.msk.bf16.gmra.mxu0 %vm14632_vm15, %v8391_v2  ;;  %vm14640_vm15 = vmmov %vm14638_vm8 }
 0x583   : > { %v4662_v30 = vpop.permute.xlu1 %4661 }
 0x584   : > { %v4665_v58 = vrot.slane %v4662_v30, 4 }
 0x586   : > { %v4667_v47 = vsel %vm460_vm2, %v4665_v58, %v4666_v42 }
 0x587   : > { %v4668_v23 = vsel %vm14633_vm11, %v4662_v30, %v4667_v47  ;;  %vm14641_vm11 = vmmov %vm14638_vm8 }
 0x588   : > { %4672 = vst [vmem:[#allocation6 + $0x30] sm:$0xcc] %v4668_v23 }
 0x589   : > { %5111 = vmatmul.bf16.vlgmr.msrb.gmra.mxu0 %v12835_v29  ;;  %8594 = vmatmul.msk.bf16.vlgmr.msra.gmra.mxu3 %vm14634_vm13, %v12837_v20  ;;  %v5093_v29 = vpop.f32.mrf.mxu0  ;;  %v5036_v20 = vpop.f32.mrf.mxu1  ;;  %vm14642_vm13 = vmmov %vm14638_vm8  ;;  %vm5228_vm8 = vcmask 388098  }
 0x58a   : > { %v5056_v4 = vadd.f32 %v5055_v60, %v5036_v20 }
 0x58c   : > { %v5075_v35 = vadd.f32 %v5074_v32, %v5056_v4 }
 0x58e   : > { %v5094_v28 = vadd.f32 %v5093_v29, %v5075_v35 }
 0x58f   : > { %v9192_v63 = vld [vmem:[#allocation6 + $0x2c] sm:$0xf0]  ;;  %v8380_v50 = vld [vmem:[#allocation6 + $0x30] sm:$0xf0] }
 0x590   : > { %v8379_v9 = vor.u32 %v9192_v63, %v8378_v45  ;;  %v8383_v17 = vor.u32 %v9190_v57, %v8380_v50 }
 0x591   : > { %v5095_v38 = vpop.f32.mrf.mxu0  ;;  %v5038_v41 = vpop.f32.mrf.mxu1 }
 0x592   : > { %5040 = vmatmul.bf16.gmra.mxu1 %v8379_v9  ;;  %5059 = vmatmul.bf16.gmra.mxu2 %v8383_v17  ;;  %v5058_v8 = vadd.f32 %v5057_v21, %v5038_v41 }
 0x594   : > { %v5077_v46 = vadd.f32 %v5076_v16, %v5058_v8 }
 0x599   : > { %5116 = vmatmul.bf16.gmra.mxu0 %v8379_v9  ;;  %8595 = vmatmul.msk.bf16.gmra.mxu3 %vm14635_vm14, %v8391_v2  ;;  %v5096_v2 = vadd.f32 %v5095_v38, %v5077_v46  ;;  %vm5211_vm14 = vcmask 1041536  }
 0x5a2   : > { %5130 = vmatmul.bf16.vlgmr.msra.gmra.mxu1 %v12867_v31  ;;  %5149 = vmatmul.bf16.vlgmr.msra.gmra.mxu2 %v12869_v62 }
 0x5b2   : > { %5135 = vmatmul.bf16.gmra.mxu1 %v8383_v17  ;;  %5154 = vmatmul.bf16.gmra.mxu2 %v8387_v0 }
 0x5f6   : > { %v5098_v37 = vpop.f32.mrf.mxu0 }
 0x5fc   : > { %v5079_v48 = vpop.f32.mrf.mxu3 }
 0x5fe   : > { %v13061_v53 = vpop.f32.mrf.mxu0 }
 0x604   : > { %v5081_v6 = vpop.f32.mrf.mxu3 }
 0x606   : > { %v5112_v43 = vpop.f32.mrf.mxu0 }
 0x60c   : > { %v5169_v52 = vpop.f32.mrf.mxu3 }
 0x60e   : > { %v5114_v36 = vpop.f32.mrf.mxu0 }
 0x60f   : > { %v5041_v11 = vpop.f32.mrf.mxu1 }
 0x614   : > { %v5171_v61 = vpop.f32.mrf.mxu3 }
 0x615   : > { %v5060_v42 = vpop.f32.mrf.mxu2 }
 0x616   : > { %v5061_v54 = vadd.f32 %v5060_v42, %v5041_v11  ;;  %v5117_v14 = vpop.f32.mrf.mxu0 }
 0x617   : > { %v5043_v31 = vpop.f32.mrf.mxu1 }
 0x618   : > { %v5080_v25 = vadd.f32 %v5079_v48, %v5061_v54 }
 0x61a   : > { %v5099_v12 = vadd.f32 %v5098_v37, %v5080_v25 }
 0x61c   : > { %v5174_v55 = vpop.f32.mrf.mxu3 }
 0x61d   : > { %v5062_v62 = vpop.f32.mrf.mxu2 }
 0x61e   : > { %v5063_v19 = vadd.f32 %v5062_v62, %v5043_v31  ;;  %v5119_v47 = vpop.f32.mrf.mxu0 }
 0x61f   : > { %v5131_v7 = vpop.f32.mrf.mxu1 }
 0x620   : > { %v5132_v13 = vadd.f32 %v5131_v7, %v5112_v43  ;;  %v5082_v45 = vadd.f32 %v5081_v6, %v5063_v19 }
 0x622   : > { %v5101_v38 = vadd.f32 %v13061_v53, %v5082_v45 }
 0x624   : > { %v5176_v32 = vpop.f32.mrf.mxu3 }
 0x625   : > { %v5150_v10 = vpop.f32.mrf.mxu2 }
 0x626   : > { %v5151_v15 = vadd.f32 %v5150_v10, %v5132_v13 }
 0x627   : > { %v5133_v1 = vpop.f32.mrf.mxu1 }
 0x628   : > { %v5170_v18 = vadd.f32 %v5169_v52, %v5151_v15  ;;  %v5134_v49 = vadd.f32 %v5133_v1, %v5114_v36 }
 0x62a   : > { %v5179_v3 = vpack.c.bf16 %v5170_v18, %v5094_v28 }
 0x62c   : > { %5186 = vst.msk [vmem:[#allocation7] sm:$0xff] %vm13064_vm3, %v5179_v3 }
 0x62d   : > { %v5152_v39 = vpop.f32.mrf.mxu2 }
 0x62e   : > { %v5153_v27 = vadd.f32 %v5152_v39, %v5134_v49 }
 0x62f   : > { %v5136_v0 = vpop.f32.mrf.mxu1 }
 0x630   : > { %v5172_v5 = vadd.f32 %v5171_v61, %v5153_v27  ;;  %v5137_v40 = vadd.f32 %v5136_v0, %v5117_v14 }
 0x632   : > { %v5180_v26 = vpack.c.bf16 %v5172_v5, %v5096_v2 }
 0x633   : > { %v5190_v33 = vld [vmem:[#allocation7] sm:$0x33]  ;;  %v5200_v56 = vld [vmem:[#allocation7] sm:$0xcc] }
 0x634   : > { %v5192_v22 = vrot.slane %v5190_v33, 2  ;;  %5202 = vst.sshfl [vmem:[#allocation1] sm:$0xff pattern:$0x75643120] %v5200_v56 }
 0x635   : > { %5187 = vst.msk [vmem:[#allocation7 + $0x8] sm:$0xff] %vm13064_vm3, %v5180_v26  ;;  %v5155_v59 = vpop.f32.mrf.mxu2 }
 0x636   : > { %v5195_v34 = vsel %vm14639_vm9, %v5190_v33, %v5192_v22  ;;  %v5156_v44 = vadd.f32 %v5155_v59, %v5137_v40  ;;  %vm5242_vm9 = vcmask 1041792  }
 0x637   : > { %5199 = vst.msk [vmem:[#allocation3 + $0x2] sm:$0xf] %vm5198_vm12, %v5195_v34  ;;  %v5138_v30 = vpop.f32.mrf.mxu1  ;;  %vm14643_vm12 = vcmask 130048  }
 0x638   : > { %v5175_v24 = vadd.f32 %v5174_v55, %v5156_v44  ;;  %v5139_v57 = vadd.f32 %v5138_v30, %v5119_v47 }
 0x63a   : > { %v5181_v58 = vpack.c.bf16 %v5175_v24, %v5099_v12 }
 0x63b   : > { %v5204_v23 = vld [vmem:[#allocation1 + $0x1] ss:$2 sm:$0xff] }
 0x63c   : > { %v5231_v63 = vld [vmem:[#allocation7 + $0x8] sm:$0xcc]  ;;  %5188 = vst.msk [vmem:[#allocation7 + $0x10] sm:$0xff] %vm13064_vm3, %v5181_v58  ;;  %5206 = vrot.lane.b32.xlu0 %v5204_v23, %s14624_s17  ;;  %v5215_v50 = vld [vmem:[#allocation7 + $0x8] sm:$0x33]  ;;  %s9477_s17 = smov 12  }
 0x63d   : > { %5233 = vst.sshfl [vmem:[#allocation1] sm:$0xff pattern:$0x75643120] %v5231_v63  ;;  %v5157_v9 = vpop.f32.mrf.mxu2  ;;  %v5217_v17 = vrot.slane %v5215_v50, 2 }
 0x63e   : > { %v5158_v29 = vadd.f32 %v5157_v9, %v5139_v57 }
 0x63f   : > { %v5220_v20 = vsel %vm14640_vm15, %v5215_v50, %v5217_v17  ;;  %vm5243_vm15 = vcmask 519170  }
 0x640   : > { %v5177_v60 = vadd.f32 %v5176_v32, %v5158_v29  ;;  %5222 = vrot.lane.b32.xlu1 %v5220_v20, %s14623_s15  ;;  %s9476_s15 = smov 13  }
 0x642   : > { %v5182_v16 = vpack.c.bf16 %v5177_v60, %v5101_v38 }
 0x643   : > { %v5262_v41 = vld [vmem:[#allocation7 + $0x10] sm:$0xcc]  ;;  %v5246_v37 = vld [vmem:[#allocation7 + $0x10] sm:$0x33] }
 0x644   : > { %v5235_v21 = vld [vmem:[#allocation1 + $0x1] ss:$2 sm:$0xff]  ;;  %5189 = vst.msk [vmem:[#allocation7 + $0x18] sm:$0xff] %vm13064_vm3, %v5182_v16  ;;  %v5248_v48 = vrot.slane %v5246_v37, 2  ;;  %vm5213_vm3 = vmor %vm5212_vm0, %vm5211_vm14  ;;  %vm14646_vm0 = vcmask 523264  }
 0x645   : > { %5264 = vst.sshfl [vmem:[#allocation1] sm:$0xff pattern:$0x75643120] %v5262_v41  ;;  %5237 = vrot.lane.b32.xlu2 %v5235_v21, %s14622_s10  ;;  %s9475_s10 = smov 14  }
 0x646   : > { %v5251_v11 = vsel %vm14641_vm11, %v5246_v37, %v5248_v48  ;;  %vm5229_vm11 = vmor %vm5228_vm8, %vm5227_vm6  ;;  %vm5274_vm6 = vcmask 781314  }
 0x647   : > { %5253 = vrot.lane.b32.xlu0 %v5251_v11, %s14620_s19  ;;  %s9474_s19 = smov 23  }
 0x64b   : > { %v5293_v42 = vld [vmem:[#allocation7 + $0x18] sm:$0xcc]  ;;  %v5277_v53 = vld [vmem:[#allocation7 + $0x18] sm:$0x33] }
 0x64c   : > { %v5266_v6 = vld [vmem:[#allocation1 + $0x1] ss:$2 sm:$0xff]  ;;  %v5279_v31 = vrot.slane %v5277_v53, 2 }
 0x64d   : > { %5295 = vst.sshfl [vmem:[#allocation1] sm:$0xff pattern:$0x75643120] %v5293_v42  ;;  %5268 = vrot.lane.b32.xlu1 %v5266_v6, %s14578_s7  ;;  %s9473_s7 = smov 24  }
 0x64e   : > { %v5282_v43 = vsel %vm14642_vm13, %v5277_v53, %v5279_v31  ;;  %vm5244_vm13 = vmor %vm5243_vm15, %vm5242_vm9  ;;  %vm5290_vm9 = vcmask 912386   ;;  %vm14647_vm15 = vcmask 654336  }
 0x64f   : > { %5284 = vrot.lane.b32.xlu2 %v5282_v43, %s14575_s28  ;;  %s9471_s28 = smov 26  }
 0x654   : > { %v5297_v62 = vld [vmem:[#allocation1 + $0x1] ss:$2 sm:$0xff] }
 0x655   : > { %5299 = vrot.lane.b32.xlu0 %v5297_v62, %s14576_s29  ;;  %s9472_s29 = smov 25  }
 0x69f   : > { %v5238_v4 = vpop.permute.xlu2 %5237 }
 0x6a0   : > { %v5239_v13 = vrot.slane %v5238_v4, 6 }
 0x6a2   : > { %v5240_v1 = vsel %vm14645_vm4, %v5239_v13, %v5238_v4  ;;  %vm5259_vm4 = vcmask 650242  }
 0x6a9   : > { %v5285_v5 = vpop.permute.xlu2 %5284 }
 0x6aa   : > { %v5286_v56 = vrot.slane %v5285_v5, 6 }
 0x6ae   : > { %v5207_v7 = vpop.permute.xlu0 %5206 }
 0x6af   : > { %v5208_v52 = vrot.slane %v5207_v7, 6 }
 0x6b1   : > { %v5209_v35 = vsel %vm14643_vm12, %v5208_v52, %v5207_v7  ;;  %vm5289_vm12 = vcmask 1042176  }
 0x6b2   : > { %5214 = vst.msk [vmem:[#allocation3 + $0x4] sm:$0xf] %vm5213_vm3, %v5209_v35  ;;  %v5223_v10 = vpop.permute.xlu1 %5222  ;;  %vm5273_vm3 = vcmask 1042048  }
 0x6b3   : > { %v5224_v15 = vrot.slane %v5223_v10, 6  ;;  %vm5275_vm8 = vmor %vm5274_vm6, %vm5273_vm3  ;;  %vm5457_vm3 = vcmask 195584   ;;  %vm5514_vm6 = vcmask 187392  }
 0x6b5   : > { %v5225_v36 = vsel %vm14644_vm1, %v5224_v15, %v5223_v10  ;;  %vm5258_vm1 = vcmask 1041920  }
 0x6b6   : > { %5230 = vst.msk [vmem:[#allocation3 + $0x6] sm:$0xf] %vm5229_vm11, %v5225_v36  ;;  %vm5260_vm14 = vmor %vm5259_vm4, %vm5258_vm1  ;;  %vm5304_vm1 = vcmask 1042304  }
 0x6b7   : > { %5245 = vst.msk [vmem:[#allocation3 + $0x8] sm:$0xf] %vm5244_vm13, %v5240_v1  ;;  %vm5291_vm11 = vmor %vm5290_vm9, %vm5289_vm12  ;;  %vm14648_vm13 = vcmask 785408   ;;  %vm14306_vm12 = vcmask 105472   ;;  %vm5739_vm9 = vcmask 97280  }
 0x6b8   : > { %v5287_v55 = vsel %vm14648_vm13, %v5286_v56, %v5285_v5  ;;  %vm5305_vm4 = vmor %vm4562_vm5, %vm5304_vm1  ;;  %vm5344_vm5 = vcmask 211968   ;;  %vm14652_vm13 = vcmask 7168   ;;  %vm14653_vm1 = vcmask 1039360  }
 0x6b9   : > { %v5254_v27 = vpop.permute.xlu0 %5253 }
 0x6ba   : > { %v5255_v54 = vrot.slane %v5254_v27, 6 }
 0x6bc   : > { %v5256_v14 = vsel %vm14646_vm0, %v5255_v54, %v5254_v27  ;;  %vm5401_vm0 = vcmask 203776  }
 0x6bd   : > { %v13092_v28 = vld [vmem:[#allocation3] sm:$0xff]  ;;  %5261 = vst.msk [vmem:[#allocation3 + $0xa] sm:$0xf] %vm5260_vm14, %v5256_v14  ;;  %vm14649_vm14 = vcmask 916480  }
 0x6be   : > { %5311 = vst [vmem:[#allocation1] ss:$2 sm:$0xff] %v13092_v28  ;;  %v13164_v42 = vld [vmem:[#allocation3 + $0x2] sm:$0xff] }
 0x6bf   : > { %v5269_v26 = vpop.permute.xlu1 %5268 }
 0x6c0   : > { %v5270_v33 = vrot.slane %v5269_v26, 6 }
 0x6c2   : > { %v5271_v25 = vsel %vm14647_vm15, %v5270_v33, %v5269_v26  ;;  %vm5852_vm15 = vcmask 80896  }
 0x6c3   : > { %5276 = vst.msk [vmem:[#allocation3 + $0xc] sm:$0xf] %vm5275_vm8, %v5271_v25  ;;  %vm5626_vm8 = vcmask 113664  }
 0x6c4   : > { %5292 = vst.msk [vmem:[#allocation3 + $0xe] sm:$0xf] %vm5291_vm11, %v5287_v55  ;;  %vm5795_vm11 = vcmask 89088  }
 0x6c5   : > { %v5318_v8 = vld.sshfl [vmem:[#allocation1] sm:$0xff pattern:$0x75643120]  ;;  %v5320_v18 = vld.sshfl [vmem:[#allocation1 + $0x8] sm:$0xff pattern:$0x75643120] }
 0x6c6   : > { %5368 = vst [vmem:[#allocation1 + $0x1] ss:$2 sm:$0xff] %v13092_v28  ;;  %5330 = vrot.lane.b32.xlu1 %v5320_v18, %s9471_s28  ;;  %5328 = vrot.lane.b32.xlu0 %v5318_v8, %s9471_s28 }
 0x6c7   : > { %v5300_v59 = vpop.permute.xlu0 %5299 }
 0x6c8   : > { %v5301_v34 = vrot.slane %v5300_v59, 6 }
 0x6ca   : > { %v5302_v44 = vsel %vm14649_vm14, %v5301_v34, %v5300_v59  ;;  %vm14655_vm14 = vcmask 1031168  }
 0x6cb   : > { %v13117_v24 = vld [vmem:[#allocation3 + $0x8] sm:$0xff]  ;;  %5306 = vst.msk [vmem:[#allocation3 + $0x10] sm:$0xf] %vm5305_vm4, %v5302_v44  ;;  %vm14654_vm4 = vmmov %vm14652_vm13 }
 0x6cc   : > { %5314 = vst [vmem:[#allocation1 + $0x10] ss:$2 sm:$0xff] %v13117_v24 }
 0x6cd   : > { %v5375_v51 = vld.sshfl [vmem:[#allocation1] sm:$0xff pattern:$0x75643120]  ;;  %v5377_v3 = vld.sshfl [vmem:[#allocation1 + $0x8] sm:$0xff pattern:$0x75643120] }
 0x6ce   : > { %5424 = vst [vmem:[#allocation1] ss:$2 sm:$0xff] %v13092_v28  ;;  %5387 = vrot.lane.b32.xlu0 %v5377_v3, %s9472_s29  ;;  %5385 = vrot.lane.b32.xlu2 %v5375_v51, %s9472_s29 }
 0x6d2   : > { %v5309_v57 = vld [vmem:[#allocation3 + $0x10] sm:$0xf] }
 0x6d3   : > { %v5322_v47 = vld.sshfl [vmem:[#allocation1 + $0x10] sm:$0xff pattern:$0x75643120]  ;;  %v13123_v23 = vld.sshfl [vmem:[#allocation1 + $0x18] sm:$0xff pattern:$0x75643120] }
 0x6d4   : > { %5371 = vst [vmem:[#allocation1 + $0x11] ss:$2 sm:$0xff] %v13117_v24  ;;  %v5365_v32 = vld [vmem:[#allocation3 + $0x10] sm:$0xf] }
 0x6d5   : > { %v5431_v61 = vld.sshfl [vmem:[#allocation1] sm:$0xff pattern:$0x75643120]  ;;  %v5433_v46 = vld.sshfl [vmem:[#allocation1 + $0x8] sm:$0xff pattern:$0x75643120] }
 0x6d6   : > { %5481 = vst [vmem:[#allocation1 + $0x1] ss:$2 sm:$0xff] %v13092_v28  ;;  %5441 = vrot.lane.b32.xlu1 %v5431_v61, %s9473_s7  ;;  %5443 = vrot.lane.b32.xlu2 %v5433_v46, %s9473_s7  ;;  %v5422_v37 = vld [vmem:[#allocation3 + $0x10] sm:$0xf] }
 0x6d7   : > { %5317 = vst [vmem:[#allocation1 + $0x20] ss:$2 sm:$0xff] %v5309_v57  ;;  %v5478_v31 = vld [vmem:[#allocation3 + $0x10] sm:$0xf] }
 0x6d8   : > { %v5535_v13 = vld [vmem:[#allocation3 + $0x10] sm:$0xf] }
 0x6d9   : > { %v5647_v46 = vld [vmem:[#allocation3 + $0x10] sm:$0xf] }
 0x6da   : > { %v5703_v54 = vld [vmem:[#allocation3 + $0x10] sm:$0xf] }
 0x6db   : > { %v5379_v50 = vld.sshfl [vmem:[#allocation1 + $0x10] sm:$0xff pattern:$0x75643120]  ;;  %v13132_v9 = vld.sshfl [vmem:[#allocation1 + $0x18] sm:$0xff pattern:$0x75643120] }
 0x6dc   : > { %5427 = vst [vmem:[#allocation1 + $0x10] ss:$2 sm:$0xff] %v13117_v24  ;;  %v5760_v25 = vld [vmem:[#allocation3 + $0x10] sm:$0xf] }
 0x6dd   : > { %v5488_v49 = vld.sshfl [vmem:[#allocation1] sm:$0xff pattern:$0x75643120]  ;;  %v5490_v39 = vld.sshfl [vmem:[#allocation1 + $0x8] sm:$0xff pattern:$0x75643120] }
 0x6de   : > { %5537 = vst [vmem:[#allocation1] ss:$2 sm:$0xff] %v13092_v28  ;;  %5500 = vrot.lane.b32.xlu1 %v5490_v39, %s9474_s19  ;;  %5498 = vrot.lane.b32.xlu0 %v5488_v49, %s9474_s19  ;;  %v13147_v60 = vld.sshfl [vmem:[#allocation1 + $0x20] sm:$0xff pattern:$0x75643120] }
 0x6df   : > { %5332 = vrot.lane.b32.xlu2 %v5322_v47, %s9471_s28  ;;  %5374 = vst [vmem:[#allocation1 + $0x21] ss:$2 sm:$0xff] %v5365_v32  ;;  %v5816_v44 = vld [vmem:[#allocation3 + $0x10] sm:$0xf] }
 0x6e0   : > { %v5873_v57 = vld [vmem:[#allocation3 + $0x10] sm:$0xf] }
 0x6e3   : > { %v5435_v20 = vld.sshfl [vmem:[#allocation1 + $0x10] sm:$0xff pattern:$0x75643120]  ;;  %v13142_v38 = vld.sshfl [vmem:[#allocation1 + $0x18] sm:$0xff pattern:$0x75643120] }
 0x6e4   : > { %5484 = vst [vmem:[#allocation1 + $0x11] ss:$2 sm:$0xff] %v13117_v24 }
 0x6e5   : > { %v5544_v0 = vld.sshfl [vmem:[#allocation1] sm:$0xff pattern:$0x75643120]  ;;  %v13107_v2 = vld.sshfl [vmem:[#allocation1 + $0x8] sm:$0xff pattern:$0x75643120] }
 0x6e6   : > { %5593 = vst [vmem:[#allocation1 + $0x1] ss:$2 sm:$0xff] %v13092_v28  ;;  %5389 = vrot.lane.b32.xlu0 %v5379_v50, %s9472_s29  ;;  %5445 = vrot.lane.b32.xlu1 %v5435_v20, %s9473_s7  ;;  %v13161_v11 = vld.sshfl [vmem:[#allocation1 + $0x20] sm:$0xff pattern:$0x75643120] }
 0x6e7   : > { %5554 = vrot.lane.b32.xlu2 %v5544_v0, %s9452_s16  ;;  %5430 = vst [vmem:[#allocation1 + $0x20] ss:$2 sm:$0xff] %v5422_v37 }
 0x6eb   : > { %v5492_v21 = vld.sshfl [vmem:[#allocation1 + $0x10] sm:$0xff pattern:$0x75643120]  ;;  %v13156_v48 = vld.sshfl [vmem:[#allocation1 + $0x18] sm:$0xff pattern:$0x75643120] }
 0x6ec   : > { %5540 = vst [vmem:[#allocation1 + $0x10] ss:$2 sm:$0xff] %v13117_v24 }
 0x6ed   : > { %v5600_v22 = vld.sshfl [vmem:[#allocation1] sm:$0xff pattern:$0x75643120]  ;;  %v5602_v40 = vld.sshfl [vmem:[#allocation1 + $0x8] sm:$0xff pattern:$0x75643120] }
 0x6ee   : > { %5649 = vst [vmem:[#allocation1] ss:$2 sm:$0xff] %v13092_v28  ;;  %5556 = vrot.lane.b32.xlu0 %v13107_v2, %s9452_s16  ;;  %5610 = vrot.lane.b32.xlu1 %v5600_v22, %s9475_s10  ;;  %v13174_v7 = vld.sshfl [vmem:[#allocation1 + $0x20] sm:$0xff pattern:$0x75643120] }
 0x6ef   : > { %5612 = vrot.lane.b32.xlu2 %v5602_v40, %s9475_s10  ;;  %5487 = vst [vmem:[#allocation1 + $0x21] ss:$2 sm:$0xff] %v5478_v31 }
 0x6f3   : > { %v5548_v43 = vld.sshfl [vmem:[#allocation1 + $0x10] sm:$0xff pattern:$0x75643120]  ;;  %v5550_v62 = vld.sshfl [vmem:[#allocation1 + $0x18] sm:$0xff pattern:$0x75643120] }
 0x6f4   : > { %5596 = vst [vmem:[#allocation1 + $0x11] ss:$2 sm:$0xff] %v13117_v24 }
 0x6f5   : > { %v5656_v12 = vld.sshfl [vmem:[#allocation1] sm:$0xff pattern:$0x75643120]  ;;  %v5658_v19 = vld.sshfl [vmem:[#allocation1 + $0x8] sm:$0xff pattern:$0x75643120] }
 0x6f6   : > { %5706 = vst [vmem:[#allocation1 + $0x1] ss:$2 sm:$0xff] %v13092_v28  ;;  %5666 = vrot.lane.b32.xlu0 %v5656_v12, %s9476_s15  ;;  %5668 = vrot.lane.b32.xlu1 %v5658_v19, %s9476_s15  ;;  %v13181_v15 = vld.sshfl [vmem:[#allocation1 + $0x20] sm:$0xff pattern:$0x75643120] }
 0x6f7   : > { %5502 = vrot.lane.b32.xlu2 %v5492_v21, %s9474_s19  ;;  %5543 = vst [vmem:[#allocation1 + $0x20] ss:$2 sm:$0xff] %v5535_v13 }
 0x6fb   : > { %v5604_v35 = vld.sshfl [vmem:[#allocation1 + $0x10] sm:$0xff pattern:$0x75643120]  ;;  %v5606_v10 = vld.sshfl [vmem:[#allocation1 + $0x18] sm:$0xff pattern:$0x75643120] }
 0x6fc   : > { %5652 = vst [vmem:[#allocation1 + $0x10] ss:$2 sm:$0xff] %v13117_v24 }
 0x6fd   : > { %v13120_v30 = vld.sshfl [vmem:[#allocation1] sm:$0xff pattern:$0x75643120]  ;;  %v5715_v58 = vld.sshfl [vmem:[#allocation1 + $0x8] sm:$0xff pattern:$0x75643120] }
 0x6fe   : > { %5762 = vst [vmem:[#allocation1] ss:$2 sm:$0xff] %v13092_v28  ;;  %5725 = vrot.lane.b32.xlu0 %v5715_v58, %s9477_s17  ;;  %v13193_v51 = vld.sshfl [vmem:[#allocation1 + $0x20] sm:$0xff pattern:$0x75643120] }
 0x6ff   : > { %5558 = vrot.lane.b32.xlu2 %v5548_v43, %s9452_s16 }
 0x703   : > { %v5660_v8 = vld.sshfl [vmem:[#allocation1 + $0x10] sm:$0xff pattern:$0x75643120]  ;;  %v5662_v18 = vld.sshfl [vmem:[#allocation1 + $0x18] sm:$0xff pattern:$0x75643120] }
 0x704   : > { %5709 = vst [vmem:[#allocation1 + $0x11] ss:$2 sm:$0xff] %v13117_v24  ;;  %5670 = vrot.lane.b32.xlu1 %v5660_v8, %s9476_s15 }
 0x705   : > { %v13127_v45 = vld.sshfl [vmem:[#allocation1] sm:$0xff pattern:$0x75643120]  ;;  %v13129_v63 = vld.sshfl [vmem:[#allocation1 + $0x8] sm:$0xff pattern:$0x75643120] }
 0x706   : > { %5819 = vst [vmem:[#allocation1 + $0x1] ss:$2 sm:$0xff] %v13092_v28  ;;  %5614 = vrot.lane.b32.xlu0 %v5604_v35, %s9475_s10 }
 0x707   : > { %5560 = vrot.lane.b32.xlu2 %v5550_v62, %s9452_s16 }
 0x70b   : > { %v5717_v49 = vld.sshfl [vmem:[#allocation1 + $0x10] sm:$0xff pattern:$0x75643120]  ;;  %v5719_v39 = vld.sshfl [vmem:[#allocation1 + $0x18] sm:$0xff pattern:$0x75643120] }
 0x70c   : > { %5765 = vst [vmem:[#allocation1 + $0x10] ss:$2 sm:$0xff] %v13117_v24  ;;  %5672 = vrot.lane.b32.xlu1 %v5662_v18, %s9476_s15 }
 0x70d   : > { %v13137_v17 = vld.sshfl [vmem:[#allocation1] sm:$0xff pattern:$0x75643120]  ;;  %v13139_v29 = vld.sshfl [vmem:[#allocation1 + $0x8] sm:$0xff pattern:$0x75643120] }
 0x70e   : > { %5875 = vst [vmem:[#allocation1] ss:$2 sm:$0xff] %v13092_v28  ;;  %5616 = vrot.lane.b32.xlu0 %v5606_v10, %s9475_s10 }
 0x70f   : > { %5723 = vrot.lane.b32.xlu2 %v13120_v30, %s9477_s17 }
 0x713   : > { %v5773_v5 = vld.sshfl [vmem:[#allocation1 + $0x10] sm:$0xff pattern:$0x75643120]  ;;  %v5775_v14 = vld.sshfl [vmem:[#allocation1 + $0x18] sm:$0xff pattern:$0x75643120] }
 0x714   : > { %5822 = vst [vmem:[#allocation1 + $0x11] ss:$2 sm:$0xff] %v13117_v24  ;;  %5836 = vrot.lane.b32.xlu1 %v13137_v17, %s9479_s12 }
 0x715   : > { %v13151_v16 = vld.sshfl [vmem:[#allocation1] sm:$0xff pattern:$0x75643120]  ;;  %v13153_v41 = vld.sshfl [vmem:[#allocation1 + $0x8] sm:$0xff pattern:$0x75643120] }
 0x716   : > { %5931 = vst [vmem:[#allocation1 + $0x1] ss:$2 sm:$0xff] %v13092_v28  ;;  %v5590_v28 = vld [vmem:[#allocation3 + $0x10] sm:$0xf]  ;;  %5781 = vrot.lane.b32.xlu0 %v13129_v63, %s9478_s11 }
 0x717   : > { %5599 = vst [vmem:[#allocation1 + $0x21] ss:$2 sm:$0xff] %v5590_v28  ;;  %5779 = vrot.lane.b32.xlu2 %v13127_v45, %s9478_s11  ;;  %v13253_v63 = vld [vmem:[#allocation3 + $0xa] sm:$0xff] }
 0x71b   : > { %v5830_v22 = vld.sshfl [vmem:[#allocation1 + $0x10] sm:$0xff pattern:$0x75643120]  ;;  %v13227_v40 = vld.sshfl [vmem:[#allocation1 + $0x18] sm:$0xff pattern:$0x75643120] }
 0x71c   : > { %5878 = vst [vmem:[#allocation1 + $0x10] ss:$2 sm:$0xff] %v13117_v24  ;;  %5894 = vrot.lane.b32.xlu1 %v13153_v41, %s9457_s23 }
 0x71d   : > { %v13166_v53 = vld.sshfl [vmem:[#allocation1] sm:$0xff pattern:$0x75643120]  ;;  %v13168_v6 = vld.sshfl [vmem:[#allocation1 + $0x8] sm:$0xff pattern:$0x75643120] }
 0x71e   : > { %5986 = vst [vmem:[#allocation1] ss:$2 sm:$0xff] %v13164_v42  ;;  %v13206_v27 = vld.sshfl [vmem:[#allocation1 + $0x20] sm:$0xff pattern:$0x75643120]  ;;  %5892 = vrot.lane.b32.xlu0 %v13151_v16, %s9457_s23 }
 0x71f   : > { %5655 = vst [vmem:[#allocation1 + $0x20] ss:$2 sm:$0xff] %v5647_v46  ;;  %5838 = vrot.lane.b32.xlu2 %v13139_v29, %s9479_s12 }
 0x723   : > { %v5886_v12 = vld.sshfl [vmem:[#allocation1 + $0x10] sm:$0xff pattern:$0x75643120]  ;;  %v5888_v19 = vld.sshfl [vmem:[#allocation1 + $0x18] sm:$0xff pattern:$0x75643120] }
 0x724   : > { %5783 = vrot.lane.b32.xlu1 %v5773_v5, %s9478_s11  ;;  %5934 = vst [vmem:[#allocation1 + $0x11] ss:$2 sm:$0xff] %v13117_v24 }
 0x725   : > { %v5993_v4 = vld.sshfl [vmem:[#allocation1] sm:$0xff pattern:$0x75643120]  ;;  %v5994_v52 = vld.sshfl [vmem:[#allocation1 + $0x8] sm:$0xff pattern:$0x75643120] }
 0x726   : > { %6013 = vst [vmem:[#allocation1 + $0x1] ss:$2 sm:$0xff] %v13164_v42  ;;  %v13220_v26 = vld.sshfl [vmem:[#allocation1 + $0x20] sm:$0xff pattern:$0x75643120]  ;;  %5950 = vrot.lane.b32.xlu0 %v13168_v6, %s9458_s24 }
 0x727   : > { %6003 = vst [vmem:[#allocation5 + $0xd8] sm:$0x33] %v5993_v4  ;;  %5727 = vrot.lane.b32.xlu2 %v5717_v49, %s9477_s17 }
 0x728   : > { %6004 = vst [vmem:[#allocation5 + $0xe0] sm:$0x33] %v5994_v52  ;;  %v5386_v58 = vpop.permute.xlu2 %5385 }
 0x729   : > { %5712 = vst [vmem:[#allocation1 + $0x21] ss:$2 sm:$0xff] %v5703_v54  ;;  %v5395_v4 = vrot.slane %v5386_v58, 4 }
 0x72b   : > { %v5942_v50 = vld.sshfl [vmem:[#allocation1 + $0x10] sm:$0xff pattern:$0x75643120]  ;;  %v13257_v17 = vld.sshfl [vmem:[#allocation1 + $0x18] sm:$0xff pattern:$0x75643120] }
 0x72c   : > { %5785 = vrot.lane.b32.xlu1 %v5775_v14, %s9478_s11  ;;  %5989 = vst [vmem:[#allocation1 + $0x10] ss:$2 sm:$0xff] %v13253_v63 }
 0x72d   : > { %v13183_v36 = vld.sshfl [vmem:[#allocation1] sm:$0xff pattern:$0x75643120]  ;;  %v13185_v1 = vld.sshfl [vmem:[#allocation1 + $0x8] sm:$0xff pattern:$0x75643120] }
 0x72e   : > { %6068 = vst [vmem:[#allocation1] ss:$2 sm:$0xff] %v13164_v42  ;;  %5896 = vrot.lane.b32.xlu0 %v5886_v12, %s9457_s23 }
 0x72f   : > { %5729 = vrot.lane.b32.xlu2 %v5719_v39, %s9477_s17  ;;  %v5928_v39 = vld [vmem:[#allocation3 + $0x10] sm:$0xf] }
 0x730   : > { %v13235_v55 = vld.sshfl [vmem:[#allocation1 + $0x20] sm:$0xff pattern:$0x75643120]  ;;  %v13264_v29 = vpop.permute.xlu2 %5443 }
 0x731   : > { %5768 = vst [vmem:[#allocation1 + $0x20] ss:$2 sm:$0xff] %v5760_v25  ;;  %v5452_v52 = vrot.slane %v13264_v29, 4 }
 0x733   : > { %v5995_v6 = vld.sshfl [vmem:[#allocation1 + $0x10] sm:$0xff pattern:$0x75643120]  ;;  %v5996_v31 = vld.sshfl [vmem:[#allocation1 + $0x18] sm:$0xff pattern:$0x75643120] }
 0x734   : > { %6032 = vrot.lane.b32.xlu1 %v13185_v1, %s9459_s25  ;;  %6005 = vst [vmem:[#allocation5 + $0xe8] sm:$0x33] %v5995_v6 }
 0x735   : > { %v13195_v3 = vld.sshfl [vmem:[#allocation1] sm:$0xff pattern:$0x75643120]  ;;  %v13197_v61 = vld.sshfl [vmem:[#allocation1 + $0x8] sm:$0xff pattern:$0x75643120] }
 0x736   : > { %6124 = vst [vmem:[#allocation1 + $0x1] ss:$2 sm:$0xff] %v13164_v42  ;;  %5898 = vrot.lane.b32.xlu0 %v5888_v19, %s9457_s23 }
 0x737   : > { %5948 = vrot.lane.b32.xlu2 %v13166_v53, %s9458_s24  ;;  %6006 = vst [vmem:[#allocation5 + $0xf0] sm:$0x33] %v5996_v31 }
 0x738   : > { %v13246_v30 = vld.sshfl [vmem:[#allocation1 + $0x20] sm:$0xff pattern:$0x75643120]  ;;  %v5331_v16 = vpop.permute.xlu1 %5330  ;;  %v5329_v41 = vpop.permute.xlu0 %5328  ;;  %6016 = vst [vmem:[#allocation1 + $0x11] ss:$2 sm:$0xff] %v13253_v63 }
 0x739   : > { %5825 = vst [vmem:[#allocation1 + $0x21] ss:$2 sm:$0xff] %v5816_v44  ;;  %v5339_v37 = vrot.slane %v5331_v16, 4  ;;  %v5338_v21 = vrot.slane %v5329_v41, 4  ;;  %v13278_v62 = vpop.permute.xlu2 %5332 }
 0x73a   : > { %v14301_v35 = vrot.slane %v13278_v62, 4 }
 0x73b   : > { %v5343_v53 = vsel %vm460_vm2, %v5338_v21, %v5339_v37 }
 0x73c   : > { %v5345_v43 = vsel %vm5344_vm5, %v5329_v41, %v5343_v53  ;;  %5952 = vrot.lane.b32.xlu1 %v5942_v50, %s9458_s24  ;;  %v5984_v50 = vld [vmem:[#allocation3 + $0x12] sm:$0x3] }
 0x73d   : > { %v13208_v0 = vld.sshfl [vmem:[#allocation1] sm:$0xff pattern:$0x75643120]  ;;  %v13210_v2 = vld.sshfl [vmem:[#allocation1 + $0x8] sm:$0xff pattern:$0x75643120] }
 0x73e   : > { %6180 = vst [vmem:[#allocation1] ss:$2 sm:$0xff] %v13164_v42  ;;  %6030 = vrot.lane.b32.xlu0 %v13183_v36, %s9459_s25  ;;  %v5346_v36 = vsel %vm460_vm2, %v5339_v37, %v14301_v35 }
 0x73f   : > { %5840 = vrot.lane.b32.xlu2 %v5830_v22, %s9479_s12  ;;  %5358 = vst [vmem:[#allocation5] sm:$0x33] %v5345_v43  ;;  %v5347_v18 = vsel %vm5344_vm5, %v5331_v16, %v5346_v36  ;;  %v6026_v44 = vld.sshfl [vmem:[#allocation1 + $0x18] sm:$0xff pattern:$0x75643120] }
 0x740   : > { %v13262_v24 = vld.sshfl [vmem:[#allocation1 + $0x20] sm:$0xff pattern:$0x75643120]  ;;  %v13292_v28 = vpop.permute.xlu0 %5387  ;;  %5359 = vst [vmem:[#allocation5 + $0x8] sm:$0x33] %v5347_v18 }
 0x741   : > { %5881 = vst [vmem:[#allocation1 + $0x20] ss:$2 sm:$0xff] %v5873_v57  ;;  %v5396_v46 = vrot.slane %v13292_v28, 4  ;;  %v13308_v22 = vpop.permute.xlu2 %5554  ;;  %v6010_v43 = vld [vmem:[#allocation3 + $0x12] sm:$0xf] }
 0x743   : > { %v5400_v54 = vsel %vm460_vm2, %v5395_v4, %v5396_v46 }
 0x744   : > { %v5402_v14 = vsel %vm5401_vm0, %v5386_v58, %v5400_v54  ;;  %5954 = vrot.lane.b32.xlu1 %v13257_v17, %s9458_s24 }
 0x745   : > { %v13222_v33 = vld.sshfl [vmem:[#allocation1] sm:$0xff pattern:$0x75643120]  ;;  %v13224_v56 = vld.sshfl [vmem:[#allocation1 + $0x8] sm:$0xff pattern:$0x75643120] }
 0x746   : > { %6237 = vst [vmem:[#allocation1 + $0x1] ss:$2 sm:$0xff] %v13164_v42  ;;  %6087 = vrot.lane.b32.xlu0 %v13197_v61, %s14650_s13 }
 0x747   : > { %5842 = vrot.lane.b32.xlu2 %v13227_v40, %s9479_s12  ;;  %5415 = vst [vmem:[#allocation5] sm:$0xcc] %v5402_v14  ;;  %v6024_v40 = vld.sshfl [vmem:[#allocation1 + $0x10] sm:$0xff pattern:$0x75643120] }
 0x748   : > { %v13283_v13 = vld.sshfl [vmem:[#allocation1 + $0x20] sm:$0xff pattern:$0x75643120]  ;;  %v5442_v8 = vpop.permute.xlu1 %5441  ;;  %6071 = vst [vmem:[#allocation1 + $0x10] ss:$2 sm:$0xff] %v13253_v63 }
 0x749   : > { %v5451_v49 = vrot.slane %v5442_v8, 4  ;;  %5937 = vst [vmem:[#allocation1 + $0x21] ss:$2 sm:$0xff] %v5928_v39  ;;  %v13325_v53 = vpop.permute.xlu2 %5612 }
 0x74b   : > { %v5456_v5 = vsel %vm460_vm2, %v5451_v49, %v5452_v52 }
 0x74c   : > { %v5458_v25 = vsel %vm5457_vm3, %v5442_v8, %v5456_v5  ;;  %6141 = vrot.lane.b32.xlu1 %v13208_v0, %s9480_s30  ;;  %v6066_v5 = vld [vmem:[#allocation3 + $0x12] sm:$0xf] }
 0x74d   : > { %v13237_v59 = vld.sshfl [vmem:[#allocation1] sm:$0xff pattern:$0x75643120]  ;;  %v13239_v34 = vld.sshfl [vmem:[#allocation1 + $0x8] sm:$0xff pattern:$0x75643120] }
 0x74e   : > { %6293 = vst [vmem:[#allocation1] ss:$2 sm:$0xff] %v13164_v42  ;;  %6036 = vrot.lane.b32.xlu0 %v6026_v44, %s9459_s25 }
 0x74f   : > { %5471 = vst [vmem:[#allocation5 + $0x24] sm:$0x33] %v5458_v25  ;;  %6085 = vrot.lane.b32.xlu2 %v13195_v3, %s14650_s13  ;;  %v13332_v3 = vld.sshfl [vmem:[#allocation1 + $0x18] sm:$0xff pattern:$0x75643120] }
 0x750   : > { %v5501_v57 = vpop.permute.xlu1 %5500  ;;  %v5499_v16 = vpop.permute.xlu0 %5498  ;;  %v13316_v41 = vld.sshfl [vmem:[#allocation1 + $0x20] sm:$0xff pattern:$0x75643120]  ;;  %v6079_v36 = vld.sshfl [vmem:[#allocation1 + $0x10] sm:$0xff pattern:$0x75643120] }
 0x751   : > { %v5509_v58 = vrot.slane %v5501_v57, 4  ;;  %v5508_v61 = vrot.slane %v5499_v16, 4  ;;  %5992 = vst [vmem:[#allocation1 + $0x20] ss:$2 sm:$0xff] %v5984_v50  ;;  %v13340_v17 = vpop.permute.xlu2 %5502 }
 0x752   : > { %6127 = vst [vmem:[#allocation1 + $0x11] ss:$2 sm:$0xff] %v13253_v63  ;;  %v14299_v18 = vrot.slane %v13340_v17, 4 }
 0x753   : > { %v5513_v37 = vsel %vm460_vm2, %v5508_v61, %v5509_v58 }
 0x754   : > { %v5515_v21 = vsel %vm5514_vm6, %v5499_v16, %v5513_v37  ;;  %6034 = vrot.lane.b32.xlu1 %v6024_v40, %s9459_s25 }
 0x755   : > { %v13248_v47 = vld.sshfl [vmem:[#allocation1] sm:$0xff pattern:$0x75643120]  ;;  %v13250_v45 = vld.sshfl [vmem:[#allocation1 + $0x8] sm:$0xff pattern:$0x75643120] }
 0x756   : > { %6350 = vst [vmem:[#allocation1 + $0x1] ss:$2 sm:$0xff] %v13164_v42  ;;  %6197 = vrot.lane.b32.xlu0 %v13222_v33, %s9481_s26 }
 0x757   : > { %5528 = vst [vmem:[#allocation5 + $0x24] sm:$0xcc] %v5515_v21  ;;  %6143 = vrot.lane.b32.xlu2 %v13210_v2, %s9480_s30  ;;  %v5516_v2 = vsel %vm460_vm2, %v5509_v58, %v14299_v18 }
 0x758   : > { %v5997_v4 = vld.sshfl [vmem:[#allocation1 + $0x20] sm:$0xff pattern:$0x75643120]  ;;  %v13342_v8 = vpop.permute.xlu0 %5389  ;;  %v5517_v33 = vsel %vm5514_vm6, %v5501_v57, %v5516_v2  ;;  %v13360_v25 = vpop.permute.xlu1 %5445 }
 0x759   : > { %6019 = vst [vmem:[#allocation1 + $0x21] ss:$2 sm:$0xff] %v6010_v43  ;;  %v14305_v49 = vrot.slane %v13342_v8, 4  ;;  %v13358_v14 = vld.sshfl [vmem:[#allocation1 + $0x10] sm:$0xff pattern:$0x75643120]  ;;  %v5559_v44 = vpop.permute.xlu2 %5558 }
 0x75a   : > { %6007 = vst [vmem:[#allocation5 + $0xf8] sm:$0x3] %v5997_v4  ;;  %v14302_v57 = vrot.slane %v13360_v25, 4  ;;  %v5566_v50 = vrot.slane %v5559_v44, 4  ;;  %v6121_v43 = vld [vmem:[#allocation3 + $0x12] sm:$0xf] }
 0x75b   : > { %v5403_v0 = vsel %vm460_vm2, %v5396_v46, %v14305_v49  ;;  %5529 = vst [vmem:[#allocation5 + $0x2c] sm:$0xcc] %v5517_v33  ;;  %v13362_v46 = vld.sshfl [vmem:[#allocation1 + $0x18] sm:$0xff pattern:$0x75643120] }
 0x75c   : > { %v5404_v39 = vsel %vm5401_vm0, %v13292_v28, %v5403_v0  ;;  %6183 = vst [vmem:[#allocation1 + $0x10] ss:$2 sm:$0xff] %v13253_v63  ;;  %v5564_v28 = vrot.slane %v13308_v22, 4  ;;  %v5459_v40 = vsel %vm460_vm2, %v5452_v52, %v14302_v57  ;;  %6199 = vrot.lane.b32.xlu1 %v13224_v56, %s9481_s26  ;;  %v6459_v57 = vld [vmem:[#allocation3 + $0x12] sm:$0xf] }
 0x75d   : > { %v13266_v32 = vld.sshfl [vmem:[#allocation1] sm:$0xff pattern:$0x75643120]  ;;  %v13268_v20 = vld.sshfl [vmem:[#allocation1 + $0x8] sm:$0xff pattern:$0x75643120]  ;;  %v5460_v61 = vsel %vm5457_vm3, %v13264_v29, %v5459_v40 }
 0x75e   : > { %6406 = vst [vmem:[#allocation1] ss:$2 sm:$0xff] %v13164_v42  ;;  %v6178_v40 = vld [vmem:[#allocation3 + $0x12] sm:$0xf] }
 0x75f   : > { %5416 = vst [vmem:[#allocation5 + $0x8] sm:$0xcc] %v5404_v39  ;;  %v6572_v49 = vld [vmem:[#allocation3 + $0x12] sm:$0xf] }
 0x760   : > { %v6028_v54 = vld.sshfl [vmem:[#allocation1 + $0x20] sm:$0xff pattern:$0x75643120]  ;;  %v5557_v16 = vpop.permute.xlu0 %5556  ;;  %5472 = vst [vmem:[#allocation5 + $0x2c] sm:$0x33] %v5460_v61  ;;  %v5611_v29 = vpop.permute.xlu1 %5610 }
 0x761   : > { %6038 = vrot.lane.b32.xlu2 %v6028_v54, %s9459_s25  ;;  %6074 = vst [vmem:[#allocation1 + $0x20] ss:$2 sm:$0xff] %v6066_v5  ;;  %v5565_v58 = vrot.slane %v5557_v16, 4  ;;  %v13383_v52 = vpop.permute.xlu2 %5560  ;;  %v5620_v39 = vrot.slane %v5611_v29, 4  ;;  %s9482_s25 = smov 116  }
 0x762   : > { %v14304_v54 = vrot.slane %v13383_v52, 4 }
 0x763   : > { %v5569_v37 = vsel %vm460_vm2, %v5564_v28, %v5565_v58  ;;  %v5571_v21 = vsel %vm460_vm2, %v5565_v58, %v5566_v50  ;;  %v6191_v33 = vld.sshfl [vmem:[#allocation1 + $0x10] sm:$0xff pattern:$0x75643120] }
 0x764   : > { %v5570_v4 = vsel %vm1116_vm10, %v13308_v22, %v5569_v37  ;;  %v5572_v2 = vsel %vm1116_vm10, %v5557_v16, %v5571_v21  ;;  %v5621_v22 = vrot.slane %v13325_v53, 4  ;;  %v13387_v16 = vld.sshfl [vmem:[#allocation1 + $0x18] sm:$0xff pattern:$0x75643120]  ;;  %6091 = vrot.lane.b32.xlu1 %v13332_v3, %s14650_s13 }
 0x765   : > { %v13285_v10 = vld.sshfl [vmem:[#allocation1] sm:$0xff pattern:$0x75643120]  ;;  %v13287_v1 = vld.sshfl [vmem:[#allocation1 + $0x8] sm:$0xff pattern:$0x75643120] }
 0x766   : > { %6462 = vst [vmem:[#allocation1 + $0x1] ss:$2 sm:$0xff] %v13164_v42  ;;  %v5625_v56 = vsel %vm460_vm2, %v5620_v39, %v5621_v22  ;;  %v6234_v39 = vld [vmem:[#allocation3 + $0x12] sm:$0xf] }
 0x767   : > { %5583 = vst [vmem:[#allocation5 + $0x48] sm:$0x33] %v5570_v4  ;;  %v5627_v28 = vsel %vm5626_vm8, %v5611_v29, %v5625_v56 }
 0x768   : > { %v6083_v0 = vld.sshfl [vmem:[#allocation1 + $0x20] sm:$0xff pattern:$0x75643120]  ;;  %5584 = vst [vmem:[#allocation5 + $0x50] sm:$0x33] %v5572_v2  ;;  %v5667_v5 = vpop.permute.xlu0 %5666 }
 0x769   : > { %6089 = vrot.lane.b32.xlu2 %v6079_v36, %s14650_s13  ;;  %6093 = vrot.lane.b32.xlu0 %v6083_v0, %s14650_s13  ;;  %6130 = vst [vmem:[#allocation1 + $0x21] ss:$2 sm:$0xff] %v6121_v43  ;;  %v5573_v36 = vsel %vm460_vm2, %v5566_v50, %v14304_v54  ;;  %v5676_v37 = vrot.slane %v5667_v5, 4  ;;  %v5669_v50 = vpop.permute.xlu1 %5668  ;;  %v5724_v21 = vpop.permute.xlu2 %5723  ;;  %s9488_s13 = smov 102  }
 0x76a   : > { %6240 = vst [vmem:[#allocation1 + $0x11] ss:$2 sm:$0xff] %v13253_v63  ;;  %v5574_v58 = vsel %vm1116_vm10, %v5559_v44, %v5573_v36  ;;  %v5677_v44 = vrot.slane %v5669_v50, 4  ;;  %v5733_v2 = vrot.slane %v5724_v21, 4 }
 0x76b   : > { %5640 = vst [vmem:[#allocation5 + $0x48] sm:$0xcc] %v5627_v28 }
 0x76c   : > { %5585 = vst [vmem:[#allocation5 + $0x58] sm:$0x33] %v5574_v58  ;;  %v5681_v3 = vsel %vm460_vm2, %v5676_v37, %v5677_v44 }
 0x76d   : > { %v13310_v12 = vld.sshfl [vmem:[#allocation1] sm:$0xff pattern:$0x75643120]  ;;  %v13312_v19 = vld.sshfl [vmem:[#allocation1 + $0x8] sm:$0xff pattern:$0x75643120] }
 0x76e   : > { %6518 = vst [vmem:[#allocation1] ss:$2 sm:$0xff] %v13164_v42 }
 0x770   : > { %v6139_v61 = vld.sshfl [vmem:[#allocation1 + $0x20] sm:$0xff pattern:$0x75643120]  ;;  %v13402_v43 = vpop.permute.xlu0 %5725 }
 0x771   : > { %6254 = vrot.lane.b32.xlu2 %v13237_v59, %s9482_s25  ;;  %6256 = vrot.lane.b32.xlu0 %v13239_v34, %s9482_s25  ;;  %6186 = vst [vmem:[#allocation1 + $0x20] ss:$2 sm:$0xff] %v6178_v40  ;;  %v13404_v4 = vld.sshfl [vmem:[#allocation1 + $0x10] sm:$0xff pattern:$0x75643120]  ;;  %v5734_v59 = vrot.slane %v13402_v43, 4  ;;  %v5683_v34 = vsel %vm14306_vm12, %v5667_v5, %v5681_v3  ;;  %v13419_v28 = vpop.permute.xlu2 %5779 }
 0x772   : > { %v13407_v0 = vld.sshfl [vmem:[#allocation1 + $0x18] sm:$0xff pattern:$0x75643120]  ;;  %5696 = vst [vmem:[#allocation5 + $0x6c] sm:$0x33] %v5683_v34  ;;  %6149 = vrot.lane.b32.xlu1 %v6139_v61, %s9480_s30 }
 0x773   : > { %6296 = vst [vmem:[#allocation1 + $0x10] ss:$2 sm:$0xff] %v13253_v63  ;;  %v5738_v29 = vsel %vm460_vm2, %v5733_v2, %v5734_v59  ;;  %v6291_v2 = vld [vmem:[#allocation3 + $0x12] sm:$0xf] }
 0x774   : > { %v5740_v56 = vsel %vm5739_vm9, %v5724_v21, %v5738_v29 }
 0x775   : > { %v13327_v6 = vld.sshfl [vmem:[#allocation1] sm:$0xff pattern:$0x75643120]  ;;  %v13329_v31 = vld.sshfl [vmem:[#allocation1 + $0x8] sm:$0xff pattern:$0x75643120] }
 0x776   : > { %6575 = vst [vmem:[#allocation1 + $0x1] ss:$2 sm:$0xff] %v13164_v42  ;;  %v5671_v61 = vpop.permute.xlu1 %5670 }
 0x777   : > { %5753 = vst [vmem:[#allocation5 + $0x6c] sm:$0xcc] %v5740_v56  ;;  %v5678_v34 = vrot.slane %v5671_v61, 4 }
 0x778   : > { %v6195_v36 = vld.sshfl [vmem:[#allocation1 + $0x20] sm:$0xff pattern:$0x75643120]  ;;  %v5615_v5 = vpop.permute.xlu0 %5614 }
 0x779   : > { %6147 = vrot.lane.b32.xlu2 %v13362_v46, %s9480_s30  ;;  %6145 = vrot.lane.b32.xlu0 %v13358_v14, %s9480_s30  ;;  %6243 = vst [vmem:[#allocation1 + $0x21] ss:$2 sm:$0xff] %v6234_v39  ;;  %v5622_v58 = vrot.slane %v5615_v5, 4 }
 0x77a   : > { %v6304_v40 = vld.sshfl [vmem:[#allocation1 + $0x10] sm:$0xff pattern:$0x75643120]  ;;  %v13421_v37 = vld.sshfl [vmem:[#allocation1 + $0x18] sm:$0xff pattern:$0x75643120]  ;;  %6310 = vrot.lane.b32.xlu1 %v13248_v47, %s9483_s9 }
 0x77b   : > { %v5628_v21 = vsel %vm460_vm2, %v5621_v22, %v5622_v58  ;;  %6353 = vst [vmem:[#allocation1 + $0x11] ss:$2 sm:$0xff] %v13253_v63  ;;  %v13434_v22 = vpop.permute.xlu2 %5838 }
 0x77c   : > { %v5629_v46 = vsel %vm5626_vm8, %v13325_v53, %v5628_v21 }
 0x77d   : > { %5641 = vst [vmem:[#allocation5 + $0x50] sm:$0xcc] %v5629_v46 }
 0x780   : > { %v13429_v14 = vld.sshfl [vmem:[#allocation1 + $0x20] sm:$0xff pattern:$0x75643120]  ;;  %v13436_v3 = vpop.permute.xlu0 %5616 }
 0x781   : > { %6312 = vrot.lane.b32.xlu2 %v13250_v45, %s9483_s9  ;;  %6201 = vrot.lane.b32.xlu0 %v6191_v33, %s9481_s26  ;;  %6299 = vst [vmem:[#allocation1 + $0x20] ss:$2 sm:$0xff] %v6291_v2  ;;  %v14300_v53 = vrot.slane %v13436_v3, 4  ;;  %v5684_v45 = vsel %vm460_vm2, %v5677_v44, %v5678_v34  ;;  %v13448_v33 = vld.sshfl [vmem:[#allocation1 + $0x8] sm:$0xff pattern:$0x75643120] }
 0x782   : > { %v13439_v29 = vld.sshfl [vmem:[#allocation1 + $0x10] sm:$0xff pattern:$0x75643120]  ;;  %v13441_v39 = vld.sshfl [vmem:[#allocation1 + $0x18] sm:$0xff pattern:$0x75643120]  ;;  %v5685_v56 = vsel %vm14306_vm12, %v5669_v50, %v5684_v45  ;;  %6369 = vrot.lane.b32.xlu1 %v13268_v20, %s9484_s18 }
 0x783   : > { %v5630_v47 = vsel %vm460_vm2, %v5622_v58, %v14300_v53  ;;  %6409 = vst [vmem:[#allocation1 + $0x10] ss:$2 sm:$0xff] %v13253_v63  ;;  %v13452_v2 = vld.sshfl [vmem:[#allocation1] sm:$0xff pattern:$0x75643120]  ;;  %v5728_v50 = vpop.permute.xlu2 %5727 }
 0x784   : > { %v5631_v21 = vsel %vm5626_vm8, %v5615_v5, %v5630_v47  ;;  %5697 = vst [vmem:[#allocation5 + $0x74] sm:$0x33] %v5685_v56  ;;  %v6347_v44 = vld [vmem:[#allocation3 + $0x12] sm:$0xf]  ;;  %v13462_v5 = vpop.permute.xlu1 %5672  ;;  %v5735_v58 = vrot.slane %v5728_v50, 4 }
 0x785   : > { %5642 = vst [vmem:[#allocation5 + $0x58] sm:$0xcc] %v5631_v21 }
 0x786   : > { %6631 = vst [vmem:[#allocation1] ss:$2 sm:$0xff] %v13164_v42  ;;  %v5741_v47 = vsel %vm460_vm2, %v5734_v59, %v5735_v58  ;;  %v6404_v59 = vld [vmem:[#allocation3 + $0x12] sm:$0xf] }
 0x787   : > { %v5742_v21 = vsel %vm5739_vm9, %v13402_v43, %v5741_v47  ;;  %v5789_v43 = vrot.slane %v13419_v28, 4 }
 0x788   : > { %v13456_v46 = vld.sshfl [vmem:[#allocation1 + $0x20] sm:$0xff pattern:$0x75643120]  ;;  %v13464_v45 = vpop.permute.xlu0 %5781  ;;  %5754 = vst [vmem:[#allocation5 + $0x74] sm:$0xcc] %v5742_v21 }
 0x789   : > { %6425 = vrot.lane.b32.xlu2 %v13287_v1, %s14651_s8  ;;  %6203 = vrot.lane.b32.xlu0 %v13387_v16, %s9481_s26  ;;  %6356 = vst [vmem:[#allocation1 + $0x21] ss:$2 sm:$0xff] %v6347_v44  ;;  %v14298_v1 = vrot.slane %v13462_v5, 4  ;;  %v5790_v42 = vrot.slane %v13464_v45, 4 }
 0x78a   : > { %v13469_v56 = vld.sshfl [vmem:[#allocation1 + $0x10] sm:$0xff pattern:$0x75643120]  ;;  %v13471_v20 = vld.sshfl [vmem:[#allocation1 + $0x18] sm:$0xff pattern:$0x75643120]  ;;  %6258 = vrot.lane.b32.xlu1 %v13404_v4, %s9482_s25 }
 0x78b   : > { %v5686_v16 = vsel %vm460_vm2, %v5678_v34, %v14298_v1  ;;  %6465 = vst [vmem:[#allocation1 + $0x11] ss:$2 sm:$0xff] %v13253_v63  ;;  %v13488_v47 = vpop.permute.xlu2 %5729  ;;  %v5794_v4 = vsel %vm460_vm2, %v5789_v43, %v5790_v42 }
 0x78c   : > { %v5687_v44 = vsel %vm14306_vm12, %v5671_v61, %v5686_v16  ;;  %v5837_v61 = vpop.permute.xlu1 %5836  ;;  %v14303_v16 = vrot.slane %v13488_v47, 4  ;;  %v5796_v43 = vsel %vm5795_vm11, %v13419_v28, %v5794_v4 }
 0x78d   : > { %5698 = vst [vmem:[#allocation5 + $0x7c] sm:$0x33] %v5687_v44  ;;  %v5847_v44 = vrot.slane %v13434_v22, 4 }
 0x78e   : > { %5809 = vst [vmem:[#allocation5 + $0x90] sm:$0x33] %v5796_v43  ;;  %v6516_v43 = vld [vmem:[#allocation3 + $0x12] sm:$0xf] }
 0x790   : > { %v13485_v34 = vld.sshfl [vmem:[#allocation1 + $0x20] sm:$0xff pattern:$0x75643120]  ;;  %v5893_v21 = vpop.permute.xlu0 %5892 }
 0x791   : > { %6314 = vrot.lane.b32.xlu2 %v6304_v40, %s9483_s9  ;;  %6205 = vrot.lane.b32.xlu0 %v6195_v36, %s9481_s26  ;;  %6412 = vst [vmem:[#allocation1 + $0x20] ss:$2 sm:$0xff] %v6404_v59  ;;  %v5846_v40 = vrot.slane %v5837_v61, 4  ;;  %v5743_v36 = vsel %vm460_vm2, %v5735_v58, %v14303_v16  ;;  %v5902_v58 = vrot.slane %v5893_v21, 4 }
 0x792   : > { %v13498_v1 = vld.sshfl [vmem:[#allocation1 + $0x18] sm:$0xff pattern:$0x75643120]  ;;  %v13500_v18 = vld.sshfl [vmem:[#allocation1 + $0x10] sm:$0xff pattern:$0x75643120]  ;;  %v5744_v53 = vsel %vm5739_vm9, %v5728_v50, %v5743_v36  ;;  %6260 = vrot.lane.b32.xlu1 %v13407_v0, %s9482_s25 }
 0x793   : > { %v5851_v59 = vsel %vm460_vm2, %v5846_v40, %v5847_v44  ;;  %6521 = vst [vmem:[#allocation1 + $0x10] ss:$2 sm:$0xff] %v13253_v63 }
 0x794   : > { %v5853_v35 = vsel %vm5852_vm15, %v5837_v61, %v5851_v59  ;;  %5755 = vst [vmem:[#allocation5 + $0x7c] sm:$0xcc] %v5744_v53  ;;  %v5949_v61 = vpop.permute.xlu2 %5948  ;;  %v5895_v53 = vpop.permute.xlu1 %5894 }
 0x795   : > { %5866 = vst [vmem:[#allocation5 + $0x90] sm:$0xcc] %v5853_v35  ;;  %v5903_v28 = vrot.slane %v5895_v53, 4  ;;  %v5958_v35 = vrot.slane %v5949_v61, 4 }
 0x797   : > { %v5907_v0 = vsel %vm460_vm2, %v5902_v58, %v5903_v28 }
 0x798   : > { %v13514_v50 = vld.sshfl [vmem:[#allocation1 + $0x20] sm:$0xff pattern:$0x75643120]  ;;  %v13516_v40 = vpop.permute.xlu0 %5950 }
 0x799   : > { %6316 = vrot.lane.b32.xlu2 %v13421_v37, %s9483_s9  ;;  %6367 = vrot.lane.b32.xlu0 %v13266_v32, %s9484_s18  ;;  %6468 = vst [vmem:[#allocation1 + $0x21] ss:$2 sm:$0xff] %v6459_v57  ;;  %v5959_v4 = vrot.slane %v13516_v40, 4  ;;  %v5908_v57 = vsel %vm1770_vm7, %v5893_v21, %v5907_v0 }
 0x79a   : > { %v13519_v37 = vld.sshfl [vmem:[#allocation1 + $0x10] sm:$0xff pattern:$0x75643120]  ;;  %v13521_v36 = vld.sshfl [vmem:[#allocation1 + $0x18] sm:$0xff pattern:$0x75643120]  ;;  %6262 = vrot.lane.b32.xlu1 %v13429_v14, %s9482_s25 }
 0x79b   : > { %v5963_v32 = vsel %vm460_vm2, %v5958_v35, %v5959_v4  ;;  %6578 = vst [vmem:[#allocation1 + $0x11] ss:$2 sm:$0xff] %v13253_v63 }
 0x79c   : > { %v5964_v59 = vsel %vm14652_vm13, %v5949_v61, %v5963_v32  ;;  %5921 = vst [vmem:[#allocation5 + $0xb4] sm:$0x33] %v5908_v57  ;;  %v5841_v35 = vpop.permute.xlu2 %5840  ;;  %v5784_v21 = vpop.permute.xlu1 %5783  ;;  %vm14656_vm13 = vmmov %vm14653_vm1 }
 0x79d   : > { %5977 = vst [vmem:[#allocation5 + $0xb4] sm:$0xcc] %v5964_v59  ;;  %v5848_v0 = vrot.slane %v5841_v35, 4  ;;  %v5791_v32 = vrot.slane %v5784_v21, 4 }
 0x79f   : > { %v5854_v16 = vsel %vm460_vm2, %v5847_v44, %v5848_v0 }
 0x7a0   : > { %v13536_v58 = vld.sshfl [vmem:[#allocation1 + $0x20] sm:$0xff pattern:$0x75643120]  ;;  %v5897_v61 = vpop.permute.xlu0 %5896  ;;  %v5855_v14 = vsel %vm5852_vm15, %v13434_v22, %v5854_v16 }
 0x7a1   : > { %6318 = vrot.lane.b32.xlu2 %v13456_v46, %s9483_s9  ;;  %6479 = vrot.lane.b32.xlu0 %v13310_v12, %s9485_s20  ;;  %6524 = vst [vmem:[#allocation1 + $0x20] ss:$2 sm:$0xff] %v6516_v43  ;;  %v5904_v57 = vrot.slane %v5897_v61, 4  ;;  %v5797_v12 = vsel %vm460_vm2, %v5790_v42, %v5791_v32 }
 0x7a2   : > { %v13539_v46 = vld.sshfl [vmem:[#allocation1 + $0x18] sm:$0xff pattern:$0x75643120]  ;;  %v13541_v54 = vld.sshfl [vmem:[#allocation1 + $0x10] sm:$0xff pattern:$0x75643120]  ;;  %v5798_v44 = vsel %vm5795_vm11, %v13464_v45, %v5797_v12  ;;  %6423 = vrot.lane.b32.xlu1 %v13285_v10, %s14651_s8 }
 0x7a3   : > { %v5909_v59 = vsel %vm460_vm2, %v5903_v28, %v5904_v57  ;;  %6634 = vst [vmem:[#allocation1 + $0x10] ss:$2 sm:$0xff] %v13253_v63 }
 0x7a4   : > { %5867 = vst [vmem:[#allocation5 + $0x98] sm:$0xcc] %v5855_v14  ;;  %v5910_v43 = vsel %vm1770_vm7, %v5895_v53, %v5909_v59  ;;  %v13561_v63 = vpop.permute.xlu2 %5842  ;;  %v13563_v42 = vpop.permute.xlu1 %5785  ;;  %v6629_v59 = vld [vmem:[#allocation3 + $0x12] sm:$0xf] }
 0x7a5   : > { %5922 = vst [vmem:[#allocation5 + $0xbc] sm:$0x33] %v5910_v43  ;;  %v5849_v45 = vrot.slane %v13561_v63, 4 }
 0x7a6   : > { %5810 = vst [vmem:[#allocation5 + $0x98] sm:$0x33] %v5798_v44 }
 0x7a7   : > { %v5856_v10 = vsel %vm460_vm2, %v5848_v0, %v5849_v45 }
 0x7a8   : > { %v13559_v22 = vld.sshfl [vmem:[#allocation1 + $0x20] sm:$0xff pattern:$0x75643120]  ;;  %v13566_v16 = vpop.permute.xlu0 %5898 }
 0x7a9   : > { %6535 = vrot.lane.b32.xlu2 %v13327_v6, %s9486_s27  ;;  %6371 = vrot.lane.b32.xlu0 %v13439_v29, %s9484_s18  ;;  %6581 = vst [vmem:[#allocation1 + $0x21] ss:$2 sm:$0xff] %v6572_v49  ;;  %v5792_v6 = vrot.slane %v13563_v42, 4  ;;  %v5905_v53 = vrot.slane %v13566_v16, 4  ;;  %v5857_v49 = vsel %vm5852_vm15, %v5841_v35, %v5856_v10 }
 0x7aa   : > { %5868 = vst [vmem:[#allocation5 + $0xa0] sm:$0xcc] %v5857_v49  ;;  %6481 = vrot.lane.b32.xlu1 %v13312_v19, %s9485_s20 }
 0x7ab   : > { %v5799_v29 = vsel %vm460_vm2, %v5791_v32, %v5792_v6  ;;  %v5911_v28 = vsel %vm460_vm2, %v5904_v57, %v5905_v53 }
 0x7ac   : > { %v5912_v12 = vsel %vm1770_vm7, %v5897_v61, %v5911_v28  ;;  %v5800_v14 = vsel %vm5795_vm11, %v5784_v21, %v5799_v29  ;;  %v6086_v0 = vpop.permute.xlu2 %6085  ;;  %v13590_v32 = vpop.permute.xlu1 %6032 }
 0x7ad   : > { %5923 = vst [vmem:[#allocation5 + $0xc4] sm:$0x33] %v5912_v12  ;;  %v6041_v21 = vrot.slane %v13590_v32, 4  ;;  %v6095_v10 = vrot.slane %v6086_v0, 4 }
 0x7ae   : > { %5811 = vst [vmem:[#allocation5 + $0xa0] sm:$0x33] %v5800_v14 }
 0x7b0   : > { %v13588_v35 = vld.sshfl [vmem:[#allocation1 + $0x20] sm:$0xff pattern:$0x75643120]  ;;  %v6031_v61 = vpop.permute.xlu0 %6030 }
 0x7b1   : > { %6427 = vrot.lane.b32.xlu2 %v13469_v56, %s14651_s8  ;;  %6373 = vrot.lane.b32.xlu0 %v13441_v39, %s9484_s18  ;;  %6637 = vst [vmem:[#allocation1 + $0x20] ss:$2 sm:$0xff] %v6629_v59  ;;  %v6040_v57 = vrot.slane %v6031_v61, 4 }
 0x7b2   : > { %6431 = vrot.lane.b32.xlu1 %v13514_v50, %s14651_s8 }
 0x7b3   : > { %v6045_v56 = vsel %vm460_vm2, %v6040_v57, %v6041_v21 }
 0x7b4   : > { %v6046_v19 = vsel %vm14653_vm1, %v6031_v61, %v6045_v56  ;;  %v13603_v39 = vpop.permute.xlu2 %6143  ;;  %v5953_v43 = vpop.permute.xlu1 %5952  ;;  %vm14657_vm1 = vmmov %vm14654_vm4  ;;  %v6638_v56 = vld.sshfl [vmem:[#allocation1] sm:$0xff pattern:$0x75643120] }
 0x7b5   : > { %6059 = vst [vmem:[#allocation5 + $0xd8] sm:$0xcc] %v6046_v19  ;;  %v5960_v29 = vrot.slane %v5953_v43, 4 }
 0x7b7   : > { %v5965_v28 = vsel %vm460_vm2, %v5959_v4, %v5960_v29 }
 0x7b8   : > { %v6088_v44 = vpop.permute.xlu0 %6087 }
 0x7b9   : > { %6429 = vrot.lane.b32.xlu2 %v13471_v20, %s14651_s8  ;;  %6375 = vrot.lane.b32.xlu0 %v13485_v34, %s9484_s18  ;;  %v6096_v49 = vrot.slane %v6088_v44, 4  ;;  %v5966_v20 = vsel %vm14654_vm4, %v13516_v40, %v5965_v28  ;;  %vm14658_vm4 = vmmov %vm14656_vm13  ;;  %v6152_v28 = vrot.slane %v13603_v39, 4 }
 0x7ba   : > { %5978 = vst [vmem:[#allocation5 + $0xbc] sm:$0xcc] %v5966_v20  ;;  %6592 = vrot.lane.b32.xlu1 %v13452_v2, %s9487_s14 }
 0x7bb   : > { %v6100_v12 = vsel %vm460_vm2, %v6095_v10, %v6096_v49 }
 0x7bc   : > { %v6101_v50 = vsel %vm14655_vm14, %v6086_v0, %v6100_v12  ;;  %v6039_v34 = vpop.permute.xlu2 %6038  ;;  %v13618_v4 = vpop.permute.xlu1 %5954  ;;  %vm6157_vm14 = vcmask 965632  }
 0x7bd   : > { %6114 = vst [vmem:[#allocation5 + $0xfc] sm:$0x33] %v6101_v50  ;;  %v6044_v14 = vrot.slane %v6039_v34, 4  ;;  %v5961_v40 = vrot.slane %v13618_v4, 4 }
 0x7bf   : > { %v6053_v61 = vsel %vm14656_vm13, %v6039_v34, %v6044_v14  ;;  %vm14659_vm13 = vcmask 1031168  }
 0x7c0   : > { %v6037_v59 = vpop.permute.xlu0 %6036  ;;  %6063 = vst [vmem:[#allocation5 + $0xf8] sm:$0xc] %v6053_v61 }
 0x7c1   : > { %6594 = vrot.lane.b32.xlu2 %v13448_v33, %s9487_s14  ;;  %6537 = vrot.lane.b32.xlu0 %v13329_v31, %s9486_s27  ;;  %v6043_v0 = vrot.slane %v6037_v59, 4  ;;  %v5967_v33 = vsel %vm460_vm2, %v5960_v29, %v5961_v40 }
 0x7c2   : > { %v5968_v31 = vsel %vm14657_vm1, %v5953_v43, %v5967_v33  ;;  %6648 = vrot.lane.b32.xlu1 %v6638_v56, %s9488_s13  ;;  %vm14660_vm1 = vmmov %vm14658_vm4  ;;  %v6642_v56 = vld.sshfl [vmem:[#allocation1 + $0x10] sm:$0xff pattern:$0x75643120] }
 0x7c3   : > { %v6051_v2 = vsel %vm460_vm2, %v6043_v0, %v6044_v14  ;;  %5979 = vst [vmem:[#allocation5 + $0xc4] sm:$0xcc] %v5968_v31 }
 0x7c4   : > { %v6052_v57 = vsel %vm14658_vm4, %v6037_v59, %v6051_v2  ;;  %v6090_v19 = vpop.permute.xlu2 %6089  ;;  %v6142_v10 = vpop.permute.xlu1 %6141  ;;  %vm14661_vm4 = vmmov %vm14660_vm1 }
 0x7c5   : > { %6062 = vst [vmem:[#allocation5 + $0xf0] sm:$0xcc] %v6052_v57  ;;  %v6097_v29 = vrot.slane %v6090_v19, 4  ;;  %v6151_v43 = vrot.slane %v6142_v10, 4 }
 0x7c7   : > { %v6102_v12 = vsel %vm460_vm2, %v6096_v49, %v6097_v29 }
 0x7c8   : > { %v6103_v20 = vsel %vm14659_vm13, %v6088_v44, %v6102_v12  ;;  %v6198_v49 = vpop.permute.xlu0 %6197  ;;  %vm6213_vm13 = vcmask 957440  }
 0x7c9   : > { %6487 = vrot.lane.b32.xlu2 %v13536_v58, %s9485_s20  ;;  %6483 = vrot.lane.b32.xlu0 %v13500_v18, %s9485_s20  ;;  %v6156_v58 = vsel %vm460_vm2, %v6151_v43, %v6152_v28  ;;  %6115 = vst [vmem:[#allocation5 + $0x104] sm:$0x33] %v6103_v20  ;;  %v6640_v18 = vld.sshfl [vmem:[#allocation1 + $0x8] sm:$0xff pattern:$0x75643120] }
 0x7ca   : > { %v6158_v50 = vsel %vm6157_vm14, %v6142_v10, %v6156_v58  ;;  %6539 = vrot.lane.b32.xlu1 %v13519_v37, %s9486_s27 }
 0x7cb   : > { %6171 = vst [vmem:[#allocation5 + $0xfc] sm:$0xcc] %v6158_v50 }
 0x7cc   : > { %v6255_v34 = vpop.permute.xlu2 %6254  ;;  %v6035_v14 = vpop.permute.xlu1 %6034 }
 0x7cd   : > { %v6042_v59 = vrot.slane %v6035_v14, 4  ;;  %v6264_v12 = vrot.slane %v6255_v34, 4 }
 0x7cf   : > { %v6047_v44 = vsel %vm460_vm2, %v6041_v21, %v6042_v59  ;;  %v6049_v61 = vsel %vm460_vm2, %v6042_v59, %v6043_v0  ;;  %v6207_v0 = vrot.slane %v6198_v49, 4 }
 0x7d0   : > { %v6048_v33 = vsel %vm14660_vm1, %v13590_v32, %v6047_v44  ;;  %v6050_v2 = vsel %vm14661_vm4, %v6035_v14, %v6049_v61  ;;  %vm14662_vm1 = vcmask 1031168   ;;  %vm6270_vm4 = vcmask 949248  }
 0x7d1   : > { %6650 = vrot.lane.b32.xlu2 %v6640_v18, %s9488_s13  ;;  %6485 = vrot.lane.b32.xlu0 %v13498_v1, %s9485_s20  ;;  %6060 = vst [vmem:[#allocation5 + $0xe0] sm:$0xcc] %v6048_v33  ;;  %vm14663_vm12 = vmmov %vm14662_vm1  ;;  %s9370_s20 = smul.u32 36, %s14692_s22 }
 0x7d2   : > { %6061 = vst [vmem:[#allocation5 + $0xe8] sm:$0xcc] %v6050_v2  ;;  %6541 = vrot.lane.b32.xlu1 %v13521_v36, %s9486_s27 }
 0x7d4   : > { %v6148_v1 = vpop.permute.xlu2 %6147  ;;  %v13658_v37 = vpop.permute.xlu1 %6199 }
 0x7d5   : > { %v6208_v32 = vrot.slane %v13658_v37, 4  ;;  %v6154_v44 = vrot.slane %v6148_v1, 4 }
 0x7d9   : > { %6596 = vrot.lane.b32.xlu2 %v13541_v54, %s9487_s14  ;;  %6543 = vrot.lane.b32.xlu0 %v13559_v22, %s9486_s27  ;;  %v6212_v54 = vsel %vm460_vm2, %v6207_v0, %v6208_v32 }
 0x7da   : > { %v6214_v36 = vsel %vm6213_vm13, %v6198_v49, %v6212_v54  ;;  %6600 = vrot.lane.b32.xlu1 %v13588_v35, %s9487_s14 }
 0x7db   : > { %v6094_v21 = vpop.permute.xlu0 %6093  ;;  %6227 = vst [vmem:[#allocation5 + $0x120] sm:$0x33] %v6214_v36 }
 0x7dc   : > { %v6099_v31 = vrot.slane %v6094_v21, 4  ;;  %v6313_v22 = vpop.permute.xlu2 %6312  ;;  %v6092_v10 = vpop.permute.xlu1 %6091 }
 0x7dd   : > { %v6098_v58 = vrot.slane %v6092_v10, 4 }
 0x7de   : > { %v6108_v57 = vsel %vm14662_vm1, %v6094_v21, %v6099_v31 }
 0x7df   : > { %6118 = vst [vmem:[#allocation5 + $0x11c] sm:$0x3] %v6108_v57  ;;  %v6104_v50 = vsel %vm460_vm2, %v6097_v29, %v6098_v58  ;;  %v6106_v18 = vsel %vm460_vm2, %v6098_v58, %v6099_v31  ;;  %v6644_v31 = vld.sshfl [vmem:[#allocation1 + $0x18] sm:$0xff pattern:$0x75643120] }
 0x7e0   : > { %v6105_v35 = vsel %vm14662_vm1, %v6090_v19, %v6104_v50  ;;  %v6107_v49 = vsel %vm14663_vm12, %v6092_v10, %v6106_v18  ;;  %vm6326_vm12 = vcmask 941056   ;;  %v6646_v18 = vld.sshfl [vmem:[#allocation1 + $0x20] sm:$0xff pattern:$0x75643120] }
 0x7e1   : > { %6598 = vrot.lane.b32.xlu2 %v13539_v46, %s9487_s14  ;;  %6652 = vrot.lane.b32.xlu0 %v6642_v56, %s9488_s13  ;;  %6116 = vst [vmem:[#allocation5 + $0x10c] sm:$0x33] %v6105_v35 }
 0x7e2   : > { %6117 = vst [vmem:[#allocation5 + $0x114] sm:$0x33] %v6107_v49  ;;  %5844 = vrot.lane.b32.xlu1 %v13262_v24, %s9479_s12 }
 0x7e3   : > { %v13671_v43 = vpop.permute.xlu0 %6256 }
 0x7e4   : > { %v6265_v20 = vrot.slane %v13671_v43, 4  ;;  %v13688_v29 = vpop.permute.xlu2 %6425  ;;  %v6150_v59 = vpop.permute.xlu1 %6149 }
 0x7e5   : > { %v6155_v61 = vrot.slane %v6150_v59, 4 }
 0x7e6   : > { %v6269_v46 = vsel %vm460_vm2, %v6264_v12, %v6265_v20 }
 0x7e7   : > { %v6271_v14 = vsel %vm6270_vm4, %v6255_v34, %v6269_v46  ;;  %v6163_v34 = vsel %vm460_vm2, %v6154_v44, %v6155_v61  ;;  %v6165_v2 = vsel %vm6157_vm14, %v6150_v59, %v6155_v61 }
 0x7e8   : > { %6284 = vst [vmem:[#allocation5 + $0x120] sm:$0xcc] %v6271_v14 }
 0x7e9   : > { %5900 = vrot.lane.b32.xlu2 %v13283_v13, %s9457_s23  ;;  %5787 = vrot.lane.b32.xlu0 %v13246_v30, %s9478_s11  ;;  %v6164_v30 = vsel %vm6157_vm14, %v6148_v1, %v6163_v34  ;;  %6175 = vst [vmem:[#allocation5 + $0x11c] sm:$0xc] %v6165_v2  ;;  %v6321_v1 = vrot.slane %v6313_v22, 4 }
 0x7ea   : > { %6174 = vst [vmem:[#allocation5 + $0x114] sm:$0xcc] %v6164_v30  ;;  %6654 = vrot.lane.b32.xlu1 %v6644_v31, %s9488_s13 }
 0x7eb   : > { %v6146_v19 = vpop.permute.xlu0 %6145 }
 0x7ec   : > { %v6153_v33 = vrot.slane %v6146_v19, 4  ;;  %v6311_v54 = vpop.permute.xlu1 %6310 }
 0x7ee   : > { %v6159_v13 = vsel %vm460_vm2, %v6152_v28, %v6153_v33  ;;  %v6161_v24 = vsel %vm460_vm2, %v6153_v33, %v6154_v44  ;;  %v6315_v28 = vpop.permute.xlu2 %6314 }
 0x7ef   : > { %v6160_v21 = vsel %vm6157_vm14, %v13603_v39, %v6159_v13  ;;  %v6162_v0 = vsel %vm6157_vm14, %v6146_v19, %v6161_v24  ;;  %v6322_v36 = vrot.slane %v6315_v28, 4  ;;  %v6320_v39 = vrot.slane %v6311_v54, 4 }
 0x7f0   : > { %6172 = vst [vmem:[#allocation5 + $0x104] sm:$0xcc] %v6160_v21  ;;  %vm6383_vm14 = vcmask 932864  }
 0x7f1   : > { %5391 = vrot.lane.b32.xlu2 %v13132_v9, %s9472_s29  ;;  %5956 = vrot.lane.b32.xlu0 %v13316_v41, %s9458_s24  ;;  %6173 = vst [vmem:[#allocation5 + $0x10c] sm:$0xcc] %v6162_v0  ;;  %v6328_v10 = vsel %vm460_vm2, %v6321_v1, %v6322_v36  ;;  %v6325_v12 = vsel %vm460_vm2, %v6320_v39, %v6321_v1 }
 0x7f2   : > { %v6329_v58 = vsel %vm6326_vm12, %v6313_v22, %v6328_v10  ;;  %v6327_v41 = vsel %vm6326_vm12, %v6311_v54, %v6325_v12  ;;  %6656 = vrot.lane.b32.xlu1 %v6646_v18, %s9488_s13 }
 0x7f3   : > { %v6202_v57 = vpop.permute.xlu0 %6201  ;;  %6341 = vst [vmem:[#allocation5 + $0x14c] sm:$0x33] %v6329_v58 }
 0x7f4   : > { %v6209_v56 = vrot.slane %v6202_v57, 4  ;;  %6340 = vst [vmem:[#allocation5 + $0x144] sm:$0x33] %v6327_v41  ;;  %v13719_v46 = vpop.permute.xlu1 %6369 }
 0x7f6   : > { %v6215_v9 = vsel %vm460_vm2, %v6208_v32, %v6209_v56  ;;  %v6317_v32 = vpop.permute.xlu2 %6316 }
 0x7f7   : > { %v6216_v50 = vsel %vm6213_vm13, %v13658_v37, %v6215_v9  ;;  %v6323_v35 = vrot.slane %v6317_v32, 4 }
 0x7f8   : > { %6228 = vst [vmem:[#allocation5 + $0x128] sm:$0x33] %v6216_v50 }
 0x7f9   : > { %5562 = vrot.lane.b32.xlu2 %v13193_v51, %s9452_s16  ;;  %5447 = vrot.lane.b32.xlu0 %v13142_v38, %s9473_s7  ;;  %v6330_v14 = vsel %vm460_vm2, %v6322_v36, %v6323_v35  ;;  %v6434_v36 = vrot.slane %v13688_v29, 4 }
 0x7fa   : > { %v6331_v59 = vsel %vm6326_vm12, %v6315_v28, %v6330_v14  ;;  %5334 = vrot.lane.b32.xlu1 %v13123_v23, %s9471_s28  ;;  %v6378_v28 = vrot.slane %v13719_v46, 4 }
 0x7fb   : > { %v6204_v22 = vpop.permute.xlu0 %6203  ;;  %6342 = vst [vmem:[#allocation5 + $0x154] sm:$0x33] %v6331_v59 }
 0x7fc   : > { %v6210_v49 = vrot.slane %v6204_v22, 4  ;;  %v6259_v19 = vpop.permute.xlu1 %6258 }
 0x7fd   : > { %v6266_v33 = vrot.slane %v6259_v19, 4 }
 0x7fe   : > { %v6217_v37 = vsel %vm460_vm2, %v6209_v56, %v6210_v49  ;;  %v6319_v38 = vpop.permute.xlu2 %6318 }
 0x7ff   : > { %v6218_v51 = vsel %vm6213_vm13, %v6202_v57, %v6217_v37  ;;  %v6324_v61 = vrot.slane %v6319_v38, 4 }
 0x800   : > { %6229 = vst [vmem:[#allocation5 + $0x130] sm:$0x33] %v6218_v51 }
 0x801   : > { %5731 = vrot.lane.b32.xlu2 %v13235_v55, %s9477_s17  ;;  %5618 = vrot.lane.b32.xlu0 %v13206_v27, %s9475_s10  ;;  %v6332_v2 = vsel %vm460_vm2, %v6323_v35, %v6324_v61  ;;  %v6334_v13 = vsel %vm6326_vm12, %v6319_v38, %v6324_v61  ;;  %v6272_v55 = vsel %vm460_vm2, %v6265_v20, %v6266_v33 }
 0x802   : > { %v6333_v27 = vsel %vm6326_vm12, %v6317_v32, %v6332_v2  ;;  %6344 = vst [vmem:[#allocation5 + $0x164] sm:$0x3] %v6334_v13  ;;  %v6273_v21 = vsel %vm6270_vm4, %v13671_v43, %v6272_v55  ;;  %5504 = vrot.lane.b32.xlu1 %v13156_v48, %s9474_s19  ;;  %vm6495_vm12 = vcmask 859136  }
 0x803   : > { %v6206_v44 = vpop.permute.xlu0 %6205  ;;  %6343 = vst [vmem:[#allocation5 + $0x15c] sm:$0x33] %v6333_v27 }
 0x804   : > { %v6211_v34 = vrot.slane %v6206_v44, 4  ;;  %6285 = vst [vmem:[#allocation5 + $0x128] sm:$0xcc] %v6273_v21  ;;  %v6261_v0 = vpop.permute.xlu1 %6260 }
 0x805   : > { %v6267_v1 = vrot.slane %v6261_v0, 4 }
 0x806   : > { %v6219_v24 = vsel %vm460_vm2, %v6210_v49, %v6211_v34  ;;  %v6221_v23 = vsel %vm6213_vm13, %v6206_v44, %v6211_v34  ;;  %v13748_v20 = vpop.permute.xlu2 %6535 }
 0x807   : > { %v6220_v30 = vsel %vm6213_vm13, %v6204_v22, %v6219_v24  ;;  %6231 = vst [vmem:[#allocation5 + $0x140] sm:$0x3] %v6221_v23  ;;  %v6274_v54 = vsel %vm460_vm2, %v6266_v33, %v6267_v1  ;;  %vm14664_vm13 = vcmask 867328  }
 0x808   : > { %6230 = vst [vmem:[#allocation5 + $0x138] sm:$0x33] %v6220_v30  ;;  %v6275_v48 = vsel %vm6270_vm4, %v6259_v19, %v6274_v54  ;;  %vm14665_vm1 = vmmov %vm14664_vm13 }
 0x809   : > { %5449 = vrot.lane.b32.xlu2 %v13174_v7, %s9473_s7  ;;  %5336 = vrot.lane.b32.xlu0 %v13147_v60, %s9471_s28  ;;  %6286 = vst [vmem:[#allocation5 + $0x130] sm:$0xcc] %v6275_v48  ;;  %s14117_s7 = scalar_lea.vmem %s14224_s5, %s9370_s20 }
 0x80a   : > { %5674 = vrot.lane.b32.xlu1 %v13220_v26, %s9476_s15 }
 0x80b   : > { %v6368_v31 = vpop.permute.xlu0 %6367 }
 0x80c   : > { %v6377_v43 = vrot.slane %v6368_v31, 4  ;;  %v6263_v39 = vpop.permute.xlu1 %6262 }
 0x80d   : > { %v6268_v12 = vrot.slane %v6263_v39, 4 }
 0x80e   : > { %v6382_v7 = vsel %vm460_vm2, %v6377_v43, %v6378_v28  ;;  %v6428_v60 = vpop.permute.xlu2 %6427 }
 0x80f   : > { %v6384_v57 = vsel %vm6383_vm14, %v6368_v31, %v6382_v7  ;;  %v6435_v10 = vrot.slane %v6428_v60, 4  ;;  %v6276_v58 = vsel %vm460_vm2, %v6267_v1, %v6268_v12  ;;  %v6278_v41 = vsel %vm6270_vm4, %v6263_v39, %v6268_v12 }
 0x810   : > { %6397 = vst [vmem:[#allocation5 + $0x144] sm:$0xcc] %v6384_v57  ;;  %v6277_v50 = vsel %vm6270_vm4, %v6261_v0, %v6276_v58  ;;  %vm14666_vm4 = vmmov %vm14665_vm1 }
 0x811   : > { %5506 = vrot.lane.b32.xlu0 %v13181_v15, %s9474_s19  ;;  %v6440_v9 = vsel %vm460_vm2, %v6434_v36, %v6435_v10  ;;  %6288 = vst [vmem:[#allocation5 + $0x140] sm:$0xc] %v6278_v41 }
 0x812   : > { %v6441_v26 = vsel %vm14664_vm13, %v13688_v29, %v6440_v9  ;;  %6287 = vst [vmem:[#allocation5 + $0x138] sm:$0xcc] %v6277_v50  ;;  %5393 = vrot.lane.b32.xlu1 %v13161_v11, %s9472_s29  ;;  %vm14667_vm13 = vmmov %vm14665_vm1 }
 0x813   : > { %v6480_v56 = vpop.permute.xlu0 %6479  ;;  %6453 = vst [vmem:[#allocation5 + $0x170] sm:$0x33] %v6441_v26 }
 0x814   : > { %v6424_v18 = vpop.permute.xlu1 %6423  ;;  %v6489_v61 = vrot.slane %v6480_v56, 4 }
 0x815   : > { %v6433_v35 = vrot.slane %v6424_v18, 4 }
 0x816   : > { %v6430_v15 = vpop.permute.xlu2 %6429 }
 0x817   : > { %v6436_v22 = vrot.slane %v6430_v15, 4  ;;  %v6438_v37 = vsel %vm460_vm2, %v6433_v35, %v6434_v36 }
 0x818   : > { %v6439_v51 = vsel %vm14666_vm4, %v6424_v18, %v6438_v37  ;;  %vm6608_vm4 = vcmask 842752  }
 0x819   : > { %v6442_v14 = vsel %vm460_vm2, %v6435_v10, %v6436_v22  ;;  %6452 = vst [vmem:[#allocation5 + $0x168] sm:$0x33] %v6439_v51 }
 0x81a   : > { %v6443_v59 = vsel %vm14665_vm1, %v6428_v60, %v6442_v14  ;;  %v6545_v60 = vrot.slane %v13748_v20, 4 }
 0x81b   : > { %v6372_v32 = vpop.permute.xlu0 %6371  ;;  %6454 = vst [vmem:[#allocation5 + $0x178] sm:$0x33] %v6443_v59 }
 0x81c   : > { %v6379_v49 = vrot.slane %v6372_v32, 4  ;;  %v6482_v19 = vpop.permute.xlu1 %6481 }
 0x81d   : > { %v6490_v33 = vrot.slane %v6482_v19, 4 }
 0x81e   : > { %v6385_v29 = vsel %vm460_vm2, %v6378_v28, %v6379_v49  ;;  %v6595_v11 = vpop.permute.xlu2 %6594 }
 0x81f   : > { %v6386_v38 = vsel %vm6383_vm14, %v13719_v46, %v6385_v29  ;;  %v6494_v2 = vsel %vm460_vm2, %v6489_v61, %v6490_v33 }
 0x820   : > { %6398 = vst [vmem:[#allocation5 + $0x14c] sm:$0xcc] %v6386_v38  ;;  %v6496_v24 = vsel %vm6495_vm12, %v6480_v56, %v6494_v2  ;;  %v6603_v56 = vrot.slane %v6595_v11, 4 }
 0x821   : > { %6509 = vst [vmem:[#allocation5 + $0x168] sm:$0xcc] %v6496_v24 }
 0x823   : > { %v6374_v44 = vpop.permute.xlu0 %6373 }
 0x824   : > { %v6380_v34 = vrot.slane %v6374_v44, 4  ;;  %v6432_v23 = vpop.permute.xlu1 %6431 }
 0x825   : > { %v6437_v21 = vrot.slane %v6432_v23, 4 }
 0x826   : > { %v6387_v13 = vsel %vm460_vm2, %v6379_v49, %v6380_v34  ;;  %v6488_v46 = vpop.permute.xlu2 %6487 }
 0x827   : > { %v6388_v55 = vsel %vm6383_vm14, %v6372_v32, %v6387_v13  ;;  %v6493_v30 = vrot.slane %v6488_v46, 4  ;;  %v6444_v28 = vsel %vm460_vm2, %v6436_v22, %v6437_v21  ;;  %v6446_v1 = vsel %vm14667_vm13, %v6432_v23, %v6437_v21 }
 0x828   : > { %6399 = vst [vmem:[#allocation5 + $0x154] sm:$0xcc] %v6388_v55  ;;  %v6445_v54 = vsel %vm14665_vm1, %v6430_v15, %v6444_v28  ;;  %vm6551_vm13 = vcmask 850944   ;;  %vm14668_vm1 = vcmask 1041408  }
 0x829   : > { %v6503_v31 = vsel %vm6495_vm12, %v6488_v46, %v6493_v30  ;;  %6456 = vst [vmem:[#allocation5 + $0x188] sm:$0x3] %v6446_v1 }
 0x82a   : > { %6513 = vst [vmem:[#allocation5 + $0x188] sm:$0xc] %v6503_v31 }
 0x82b   : > { %v6376_v27 = vpop.permute.xlu0 %6375  ;;  %6455 = vst [vmem:[#allocation5 + $0x180] sm:$0x33] %v6445_v54 }
 0x82c   : > { %v6381_v0 = vrot.slane %v6376_v27, 4  ;;  %v6593_v36 = vpop.permute.xlu1 %6592 }
 0x82d   : > { %v6602_v10 = vrot.slane %v6593_v36, 4 }
 0x82e   : > { %v6389_v43 = vsel %vm460_vm2, %v6380_v34, %v6381_v0  ;;  %v6391_v57 = vsel %vm6383_vm14, %v6376_v27, %v6381_v0  ;;  %v13786_v48 = vpop.permute.xlu2 %6650 }
 0x82f   : > { %v6390_v7 = vsel %vm6383_vm14, %v6374_v44, %v6389_v43  ;;  %6401 = vst [vmem:[#allocation5 + $0x164] sm:$0xc] %v6391_v57  ;;  %v6607_v9 = vsel %vm460_vm2, %v6602_v10, %v6603_v56  ;;  %v6659_v22 = vrot.slane %v13786_v48, 4  ;;  %vm6664_vm14 = vcmask 834560  }
 0x830   : > { %6400 = vst [vmem:[#allocation5 + $0x15c] sm:$0xcc] %v6390_v7  ;;  %v6609_v41 = vsel %vm6608_vm4, %v6593_v36, %v6607_v9 }
 0x831   : > { %6622 = vst [vmem:[#allocation5 + $0x18c] sm:$0xcc] %v6609_v41 }
 0x833   : > { %v6538_v39 = vpop.permute.xlu0 %6537 }
 0x834   : > { %v6546_v12 = vrot.slane %v6538_v39, 4  ;;  %v6649_v15 = vpop.permute.xlu1 %6648 }
 0x835   : > { %v6658_v35 = vrot.slane %v6649_v15, 4 }
 0x836   : > { %v6550_v58 = vsel %vm460_vm2, %v6545_v60, %v6546_v12  ;;  %v6597_v50 = vpop.permute.xlu2 %6596 }
 0x837   : > { %v6552_v26 = vsel %vm6551_vm13, %v13748_v20, %v6550_v58  ;;  %v6604_v32 = vrot.slane %v6597_v50, 4  ;;  %v6663_v37 = vsel %vm460_vm2, %v6658_v35, %v6659_v22  ;;  %v8778_v58 = vld [vmem:[#allocation5 + $0x168] sm:$0xf] }
 0x838   : > { %6565 = vst [vmem:[#allocation5 + $0x18c] sm:$0x33] %v6552_v26  ;;  %v6665_v59 = vsel %vm6664_vm14, %v6649_v15, %v6663_v37  ;;  %v8744_v37 = vld [vmem:[#allocation5 + $0x144] sm:$0xf0] }
 0x839   : > { %v6610_v14 = vsel %vm460_vm2, %v6603_v56, %v6604_v32  ;;  %6678 = vst [vmem:[#allocation5 + $0x1b0] sm:$0x33] %v6665_v59 }
 0x83a   : > { %v6611_v20 = vsel %vm6608_vm4, %v6595_v11, %v6610_v14  ;;  %v9284_v14 = vld [vmem:[#allocation5 + $0x140] sm:$0xf0] }
 0x83b   : > { %v6484_v18 = vpop.permute.xlu0 %6483  ;;  %6623 = vst [vmem:[#allocation5 + $0x194] sm:$0xcc] %v6611_v20  ;;  %v9280_v20 = vld [vmem:[#allocation5 + $0x124] sm:$0xf] }
 0x83c   : > { %v6491_v49 = vrot.slane %v6484_v18, 4  ;;  %v6540_v44 = vpop.permute.xlu1 %6539 }
 0x83d   : > { %v6547_v2 = vrot.slane %v6540_v44, 4 }
 0x83e   : > { %v6497_v29 = vsel %vm460_vm2, %v6490_v33, %v6491_v49  ;;  %v13803_v38 = vpop.permute.xlu2 %6598 }
 0x83f   : > { %v6498_v51 = vsel %vm6495_vm12, %v6482_v19, %v6497_v29  ;;  %v6605_v34 = vrot.slane %v13803_v38, 4  ;;  %v6553_v11 = vsel %vm460_vm2, %v6546_v12, %v6547_v2  ;;  %v9293_v57 = vld [vmem:[#allocation5 + $0x188] sm:$0xf0]  ;;  %v8742_v29 = vld [vmem:[#allocation5 + $0x120] sm:$0xf] }
 0x840   : > { %6510 = vst [vmem:[#allocation5 + $0x170] sm:$0xcc] %v6498_v51  ;;  %v6554_v27 = vsel %vm6551_vm13, %v6538_v39, %v6553_v11  ;;  %v6744_v21 = vld [vmem:[#allocation5 + $0x1b0] sm:$0x33]  ;;  %v8779_v15 = vor.u32 %v9293_v57, %v8778_v58 }
 0x841   : > { %v6612_v33 = vsel %vm460_vm2, %v6604_v32, %v6605_v34  ;;  %v6922_v0 = vunpack.c.l.b16 %v6744_v21  ;;  %v6923_v31 = vunpack.c.h.b16 %v6744_v21  ;;  %6566 = vst [vmem:[#allocation5 + $0x194] sm:$0x33] %v6554_v27  ;;  %v8780_v39 = vld [vmem:[#allocation5 + $0x18c] sm:$0xf0] }
 0x842   : > { %v6613_v24 = vsel %vm6608_vm4, %v6597_v50, %v6612_v33 }
 0x843   : > { %v6486_v61 = vpop.permute.xlu0 %6485  ;;  %6624 = vst [vmem:[#allocation5 + $0x19c] sm:$0xcc] %v6613_v24  ;;  %v6985_v28 = vpack.c.b16 %v6922_v0, %v6922_v0  ;;  %v6986_v1 = vpack.c.b16 %v6923_v31, %v6923_v31  ;;  %v9271_v31 = vld [vmem:[#allocation5 + $0xdc] sm:$0xf] }
 0x844   : > { %v6492_v13 = vrot.slane %v6486_v61, 4  ;;  %v6542_v54 = vpop.permute.xlu1 %6541 }
 0x845   : > { %v6548_v60 = vrot.slane %v6542_v54, 4  ;;  %v7053_v56 = vsel %vm14668_vm1, %v6985_v28, 0 }
 0x846   : > { %v6499_v55 = vsel %vm460_vm2, %v6491_v49, %v6492_v13  ;;  %v6501_v19 = vsel %vm460_vm2, %v6492_v13, %v6493_v30  ;;  %v5901_v43 = vpop.permute.xlu2 %5900  ;;  %7080 = vmatpush.bf16.msra.mxu0 %v7053_v56 }
 0x847   : > { %v6500_v46 = vsel %vm6495_vm12, %v6484_v18, %v6499_v55  ;;  %v6502_v23 = vsel %vm6495_vm12, %v6486_v61, %v6501_v19  ;;  %v5906_v7 = vrot.slane %v5901_v43, 4  ;;  %vm14669_vm12 = vmmov %vm14668_vm1  ;;  %v6555_v41 = vsel %vm460_vm2, %v6547_v2, %v6548_v60  ;;  %v9289_v18 = vld [vmem:[#allocation5 + $0x16c] sm:$0xf]  ;;  %v8708_v55 = vld [vmem:[#allocation5 + $0xfc] sm:$0xf0] }
 0x848   : > { %6511 = vst [vmem:[#allocation5 + $0x178] sm:$0xcc] %v6500_v46  ;;  %v7056_v10 = vsel %vm14669_vm12, %v6986_v1, 0  ;;  %v6556_v32 = vsel %vm6551_vm13, %v6540_v44, %v6555_v41  ;;  %v8783_v49 = vor.u32 %v9289_v18, %v8780_v39  ;;  %v8743_v61 = vor.u32 %v9284_v14, %v8742_v29  ;;  %v8706_v46 = vld [vmem:[#allocation5 + $0xd8] sm:$0xf] }
 0x849   : > { %6512 = vst [vmem:[#allocation5 + $0x180] sm:$0xcc] %v6502_v23  ;;  %7093 = vmatpush.bf16.msrb.mxu1 %v7056_v10  ;;  %v5913_v12 = vsel %vm460_vm2, %v5905_v53, %v5906_v7  ;;  %v5915_v9 = vsel %vm1770_vm7, %v5901_v43, %v5906_v7  ;;  %v8747_v2 = vor.u32 %v9280_v20, %v8744_v37  ;;  %v14670_v19 = vrot.slane %v13342_v8, 4  ;;  %v9262_v7 = vld [vmem:[#allocation5 + $0x94] sm:$0xf] }
 0x84a   : > { %5925 = vst [vmem:[#allocation5 + $0xd4] sm:$0x3] %v5915_v9  ;;  %v5914_v53 = vsel %vm1770_vm7, %v13566_v16, %v5913_v12  ;;  %7081 = vmatpush.bf16.msra.mxu0 %v8779_v15  ;;  %v9275_v16 = vld [vmem:[#allocation5 + $0xf8] sm:$0xf0]  ;;  %v8711_v43 = vor.u32 %v9271_v31, %v8708_v55  ;;  %v14671_v9 = vrot.slane %v13383_v52, 4  ;;  %vm14673_vm7 = vmmov %vm14668_vm1 }
 0x84b   : > { %v6544_v30 = vpop.permute.xlu0 %6543  ;;  %6567 = vst [vmem:[#allocation5 + $0x19c] sm:$0x33] %v6556_v32  ;;  %v8707_v0 = vor.u32 %v9275_v16, %v8706_v46  ;;  %v8600_v20 = vld [vmem:[#allocation5 + $0x24] sm:$0xf0]  ;;  %v9244_v16 = vld [vmem:[#allocation5 + $0x4] sm:$0xf] }
 0x84c   : > { %v6549_v36 = vrot.slane %v6544_v30, 4  ;;  %5924 = vst [vmem:[#allocation5 + $0xcc] sm:$0x33] %v5914_v53  ;;  %v6601_v51 = vpop.permute.xlu1 %6600 }
 0x84d   : > { %7094 = vmatpush.bf16.msrb.mxu1 %v8783_v49  ;;  %v6606_v33 = vrot.slane %v6601_v51, 4 }
 0x84e   : > { %v6557_v26 = vsel %vm460_vm2, %v6548_v60, %v6549_v36  ;;  %v6559_v50 = vsel %vm6551_vm13, %v6544_v30, %v6549_v36  ;;  %v13829_v59 = vpop.permute.xlu2 %5391  ;;  %7082 = vmatpush.bf16.msra.mxu0 %v8743_v61  ;;  %v8672_v30 = vld [vmem:[#allocation5 + $0xb4] sm:$0xf0] }
 0x84f   : > { %v6558_v35 = vsel %vm6551_vm13, %v6542_v54, %v6557_v26  ;;  %6569 = vst [vmem:[#allocation5 + $0x1ac] sm:$0x3] %v6559_v50  ;;  %v5398_v13 = vrot.slane %v13829_v59, 4  ;;  %v6614_v23 = vsel %vm460_vm2, %v6605_v34, %v6606_v33  ;;  %v6616_v27 = vsel %vm6608_vm4, %v6601_v51, %v6606_v33  ;;  %v9266_v54 = vld [vmem:[#allocation5 + $0xb0] sm:$0xf0]  ;;  %vm14684_vm13 = vmmov %vm14668_vm1 }
 0x850   : > { %6568 = vst [vmem:[#allocation5 + $0x1a4] sm:$0x33] %v6558_v35  ;;  %v6615_v28 = vsel %vm6608_vm4, %v13803_v38, %v6614_v23  ;;  %v8675_v56 = vor.u32 %v9262_v7, %v8672_v30  ;;  %v8634_v26 = vld [vmem:[#allocation5 + $0x48] sm:$0xf]  ;;  %v9253_v35 = vld [vmem:[#allocation5 + $0x4c] sm:$0xf] }
 0x851   : > { %7095 = vmatpush.bf16.msrb.mxu1 %v8747_v2  ;;  %v5405_v24 = vsel %vm460_vm2, %v14670_v19, %v5398_v13  ;;  %6626 = vst [vmem:[#allocation5 + $0x1ac] sm:$0xc] %v6616_v27  ;;  %v8598_v51 = vld [vmem:[#allocation5] sm:$0xf]  ;;  %v8603_v19 = vor.u32 %v9244_v16, %v8600_v20  ;;  %v8788_v7 = vld [vmem:[#allocation5 + $0x194] sm:$0xf0] }
 0x852   : > { %v5406_v34 = vsel %vm5401_vm0, %v13342_v8, %v5405_v24  ;;  %6625 = vst [vmem:[#allocation5 + $0x1a4] sm:$0xcc] %v6615_v28  ;;  %7083 = vmatpush.bf16.msra.mxu0 %v8707_v0  ;;  %v8636_v8 = vld [vmem:[#allocation5 + $0x6c] sm:$0xf0] }
 0x853   : > { %v13831_v44 = vpop.permute.xlu0 %6652  ;;  %5417 = vst [vmem:[#allocation5 + $0x10] sm:$0xcc] %v5406_v34  ;;  %v8639_v37 = vor.u32 %v9253_v35, %v8636_v8  ;;  %v13882_v34 = vld [vmem:[%s14222_s3] sm:$0x3] }
 0x854   : > { %v6660_v11 = vrot.slane %v13831_v44, 4  ;;  %v5845_v60 = vpop.permute.xlu1 %5844 }
 0x855   : > { %7096 = vmatpush.bf16.msrb.mxu1 %v8711_v43  ;;  %v5850_v39 = vrot.slane %v5845_v60, 4 }
 0x856   : > { %v6666_v21 = vsel %vm460_vm2, %v6659_v22, %v6660_v11  ;;  %v8670_v22 = vld [vmem:[#allocation5 + $0x90] sm:$0xf]  ;;  %v5563_v57 = vpop.permute.xlu2 %5562 }
 0x857   : > { %v6667_v1 = vsel %vm6664_vm14, %v13786_v48, %v6666_v21  ;;  %v8671_v36 = vor.u32 %v9266_v54, %v8670_v22  ;;  %v5568_v10 = vrot.slane %v5563_v57, 4  ;;  %v9257_v48 = vld [vmem:[#allocation5 + $0x68] sm:$0xf0]  ;;  %v5858_v50 = vsel %vm460_vm2, %v5849_v45, %v5850_v39  ;;  %v9248_v45 = vld [vmem:[#allocation5 + $0x20] sm:$0xf0] }
 0x858   : > { %6679 = vst [vmem:[#allocation5 + $0x1b8] sm:$0x33] %v6667_v1  ;;  %v5860_v15 = vsel %vm5852_vm15, %v5845_v60, %v5850_v39  ;;  %v8635_v32 = vor.u32 %v9257_v48, %v8634_v26  ;;  %v5859_v53 = vsel %vm5852_vm15, %v13561_v63, %v5858_v50  ;;  %v8599_v2 = vor.u32 %v9248_v45, %v8598_v51  ;;  %vm14674_vm15 = vmmov %vm14668_vm1  ;;  %v9294_v22 = vld [vmem:[#allocation5 + $0x190] sm:$0xf0]  ;;  %v9272_v51 = vld [vmem:[#allocation5 + $0xe4] sm:$0xf] }
 0x859   : > { %7084 = vmatpush.bf16.msra.mxu0 %v8671_v36  ;;  %7097 = vmatpush.bf16.msrb.mxu1 %v8675_v56  ;;  %v5575_v58 = vsel %vm460_vm2, %v14671_v9, %v5568_v10  ;;  %v5577_v41 = vsel %vm1116_vm10, %v5563_v57, %v5568_v10  ;;  %5870 = vst [vmem:[#allocation5 + $0xb0] sm:$0xc] %v5860_v15  ;;  %v14672_v21 = vrot.slane %v13488_v47, 4  ;;  %v9285_v56 = vld [vmem:[#allocation5 + $0x148] sm:$0xf0] }
 0x85a   : > { %5587 = vst [vmem:[#allocation5 + $0x68] sm:$0x3] %v5577_v41  ;;  %v5576_v29 = vsel %vm1116_vm10, %v13383_v52, %v5575_v58  ;;  %vm7048_vm10 = vcmask 818176   ;;  %v8752_v10 = vld [vmem:[#allocation5 + $0x14c] sm:$0xf0] }
 0x85b   : > { %v5788_v38 = vpop.permute.xlu0 %5787  ;;  %5869 = vst [vmem:[#allocation5 + $0xa8] sm:$0xcc] %v5859_v53  ;;  %v8750_v9 = vld [vmem:[#allocation5 + $0x128] sm:$0xf]  ;;  %v9281_v58 = vld [vmem:[#allocation5 + $0x12c] sm:$0xf] }
 0x85c   : > { %v5793_v12 = vrot.slane %v5788_v38, 4  ;;  %5586 = vst [vmem:[#allocation5 + $0x60] sm:$0x33] %v5576_v29  ;;  %v6655_v33 = vpop.permute.xlu1 %6654  ;;  %v8751_v26 = vor.u32 %v9285_v56, %v8750_v9  ;;  %v8755_v50 = vor.u32 %v9281_v58, %v8752_v10  ;;  %v9249_v9 = vld [vmem:[#allocation5 + $0x28] sm:$0xf0] }
 0x85d   : > { %7085 = vmatpush.bf16.msra.mxu0 %v8635_v32  ;;  %7098 = vmatpush.bf16.msrb.mxu1 %v8639_v37  ;;  %v6661_v52 = vrot.slane %v6655_v33, 4  ;;  %v14677_v32 = vrot.slane %v13360_v25, 4 }
 0x85e   : > { %v5801_v18 = vsel %vm460_vm2, %v5792_v6, %v5793_v12  ;;  %v5803_v14 = vsel %vm5795_vm11, %v5788_v38, %v5793_v12 }
 0x85f   : > { %v5802_v49 = vsel %vm5795_vm11, %v13563_v42, %v5801_v18  ;;  %v6745_v6 = vld [vmem:[#allocation5 + $0x1b8] sm:$0x33]  ;;  %5813 = vst [vmem:[#allocation5 + $0xb0] sm:$0x3] %v5803_v14  ;;  %v5732_v42 = vpop.permute.xlu2 %5731  ;;  %v6668_v43 = vsel %vm460_vm2, %v6660_v11, %v6661_v52  ;;  %vm14675_vm11 = vcmask 7168  }
 0x860   : > { %5812 = vst [vmem:[#allocation5 + $0xa8] sm:$0x33] %v5802_v49  ;;  %v6924_v61 = vunpack.c.l.b16 %v6745_v6  ;;  %v6925_v63 = vunpack.c.h.b16 %v6745_v6  ;;  %v5737_v24 = vrot.slane %v5732_v42, 4  ;;  %v6669_v57 = vsel %vm6664_vm14, %v13831_v44, %v6668_v43  ;;  %vm14676_vm4 = vmmov %vm14675_vm11  ;;  %v8786_v11 = vld [vmem:[#allocation5 + $0x170] sm:$0xf] }
 0x861   : > { %7086 = vmatpush.bf16.msra.mxu0 %v8599_v2  ;;  %7099 = vmatpush.bf16.msrb.mxu1 %v8603_v19  ;;  %6680 = vst [vmem:[#allocation5 + $0x1c0] sm:$0x33] %v6669_v57  ;;  %v8787_v44 = vor.u32 %v9294_v22, %v8786_v11  ;;  %v9276_v49 = vld [vmem:[#allocation5 + $0x100] sm:$0xf0]  ;;  %v8716_v14 = vld [vmem:[#allocation5 + $0x104] sm:$0xf0] }
 0x862   : > { %v6987_v46 = vpack.c.b16 %v6924_v61, %v6924_v61  ;;  %v6988_v23 = vpack.c.b16 %v6925_v63, %v6925_v63  ;;  %v5745_v0 = vsel %vm460_vm2, %v14672_v21, %v5737_v24  ;;  %v5747_v31 = vsel %vm5739_vm9, %v5732_v42, %v5737_v24  ;;  %v8714_v6 = vld [vmem:[#allocation5 + $0xe0] sm:$0xf]  ;;  %v9291_v11 = vld [vmem:[#allocation5 + $0x17c] sm:$0xf] }
 0x863   : > { %v5957_v55 = vpop.permute.xlu0 %5956  ;;  %5757 = vst [vmem:[#allocation5 + $0x8c] sm:$0xc] %v5747_v31  ;;  %v5746_v38 = vsel %vm5739_vm9, %v13488_v47, %v5745_v0  ;;  %v8715_v2 = vor.u32 %v9276_v49, %v8714_v6  ;;  %v8719_v16 = vor.u32 %v9272_v51, %v8716_v14  ;;  %v8680_v19 = vld [vmem:[#allocation5 + $0xbc] sm:$0xf0]  ;;  %vm14679_vm9 = vmmov %vm14668_vm1  ;;  %v8722_v51 = vld [vmem:[#allocation5 + $0xe8] sm:$0xf] }
 0x864   : > { %v5962_v27 = vrot.slane %v5957_v55, 4  ;;  %v7059_v28 = vsel %vm14673_vm7, %v6987_v46, 0  ;;  %v7062_v1 = vsel %vm14674_vm15, %v6988_v23, 0  ;;  %8813 = vmatmul.msk.bf16.vlgmr.msrb.gmra.mxu1 %vm7048_vm10, %v13882_v34  ;;  %8812 = vmatmul.msk.bf16.vlgmr.msra.gmra.mxu0 %vm7048_vm10, %v13882_v34  ;;  %5756 = vst [vmem:[#allocation5 + $0x84] sm:$0xcc] %v5746_v38  ;;  %v6657_v48 = vpop.permute.xlu1 %6656 }
 0x865   : > { %7106 = vmatpush.bf16.msrb.mxu2 %v7059_v28  ;;  %7119 = vmatpush.bf16.msrb.mxu3 %v7062_v1  ;;  %v6662_v12 = vrot.slane %v6657_v48, 4  ;;  %v8678_v46 = vld [vmem:[#allocation5 + $0x98] sm:$0xf]  ;;  %v9263_v23 = vld [vmem:[#allocation5 + $0x9c] sm:$0xf] }
 0x866   : > { %v5969_v54 = vsel %vm460_vm2, %v5961_v40, %v5962_v27  ;;  %v5971_v30 = vsel %vm14675_vm11, %v5957_v55, %v5962_v27  ;;  %v9290_v40 = vld [vmem:[#allocation5 + $0x174] sm:$0xf]  ;;  %v9267_v55 = vld [vmem:[#allocation5 + $0xb8] sm:$0xf0]  ;;  %v8796_v28 = vld [vmem:[#allocation5 + $0x19c] sm:$0xf0]  ;;  %v8683_v43 = vor.u32 %v9263_v23, %v8680_v19 }
 0x867   : > { %v5970_v60 = vsel %vm14676_vm4, %v13618_v4, %v5969_v54  ;;  %5981 = vst [vmem:[#allocation5 + $0xd4] sm:$0xc] %v5971_v30  ;;  %v8791_v36 = vor.u32 %v9290_v40, %v8788_v7  ;;  %v5450_v4 = vpop.permute.xlu2 %5449  ;;  %v6670_v15 = vsel %vm460_vm2, %v6661_v52, %v6662_v12  ;;  %v6672_v18 = vsel %vm6664_vm14, %v6657_v48, %v6662_v12  ;;  %v9295_v52 = vld [vmem:[#allocation5 + $0x198] sm:$0xf0]  ;;  %v8794_v54 = vld [vmem:[#allocation5 + $0x178] sm:$0xf] }
 0x868   : > { %5980 = vst [vmem:[#allocation5 + $0xcc] sm:$0xcc] %v5970_v60  ;;  %v5455_v39 = vrot.slane %v5450_v4, 4  ;;  %v6671_v37 = vsel %vm6664_vm14, %v6655_v33, %v6670_v15  ;;  %v6746_v20 = vld [vmem:[#allocation5 + $0x1c0] sm:$0x33]  ;;  %v8679_v1 = vor.u32 %v9267_v55, %v8678_v46  ;;  %v14680_v30 = vrot.slane %v13278_v62, 4 }
 0x869   : > { %7107 = vmatpush.bf16.msrb.mxu2 %v8787_v44  ;;  %7120 = vmatpush.bf16.msrb.mxu3 %v8791_v36  ;;  %6682 = vst [vmem:[#allocation5 + $0x1d0] sm:$0x3] %v6672_v18  ;;  %v6926_v61 = vunpack.c.l.b16 %v6746_v20  ;;  %v6927_v63 = vunpack.c.h.b16 %v6746_v20  ;;  %v14681_v7 = vrot.slane %v13436_v3, 4  ;;  %v8795_v38 = vor.u32 %v9295_v52, %v8794_v54  ;;  %v8642_v40 = vld [vmem:[#allocation5 + $0x50] sm:$0xf] }
 0x86a   : > { %v5465_v41 = vsel %vm5457_vm3, %v5450_v4, %v5455_v39  ;;  %6681 = vst [vmem:[#allocation5 + $0x1c8] sm:$0x33] %v6671_v37  ;;  %v9258_v44 = vld [vmem:[#allocation5 + $0x70] sm:$0xf0]  ;;  %v8644_v36 = vld [vmem:[#allocation5 + $0x74] sm:$0xf0]  ;;  %v8799_v10 = vor.u32 %v9291_v11, %v8796_v28 }
 0x86b   : > { %v5448_v47 = vpop.permute.xlu0 %5447  ;;  %5475 = vst [vmem:[#allocation5 + $0x44] sm:$0x3] %v5465_v41  ;;  %v6989_v42 = vpack.c.b16 %v6926_v61, %v6926_v61  ;;  %v6990_v33 = vpack.c.b16 %v6927_v63, %v6927_v63  ;;  %v9286_v48 = vld [vmem:[#allocation5 + $0x150] sm:$0xf0]  ;;  %v8760_v12 = vld [vmem:[#allocation5 + $0x154] sm:$0xf0] }
 0x86c   : > { %v5454_v8 = vrot.slane %v5448_v47, 4  ;;  %v13912_v24 = vpop.permute.xlu1 %5334  ;;  %v9282_v18 = vld [vmem:[#allocation5 + $0x134] sm:$0xf]  ;;  %v9296_v46 = vld [vmem:[#allocation5 + $0x1a0] sm:$0xf0] }
 0x86d   : > { %7108 = vmatpush.bf16.msrb.mxu2 %v8751_v26  ;;  %7121 = vmatpush.bf16.msrb.mxu3 %v8755_v50  ;;  %v5341_v27 = vrot.slane %v13912_v24, 4  ;;  %v7068_v31 = vsel %vm14679_vm9, %v6990_v33, 0  ;;  %v8758_v50 = vld [vmem:[#allocation5 + $0x130] sm:$0xf]  ;;  %v8763_v14 = vor.u32 %v9282_v18, %v8760_v12  ;;  %v9268_v28 = vld [vmem:[#allocation5 + $0xc0] sm:$0xf0] }
 0x86e   : > { %v5461_v35 = vsel %vm460_vm2, %v14677_v32, %v5454_v8  ;;  %v5463_v53 = vsel %vm460_vm2, %v5454_v8, %v5455_v39  ;;  %7145 = vmatpush.bf16.msra.mxu1 %v7068_v31  ;;  %v9254_v39 = vld [vmem:[#allocation5 + $0x54] sm:$0xf]  ;;  %v8606_v8 = vld [vmem:[#allocation5 + $0x8] sm:$0xf]  ;;  %v8759_v15 = vor.u32 %v9286_v48, %v8758_v50  ;;  %v8608_v32 = vld [vmem:[#allocation5 + $0x2c] sm:$0xf0] }
 0x86f   : > { %v5462_v45 = vsel %vm5457_vm3, %v13360_v25, %v5461_v35  ;;  %v5464_v29 = vsel %vm5457_vm3, %v5448_v47, %v5463_v53  ;;  %vm14678_vm3 = vmmov %vm14668_vm1  ;;  %v5348_v22 = vsel %vm460_vm2, %v14680_v30, %v5341_v27  ;;  %v8647_v26 = vor.u32 %v9254_v39, %v8644_v36  ;;  %v9277_v35 = vld [vmem:[#allocation5 + $0x108] sm:$0xf0]  ;;  %v8804_v31 = vld [vmem:[#allocation5 + $0x1a4] sm:$0xf0] }
 0x870   : > { %5473 = vst [vmem:[#allocation5 + $0x34] sm:$0x33] %v5462_v45  ;;  %v7065_v0 = vsel %vm14678_vm3, %v6989_v42, 0  ;;  %v5349_v4 = vsel %vm5344_vm5, %v13278_v62, %v5348_v22  ;;  %v8643_v62 = vor.u32 %v9258_v44, %v8642_v40  ;;  %v8607_v61 = vor.u32 %v9249_v9, %v8606_v8  ;;  %v9264_v22 = vld [vmem:[#allocation5 + $0xa4] sm:$0xf] }
 0x871   : > { %5474 = vst [vmem:[#allocation5 + $0x3c] sm:$0x33] %v5464_v29  ;;  %7109 = vmatpush.bf16.msrb.mxu2 %v8715_v2  ;;  %7122 = vmatpush.bf16.msrb.mxu3 %v8719_v16  ;;  %v6747_v47 = vld [vmem:[#allocation5 + $0x1c8] sm:$0x33]  ;;  %v8724_v29 = vld [vmem:[#allocation5 + $0x10c] sm:$0xf0]  ;;  %v8723_v2 = vor.u32 %v9277_v35, %v8722_v51 }
 0x872   : > { %7132 = vmatpush.bf16.msrb.mxu0 %v7065_v0  ;;  %5360 = vst [vmem:[#allocation5 + $0x10] sm:$0x33] %v5349_v4  ;;  %v6928_v58 = vunpack.c.l.b16 %v6747_v47  ;;  %v6929_v41 = vunpack.c.h.b16 %v6747_v47  ;;  %7146 = vmatpush.bf16.msra.mxu1 %v8799_v10  ;;  %v9273_v16 = vld [vmem:[#allocation5 + $0xec] sm:$0xf]  ;;  %v14682_v42 = vrot.slane %v13340_v17, 4  ;;  %v14685_v9 = vrot.slane %v13462_v5, 4 }
 0x873   : > { %v5619_v25 = vpop.permute.xlu0 %5618  ;;  %v8768_v44 = vld [vmem:[#allocation5 + $0x15c] sm:$0xf0]  ;;  %v8650_v36 = vld [vmem:[#allocation5 + $0x58] sm:$0xf]  ;;  %v9283_v39 = vld [vmem:[#allocation5 + $0x13c] sm:$0xf] }
 0x874   : > { %v5624_v21 = vrot.slane %v5619_v25, 4  ;;  %v13930_v53 = vpop.permute.xlu1 %5504  ;;  %v6991_v37 = vpack.c.b16 %v6928_v58, %v6928_v58  ;;  %v6992_v45 = vpack.c.b16 %v6929_v41, %v6929_v41  ;;  %v8766_v10 = vld [vmem:[#allocation5 + $0x138] sm:$0xf]  ;;  %v8652_v48 = vld [vmem:[#allocation5 + $0x7c] sm:$0xf0] }
 0x875   : > { %7110 = vmatpush.bf16.msrb.mxu2 %v8679_v1  ;;  %7123 = vmatpush.bf16.msrb.mxu3 %v8683_v43  ;;  %v5511_v20 = vrot.slane %v13930_v53, 4  ;;  %v8688_v1 = vld [vmem:[#allocation5 + $0xc4] sm:$0xf0]  ;;  %v9259_v43 = vld [vmem:[#allocation5 + $0x78] sm:$0xf0] }
 0x876   : > { %v5632_v57 = vsel %vm460_vm2, %v14681_v7, %v5624_v21  ;;  %v5634_v60 = vsel %vm5626_vm8, %v5619_v25, %v5624_v21  ;;  %7133 = vmatpush.bf16.msrb.mxu0 %v8795_v38  ;;  %7147 = vmatpush.bf16.msra.mxu1 %v8763_v14  ;;  %v8727_v25 = vor.u32 %v9273_v16, %v8724_v29  ;;  %v7074_v0 = vsel %vm14684_vm13, %v6992_v45, 0  ;;  %v9287_v7 = vld [vmem:[#allocation5 + $0x158] sm:$0xf0]  ;;  %v8730_v35 = vld [vmem:[#allocation5 + $0xf0] sm:$0xf] }
 0x877   : > { %v5633_v56 = vsel %vm5626_vm8, %v13436_v3, %v5632_v57  ;;  %5644 = vst [vmem:[#allocation5 + $0x68] sm:$0xc] %v5634_v60  ;;  %v9245_v3 = vld [vmem:[#allocation5 + $0xc] sm:$0xf]  ;;  %v5518_v33 = vsel %vm460_vm2, %v14682_v42, %v5511_v20  ;;  %vm14683_vm8 = vmmov %vm14668_vm1  ;;  %v6748_v57 = vld [vmem:[#allocation5 + $0x1d0] sm:$0x3]  ;;  %v8691_v40 = vor.u32 %v9264_v22, %v8688_v1  ;;  %v8767_v47 = vor.u32 %v9287_v7, %v8766_v10 }
 0x878   : > { %5643 = vst [vmem:[#allocation5 + $0x60] sm:$0xcc] %v5633_v56  ;;  %v8611_v63 = vor.u32 %v9245_v3, %v8608_v32  ;;  %v5519_v23 = vsel %vm5514_vm6, %v13340_v17, %v5518_v33  ;;  %v7071_v21 = vsel %vm14683_vm8, %v6991_v37, 0  ;;  %v8802_v17 = vld [vmem:[#allocation5 + $0x180] sm:$0xf]  ;;  %v8651_v12 = vor.u32 %v9259_v43, %v8650_v36  ;;  %v9303_v22 = vld [vmem:[%s14223_s4 + $0x28] sm:$0xff] }
 0x879   : > { %7111 = vmatpush.bf16.msrb.mxu2 %v8643_v62  ;;  %7124 = vmatpush.bf16.msrb.mxu3 %v8647_v26  ;;  %5530 = vst [vmem:[#allocation5 + $0x34] sm:$0xcc] %v5519_v23  ;;  %v8803_v54 = vor.u32 %v9296_v46, %v8802_v17  ;;  %v6930_v8 = vunpack.c.l.b16 %v6748_v57  ;;  %v8771_v26 = vor.u32 %v9283_v39, %v8768_v44  ;;  %v9255_v50 = vld [vmem:[#allocation5 + $0x5c] sm:$0xf]  ;;  %v8732_v14 = vld [vmem:[#allocation5 + $0x114] sm:$0xf0] }
 0x87a   : > { %7134 = vmatpush.bf16.msrb.mxu0 %v8759_v15  ;;  %7148 = vmatpush.bf16.msra.mxu1 %v8727_v25  ;;  %v8655_v32 = vor.u32 %v9255_v50, %v8652_v48  ;;  %v9274_v29 = vld [vmem:[#allocation5 + $0xf4] sm:$0xf]  ;;  %v9269_v42 = vld [vmem:[#allocation5 + $0xc8] sm:$0xf0]  ;;  %v8694_v25 = vld [vmem:[#allocation5 + $0xa8] sm:$0xf] }
 0x87b   : > { %v5337_v49 = vpop.permute.xlu0 %5336  ;;  %v9246_v51 = vld [vmem:[#allocation5 + $0x14] sm:$0xf]  ;;  %v9297_v46 = vld [vmem:[#allocation5 + $0x1a8] sm:$0xf0]  ;;  %v8810_v1 = vld [vmem:[#allocation5 + $0x188] sm:$0xf] }
 0x87c   : > { %v5342_v6 = vrot.slane %v5337_v49, 4  ;;  %v5675_v60 = vpop.permute.xlu1 %5674  ;;  %v8774_v57 = vld [vmem:[#allocation5 + $0x140] sm:$0xf]  ;;  %v8738_v48 = vld [vmem:[#allocation5 + $0xf8] sm:$0xf] }
 0x87d   : > { %7112 = vmatpush.bf16.msrb.mxu2 %v8607_v61  ;;  %7125 = vmatpush.bf16.msrb.mxu3 %v8611_v63  ;;  %v5680_v4 = vrot.slane %v5675_v60, 4  ;;  %v9305_v61 = vld [vmem:[%s14223_s4 + $0x38] sm:$0xff] }
 0x87e   : > { %v5350_v55 = vsel %vm460_vm2, %v5341_v27, %v5342_v6  ;;  %v5352_v19 = vsel %vm5344_vm5, %v5337_v49, %v5342_v6  ;;  %v8686_v27 = vld [vmem:[#allocation5 + $0xa0] sm:$0xf]  ;;  %7135 = vmatpush.bf16.msrb.mxu0 %v8723_v2  ;;  %7149 = vmatpush.bf16.msra.mxu1 %v8691_v40  ;;  %v9278_v49 = vld [vmem:[#allocation5 + $0x110] sm:$0xf0] }
 0x87f   : > { %v5351_v52 = vsel %vm5344_vm5, %v13912_v24, %v5350_v55  ;;  %5362 = vst [vmem:[#allocation5 + $0x20] sm:$0x3] %v5352_v19  ;;  %v9292_v24 = vld [vmem:[#allocation5 + $0x184] sm:$0xf]  ;;  %v8687_v11 = vor.u32 %v9268_v28, %v8686_v27  ;;  %v5688_v58 = vsel %vm460_vm2, %v14685_v9, %v5680_v4  ;;  %vm14686_vm5 = vcmask 105472   ;;  %v9312_v9 = vld [vmem:[%s14223_s4 + $0x70] sm:$0xff] }
 0x880   : > { %5361 = vst [vmem:[#allocation5 + $0x18] sm:$0x33] %v5351_v52  ;;  %8814 = vmatmul.msk.bf16.vlgmr.msrb.gmra.mxu2 %vm7048_vm10, %v13882_v34  ;;  %v8807_v30 = vor.u32 %v9292_v24, %v8804_v31  ;;  %8815 = vmatmul.msk.bf16.vlgmr.msrb.gmra.mxu3 %vm7048_vm10, %v13882_v34  ;;  %v5690_v41 = vsel %vm14686_vm5, %v5675_v60, %v5680_v4  ;;  %vm14687_vm14 = vmmov %vm14686_vm5  ;;  %v9250_v37 = vld [vmem:[#allocation5 + $0x30] sm:$0xf0]  ;;  %v8616_v45 = vld [vmem:[#allocation5 + $0x34] sm:$0xf0] }
 0x881   : > { %7158 = vmatpush.bf16.msra.mxu2 %v7071_v21  ;;  %7171 = vmatpush.bf16.msra.mxu3 %v7074_v0  ;;  %v5689_v3 = vsel %vm14687_vm14, %v13462_v5, %v5688_v58  ;;  %5700 = vst [vmem:[#allocation5 + $0x8c] sm:$0x3] %v5690_v41  ;;  %v8614_v5 = vld [vmem:[#allocation5 + $0x10] sm:$0xf]  ;;  %v8731_v6 = vor.u32 %v9278_v49, %v8730_v35  ;;  %v9265_v0 = vld [vmem:[#allocation5 + $0xac] sm:$0xf] }
 0x882   : > { %7136 = vmatpush.bf16.msrb.mxu0 %v8687_v11  ;;  %5699 = vst [vmem:[#allocation5 + $0x84] sm:$0x33] %v5689_v3  ;;  %7150 = vmatpush.bf16.msra.mxu1 %v8655_v32  ;;  %v8615_v2 = vor.u32 %v9250_v37, %v8614_v5  ;;  %v8619_v16 = vor.u32 %v9246_v51, %v8616_v45  ;;  %v8696_v55 = vld [vmem:[#allocation5 + $0xcc] sm:$0xf0]  ;;  %v9304_v31 = vld [vmem:[%s14223_s4 + $0x30] sm:$0xff]  ;;  %v9313_v40 = vld [vmem:[%s14223_s4 + $0x78] sm:$0xff] }
 0x883   : > { %v5507_v38 = vpop.permute.xlu0 %5506  ;;  %v8695_v21 = vor.u32 %v9269_v42, %v8694_v25  ;;  %v8699_v28 = vor.u32 %v9265_v0, %v8696_v55  ;;  %v8658_v24 = vld [vmem:[#allocation5 + $0x60] sm:$0xf]  ;;  %v9279_v11 = vld [vmem:[#allocation5 + $0x118] sm:$0xf0]  ;;  %v8702_v58 = vld [vmem:[#allocation5 + $0xb0] sm:$0xf] }
 0x884   : > { %v5512_v56 = vrot.slane %v5507_v38, 4  ;;  %v5394_v63 = vpop.permute.xlu1 %5393  ;;  %v9321_v39 = vld [vmem:[%s14223_s4 + $0xb8] sm:$0xff]  ;;  %v9311_v3 = vld [vmem:[%s14223_s4 + $0x68] sm:$0xff]  ;;  %v9298_v51 = vld [vmem:[%s14223_s4] sm:$0xff] }
 0x885   : > { %7159 = vmatpush.bf16.msra.mxu2 %v8803_v54  ;;  %7172 = vmatpush.bf16.msra.mxu3 %v8807_v30  ;;  %v5399_v33 = vrot.slane %v5394_v63, 4  ;;  %v9288_v54 = vld [vmem:[#allocation5 + $0x160] sm:$0xf0]  ;;  %v9319_v32 = vld [vmem:[%s14223_s4 + $0xa8] sm:$0xff]  ;;  %v9336_v42 = vld [vmem:[%s14223_s4 + $0x130] sm:$0xff] }
 0x886   : > { %v5520_v62 = vsel %vm460_vm2, %v5511_v20, %v5512_v56  ;;  %v5522_v18 = vsel %vm5514_vm6, %v5507_v38, %v5512_v56  ;;  %7137 = vmatpush.bf16.msrb.mxu0 %v8651_v12  ;;  %v6993_v20 = vpack.c.b16 %v6930_v8, %v6930_v8  ;;  %7151 = vmatpush.bf16.msra.mxu1 %v8619_v16  ;;  %v9270_v8 = vld [vmem:[#allocation5 + $0xd0] sm:$0xf0]  ;;  %v9301_v41 = vld [vmem:[%s14223_s4 + $0x18] sm:$0xff]  ;;  %v9316_v0 = vld [vmem:[%s14223_s4 + $0x90] sm:$0xff] }
 0x887   : > { %v5521_v15 = vsel %vm5514_vm6, %v13930_v53, %v5520_v62  ;;  %5532 = vst [vmem:[#allocation5 + $0x44] sm:$0xc] %v5522_v18  ;;  %v8735_v53 = vor.u32 %v9274_v29, %v8732_v14  ;;  %vm14688_vm6 = vmmov %vm14668_vm1  ;;  %v5407_v23 = vsel %vm460_vm2, %v5398_v13, %v5399_v33  ;;  %v5409_v52 = vsel %vm5401_vm0, %v5394_v63, %v5399_v33  ;;  %v9320_v62 = vld [vmem:[%s14223_s4 + $0xb0] sm:$0xff]  ;;  %v9310_v14 = vld [vmem:[%s14223_s4 + $0x60] sm:$0xff] }
 0x888   : > { %5531 = vst [vmem:[#allocation5 + $0x3c] sm:$0xcc] %v5521_v15  ;;  %v7077_v19 = vsel %vm14688_vm6, %v6993_v20, 0  ;;  %v5408_v27 = vsel %vm5401_vm0, %v13829_v59, %v5407_v23  ;;  %v8811_v13 = vor.u32 %v9297_v46, %v8810_v1  ;;  %v9256_v59 = vld [vmem:[#allocation5 + $0x64] sm:$0xf]  ;;  %v8775_v60 = vor.u32 %v9288_v54, %v8774_v57  ;;  %v9300_v18 = vld [vmem:[%s14223_s4 + $0x10] sm:$0xff] }
 0x889   : > { %7160 = vmatpush.bf16.msra.mxu2 %v8767_v47  ;;  %7173 = vmatpush.bf16.msra.mxu3 %v8771_v26  ;;  %5419 = vst [vmem:[#allocation5 + $0x20] sm:$0xc] %v5409_v52  ;;  %v9260_v43 = vld [vmem:[#allocation5 + $0x80] sm:$0xf0]  ;;  %v8660_v17 = vld [vmem:[#allocation5 + $0x84] sm:$0xf0]  ;;  %v8739_v12 = vor.u32 %v9279_v11, %v8738_v48  ;;  %v8703_v26 = vor.u32 %v9270_v8, %v8702_v58 }
 0x88a   : > { %7138 = vmatpush.bf16.msrb.mxu0 %v8615_v2  ;;  %7815 = vmatpush.bf16.msrb.mxu1 %v9305_v61  ;;  %5418 = vst [vmem:[#allocation5 + $0x18] sm:$0xcc] %v5408_v27  ;;  %v8659_v30 = vor.u32 %v9260_v43, %v8658_v24  ;;  %v8663_v7 = vor.u32 %v9256_v59, %v8660_v17  ;;  %v9302_v47 = vld [vmem:[%s14223_s4 + $0x20] sm:$0xff]  ;;  %v9329_v45 = vld [vmem:[%s14223_s4 + $0xf8] sm:$0xff]  ;;  %v9299_v29 = vld [vmem:[%s14223_s4 + $0x8] sm:$0xff] }
 0x88b   : > { %8817 = vmatmul.msk.bf16.vlgmr.msra.gmra.mxu1 %vm7048_vm10, %v13882_v34  ;;  %v9261_v50 = vld [vmem:[#allocation5 + $0x88] sm:$0xf0]  ;;  %v8666_v15 = vld [vmem:[#allocation5 + $0x68] sm:$0xf]  ;;  %v9308_v2 = vld [vmem:[%s14223_s4 + $0x50] sm:$0xff] }
 0x88c   : > { %v8667_v35 = vor.u32 %v9261_v50, %v8666_v15  ;;  %v9318_v20 = vld [vmem:[%s14223_s4 + $0xa0] sm:$0xff]  ;;  %v9337_v61 = vld [vmem:[%s14223_s4 + $0x138] sm:$0xff]  ;;  %v9327_v16 = vld [vmem:[%s14223_s4 + $0xe8] sm:$0xff] }
 0x88d   : > { %7161 = vmatpush.bf16.msra.mxu2 %v8731_v6  ;;  %7174 = vmatpush.bf16.msra.mxu3 %v8735_v53  ;;  %v9309_v6 = vld [vmem:[%s14223_s4 + $0x58] sm:$0xff]  ;;  %v9328_v53 = vld [vmem:[%s14223_s4 + $0xf0] sm:$0xff]  ;;  %v9326_v33 = vld [vmem:[%s14223_s4 + $0xe0] sm:$0xff] }
 0x88e   : > { %7184 = vmatpush.bf16.msra.mxu0 %v7077_v19  ;;  %7816 = vmatpush.bf16.msrb.mxu1 %v9304_v31  ;;  %v9252_v37 = vld [vmem:[#allocation5 + $0x40] sm:$0xf0]  ;;  %v9335_v55 = vld [vmem:[%s14223_s4 + $0x128] sm:$0xff]  ;;  %v9306_v19 = vld [vmem:[%s14223_s4 + $0x40] sm:$0xff] }
 0x88f   : > { %8816 = vmatmul.msk.bf16.vlgmr.msrb.gmra.mxu0 %vm7048_vm10, %v13882_v34  ;;  %v9251_v38 = vld [vmem:[#allocation5 + $0x38] sm:$0xf0]  ;;  %v8624_v4 = vld [vmem:[#allocation5 + $0x3c] sm:$0xf0]  ;;  %v9334_v23 = vld [vmem:[%s14223_s4 + $0x120] sm:$0xff] }
 0x890   : > { %v8630_v49 = vld [vmem:[#allocation5 + $0x20] sm:$0xf]  ;;  %v9315_v1 = vld [vmem:[%s14223_s4 + $0x88] sm:$0xff]  ;;  %v9358_v50 = vld [vmem:[%s14223_s4 + $0x1e0] sm:$0xff] }
 0x891   : > { %7162 = vmatpush.bf16.msra.mxu2 %v8695_v21  ;;  %7175 = vmatpush.bf16.msra.mxu3 %v8699_v28  ;;  %v8622_v44 = vld [vmem:[#allocation5 + $0x18] sm:$0xf]  ;;  %v9247_v36 = vld [vmem:[#allocation5 + $0x1c] sm:$0xf]  ;;  %v8631_v5 = vor.u32 %v9252_v37, %v8630_v49  ;;  %v9317_v63 = vld [vmem:[%s14223_s4 + $0x98] sm:$0xff] }
 0x892   : > { %7185 = vmatpush.bf16.msra.mxu0 %v8811_v13  ;;  %7817 = vmatpush.bf16.msrb.mxu1 %v9303_v22  ;;  %v8623_v56 = vor.u32 %v9251_v38, %v8622_v44  ;;  %v8627_v10 = vor.u32 %v9247_v36, %v8624_v4  ;;  %v9345_v25 = vld [vmem:[%s14223_s4 + $0x178] sm:$0xff]  ;;  %v9344_v52 = vld [vmem:[%s14223_s4 + $0x170] sm:$0xff]  ;;  %v9343_v21 = vld [vmem:[%s14223_s4 + $0x168] sm:$0xff] }
 0x893   : > { %v9325_v46 = vld [vmem:[%s14223_s4 + $0xd8] sm:$0xff]  ;;  %v9324_v31 = vld [vmem:[%s14223_s4 + $0xd0] sm:$0xff]  ;;  %v9342_v28 = vld [vmem:[%s14223_s4 + $0x160] sm:$0xff] }
 0x894   : > { %v9333_v27 = vld [vmem:[%s14223_s4 + $0x118] sm:$0xff]  ;;  %v9323_v43 = vld [vmem:[%s14223_s4 + $0xc8] sm:$0xff]  ;;  %v9332_v13 = vld [vmem:[%s14223_s4 + $0x110] sm:$0xff] }
 0x895   : > { %7163 = vmatpush.bf16.msra.mxu2 %v8659_v30  ;;  %7176 = vmatpush.bf16.msra.mxu3 %v8663_v7  ;;  %v9341_v17 = vld [vmem:[%s14223_s4 + $0x158] sm:$0xff]  ;;  %v9322_v38 = vld [vmem:[%s14223_s4 + $0xc0] sm:$0xff]  ;;  %v9331_v44 = vld [vmem:[%s14223_s4 + $0x108] sm:$0xff] }
 0x896   : > { %7186 = vmatpush.bf16.msra.mxu0 %v8775_v60  ;;  %7818 = vmatpush.bf16.msrb.mxu1 %v9302_v47  ;;  %v9314_v60 = vld [vmem:[%s14223_s4 + $0x80] sm:$0xff]  ;;  %v9353_v11 = vld [vmem:[%s14223_s4 + $0x1b8] sm:$0xff]  ;;  %v9340_v36 = vld [vmem:[%s14223_s4 + $0x150] sm:$0xff] }
 0x897   : > { %v9369_v8 = vld [vmem:[%s14223_s4 + $0x238] sm:$0xff]  ;;  %v9359_v58 = vld [vmem:[%s14223_s4 + $0x1e8] sm:$0xff]  ;;  %v9356_v49 = vld [vmem:[%s14223_s4 + $0x1d0] sm:$0xff] }
 0x898   : > { %v9349_v15 = vld [vmem:[%s14223_s4 + $0x198] sm:$0xff]  ;;  %v9347_v37 = vld [vmem:[%s14223_s4 + $0x188] sm:$0xff] }
 0x899   : > { %7164 = vmatpush.bf16.msra.mxu2 %v8623_v56  ;;  %7177 = vmatpush.bf16.msra.mxu3 %v8627_v10  ;;  %v9352_v56 = vld [vmem:[%s14223_s4 + $0x1b0] sm:$0xff] }
 0x89a   : > { %7187 = vmatpush.bf16.msra.mxu0 %v8739_v12  ;;  %7819 = vmatpush.bf16.msrb.mxu1 %v9301_v41  ;;  %v9360_v10 = vld [vmem:[%s14223_s4 + $0x1f0] sm:$0xff]  ;;  %v9339_v12 = vld [vmem:[%s14223_s4 + $0x148] sm:$0xff]  ;;  %v9338_v41 = vld [vmem:[%s14223_s4 + $0x140] sm:$0xff] }
 0x89c   : > { %8818 = vmatmul.msk.bf16.vlgmr.msra.gmra.mxu2 %vm7048_vm10, %v13882_v34  ;;  %8819 = vmatmul.msk.bf16.vlgmr.msra.gmra.mxu3 %vm7048_vm10, %v13882_v34 }
 0x89d   : > { %7828 = vmatpush.bf16.msrb.mxu2 %v9313_v40  ;;  %7841 = vmatpush.bf16.msrb.mxu3 %v9321_v39  ;;  %v9361_v40 = vld [vmem:[%s14223_s4 + $0x1f8] sm:$0xff]  ;;  %v9330_v39 = vld [vmem:[%s14223_s4 + $0x100] sm:$0xff] }
 0x89e   : > { %7188 = vmatpush.bf16.msra.mxu0 %v8703_v26  ;;  %7820 = vmatpush.bf16.msrb.mxu1 %v9300_v18  ;;  %v9350_v26 = vld [vmem:[%s14223_s4 + $0x1a0] sm:$0xff]  ;;  %v9357_v18 = vld [vmem:[%s14223_s4 + $0x1d8] sm:$0xff] }
 0x8a1   : > { %7829 = vmatpush.bf16.msrb.mxu2 %v9312_v9  ;;  %7842 = vmatpush.bf16.msrb.mxu3 %v9320_v62  ;;  %v9351_v9 = vld [vmem:[%s14223_s4 + $0x1a8] sm:$0xff]  ;;  %v9368_v62 = vld [vmem:[%s14223_s4 + $0x230] sm:$0xff] }
 0x8a2   : > { %7189 = vmatpush.bf16.msra.mxu0 %v8667_v35  ;;  %7821 = vmatpush.bf16.msrb.mxu1 %v9299_v29  ;;  %v9348_v35 = vld [vmem:[%s14223_s4 + $0x190] sm:$0xff] }
 0x8a5   : > { %7830 = vmatpush.bf16.msrb.mxu2 %v9311_v3  ;;  %7843 = vmatpush.bf16.msrb.mxu3 %v9319_v32  ;;  %v9367_v3 = vld [vmem:[%s14223_s4 + $0x228] sm:$0xff]  ;;  %v9366_v32 = vld [vmem:[%s14223_s4 + $0x220] sm:$0xff] }
 0x8a6   : > { %7190 = vmatpush.bf16.msra.mxu0 %v8631_v5  ;;  %7822 = vmatpush.bf16.msrb.mxu1 %v9298_v51 }
 0x8a9   : > { %7831 = vmatpush.bf16.msrb.mxu2 %v9310_v14  ;;  %7844 = vmatpush.bf16.msrb.mxu3 %v9318_v20  ;;  %v9365_v14 = vld [vmem:[%s14223_s4 + $0x218] sm:$0xff]  ;;  %v9364_v20 = vld [vmem:[%s14223_s4 + $0x210] sm:$0xff] }
 0x8aa   : > { %7854 = vmatpush.bf16.msrb.mxu0 %v9329_v45  ;;  %7867 = vmatpush.bf16.msra.mxu1 %v9337_v61  ;;  %v9355_v45 = vld [vmem:[%s14223_s4 + $0x1c8] sm:$0xff] }
 0x8ab   : > { %8820 = vmatmul.msk.bf16.vlgmr.msra.gmra.mxu0 %vm7048_vm10, %v13882_v34  ;;  %v9307_v34 = vld [vmem:[%s14223_s4 + $0x48] sm:$0xff] }
 0x8ad   : > { %7832 = vmatpush.bf16.msrb.mxu2 %v9309_v6  ;;  %7845 = vmatpush.bf16.msrb.mxu3 %v9317_v63  ;;  %v9346_v6 = vld [vmem:[%s14223_s4 + $0x180] sm:$0xff]  ;;  %v9363_v63 = vld [vmem:[%s14223_s4 + $0x208] sm:$0xff] }
 0x8ae   : > { %7855 = vmatpush.bf16.msrb.mxu0 %v9328_v53  ;;  %7868 = vmatpush.bf16.msra.mxu1 %v9336_v42  ;;  %v9354_v53 = vld [vmem:[%s14223_s4 + $0x1c0] sm:$0xff] }
 0x8b1   : > { %7833 = vmatpush.bf16.msrb.mxu2 %v9308_v2  ;;  %7846 = vmatpush.bf16.msrb.mxu3 %v9316_v0 }
 0x8b2   : > { %7856 = vmatpush.bf16.msrb.mxu0 %v9327_v16  ;;  %7869 = vmatpush.bf16.msra.mxu1 %v9335_v55 }
 0x8b5   : > { %7834 = vmatpush.bf16.msrb.mxu2 %v9307_v34  ;;  %7847 = vmatpush.bf16.msrb.mxu3 %v9315_v1 }
 0x8b6   : > { %7857 = vmatpush.bf16.msrb.mxu0 %v9326_v33  ;;  %7870 = vmatpush.bf16.msra.mxu1 %v9334_v23  ;;  %v9362_v33 = vld [vmem:[%s14223_s4 + $0x200] sm:$0xff] }
 0x8b9   : > { %7835 = vmatpush.bf16.msrb.mxu2 %v9306_v19  ;;  %7848 = vmatpush.bf16.msrb.mxu3 %v9314_v60 }
 0x8ba   : > { %7858 = vmatpush.bf16.msrb.mxu0 %v9325_v46  ;;  %7871 = vmatpush.bf16.msra.mxu1 %v9333_v27 }
 0x8bd   : > { %7880 = vmatpush.bf16.msra.mxu2 %v9345_v25  ;;  %7893 = vmatpush.bf16.msra.mxu3 %v9353_v11 }
 0x8be   : > { %7859 = vmatpush.bf16.msrb.mxu0 %v9324_v31  ;;  %7872 = vmatpush.bf16.msra.mxu1 %v9332_v13 }
 0x8c1   : > { %7881 = vmatpush.bf16.msra.mxu2 %v9344_v52  ;;  %7894 = vmatpush.bf16.msra.mxu3 %v9352_v56 }
 0x8c2   : > { %7860 = vmatpush.bf16.msrb.mxu0 %v9323_v43  ;;  %7873 = vmatpush.bf16.msra.mxu1 %v9331_v44 }
 0x8c5   : > { %7882 = vmatpush.bf16.msra.mxu2 %v9343_v21  ;;  %7895 = vmatpush.bf16.msra.mxu3 %v9351_v9 }
 0x8c6   : > { %7861 = vmatpush.bf16.msrb.mxu0 %v9322_v38  ;;  %7874 = vmatpush.bf16.msra.mxu1 %v9330_v39 }
 0x8c9   : > { %7883 = vmatpush.bf16.msra.mxu2 %v9342_v28  ;;  %7896 = vmatpush.bf16.msra.mxu3 %v9350_v26 }
 0x8ca   : > { %7906 = vmatpush.bf16.msra.mxu0 %v9361_v40 }
 0x8cd   : > { %7884 = vmatpush.bf16.msra.mxu2 %v9341_v17  ;;  %7897 = vmatpush.bf16.msra.mxu3 %v9349_v15 }
 0x8ce   : > { %7907 = vmatpush.bf16.msra.mxu0 %v9360_v10 }
 0x8d1   : > { %7885 = vmatpush.bf16.msra.mxu2 %v9340_v36  ;;  %7898 = vmatpush.bf16.msra.mxu3 %v9348_v35 }
 0x8d2   : > { %7908 = vmatpush.bf16.msra.mxu0 %v9359_v58 }
 0x8d5   : > { %7886 = vmatpush.bf16.msra.mxu2 %v9339_v12  ;;  %7899 = vmatpush.bf16.msra.mxu3 %v9347_v37 }
 0x8d6   : > { %7909 = vmatpush.bf16.msra.mxu0 %v9358_v50 }
 0x8d9   : > { %7887 = vmatpush.bf16.msra.mxu2 %v9338_v41  ;;  %7900 = vmatpush.bf16.msra.mxu3 %v9346_v6 }
 0x8da   : > { %7910 = vmatpush.bf16.msra.mxu0 %v9357_v18 }
 0x8de   : > { %7911 = vmatpush.bf16.msra.mxu0 %v9356_v49 }
 0x8e1   : > { %v7101_v24 = vpop.f32.mrf.mxu1  ;;  %v7088_v54 = vpop.f32.mrf.mxu0 }
 0x8e2   : > { %v7197_v30 = vmax.f32 %v7101_v24, 0.0  ;;  %v7196_v59 = vmax.f32 %v7088_v54, 0.0  ;;  %7912 = vmatpush.bf16.msra.mxu0 %v9355_v45 }
 0x8e4   : > { %v7213_v22 = vrot.slane %v7197_v30, 4  ;;  %v7231_v7 = vpack.c.bf16 %v7197_v30, %v7197_v30  ;;  %v7230_v57 = vpack.c.bf16 %v7196_v59, %v7196_v59 }
 0x8e6   : > { %v7217_v4 = vsel %vm460_vm2, %v7196_v59, %v7213_v22  ;;  %7836 = vmatmul.bf16.vlgmr.msrb.gmra.mxu2 %v7231_v7  ;;  %7823 = vmatmul.bf16.vlgmr.msrb.gmra.mxu1 %v7230_v57 }
 0x8e7   : > { %7225 = vst [vmem:[%s14117_s7] sm:$0x77] %v7217_v4  ;;  %7919 = vmatpush.bf16.msrb.mxu1 %v9369_v8  ;;  %7913 = vmatpush.bf16.msra.mxu0 %v9354_v53 }
 0x8e9   : > { %v7103_v48 = vpop.f32.mrf.mxu1  ;;  %v7090_v47 = vpop.f32.mrf.mxu0 }
 0x8eb   : > { %7920 = vmatpush.bf16.msrb.mxu1 %v9368_v62 }
 0x8ef   : > { %7921 = vmatpush.bf16.msrb.mxu1 %v9367_v3 }
 0x8f3   : > { %7922 = vmatpush.bf16.msrb.mxu1 %v9366_v32 }
 0x8f7   : > { %7923 = vmatpush.bf16.msrb.mxu1 %v9365_v14 }
 0x8fb   : > { %7924 = vmatpush.bf16.msrb.mxu1 %v9364_v20 }
 0x8ff   : > { %7925 = vmatpush.bf16.msrb.mxu1 %v9363_v63 }
 0x903   : > { %v7114_v29 = vpop.f32.mrf.mxu2  ;;  %v7127_v5 = vpop.f32.mrf.mxu3  ;;  %7926 = vmatpush.bf16.msrb.mxu1 %v9362_v33 }
 0x904   : > { %v7198_v51 = vmax.f32 %v7114_v29, 0.0  ;;  %v7199_v61 = vmax.f32 %v7127_v5, 0.0 }
 0x906   : > { %v7232_v2 = vpack.c.bf16 %v7198_v51, %v7198_v51  ;;  %v7214_v16 = vrot.slane %v7199_v61, 4  ;;  %v7233_v42 = vpack.c.bf16 %v7199_v61, %v7199_v61 }
 0x908   : > { %7849 = vmatmul.bf16.vlgmr.msrb.gmra.mxu3 %v7232_v2  ;;  %v7218_v34 = vsel %vm460_vm2, %v7198_v51, %v7214_v16  ;;  %7862 = vmatmul.bf16.vlgmr.msrb.gmra.mxu0 %v7233_v42  ;;  %v7153_v55 = vpop.f32.mrf.mxu1 }
 0x909   : > { %7226 = vst [vmem:[%s14117_s7 + $0x8] sm:$0x77] %v7218_v34  ;;  %v7201_v25 = vmax.f32 %v7153_v55, 0.0 }
 0x90b   : > { %v7116_v19 = vpop.f32.mrf.mxu2  ;;  %v7129_v23 = vpop.f32.mrf.mxu3  ;;  %v7215_v21 = vrot.slane %v7201_v25, 4  ;;  %v7235_v0 = vpack.c.bf16 %v7201_v25, %v7201_v25 }
 0x90c   : > { %v7140_v46 = vpop.f32.mrf.mxu0 }
 0x90d   : > { %v7200_v52 = vmax.f32 %v7140_v46, 0.0  ;;  %7888 = vmatmul.bf16.vlgmr.msra.gmra.mxu2 %v7235_v0 }
 0x90f   : > { %v7234_v31 = vpack.c.bf16 %v7200_v52, %v7200_v52  ;;  %v7219_v27 = vsel %vm460_vm2, %v7200_v52, %v7215_v21 }
 0x910   : > { %7227 = vst [vmem:[%s14117_s7 + $0x10] sm:$0x77] %v7219_v27  ;;  %v7155_v28 = vpop.f32.mrf.mxu1 }
 0x911   : > { %7875 = vmatmul.bf16.vlgmr.msra.gmra.mxu1 %v7234_v31 }
 0x914   : > { %v7142_v1 = vpop.f32.mrf.mxu0 }
 0x91f   : > { %v7166_v43 = vpop.f32.mrf.mxu2  ;;  %v7179_v13 = vpop.f32.mrf.mxu3 }
 0x920   : > { %v7202_v17 = vmax.f32 %v7166_v43, 0.0  ;;  %v7203_v24 = vmax.f32 %v7179_v13, 0.0 }
 0x922   : > { %v7236_v54 = vpack.c.bf16 %v7202_v17, %v7202_v17  ;;  %v7216_v30 = vrot.slane %v7203_v24, 4  ;;  %v7237_v59 = vpack.c.bf16 %v7203_v24, %v7203_v24 }
 0x924   : > { %v7220_v22 = vsel %vm460_vm2, %v7202_v17, %v7216_v30  ;;  %7901 = vmatmul.bf16.vlgmr.msra.gmra.mxu3 %v7236_v54  ;;  %7914 = vmatmul.bf16.vlgmr.msra.gmra.mxu0 %v7237_v59 }
 0x925   : > { %7228 = vst [vmem:[%s14117_s7 + $0x18] sm:$0x77] %v7220_v22 }
 0x927   : > { %v7168_v60 = vpop.f32.mrf.mxu2  ;;  %v7181_v38 = vpop.f32.mrf.mxu3 }
 0x928   : > { %v7192_v7 = vpop.f32.mrf.mxu0 }
 0x929   : > { %v7204_v57 = vmax.f32 %v7192_v7, 0.0 }
 0x92b   : > { %7229 = vst [vmem:[%s14117_s7 + $0x20] sm:$0x7] %v7204_v57  ;;  %v7238_v11 = vpack.c.bf16 %v7204_v57, %v7204_v57  ;;  %s8027_s7 = sshll.u32 %s14692_s22, 2 }
 0x92c   : > { %s264_s16 = scalar_lea.vmem %s14225_s6, %s8027_s7 }
 0x92d   : > { %7927 = vmatmul.bf16.vlgmr.msrb.gmra.mxu1 %v7238_v11 }
 0x930   : > { %v7194_v40 = vpop.f32.mrf.mxu0 }
 0x963   : > { %v7824_v44 = vpop.f32.mrf.mxu1 }
 0x969   : > { %v7837_v36 = vpop.f32.mrf.mxu2 }
 0x96a   : > { %v7838_v58 = vadd.f32 %v7837_v36, %v7824_v44 }
 0x96b   : > { %v7826_v4 = vpop.f32.mrf.mxu1 }
 0x971   : > { %v7839_v56 = vpop.f32.mrf.mxu2 }
 0x985   : > { %v7863_v10 = vpop.f32.mrf.mxu0 }
 0x98b   : > { %v7850_v48 = vpop.f32.mrf.mxu3 }
 0x98c   : > { %v7851_v41 = vadd.f32 %v7850_v48, %v7838_v58 }
 0x98d   : > { %v7865_v47 = vpop.f32.mrf.mxu0 }
 0x98e   : > { %v7876_v39 = vpop.f32.mrf.mxu1  ;;  %v7864_v26 = vadd.f32 %v7863_v10, %v7851_v41 }
 0x990   : > { %v7889_v12 = vpop.f32.mrf.mxu2  ;;  %v7877_v3 = vadd.f32 %v7876_v39, %v7864_v26 }
 0x992   : > { %v7890_v15 = vadd.f32 %v7889_v12, %v7877_v3 }
 0x993   : > { %v7852_v8 = vpop.f32.mrf.mxu3 }
 0x996   : > { %v7878_v9 = vpop.f32.mrf.mxu1 }
 0x998   : > { %v7891_v62 = vpop.f32.mrf.mxu2 }
 0x9a1   : > { %v7915_v50 = vpop.f32.mrf.mxu0 }
 0x9a7   : > { %v7902_v18 = vpop.f32.mrf.mxu3 }
 0x9a8   : > { %v7903_v32 = vadd.f32 %v7902_v18, %v7890_v15 }
 0x9a9   : > { %v7917_v49 = vpop.f32.mrf.mxu0 }
 0x9aa   : > { %v7928_v35 = vpop.f32.mrf.mxu1  ;;  %v7916_v14 = vadd.f32 %v7915_v50, %v7903_v32 }
 0x9ac   : > { %v7929_v37 = vadd.f32 %v7928_v35, %v7916_v14 }
 0x9ae   : > { %7932 = vst [vmem:[%s264_s16] sm:$0x7] %v7929_v37 }
 0x9af   : > { %v7904_v45 = vpop.f32.mrf.mxu3 }
 0x9b2   : > { %v7930_v29 = vpop.f32.mrf.mxu1 }
 0x9b3 PF: > { %s17_s21 = sadd.s32 1, %s9437_s21  }
 0x9b4   : > { %p14_p5 = scmp.ge.s32.totalorder %s17_s21, 4  }
 0x9b6   :  { %16 = sbr.rel (!%p14_p5) target bundleno = 1 (0x1), region = 198 }

</bundles_post_ra>
